<compile_context>
chip_gen: v6e
topology: v6e:2x2x1
jax: 0.10.0
libtpu: 0.0.40
codegen_flags: <defaults>
</compile_context>

<pallas_src>
import jax
import jax.numpy as jnp
from jax.experimental import pallas as pl
from jax.experimental.pallas import tpu as pltpu

LANE = 128
NEG_SLOPE = 0.2


def _leaky(y):
    # mul + max instead of mul + cmp + select.
    return jnp.maximum(y, NEG_SLOPE * y)


# ------------------------------ Pallas kernels ------------------------------

def _gemm_lrelu_1k_kernel(a_ref, b_ref, bias_ref, o_ref):
    """Single-K-step layer: o = leaky_relu(a @ b + bias); no accumulator."""
    y = jnp.dot(a_ref[...], b_ref[...], preferred_element_type=jnp.float32)
    o_ref[...] = _leaky(y + bias_ref[...]).astype(o_ref.dtype)


def _gemm_lrelu_acc_kernel(a_ref, b_ref, bias_ref, o_ref, acc_ref):
    """Multi-K-step layer with a f32 VMEM accumulator (only built when gk > 1)."""
    @pl.when(pl.program_id(2) == 0)
    def _():
        acc_ref[...] = jnp.zeros_like(acc_ref)

    acc_ref[...] += jnp.dot(a_ref[...], b_ref[...],
                            preferred_element_type=jnp.float32)

    @pl.when(pl.program_id(2) == pl.num_programs(2) - 1)
    def _():
        o_ref[...] = _leaky(acc_ref[...] + bias_ref[...]).astype(o_ref.dtype)


def _head_finalize(y, w5_ref, o_ref):
    # conv5 is a 4x4 valid conv over the 4x4 conv4 map == one dot per sample,
    # followed by sigmoid.  y: [16, Cp] f32 = this sample's conv4 activation.
    logit = jnp.sum(y * w5_ref[...], keepdims=True)            # (1, 1)
    sig = 1.0 / (1.0 + jnp.exp(-logit))                        # sigmoid
    o_ref[...] = jnp.broadcast_to(sig.reshape(1, 1, 1), o_ref.shape)


def _head_1k_kernel(a_ref, b_ref, bias_ref, w5_ref, o_ref):
    y = jnp.dot(a_ref[...], b_ref[...], preferred_element_type=jnp.float32)
    _head_finalize(_leaky(y + bias_ref[...]), w5_ref, o_ref)


def _head_acc_kernel(a_ref, b_ref, bias_ref, w5_ref, o_ref, acc_ref):
    @pl.when(pl.program_id(1) == 0)
    def _():
        acc_ref[...] = jnp.zeros_like(acc_ref)

    acc_ref[...] += jnp.dot(a_ref[...], b_ref[...],
                            preferred_element_type=jnp.float32)

    @pl.when(pl.program_id(1) == pl.num_programs(1) - 1)
    def _():
        _head_finalize(_leaky(acc_ref[...] + bias_ref[...]), w5_ref, o_ref)


# ------------------------------ tiling helpers ------------------------------

def _largest_tile(total, cap, mult):
    """Largest divisor of `total` that is <= cap and a multiple of `mult`."""
    t = min(total, (cap // mult) * mult)
    while t >= mult:
        if total % t == 0:
            return t
        t -= mult
    return total


def _choose_tm(M, tk, elem_bytes=2, max_a_block_bytes=4 << 20):
    """Prefer >=2 sublane-aligned M blocks (v7x megacore); cap A-block VMEM."""
    if M < 16:
        return M
    cap = max(8, min(1024, max_a_block_bytes // (tk * elem_bytes)))
    return _largest_tile(M, min(cap, M // 2), 8)


def _vmem_limit(est_bytes):
    return int(min(max(2 * est_bytes, 16 << 20), 48 << 20))


# --------------------------- fused GEMM wrappers ---------------------------

def fused_gemm_lrelu(a, b, bias):
    """leaky_relu(a @ b + bias).
    a: [M, K] bf16 patches (K multiple of 128),
    b: [K, Np] bf16 (BN scale folded, zero pad rows/cols, Np multiple of 128),
    bias: [1, Np] f32 (zero pad entries).
    Returns [M, Np] bf16; pad columns are exactly zero (carried to next layer).
    """
    M, K = a.shape
    Kb, Np = b.shape
    assert K == Kb and K % LANE == 0 and Np % LANE == 0

    tk = _largest_tile(K, 4096, LANE)
    tn = _largest_tile(Np, 512, LANE)
    tm = _choose_tm(M, tk)
    gm, gn, gk = M // tm, Np // tn, K // tk

    est = 2 * (2 * tm * tk + 2 * tk * tn + 4 * tn + 2 * tm * tn)
    est += 4 * tm * tn if gk > 1 else 0

    if gk == 1:
        return pl.pallas_call(
            _gemm_lrelu_1k_kernel,
            out_shape=jax.ShapeDtypeStruct((M, Np), jnp.bfloat16),
            grid_spec=pltpu.PrefetchScalarGridSpec(
                num_scalar_prefetch=0,
                grid=(gm, gn),
                in_specs=[
                    pl.BlockSpec((tm, tk), lambda i, j: (i, 0)),
                    pl.BlockSpec((tk, tn), lambda i, j: (0, j)),
                    pl.BlockSpec((1, tn), lambda i, j: (0, j)),
                ],
                out_specs=pl.BlockSpec((tm, tn), lambda i, j: (i, j))),
            compiler_params=pltpu.CompilerParams(
                dimension_semantics=("parallel", "parallel"),
                vmem_limit_bytes=_vmem_limit(est)),
        )(a, b, bias)

    return pl.pallas_call(
        _gemm_lrelu_acc_kernel,
        out_shape=jax.ShapeDtypeStruct((M, Np), jnp.bfloat16),
        grid_spec=pltpu.PrefetchScalarGridSpec(
            num_scalar_prefetch=0,
            grid=(gm, gn, gk),
            in_specs=[
                pl.BlockSpec((tm, tk), lambda i, j, k: (i, k)),
                pl.BlockSpec((tk, tn), lambda i, j, k: (k, j)),
                pl.BlockSpec((1, tn), lambda i, j, k: (0, j)),
            ],
            out_specs=pl.BlockSpec((tm, tn), lambda i, j, k: (i, j)),
            scratch_shapes=[pltpu.VMEM((tm, tn), jnp.float32)]),
        compiler_params=pltpu.CompilerParams(
            dimension_semantics=("parallel", "parallel", "arbitrary"),
            vmem_limit_bytes=_vmem_limit(est)),
    )(a, b, bias)


def fused_head(a, b, bias, w5, n_samples):
    """Fused conv4 + conv5 + sigmoid.
    a: [n_samples*16, K] bf16 conv4 patches, b: [K, Cp] bf16 (bn4 folded),
    bias: [1, Cp] f32, w5: [16, Cp] f32 (conv5 weight, row = oh*4 + ow).
    Returns [n_samples] f32 sigmoid outputs.  conv4's activation never leaves
    VMEM; each M block is exactly one sample (tm = 16)."""
    M, K = a.shape
    Kb, Cp = b.shape
    assert K == Kb and Cp % LANE == 0 and M == n_samples * 16
    tm = 16
    tk = _largest_tile(K, 4096, LANE)
    gk = K // tk

    est = 2 * (2 * tm * tk + 2 * tk * Cp + 4 * Cp + 4 * 8 * LANE) + 4 * 16 * Cp
    est += 4 * tm * Cp if gk > 1 else 0
    out_shape = jax.ShapeDtypeStruct((n_samples, 8, LANE), jnp.float32)

    if gk == 1:
        out = pl.pallas_call(
            _head_1k_kernel,
            out_shape=out_shape,
            grid_spec=pltpu.PrefetchScalarGridSpec(
                num_scalar_prefetch=0,
                grid=(n_samples,),
                in_specs=[
                    pl.BlockSpec((tm, tk), lambda i: (i, 0)),
                    pl.BlockSpec((tk, Cp), lambda i: (0, 0)),
                    pl.BlockSpec((1, Cp), lambda i: (0, 0)),
                    pl.BlockSpec((16, Cp), lambda i: (0, 0)),
                ],
                out_specs=pl.BlockSpec((1, 8, LANE), lambda i: (i, 0, 0))),
            compiler_params=pltpu.CompilerParams(
                dimension_semantics=("parallel",),
                vmem_limit_bytes=_vmem_limit(est)),
        )(a, b, bias, w5)
    else:
        out = pl.pallas_call(
            _head_acc_kernel,
            out_shape=out_shape,
            grid_spec=pltpu.PrefetchScalarGridSpec(
                num_scalar_prefetch=0,
                grid=(n_samples, gk),
                in_specs=[
                    pl.BlockSpec((tm, tk), lambda i, k: (i, k)),
                    pl.BlockSpec((tk, Cp), lambda i, k: (k, 0)),
                    pl.BlockSpec((1, Cp), lambda i, k: (0, 0)),
                    pl.BlockSpec((16, Cp), lambda i, k: (0, 0)),
                ],
                out_specs=pl.BlockSpec((1, 8, LANE), lambda i, k: (i, 0, 0)),
                scratch_shapes=[pltpu.VMEM((tm, Cp), jnp.float32)]),
            compiler_params=pltpu.CompilerParams(
                dimension_semantics=("parallel", "arbitrary"),
                vmem_limit_bytes=_vmem_limit(est)),
        )(a, b, bias, w5)
    return out[:, 0, 0]


# ------------------------------ im2col producer ------------------------------

def im2col_nhwc(x, kh=4, kw=4, stride=2, pad=1):
    """x: [N, H, W, C] bf16, C already lane-padded -> bf16 patches
    [N*Ho*Wo, kh*kw*C] (tap-major, C minor) from one fused XLA producer."""
    N, H, W, C = x.shape
    Ho = (H + 2 * pad - kh) // stride + 1
    Wo = (W + 2 * pad - kw) // stride + 1
    xp = jnp.pad(x, ((0, 0), (pad, pad), (pad, pad), (0, 0)))
    taps = [xp[:, i:i + stride * Ho:stride, j:j + stride * Wo:stride, :]
            for i in range(kh) for j in range(kw)]
    p = jnp.stack(taps, axis=3)                       # [N, Ho, Wo, kh*kw, C]
    return p.reshape(N * Ho * Wo, kh * kw * C), Ho, Wo


# ------------------------------ parameter prep ------------------------------

def _pad_to(x, n, axis):
    pads = [(0, 0)] * x.ndim
    pads[axis] = (0, n - x.shape[axis])
    return jnp.pad(x, pads)


def _bn_fold(bn, eps=1e-5):
    scale = bn["gamma"] / jnp.sqrt(bn["var"] + eps)
    return scale, bn["beta"] - bn["mean"] * scale


def _fold_conv(w, scale, bias, cin_pad):
    """w: [Cout, Cin, kh, kw] -> B [kh*kw*cin_pad, Cout_pad] bf16 (BN scale
    folded, zero pad rows/cols); bias -> [1, Cout_pad] f32 (zero pad)."""
    cout, cin, kh, kw = w.shape
    cout_pad = cout + (-cout) % LANE
    w = _pad_to(w, cin_pad, axis=1)
    b = w.transpose(2, 3, 1, 0).reshape(kh * kw * cin_pad, cout) * scale[None, :]
    b = _pad_to(b, cout_pad, axis=1).astype(jnp.bfloat16)
    bias = _pad_to(bias, cout_pad, axis=0).reshape(1, cout_pad).astype(jnp.float32)
    return b, bias


def prepare_params(p):
    """One-time weight preparation (hoisted out of the per-step forward)."""
    w1, w1l = p["conv1_w"], p["conv1_l_w"]
    half, img_c, kh, kw = w1.shape
    classes = w1l.shape[1]
    cin1 = img_c + classes
    cin1_pad = cin1 + (-cin1) % 8            # 6 -> 8, so K1 = 16*8 = 128 exactly
    # conv1(img) ++ conv1_l(label) == one block-diagonal conv (both bias-free).
    w_merged = jnp.zeros((2 * half, cin1_pad, kh, kw), jnp.float32)
    w_merged = w_merged.at[:half, :img_c].set(w1)
    w_merged = w_merged.at[half:, img_c:cin1].set(w1l)
    c1 = 2 * half
    b1, bias1 = _fold_conv(w_merged, jnp.ones((c1,), jnp.float32),
                           jnp.zeros((c1,), jnp.float32), cin1_pad)

    def layer(wname, bnname):
        s, bb = _bn_fold(p[bnname])
        cin = p[wname].shape[1]
        return _fold_conv(p[wname], s, bb, cin + (-cin) % LANE)

    b2, bias2 = layer("conv2_w", "bn2")
    b3, bias3 = layer("conv3_w", "bn3")
    b4, bias4 = layer("conv4_w", "bn4")

    # conv5 weight in (row = oh*4 + ow, col = cout4) layout, lane-padded, f32.
    w5 = p["conv5_w"]                        # [1, ndf*8, 4, 4]
    c5 = w5.shape[1]
    c5_pad = c5 + (-c5) % LANE
    w5_mat = jnp.transpose(w5[0], (1, 2, 0)).reshape(16, c5)
    w5_mat = _pad_to(w5_mat, c5_pad, axis=1).astype(jnp.float32)

    return dict(b1=b1, bias1=bias1, b2=b2, bias2=bias2,
                b3=b3, bias3=bias3, b4=b4, bias4=bias4, w5=w5_mat)


def init_params(key, ndf=16, img_channel=3, num_classes=3):
    keys = jax.random.split(key, 9)

    def conv_w(k, cout, cin):
        return 0.02 * jax.random.normal(k, (cout, cin, 4, 4), jnp.float32)

    def bn(k, c):
        k1, k2, k3, k4 = jax.random.split(k, 4)
        return dict(
            gamma=1.0 + 0.1 * jax.random.normal(k1, (c,), jnp.float32),
            beta=0.1 * jax.random.normal(k2, (c,), jnp.float32),
            mean=0.1 * jax.random.normal(k3, (c,), jnp.float32),
            var=jnp.abs(1.0 + 0.1 * jax.random.normal(k4, (c,), jnp.float32)),
        )

    return {
        "conv1_w": conv_w(keys[0], ndf // 2, img_channel),
        "conv1_l_w": conv_w(keys[1], ndf // 2, num_classes),
        "conv2_w": conv_w(keys[2], ndf * 2, ndf),
        "conv3_w": conv_w(keys[3], ndf * 4, ndf * 2),
        "conv4_w": conv_w(keys[4], ndf * 8, ndf * 4),
        "conv5_w": conv_w(keys[5], 1, ndf * 8),
        "bn2": bn(keys[6], ndf * 2),
        "bn3": bn(keys[7], ndf * 4),
        "bn4": bn(keys[8], ndf * 8),
    }


# ------------------------------ forward pass ------------------------------

def discriminator_forward(fp, img, label):
    n = img.shape[0]
    # NCHW -> NHWC once; stay channels-last (+channel-padded bf16) throughout.
    x_img = jnp.transpose(img, (0, 2, 3, 1))
    x_lab = jnp.transpose(label, (0, 2, 3, 1))
    x = jnp.concatenate([x_img, x_lab], axis=-1)            # [N, 64, 64, 6]
    assert x.shape[1] == 64 and x.shape[2] == 64, "architecture expects 64x64"
    cin1_pad = fp["b1"].shape[0] // 16
    x = _pad_to(x, cin1_pad, axis=3).astype(jnp.bfloat16)   # K1 = 16*8 = 128

    for bname, biasname in (("b1", "bias1"), ("b2", "bias2"), ("b3", "bias3")):
        a, ho, wo = im2col_nhwc(x)
        y = fused_gemm_lrelu(a, fp[bname], fp[biasname])     # [N*Ho*Wo, Cpad]
        x = y.reshape(n, ho, wo, y.shape[-1])

    # conv4 + conv5 + sigmoid fused head.
    a, ho, wo = im2col_nhwc(x)
    assert ho == 4 and wo == 4
    out = fused_head(a, fp["b4"], fp["bias4"], fp["w5"], n)  # [N] f32
    # x.view(-1, 1).squeeze(0)  (squeeze(0) is a no-op for batch > 1)
    return out.reshape(-1, 1)


# ------------------------------ main ------------------------------

if __name__ == "__main__":
    key = jax.random.PRNGKey(0)
    k_img, k_par = jax.random.split(key, 2)

    NDF, IMG_C, NUM_CLASSES = 16, 3, 3   # small demo size (spec uses ndf=128)
    N, H = 2, 64                         # spatial must be 64 (5 conv stages -> 1x1)

    raw = init_params(k_par, ndf=NDF, img_channel=IMG_C,
                      num_classes=NUM_CLASSES)
    folded = prepare_params(raw)         # one-time weight prep (hoisted)

    img = jax.random.normal(k_img, (N, IMG_C, H, H), jnp.float32)
    lab_idx = jnp.array([0, 2], dtype=jnp.int32)
    onehot = jax.nn.one_hot(lab_idx, NUM_CLASSES, dtype=jnp.float32)   # [N, 3]
    label = jnp.broadcast_to(onehot[:, :, None, None],
                             (N, NUM_CLASSES, H, H))                   # label maps

    fwd = jax.jit(discriminator_forward)
    out = jax.block_until_ready(fwd(folded, img, label))

    assert out.shape == (N, 1), out.shape
    assert bool(jnp.all(jnp.isfinite(out)))
    assert bool(jnp.all((out >= 0.0) & (out <= 1.0)))
    print("KERNEL_OK")
</pallas_src>

<mosaic_0001>
module attributes {stable_mosaic.version = 11 : i64} {
  func.func @_gemm_lrelu_1k_kernel(%arg0: i32, %arg1: i32, %arg2: memref<1024x128xbf16, #tpu.memory_space<vmem>>, %arg3: memref<128x128xbf16, #tpu.memory_space<vmem>>, %arg4: memref<1x128xf32, #tpu.memory_space<vmem>>, %arg5: memref<1024x128xbf16, #tpu.memory_space<vmem>>) attributes {dimension_semantics = [#tpu.dimension_semantics<parallel>, #tpu.dimension_semantics<parallel>], iteration_bounds = array<i64: 2, 1>, scalar_prefetch = 0 : i64, scratch_operands = 0 : i64, tpu.core_type = #tpu.core_type<tc>, window_params = [{transform_indices = @transform_0, window_bounds = array<i64: 1024, 128>}, {transform_indices = @transform_1, window_bounds = array<i64: 128, 128>}, {transform_indices = @transform_2, window_bounds = array<i64: 1, 128>}, {transform_indices = @transform_3, window_bounds = array<i64: 1024, 128>}]} {
    %c0 = arith.constant 0 : index
    %c0_0 = arith.constant 0 : index
    %0 = vector.load %arg2[%c0, %c0_0] : memref<1024x128xbf16, #tpu.memory_space<vmem>>, vector<1024x128xbf16>
    %c0_1 = arith.constant 0 : index
    %c0_2 = arith.constant 0 : index
    %1 = vector.load %arg3[%c0_1, %c0_2] : memref<128x128xbf16, #tpu.memory_space<vmem>>, vector<128x128xbf16>
    %cst = arith.constant dense<0.000000e+00> : vector<1024x128xf32>
    %2 = tpu.matmul %0, %1, %cst {dimension_numbers = #tpu.dot_dimension_numbers<[1], [0], [0], [1], [0, 0, 1, 1], [], []>} : vector<1024x128xbf16>, vector<128x128xbf16>, vector<1024x128xf32> -> vector<1024x128xf32>
    %c0_3 = arith.constant 0 : index
    %c0_4 = arith.constant 0 : index
    %3 = vector.load %arg4[%c0_3, %c0_4] : memref<1x128xf32, #tpu.memory_space<vmem>>, vector<1x128xf32>
    %4 = vector.broadcast %3 : vector<1x128xf32> to vector<1024x128xf32>
    %5 = arith.addf %2, %4 : vector<1024x128xf32>
    %cst_5 = arith.constant 2.000000e-01 : f32
    %6 = vector.broadcast %cst_5 : f32 to vector<1024x128xf32>
    %7 = arith.mulf %6, %5 : vector<1024x128xf32>
    %8 = arith.maximumf %5, %7 : vector<1024x128xf32>
    %9 = arith.truncf %8 : vector<1024x128xf32> to vector<1024x128xbf16>
    %c0_6 = arith.constant 0 : index
    %c0_7 = arith.constant 0 : index
    %10 = vector.load %arg5[%c0_6, %c0_7] : memref<1024x128xbf16, #tpu.memory_space<vmem>>, vector<1024x128xbf16>
    tpu.vector_store %arg5[%c0_6, %c0_7], %9 {strides = array<i32>} : memref<1024x128xbf16, #tpu.memory_space<vmem>>, vector<1024x128xbf16>,
    return
  }
  func.func @transform_0(%arg0: i32, %arg1: i32) -> (i32, i32) {
    %c0_i32 = arith.constant 0 : i32
    %c0_i32_0 = arith.constant 0 : i32
    return %arg0, %c0_i32 : i32, i32
  }
  func.func @transform_1(%arg0: i32, %arg1: i32) -> (i32, i32) {
    %c0_i32 = arith.constant 0 : i32
    %c0_i32_0 = arith.constant 0 : i32
    return %c0_i32, %arg1 : i32, i32
  }
  func.func @transform_2(%arg0: i32, %arg1: i32) -> (i32, i32) {
    %c0_i32 = arith.constant 0 : i32
    %c0_i32_0 = arith.constant 0 : i32
    return %c0_i32, %arg1 : i32, i32
  }
  func.func @transform_3(%arg0: i32, %arg1: i32) -> (i32, i32) {
    %c0_i32 = arith.constant 0 : i32
    return %arg0, %arg1 : i32, i32
  }
}

module attributes {stable_mosaic.version = 11 : i64} {
  func.func @_gemm_lrelu_1k_kernel(%arg0: i32, %arg1: i32, %arg2: memref<256x2048xbf16, #tpu.memory_space<vmem>>, %arg3: memref<2048x128xbf16, #tpu.memory_space<vmem>>, %arg4: memref<1x128xf32, #tpu.memory_space<vmem>>, %arg5: memref<256x128xbf16, #tpu.memory_space<vmem>>) attributes {dimension_semantics = [#tpu.dimension_semantics<parallel>, #tpu.dimension_semantics<parallel>], iteration_bounds = array<i64: 2, 1>, scalar_prefetch = 0 : i64, scratch_operands = 0 : i64, tpu.core_type = #tpu.core_type<tc>, window_params = [{transform_indices = @transform_0, window_bounds = array<i64: 256, 2048>}, {transform_indices = @transform_1, window_bounds = array<i64: 2048, 128>}, {transform_indices = @transform_2, window_bounds = array<i64: 1, 128>}, {transform_indices = @transform_3, window_bounds = array<i64: 256, 128>}]} {
    %c0 = arith.constant 0 : index
    %c0_0 = arith.constant 0 : index
    %0 = vector.load %arg2[%c0, %c0_0] : memref<256x2048xbf16, #tpu.memory_space<vmem>>, vector<256x2048xbf16>
    %c0_1 = arith.constant 0 : index
    %c0_2 = arith.constant 0 : index
    %1 = vector.load %arg3[%c0_1, %c0_2] : memref<2048x128xbf16, #tpu.memory_space<vmem>>, vector<2048x128xbf16>
    %cst = arith.constant dense<0.000000e+00> : vector<256x128xf32>
    %2 = tpu.matmul %0, %1, %cst {dimension_numbers = #tpu.dot_dimension_numbers<[1], [0], [0], [1], [0, 0, 1, 1], [], []>} : vector<256x2048xbf16>, vector<2048x128xbf16>, vector<256x128xf32> -> vector<256x128xf32>
    %c0_3 = arith.constant 0 : index
    %c0_4 = arith.constant 0 : index
    %3 = vector.load %arg4[%c0_3, %c0_4] : memref<1x128xf32, #tpu.memory_space<vmem>>, vector<1x128xf32>
    %4 = vector.broadcast %3 : vector<1x128xf32> to vector<256x128xf32>
    %5 = arith.addf %2, %4 : vector<256x128xf32>
    %cst_5 = arith.constant 2.000000e-01 : f32
    %6 = vector.broadcast %cst_5 : f32 to vector<256x128xf32>
    %7 = arith.mulf %6, %5 : vector<256x128xf32>
    %8 = arith.maximumf %5, %7 : vector<256x128xf32>
    %9 = arith.truncf %8 : vector<256x128xf32> to vector<256x128xbf16>
    %c0_6 = arith.constant 0 : index
    %c0_7 = arith.constant 0 : index
    %10 = vector.load %arg5[%c0_6, %c0_7] : memref<256x128xbf16, #tpu.memory_space<vmem>>, vector<256x128xbf16>
    tpu.vector_store %arg5[%c0_6, %c0_7], %9 {strides = array<i32>} : memref<256x128xbf16, #tpu.memory_space<vmem>>, vector<256x128xbf16>,
    return
  }
  func.func @transform_0(%arg0: i32, %arg1: i32) -> (i32, i32) {
    %c0_i32 = arith.constant 0 : i32
    %c0_i32_0 = arith.constant 0 : i32
    return %arg0, %c0_i32 : i32, i32
  }
  func.func @transform_1(%arg0: i32, %arg1: i32) -> (i32, i32) {
    %c0_i32 = arith.constant 0 : i32
    %c0_i32_0 = arith.constant 0 : i32
    return %c0_i32, %arg1 : i32, i32
  }
  func.func @transform_2(%arg0: i32, %arg1: i32) -> (i32, i32) {
    %c0_i32 = arith.constant 0 : i32
    %c0_i32_0 = arith.constant 0 : i32
    return %c0_i32, %arg1 : i32, i32
  }
  func.func @transform_3(%arg0: i32, %arg1: i32) -> (i32, i32) {
    %c0_i32 = arith.constant 0 : i32
    return %arg0, %arg1 : i32, i32
  }
}

module attributes {stable_mosaic.version = 11 : i64} {
  func.func @_gemm_lrelu_1k_kernel(%arg0: i32, %arg1: i32, %arg2: memref<64x2048xbf16, #tpu.memory_space<vmem>>, %arg3: memref<2048x128xbf16, #tpu.memory_space<vmem>>, %arg4: memref<1x128xf32, #tpu.memory_space<vmem>>, %arg5: memref<64x128xbf16, #tpu.memory_space<vmem>>) attributes {dimension_semantics = [#tpu.dimension_semantics<parallel>, #tpu.dimension_semantics<parallel>], iteration_bounds = array<i64: 2, 1>, scalar_prefetch = 0 : i64, scratch_operands = 0 : i64, tpu.core_type = #tpu.core_type<tc>, window_params = [{transform_indices = @transform_0, window_bounds = array<i64: 64, 2048>}, {transform_indices = @transform_1, window_bounds = array<i64: 2048, 128>}, {transform_indices = @transform_2, window_bounds = array<i64: 1, 128>}, {transform_indices = @transform_3, window_bounds = array<i64: 64, 128>}]} {
    %c0 = arith.constant 0 : index
    %c0_0 = arith.constant 0 : index
    %0 = vector.load %arg2[%c0, %c0_0] : memref<64x2048xbf16, #tpu.memory_space<vmem>>, vector<64x2048xbf16>
    %c0_1 = arith.constant 0 : index
    %c0_2 = arith.constant 0 : index
    %1 = vector.load %arg3[%c0_1, %c0_2] : memref<2048x128xbf16, #tpu.memory_space<vmem>>, vector<2048x128xbf16>
    %cst = arith.constant dense<0.000000e+00> : vector<64x128xf32>
    %2 = tpu.matmul %0, %1, %cst {dimension_numbers = #tpu.dot_dimension_numbers<[1], [0], [0], [1], [0, 0, 1, 1], [], []>} : vector<64x2048xbf16>, vector<2048x128xbf16>, vector<64x128xf32> -> vector<64x128xf32>
    %c0_3 = arith.constant 0 : index
    %c0_4 = arith.constant 0 : index
    %3 = vector.load %arg4[%c0_3, %c0_4] : memref<1x128xf32, #tpu.memory_space<vmem>>, vector<1x128xf32>
    %4 = vector.broadcast %3 : vector<1x128xf32> to vector<64x128xf32>
    %5 = arith.addf %2, %4 : vector<64x128xf32>
    %cst_5 = arith.constant 2.000000e-01 : f32
    %6 = vector.broadcast %cst_5 : f32 to vector<64x128xf32>
    %7 = arith.mulf %6, %5 : vector<64x128xf32>
    %8 = arith.maximumf %5, %7 : vector<64x128xf32>
    %9 = arith.truncf %8 : vector<64x128xf32> to vector<64x128xbf16>
    %c0_6 = arith.constant 0 : index
    %c0_7 = arith.constant 0 : index
    %10 = vector.load %arg5[%c0_6, %c0_7] : memref<64x128xbf16, #tpu.memory_space<vmem>>, vector<64x128xbf16>
    tpu.vector_store %arg5[%c0_6, %c0_7], %9 {strides = array<i32>} : memref<64x128xbf16, #tpu.memory_space<vmem>>, vector<64x128xbf16>,
    return
  }
  func.func @transform_0(%arg0: i32, %arg1: i32) -> (i32, i32) {
    %c0_i32 = arith.constant 0 : i32
    %c0_i32_0 = arith.constant 0 : i32
    return %arg0, %c0_i32 : i32, i32
  }
  func.func @transform_1(%arg0: i32, %arg1: i32) -> (i32, i32) {
    %c0_i32 = arith.constant 0 : i32
    %c0_i32_0 = arith.constant 0 : i32
    return %c0_i32, %arg1 : i32, i32
  }
  func.func @transform_2(%arg0: i32, %arg1: i32) -> (i32, i32) {
    %c0_i32 = arith.constant 0 : i32
    %c0_i32_0 = arith.constant 0 : i32
    return %c0_i32, %arg1 : i32, i32
  }
  func.func @transform_3(%arg0: i32, %arg1: i32) -> (i32, i32) {
    %c0_i32 = arith.constant 0 : i32
    return %arg0, %arg1 : i32, i32
  }
}

module attributes {stable_mosaic.version = 11 : i64} {
  func.func @_head_1k_kernel(%arg0: i32, %arg1: memref<16x2048xbf16, #tpu.memory_space<vmem>>, %arg2: memref<2048x128xbf16, #tpu.memory_space<vmem>>, %arg3: memref<1x128xf32, #tpu.memory_space<vmem>>, %arg4: memref<16x128xf32, #tpu.memory_space<vmem>>, %arg5: memref<1x8x128xf32, #tpu.memory_space<vmem>>) attributes {dimension_semantics = [#tpu.dimension_semantics<parallel>], iteration_bounds = array<i64: 2>, scalar_prefetch = 0 : i64, scratch_operands = 0 : i64, tpu.core_type = #tpu.core_type<tc>, window_params = [{transform_indices = @transform_0, window_bounds = array<i64: 16, 2048>}, {pipeline_mode = #tpu.pipeline_mode<synchronous>, transform_indices = @transform_1, window_bounds = array<i64: 2048, 128>}, {pipeline_mode = #tpu.pipeline_mode<synchronous>, transform_indices = @transform_2, window_bounds = array<i64: 1, 128>}, {pipeline_mode = #tpu.pipeline_mode<synchronous>, transform_indices = @transform_3, window_bounds = array<i64: 16, 128>}, {transform_indices = @transform_4, window_bounds = array<i64: 1, 8, 128>}]} {
    %c0 = arith.constant 0 : index
    %c0_0 = arith.constant 0 : index
    %0 = vector.load %arg1[%c0, %c0_0] : memref<16x2048xbf16, #tpu.memory_space<vmem>>, vector<16x2048xbf16>
    %c0_1 = arith.constant 0 : index
    %c0_2 = arith.constant 0 : index
    %1 = vector.load %arg2[%c0_1, %c0_2] : memref<2048x128xbf16, #tpu.memory_space<vmem>>, vector<2048x128xbf16>
    %cst = arith.constant dense<0.000000e+00> : vector<16x128xf32>
    %2 = tpu.matmul %0, %1, %cst {dimension_numbers = #tpu.dot_dimension_numbers<[1], [0], [0], [1], [0, 0, 1, 1], [], []>} : vector<16x2048xbf16>, vector<2048x128xbf16>, vector<16x128xf32> -> vector<16x128xf32>
    %c0_3 = arith.constant 0 : index
    %c0_4 = arith.constant 0 : index
    %3 = vector.load %arg3[%c0_3, %c0_4] : memref<1x128xf32, #tpu.memory_space<vmem>>, vector<1x128xf32>
    %4 = vector.broadcast %3 : vector<1x128xf32> to vector<16x128xf32>
    %5 = arith.addf %2, %4 : vector<16x128xf32>
    %cst_5 = arith.constant 2.000000e-01 : f32
    %6 = vector.broadcast %cst_5 : f32 to vector<16x128xf32>
    %7 = arith.mulf %6, %5 : vector<16x128xf32>
    %8 = arith.maximumf %5, %7 : vector<16x128xf32>
    %c0_6 = arith.constant 0 : index
    %c0_7 = arith.constant 0 : index
    %9 = vector.load %arg4[%c0_6, %c0_7] : memref<16x128xf32, #tpu.memory_space<vmem>>, vector<16x128xf32>
    %10 = arith.mulf %8, %9 : vector<16x128xf32>
    %11 = vector.shape_cast %10 : vector<16x128xf32> to vector<1x16x128xf32>
    %cst_8 = arith.constant dense<0.000000e+00> : vector<1xf32>
    %12 = vector.multi_reduction <add>, %11, %cst_8 [1, 2] : vector<1x16x128xf32> to vector<1xf32>
    %13 = vector.shape_cast %12 : vector<1xf32> to vector<1x1x1xf32>
    %14 = vector.extract %13[0, 0, 0] : f32 from vector<1x1x1xf32>
    %15 = vector.broadcast %14 : f32 to vector<1x1xf32>
    %cst_9 = arith.constant 0.000000e+00 : f32
    %16 = vector.broadcast %cst_9 : f32 to vector<1x1xf32>
    %17 = arith.subf %16, %15 : vector<1x1xf32>
    %18 = math.exp %17 : vector<1x1xf32>
    %cst_10 = arith.constant 1.000000e+00 : f32
    %19 = vector.broadcast %cst_10 : f32 to vector<1x1xf32>
    %20 = arith.addf %19, %18 : vector<1x1xf32>
    %cst_11 = arith.constant 1.000000e+00 : f32
    %21 = vector.broadcast %cst_11 : f32 to vector<1x1xf32>
    %22 = arith.divf %21, %20 : vector<1x1xf32>
    %23 = vector.shape_cast %22 : vector<1x1xf32> to vector<1x1x1xf32>
    %24 = vector.shape_cast %23 : vector<1x1x1xf32> to vector<1x1x1xf32>
    %25 = vector.broadcast %24 : vector<1x1x1xf32> to vector<1x8x128xf32>
    %c0_12 = arith.constant 0 : index
    %c0_13 = arith.constant 0 : index
    %c0_14 = arith.constant 0 : index
    %26 = vector.load %arg5[%c0_12, %c0_13, %c0_14] : memref<1x8x128xf32, #tpu.memory_space<vmem>>, vector<1x8x128xf32>
    tpu.vector_store %arg5[%c0_12, %c0_13, %c0_14], %25 {strides = array<i32>} : memref<1x8x128xf32, #tpu.memory_space<vmem>>, vector<1x8x128xf32>,
    return
  }
  func.func @transform_0(%arg0: i32) -> (i32, i32) {
    %c0_i32 = arith.constant 0 : i32
    %c0_i32_0 = arith.constant 0 : i32
    return %arg0, %c0_i32 : i32, i32
  }
  func.func @transform_1(%arg0: i32) -> (i32, i32) {
    %c0_i32 = arith.constant 0 : i32
    %c0_i32_0 = arith.constant 0 : i32
    %c0_i32_1 = arith.constant 0 : i32
    return %c0_i32, %c0_i32_0 : i32, i32
  }
  func.func @transform_2(%arg0: i32) -> (i32, i32) {
    %c0_i32 = arith.constant 0 : i32
    %c0_i32_0 = arith.constant 0 : i32
    %c0_i32_1 = arith.constant 0 : i32
    return %c0_i32, %c0_i32_0 : i32, i32
  }
  func.func @transform_3(%arg0: i32) -> (i32, i32) {
    %c0_i32 = arith.constant 0 : i32
    %c0_i32_0 = arith.constant 0 : i32
    %c0_i32_1 = arith.constant 0 : i32
    return %c0_i32, %c0_i32_0 : i32, i32
  }
  func.func @transform_4(%arg0: i32) -> (i32, i32, i32) {
    %c0_i32 = arith.constant 0 : i32
    %c0_i32_0 = arith.constant 0 : i32
    %c0_i32_1 = arith.constant 0 : i32
    return %arg0, %c0_i32, %c0_i32_0 : i32, i32, i32
  }
}

</mosaic_0001>

<bundles_post_ra>
// kernel: discriminator_forward.4
= control target key start
LH: loop header
LB: loop body
LE: loop exit
PB: predicated region body
PF: predicated region fallthrough
CT: control target
= control target key end

     0   :  { %s3450_s12 = smov 0   ;;  %s3452_s13 = smov 0   ;;  %s3784_s0 = inlined_call_operand.vmem [shape: bf16[2048,128], index: 0, kind: input, shape index: {}]   ;;  %s3785_s1 = inlined_call_operand.vmem [shape: bf16[128,128], index: 1, kind: input, shape index: {}]   ;;  %s3786_s2 = inlined_call_operand.vmem [shape: f32[1,128], index: 2, kind: input, shape index: {}]   ;;  %s3787_s3 = inlined_call_operand.vmem [shape: bf16[2048,128], index: 3, kind: output, shape index: {}]  }
   0x1   :  { %s3454_s14 = smov 0  }
   0x2 LB: > { %s25_s15 = sadd.s32 1, %s3424_s13  ;;  %p2358_p0 = scmp.ge.s32.totalorder %s3428_s14, 1  ;;  %s3428_s14 = sphi %s3454_s14, %s13_s14   ;;  %s3424_s13 = sphi %s3452_s13, %s3789_s13   ;;  %s3420_s12 = sphi %s3450_s12, %s3788_s12  }
   0x3   : > { %p27_p1 = scmp.ge.s32.totalorder %s25_s15, 2  ;;  %p169_p2 = scmp.lt.s32.totalorder %s3428_s14, 3 }
   0x5   : > { %s3791_s15 = smov (%p27_p1, %s25_s15), 0  ;;  %p170_p3 = pnand %p2358_p0, %p169_p2 }
   0x6   : > { %s2359_s18 = sshll.u32 (!%p170_p3), %s3420_s12, 7 }
   0x7   : > { %173 = sbr.rel (%p170_p3) target bundleno = 373 (0x175), region = 32  ;;  %p204_p4 = scmp.lt.s32.totalorder (!%p170_p3), %s2359_s18, 255 }
   0xc   : > { %v3333_v0 = vld [vmem:[%s3785_s1 + $0x38] sm:$0xff]   ;;  %v3334_v1 = vld [vmem:[%s3785_s1 + $0x30] sm:$0xff]   ;;  %s3793_s18 = smov (!%p204_p4, %s2359_s18), 255  ;;  %v3335_v2 = vld [vmem:[%s3785_s1 + $0x28] sm:$0xff]  }
   0xd   : > { %3149 = vmatprep.subr.bf16.mxu0 %v3333_v0  ;;  %3293 = vmatprep.subr.bf16.mxu1 %v3333_v0  ;;  %s2360_s23 = sshll.u32 %s3793_s18, 2  ;;  %v3336_v3 = vld [vmem:[%s3785_s1 + $0x20] sm:$0xff]   ;;  %v3337_v6 = vld [vmem:[%s3785_s1 + $0x18] sm:$0xff]   ;;  %v3338_v7 = vld [vmem:[%s3785_s1 + $0x10] sm:$0xff]  }
   0xe   : > { %3150 = vmatpush3.bf16.msra.mxu0 %v3333_v0  ;;  %3301 = vmatpush3.bf16.msra.mxu1 %v3333_v0  ;;  %s3485_s26 = scalar_lea.vmem %s3784_s0, %s2360_s23  ;;  %v3339_v8 = vld [vmem:[%s3785_s1 + $0x8] sm:$0xff]   ;;  %v3340_v9 = vld [vmem:[%s3785_s1] sm:$0xff]   ;;  %s3586_s17 = scalar_lea.vmem %s3787_s3, %s2360_s23 }
   0xf   : > { %3151 = vmatprep.subr.bf16.mxu0 %v3334_v1  ;;  %3294 = vmatprep.subr.bf16.mxu1 %v3334_v1  ;;  %v3341_v4 = vld [vmem:[%s3485_s26] sm:$0xff]   ;;  %v3343_v10 = vld [vmem:[%s3485_s26 + $0x8] sm:$0xff]   ;;  %v3345_v12 = vld [vmem:[%s3485_s26 + $0x10] sm:$0xff]  }
  0x10   : > { %v3342_v5 = vld [vmem:[%s3485_s26 + $0x100] sm:$0xff]   ;;  %3165 = vmatprep.mubr.bf16.mxu0 %v3341_v4  ;;  %v3344_v11 = vld [vmem:[%s3485_s26 + $0x108] sm:$0xff]   ;;  %v3346_v13 = vld [vmem:[%s3485_s26 + $0x110] sm:$0xff]  }
  0x11   : > { %3229 = vmatprep.mubr.bf16.mxu1 %v3342_v5  ;;  %v3347_v14 = vld [vmem:[%s3485_s26 + $0x18] sm:$0xff]   ;;  %v3349_v16 = vld [vmem:[%s3485_s26 + $0x20] sm:$0xff]   ;;  %v3351_v18 = vld [vmem:[%s3485_s26 + $0x28] sm:$0xff]  }
  0x12   : > { %3152 = vmatpush3.bf16.msra.mxu0 %v3334_v1  ;;  %3302 = vmatpush3.bf16.msra.mxu1 %v3334_v1  ;;  %v3348_v15 = vld [vmem:[%s3485_s26 + $0x118] sm:$0xff]   ;;  %v3350_v17 = vld [vmem:[%s3485_s26 + $0x120] sm:$0xff]   ;;  %v3352_v19 = vld [vmem:[%s3485_s26 + $0x128] sm:$0xff]  }
  0x13   : > { %3153 = vmatprep.subr.bf16.mxu0 %v3335_v2  ;;  %3295 = vmatprep.subr.bf16.mxu1 %v3335_v2  ;;  %v3353_v20 = vld [vmem:[%s3485_s26 + $0x30] sm:$0xff]   ;;  %v3355_v22 = vld [vmem:[%s3485_s26 + $0x38] sm:$0xff]   ;;  %v3357_v24 = vld [vmem:[%s3485_s26 + $0x40] sm:$0xff]  }
  0x14   : > { %v3354_v21 = vld [vmem:[%s3485_s26 + $0x130] sm:$0xff]   ;;  %v3356_v23 = vld [vmem:[%s3485_s26 + $0x138] sm:$0xff]   ;;  %v3358_v25 = vld [vmem:[%s3485_s26 + $0x140] sm:$0xff]  }
  0x15   : > { %v3359_v26 = vld [vmem:[%s3485_s26 + $0x48] sm:$0xff]   ;;  %v3361_v28 = vld [vmem:[%s3485_s26 + $0x50] sm:$0xff]   ;;  %v3363_v30 = vld [vmem:[%s3485_s26 + $0x58] sm:$0xff]  }
  0x16   : > { %3154 = vmatpush3.bf16.msra.mxu0 %v3335_v2  ;;  %3303 = vmatpush3.bf16.msra.mxu1 %v3335_v2  ;;  %v3360_v27 = vld [vmem:[%s3485_s26 + $0x148] sm:$0xff]   ;;  %v3362_v29 = vld [vmem:[%s3485_s26 + $0x150] sm:$0xff]   ;;  %v3364_v31 = vld [vmem:[%s3485_s26 + $0x158] sm:$0xff]  }
  0x17   : > { %3155 = vmatprep.subr.bf16.mxu0 %v3336_v3  ;;  %3296 = vmatprep.subr.bf16.mxu1 %v3336_v3  ;;  %v3365_v32 = vld [vmem:[%s3485_s26 + $0x60] sm:$0xff]   ;;  %v3367_v34 = vld [vmem:[%s3485_s26 + $0x68] sm:$0xff]   ;;  %v3369_v36 = vld [vmem:[%s3485_s26 + $0x70] sm:$0xff]  }
  0x18   : > { %v3366_v33 = vld [vmem:[%s3485_s26 + $0x160] sm:$0xff]   ;;  %v3368_v35 = vld [vmem:[%s3485_s26 + $0x168] sm:$0xff]   ;;  %v3370_v37 = vld [vmem:[%s3485_s26 + $0x170] sm:$0xff]  }
  0x19   : > { %v3371_v38 = vld [vmem:[%s3485_s26 + $0x78] sm:$0xff]   ;;  %v3373_v40 = vld [vmem:[%s3485_s26 + $0x80] sm:$0xff]   ;;  %v3375_v42 = vld [vmem:[%s3485_s26 + $0x88] sm:$0xff]  }
  0x1a   : > { %3156 = vmatpush3.bf16.msra.mxu0 %v3336_v3  ;;  %3304 = vmatpush3.bf16.msra.mxu1 %v3336_v3  ;;  %v3372_v39 = vld [vmem:[%s3485_s26 + $0x178] sm:$0xff]   ;;  %v3374_v41 = vld [vmem:[%s3485_s26 + $0x180] sm:$0xff]   ;;  %v3376_v43 = vld [vmem:[%s3485_s26 + $0x188] sm:$0xff]  }
  0x1b   : > { %3157 = vmatprep.subr.bf16.mxu0 %v3337_v6  ;;  %3297 = vmatprep.subr.bf16.mxu1 %v3337_v6  ;;  %v3377_v44 = vld [vmem:[%s3485_s26 + $0x90] sm:$0xff]   ;;  %v3379_v46 = vld [vmem:[%s3485_s26 + $0x98] sm:$0xff]   ;;  %v3381_v48 = vld [vmem:[%s3485_s26 + $0xa0] sm:$0xff]  }
  0x1c   : > { %v3378_v45 = vld [vmem:[%s3485_s26 + $0x190] sm:$0xff]   ;;  %v3380_v47 = vld [vmem:[%s3485_s26 + $0x198] sm:$0xff]   ;;  %v3382_v49 = vld [vmem:[%s3485_s26 + $0x1a0] sm:$0xff]  }
  0x1d   : > { %v3383_v50 = vld [vmem:[%s3485_s26 + $0xa8] sm:$0xff]   ;;  %v3385_v52 = vld [vmem:[%s3485_s26 + $0xb0] sm:$0xff]   ;;  %v3387_v54 = vld [vmem:[%s3485_s26 + $0xb8] sm:$0xff]  }
  0x1e   : > { %3158 = vmatpush3.bf16.msra.mxu0 %v3337_v6  ;;  %3305 = vmatpush3.bf16.msra.mxu1 %v3337_v6  ;;  %v3384_v51 = vld [vmem:[%s3485_s26 + $0x1a8] sm:$0xff]   ;;  %v3386_v53 = vld [vmem:[%s3485_s26 + $0x1b0] sm:$0xff]   ;;  %v3388_v55 = vld [vmem:[%s3485_s26 + $0x1b8] sm:$0xff]  }
  0x1f   : > { %3159 = vmatprep.subr.bf16.mxu0 %v3338_v7  ;;  %3298 = vmatprep.subr.bf16.mxu1 %v3338_v7  ;;  %v3389_v56 = vld [vmem:[%s3485_s26 + $0xc0] sm:$0xff]   ;;  %v3391_v58 = vld [vmem:[%s3485_s26 + $0xc8] sm:$0xff]   ;;  %v3393_v60 = vld [vmem:[%s3485_s26 + $0xd0] sm:$0xff]  }
  0x20   : > { %v3390_v57 = vld [vmem:[%s3485_s26 + $0x1c0] sm:$0xff]   ;;  %v3392_v59 = vld [vmem:[%s3485_s26 + $0x1c8] sm:$0xff]   ;;  %v3394_v61 = vld [vmem:[%s3485_s26 + $0x1d0] sm:$0xff]  }
  0x21   : > { %v3395_v62 = vld [vmem:[%s3485_s26 + $0xd8] sm:$0xff]   ;;  %v3397_v0 = vld [vmem:[%s3485_s26 + $0xe0] sm:$0xff]   ;;  %v3399_v2 = vld [vmem:[%s3485_s26 + $0xe8] sm:$0xff]  }
  0x22   : > { %3160 = vmatpush3.bf16.msra.mxu0 %v3338_v7  ;;  %3306 = vmatpush3.bf16.msra.mxu1 %v3338_v7  ;;  %v3396_v63 = vld [vmem:[%s3485_s26 + $0x1d8] sm:$0xff]   ;;  %v3398_v1 = vld [vmem:[%s3485_s26 + $0x1e0] sm:$0xff]   ;;  %v3400_v3 = vld [vmem:[%s3485_s26 + $0x1e8] sm:$0xff]  }
  0x23   : > { %3161 = vmatprep.subr.bf16.mxu0 %v3339_v8  ;;  %3299 = vmatprep.subr.bf16.mxu1 %v3339_v8  ;;  %v3401_v4 = vld [vmem:[%s3485_s26 + $0xf0] sm:$0xff]   ;;  %v3403_v6 = vld [vmem:[%s3485_s26 + $0xf8] sm:$0xff]  }
  0x24   : > { %v3402_v5 = vld [vmem:[%s3485_s26 + $0x1f0] sm:$0xff]   ;;  %v3404_v7 = vld [vmem:[%s3485_s26 + $0x1f8] sm:$0xff]  }
  0x26   : > { %3162 = vmatpush3.bf16.msra.mxu0 %v3339_v8  ;;  %3307 = vmatpush3.bf16.msra.mxu1 %v3339_v8  ;;  %v3569_v8 = vld [vmem:[%s3786_s2] ss:$0 sm:$0xff] }
  0x27   : > { %3163 = vmatprep.subr.bf16.mxu0 %v3340_v9  ;;  %3300 = vmatprep.subr.bf16.mxu1 %v3340_v9 }
  0x2a   : > { %3164 = vmatpush3.bf16.msra.mxu0 %v3340_v9  ;;  %3308 = vmatpush3.bf16.msra.mxu1 %v3340_v9 }
  0x2d   : > { %3166 = vmatmul.mubr.bf16.vlgmr.msra.gmra.mxu0 %v3343_v10  ;;  %3230 = vmatmul.mubr.bf16.vlgmr.msra.gmra.mxu1 %v3344_v11 }
  0x2e   : > { %3169 = vmatprep.mubr.bf16.mxu0 %v3345_v12  ;;  %3233 = vmatprep.mubr.bf16.mxu1 %v3346_v13 }
  0x35   : > { %3170 = vmatmul.mubr.bf16.gmra.mxu0 %v3347_v14  ;;  %3234 = vmatmul.mubr.bf16.gmra.mxu1 %v3348_v15 }
  0x36   : > { %3173 = vmatprep.mubr.bf16.mxu0 %v3349_v16  ;;  %3237 = vmatprep.mubr.bf16.mxu1 %v3350_v17 }
  0x3d   : > { %3174 = vmatmul.mubr.bf16.gmra.mxu0 %v3351_v18  ;;  %3238 = vmatmul.mubr.bf16.gmra.mxu1 %v3352_v19 }
  0x3e   : > { %3177 = vmatprep.mubr.bf16.mxu0 %v3353_v20  ;;  %3241 = vmatprep.mubr.bf16.mxu1 %v3354_v21 }
  0x45   : > { %3178 = vmatmul.mubr.bf16.gmra.mxu0 %v3355_v22  ;;  %3242 = vmatmul.mubr.bf16.gmra.mxu1 %v3356_v23 }
  0x46   : > { %3181 = vmatprep.mubr.bf16.mxu0 %v3357_v24  ;;  %3245 = vmatprep.mubr.bf16.mxu1 %v3358_v25 }
  0x4d   : > { %3182 = vmatmul.mubr.bf16.gmra.mxu0 %v3359_v26  ;;  %3246 = vmatmul.mubr.bf16.gmra.mxu1 %v3360_v27 }
  0x4e   : > { %3185 = vmatprep.mubr.bf16.mxu0 %v3361_v28  ;;  %3249 = vmatprep.mubr.bf16.mxu1 %v3362_v29 }
  0x55   : > { %3186 = vmatmul.mubr.bf16.gmra.mxu0 %v3363_v30  ;;  %3250 = vmatmul.mubr.bf16.gmra.mxu1 %v3364_v31 }
  0x56   : > { %3189 = vmatprep.mubr.bf16.mxu0 %v3365_v32  ;;  %3253 = vmatprep.mubr.bf16.mxu1 %v3366_v33 }
  0x5d   : > { %3190 = vmatmul.mubr.bf16.gmra.mxu0 %v3367_v34  ;;  %3254 = vmatmul.mubr.bf16.gmra.mxu1 %v3368_v35 }
  0x5e   : > { %3193 = vmatprep.mubr.bf16.mxu0 %v3369_v36  ;;  %3257 = vmatprep.mubr.bf16.mxu1 %v3370_v37 }
  0x65   : > { %3194 = vmatmul.mubr.bf16.gmra.mxu0 %v3371_v38  ;;  %3258 = vmatmul.mubr.bf16.gmra.mxu1 %v3372_v39 }
  0x66   : > { %3197 = vmatprep.mubr.bf16.mxu0 %v3373_v40  ;;  %3261 = vmatprep.mubr.bf16.mxu1 %v3374_v41 }
  0x6d   : > { %3198 = vmatmul.mubr.bf16.gmra.mxu0 %v3375_v42  ;;  %3262 = vmatmul.mubr.bf16.gmra.mxu1 %v3376_v43 }
  0x6e   : > { %3201 = vmatprep.mubr.bf16.mxu0 %v3377_v44  ;;  %3265 = vmatprep.mubr.bf16.mxu1 %v3378_v45 }
  0x75   : > { %3202 = vmatmul.mubr.bf16.gmra.mxu0 %v3379_v46  ;;  %3266 = vmatmul.mubr.bf16.gmra.mxu1 %v3380_v47 }
  0x76   : > { %3205 = vmatprep.mubr.bf16.mxu0 %v3381_v48  ;;  %3269 = vmatprep.mubr.bf16.mxu1 %v3382_v49 }
  0x7d   : > { %3206 = vmatmul.mubr.bf16.gmra.mxu0 %v3383_v50  ;;  %3270 = vmatmul.mubr.bf16.gmra.mxu1 %v3384_v51 }
  0x7e   : > { %3209 = vmatprep.mubr.bf16.mxu0 %v3385_v52  ;;  %3273 = vmatprep.mubr.bf16.mxu1 %v3386_v53 }
  0x85   : > { %3210 = vmatmul.mubr.bf16.gmra.mxu0 %v3387_v54  ;;  %3274 = vmatmul.mubr.bf16.gmra.mxu1 %v3388_v55 }
  0x86   : > { %3213 = vmatprep.mubr.bf16.mxu0 %v3389_v56  ;;  %3277 = vmatprep.mubr.bf16.mxu1 %v3390_v57 }
  0x8d   : > { %3214 = vmatmul.mubr.bf16.gmra.mxu0 %v3391_v58  ;;  %3278 = vmatmul.mubr.bf16.gmra.mxu1 %v3392_v59 }
  0x8e   : > { %3217 = vmatprep.mubr.bf16.mxu0 %v3393_v60  ;;  %3281 = vmatprep.mubr.bf16.mxu1 %v3394_v61 }
  0x95   : > { %3218 = vmatmul.mubr.bf16.gmra.mxu0 %v3395_v62  ;;  %3282 = vmatmul.mubr.bf16.gmra.mxu1 %v3396_v63 }
  0x96   : > { %3221 = vmatprep.mubr.bf16.mxu0 %v3397_v0  ;;  %3285 = vmatprep.mubr.bf16.mxu1 %v3398_v1 }
  0x9d   : > { %3222 = vmatmul.mubr.bf16.gmra.mxu0 %v3399_v2  ;;  %3286 = vmatmul.mubr.bf16.gmra.mxu1 %v3400_v3 }
  0x9e   : > { %3225 = vmatprep.mubr.bf16.mxu0 %v3401_v4  ;;  %3289 = vmatprep.mubr.bf16.mxu1 %v3402_v5 }
  0xa5   : > { %3226 = vmatmul.mubr.bf16.gmra.mxu0 %v3403_v6  ;;  %3290 = vmatmul.mubr.bf16.gmra.mxu1 %v3404_v7 }
  0xed   : > { %v3167_v9 = vpop.f32.mrf.mxu0  ;;  %v3231_v10 = vpop.f32.mrf.mxu1 }
  0xee   : > { %v852_v11 = vadd.f32 %v3167_v9, %v3569_v8  ;;  %v1108_v12 = vadd.f32 %v3231_v10, %v3569_v8 }
  0xef   : > { %v843_v13 = vpop.f32.mrf.mxu0  ;;  %v1099_v14 = vpop.f32.mrf.mxu1 }
  0xf0   : > { %v844_v15 = vadd.f32 %v3569_v8, %v843_v13  ;;  %v1100_v16 = vadd.f32 %v3569_v8, %v1099_v14  ;;  %v1356_v19 = vmul.f32 0.2, %v852_v11  ;;  %v1420_v20 = vmul.f32 0.2, %v1108_v12 }
  0xf1   : > { %v3168_v17 = vpop.f32.mrf.mxu0  ;;  %v3232_v18 = vpop.f32.mrf.mxu1 }
  0xf2   : > { %v855_v21 = vadd.f32 %v3168_v17, %v3569_v8  ;;  %v1111_v22 = vadd.f32 %v3232_v18, %v3569_v8  ;;  %v1354_v25 = vmul.f32 0.2, %v844_v15  ;;  %v1418_v26 = vmul.f32 0.2, %v1100_v16 }
  0xf3   : > { %v846_v23 = vpop.f32.mrf.mxu0  ;;  %v1102_v24 = vpop.f32.mrf.mxu1  ;;  %v1484_v33 = vmax.f32 %v852_v11, %v1356_v19  ;;  %v1548_v34 = vmax.f32 %v1108_v12, %v1420_v20 }
  0xf4   : > { %v847_v27 = vadd.f32 %v3569_v8, %v846_v23  ;;  %v1103_v28 = vadd.f32 %v3569_v8, %v1102_v24  ;;  %v1357_v29 = vmul.f32 0.2, %v855_v21  ;;  %v1421_v30 = vmul.f32 0.2, %v1111_v22 }
  0xf5   : > { %v3171_v31 = vpop.f32.mrf.mxu0  ;;  %v3235_v32 = vpop.f32.mrf.mxu1  ;;  %v1482_v43 = vmax.f32 %v844_v15, %v1354_v25  ;;  %v1546_v44 = vmax.f32 %v1100_v16, %v1418_v26 }
  0xf6   : > { %v1355_v35 = vmul.f32 0.2, %v847_v27  ;;  %v1419_v36 = vmul.f32 0.2, %v1103_v28  ;;  %v1485_v37 = vmax.f32 %v855_v21, %v1357_v29  ;;  %v1549_v38 = vmax.f32 %v1111_v22, %v1421_v30 }
  0xf7   : > { %v868_v39 = vadd.f32 %v3171_v31, %v3569_v8  ;;  %v1124_v40 = vadd.f32 %v3235_v32, %v3569_v8  ;;  %v859_v41 = vpop.f32.mrf.mxu0  ;;  %v1115_v42 = vpop.f32.mrf.mxu1 }
  0xf8   : > { %v1483_v45 = vmax.f32 %v847_v27, %v1355_v35  ;;  %v1547_v46 = vmax.f32 %v1103_v28, %v1419_v36  ;;  %v2702_v47 = vpack.c.bf16 %v1485_v37, %v1484_v33  ;;  %v2862_v48 = vpack.c.bf16 %v1549_v38, %v1548_v34 }
  0xf9   : > { %v860_v49 = vadd.f32 %v3569_v8, %v859_v41  ;;  %v1116_v50 = vadd.f32 %v3569_v8, %v1115_v42  ;;  %v3172_v51 = vpop.f32.mrf.mxu0  ;;  %v3236_v52 = vpop.f32.mrf.mxu1  ;;  %v1360_v55 = vmul.f32 0.2, %v868_v39  ;;  %v1424_v56 = vmul.f32 0.2, %v1124_v40 }
  0xfa   : > { %v2697_v53 = vpack.c.bf16 %v1483_v45, %v1482_v43  ;;  %v2857_v54 = vpack.c.bf16 %v1547_v46, %v1546_v44  ;;  %3014 = vst [vmem:[%s3586_s17 + $0x8] sm:$0xff] %v2702_v47   ;;  %3046 = vst [vmem:[%s3586_s17 + $0x108] sm:$0xff] %v2862_v48   ;;  %v871_v57 = vadd.f32 %v3172_v51, %v3569_v8 }
  0xfb   : > { %v1127_v58 = vadd.f32 %v3236_v52, %v3569_v8  ;;  %v862_v59 = vpop.f32.mrf.mxu0  ;;  %v1118_v60 = vpop.f32.mrf.mxu1  ;;  %v1358_v61 = vmul.f32 0.2, %v860_v49  ;;  %v1422_v62 = vmul.f32 0.2, %v1116_v50  ;;  %v1488_v10 = vmax.f32 %v868_v39, %v1360_v55 }
  0xfc   : > { %2698 = vst [vmem:[%s3586_s17] sm:$0xff] %v2697_v53   ;;  %3045 = vst [vmem:[%s3586_s17 + $0x100] sm:$0xff] %v2857_v54   ;;  %v863_v63 = vadd.f32 %v3569_v8, %v862_v59  ;;  %v1119_v0 = vadd.f32 %v3569_v8, %v1118_v60  ;;  %v1361_v1 = vmul.f32 0.2, %v871_v57  ;;  %v1552_v11 = vmax.f32 %v1124_v40, %v1424_v56 }
  0xfd   : > { %v1425_v2 = vmul.f32 0.2, %v1127_v58  ;;  %v3175_v3 = vpop.f32.mrf.mxu0  ;;  %v3239_v4 = vpop.f32.mrf.mxu1  ;;  %v1486_v16 = vmax.f32 %v860_v49, %v1358_v61  ;;  %v1550_v17 = vmax.f32 %v1116_v50, %v1422_v62 }
  0xfe   : > { %v1359_v5 = vmul.f32 0.2, %v863_v63  ;;  %v1423_v6 = vmul.f32 0.2, %v1119_v0  ;;  %v884_v7 = vadd.f32 %v3175_v3, %v3569_v8  ;;  %v1140_v9 = vadd.f32 %v3239_v4, %v3569_v8 }
  0xff   : > { %v1489_v12 = vmax.f32 %v871_v57, %v1361_v1  ;;  %v1553_v13 = vmax.f32 %v1127_v58, %v1425_v2  ;;  %v875_v14 = vpop.f32.mrf.mxu0  ;;  %v1131_v15 = vpop.f32.mrf.mxu1 }
 0x100   : > { %v1487_v18 = vmax.f32 %v863_v63, %v1359_v5  ;;  %v1551_v19 = vmax.f32 %v1119_v0, %v1423_v6  ;;  %v876_v22 = vadd.f32 %v3569_v8, %v875_v14  ;;  %v1132_v23 = vadd.f32 %v3569_v8, %v1131_v15 }
 0x101   : > { %v2712_v20 = vpack.c.bf16 %v1489_v12, %v1488_v10  ;;  %v2872_v21 = vpack.c.bf16 %v1553_v13, %v1552_v11  ;;  %v3176_v24 = vpop.f32.mrf.mxu0  ;;  %v3240_v25 = vpop.f32.mrf.mxu1  ;;  %v1364_v28 = vmul.f32 0.2, %v884_v7  ;;  %v1428_v29 = vmul.f32 0.2, %v1140_v9 }
 0x102   : > { %v2707_v26 = vpack.c.bf16 %v1487_v18, %v1486_v16  ;;  %v2867_v27 = vpack.c.bf16 %v1551_v19, %v1550_v17  ;;  %v887_v30 = vadd.f32 %v3176_v24, %v3569_v8  ;;  %v1143_v31 = vadd.f32 %v3240_v25, %v3569_v8 }
 0x103   : > { %3016 = vst [vmem:[%s3586_s17 + $0x18] sm:$0xff] %v2712_v20   ;;  %3048 = vst [vmem:[%s3586_s17 + $0x118] sm:$0xff] %v2872_v21   ;;  %v878_v32 = vpop.f32.mrf.mxu0  ;;  %v1134_v33 = vpop.f32.mrf.mxu1  ;;  %v1362_v34 = vmul.f32 0.2, %v876_v22  ;;  %v1426_v35 = vmul.f32 0.2, %v1132_v23  ;;  %v1492_v42 = vmax.f32 %v884_v7, %v1364_v28  ;;  %v1556_v43 = vmax.f32 %v1140_v9, %v1428_v29 }
 0x104   : > { %3015 = vst [vmem:[%s3586_s17 + $0x10] sm:$0xff] %v2707_v26   ;;  %3047 = vst [vmem:[%s3586_s17 + $0x110] sm:$0xff] %v2867_v27   ;;  %v879_v36 = vadd.f32 %v3569_v8, %v878_v32  ;;  %v1135_v37 = vadd.f32 %v3569_v8, %v1134_v33  ;;  %v1365_v38 = vmul.f32 0.2, %v887_v30  ;;  %v1429_v39 = vmul.f32 0.2, %v1143_v31 }
 0x105   : > { %v3179_v40 = vpop.f32.mrf.mxu0  ;;  %v3243_v41 = vpop.f32.mrf.mxu1  ;;  %v1490_v52 = vmax.f32 %v876_v22, %v1362_v34  ;;  %v1554_v53 = vmax.f32 %v1132_v23, %v1426_v35 }
 0x106   : > { %v1363_v44 = vmul.f32 0.2, %v879_v36  ;;  %v1427_v45 = vmul.f32 0.2, %v1135_v37  ;;  %v1493_v46 = vmax.f32 %v887_v30, %v1365_v38  ;;  %v1557_v47 = vmax.f32 %v1143_v31, %v1429_v39 }
 0x107   : > { %v900_v48 = vadd.f32 %v3179_v40, %v3569_v8  ;;  %v1156_v49 = vadd.f32 %v3243_v41, %v3569_v8  ;;  %v891_v50 = vpop.f32.mrf.mxu0  ;;  %v1147_v51 = vpop.f32.mrf.mxu1 }
 0x108   : > { %v1491_v54 = vmax.f32 %v879_v36, %v1363_v44  ;;  %v1555_v55 = vmax.f32 %v1135_v37, %v1427_v45  ;;  %v2722_v56 = vpack.c.bf16 %v1493_v46, %v1492_v42  ;;  %v2882_v57 = vpack.c.bf16 %v1557_v47, %v1556_v43 }
 0x109   : > { %v892_v58 = vadd.f32 %v3569_v8, %v891_v50  ;;  %v1148_v59 = vadd.f32 %v3569_v8, %v1147_v51  ;;  %v3180_v60 = vpop.f32.mrf.mxu0  ;;  %v3244_v61 = vpop.f32.mrf.mxu1  ;;  %v1368_v0 = vmul.f32 0.2, %v900_v48  ;;  %v1432_v1 = vmul.f32 0.2, %v1156_v49 }
 0x10a   : > { %v2717_v62 = vpack.c.bf16 %v1491_v54, %v1490_v52  ;;  %v2877_v63 = vpack.c.bf16 %v1555_v55, %v1554_v53  ;;  %3018 = vst [vmem:[%s3586_s17 + $0x28] sm:$0xff] %v2722_v56   ;;  %3050 = vst [vmem:[%s3586_s17 + $0x128] sm:$0xff] %v2882_v57   ;;  %v903_v2 = vadd.f32 %v3180_v60, %v3569_v8 }
 0x10b   : > { %v1159_v3 = vadd.f32 %v3244_v61, %v3569_v8  ;;  %v894_v4 = vpop.f32.mrf.mxu0  ;;  %v1150_v5 = vpop.f32.mrf.mxu1  ;;  %v1366_v6 = vmul.f32 0.2, %v892_v58  ;;  %v1430_v7 = vmul.f32 0.2, %v1148_v59  ;;  %v1496_v19 = vmax.f32 %v900_v48, %v1368_v0 }
 0x10c   : > { %3017 = vst [vmem:[%s3586_s17 + $0x20] sm:$0xff] %v2717_v62   ;;  %3049 = vst [vmem:[%s3586_s17 + $0x120] sm:$0xff] %v2877_v63   ;;  %v895_v9 = vadd.f32 %v3569_v8, %v894_v4  ;;  %v1151_v10 = vadd.f32 %v3569_v8, %v1150_v5  ;;  %v1369_v11 = vmul.f32 0.2, %v903_v2  ;;  %v1560_v20 = vmax.f32 %v1156_v49, %v1432_v1 }
 0x10d   : > { %v1433_v12 = vmul.f32 0.2, %v1159_v3  ;;  %v3183_v13 = vpop.f32.mrf.mxu0  ;;  %v3247_v14 = vpop.f32.mrf.mxu1  ;;  %v1494_v25 = vmax.f32 %v892_v58, %v1366_v6  ;;  %v1558_v26 = vmax.f32 %v1148_v59, %v1430_v7 }
 0x10e   : > { %v1367_v15 = vmul.f32 0.2, %v895_v9  ;;  %v1431_v16 = vmul.f32 0.2, %v1151_v10  ;;  %v916_v17 = vadd.f32 %v3183_v13, %v3569_v8  ;;  %v1172_v18 = vadd.f32 %v3247_v14, %v3569_v8 }
 0x10f   : > { %v1497_v21 = vmax.f32 %v903_v2, %v1369_v11  ;;  %v1561_v22 = vmax.f32 %v1159_v3, %v1433_v12  ;;  %v907_v23 = vpop.f32.mrf.mxu0  ;;  %v1163_v24 = vpop.f32.mrf.mxu1 }
 0x110   : > { %v1495_v27 = vmax.f32 %v895_v9, %v1367_v15  ;;  %v1559_v28 = vmax.f32 %v1151_v10, %v1431_v16  ;;  %v908_v31 = vadd.f32 %v3569_v8, %v907_v23  ;;  %v1164_v32 = vadd.f32 %v3569_v8, %v1163_v24 }
 0x111   : > { %v2732_v29 = vpack.c.bf16 %v1497_v21, %v1496_v19  ;;  %v2892_v30 = vpack.c.bf16 %v1561_v22, %v1560_v20  ;;  %v3184_v33 = vpop.f32.mrf.mxu0  ;;  %v3248_v34 = vpop.f32.mrf.mxu1  ;;  %v1372_v37 = vmul.f32 0.2, %v916_v17  ;;  %v1436_v38 = vmul.f32 0.2, %v1172_v18 }
 0x112   : > { %v2727_v35 = vpack.c.bf16 %v1495_v27, %v1494_v25  ;;  %v2887_v36 = vpack.c.bf16 %v1559_v28, %v1558_v26  ;;  %v919_v39 = vadd.f32 %v3184_v33, %v3569_v8  ;;  %v1175_v40 = vadd.f32 %v3248_v34, %v3569_v8 }
 0x113   : > { %3020 = vst [vmem:[%s3586_s17 + $0x38] sm:$0xff] %v2732_v29   ;;  %3052 = vst [vmem:[%s3586_s17 + $0x138] sm:$0xff] %v2892_v30   ;;  %v910_v41 = vpop.f32.mrf.mxu0  ;;  %v1166_v42 = vpop.f32.mrf.mxu1  ;;  %v1370_v43 = vmul.f32 0.2, %v908_v31  ;;  %v1434_v44 = vmul.f32 0.2, %v1164_v32  ;;  %v1500_v51 = vmax.f32 %v916_v17, %v1372_v37  ;;  %v1564_v52 = vmax.f32 %v1172_v18, %v1436_v38 }
 0x114   : > { %3019 = vst [vmem:[%s3586_s17 + $0x30] sm:$0xff] %v2727_v35   ;;  %3051 = vst [vmem:[%s3586_s17 + $0x130] sm:$0xff] %v2887_v36   ;;  %v911_v45 = vadd.f32 %v3569_v8, %v910_v41  ;;  %v1167_v46 = vadd.f32 %v3569_v8, %v1166_v42  ;;  %v1373_v47 = vmul.f32 0.2, %v919_v39  ;;  %v1437_v48 = vmul.f32 0.2, %v1175_v40 }
 0x115   : > { %v3187_v49 = vpop.f32.mrf.mxu0  ;;  %v3251_v50 = vpop.f32.mrf.mxu1  ;;  %v1498_v61 = vmax.f32 %v908_v31, %v1370_v43  ;;  %v1562_v62 = vmax.f32 %v1164_v32, %v1434_v44 }
 0x116   : > { %v1371_v53 = vmul.f32 0.2, %v911_v45  ;;  %v1435_v54 = vmul.f32 0.2, %v1167_v46  ;;  %v1501_v55 = vmax.f32 %v919_v39, %v1373_v47  ;;  %v1565_v56 = vmax.f32 %v1175_v40, %v1437_v48 }
 0x117   : > { %v932_v57 = vadd.f32 %v3187_v49, %v3569_v8  ;;  %v1188_v58 = vadd.f32 %v3251_v50, %v3569_v8  ;;  %v923_v59 = vpop.f32.mrf.mxu0  ;;  %v1179_v60 = vpop.f32.mrf.mxu1 }
 0x118   : > { %v1499_v63 = vmax.f32 %v911_v45, %v1371_v53  ;;  %v1563_v0 = vmax.f32 %v1167_v46, %v1435_v54  ;;  %v2742_v1 = vpack.c.bf16 %v1501_v55, %v1500_v51  ;;  %v2902_v2 = vpack.c.bf16 %v1565_v56, %v1564_v52 }
 0x119   : > { %v924_v3 = vadd.f32 %v3569_v8, %v923_v59  ;;  %v1180_v4 = vadd.f32 %v3569_v8, %v1179_v60  ;;  %v3188_v5 = vpop.f32.mrf.mxu0  ;;  %v3252_v6 = vpop.f32.mrf.mxu1  ;;  %v1376_v10 = vmul.f32 0.2, %v932_v57  ;;  %v1440_v11 = vmul.f32 0.2, %v1188_v58 }
 0x11a   : > { %v2737_v7 = vpack.c.bf16 %v1499_v63, %v1498_v61  ;;  %v2897_v9 = vpack.c.bf16 %v1563_v0, %v1562_v62  ;;  %3022 = vst [vmem:[%s3586_s17 + $0x48] sm:$0xff] %v2742_v1   ;;  %3054 = vst [vmem:[%s3586_s17 + $0x148] sm:$0xff] %v2902_v2   ;;  %v935_v12 = vadd.f32 %v3188_v5, %v3569_v8 }
 0x11b   : > { %v1191_v13 = vadd.f32 %v3252_v6, %v3569_v8  ;;  %v926_v14 = vpop.f32.mrf.mxu0  ;;  %v1182_v15 = vpop.f32.mrf.mxu1  ;;  %v1374_v16 = vmul.f32 0.2, %v924_v3  ;;  %v1438_v17 = vmul.f32 0.2, %v1180_v4  ;;  %v1504_v28 = vmax.f32 %v932_v57, %v1376_v10 }
 0x11c   : > { %3021 = vst [vmem:[%s3586_s17 + $0x40] sm:$0xff] %v2737_v7   ;;  %3053 = vst [vmem:[%s3586_s17 + $0x140] sm:$0xff] %v2897_v9   ;;  %v927_v18 = vadd.f32 %v3569_v8, %v926_v14  ;;  %v1183_v19 = vadd.f32 %v3569_v8, %v1182_v15  ;;  %v1377_v20 = vmul.f32 0.2, %v935_v12  ;;  %v1568_v29 = vmax.f32 %v1188_v58, %v1440_v11 }
 0x11d   : > { %v1441_v21 = vmul.f32 0.2, %v1191_v13  ;;  %v3191_v22 = vpop.f32.mrf.mxu0  ;;  %v3255_v23 = vpop.f32.mrf.mxu1  ;;  %v1502_v34 = vmax.f32 %v924_v3, %v1374_v16  ;;  %v1566_v35 = vmax.f32 %v1180_v4, %v1438_v17 }
 0x11e   : > { %v1375_v24 = vmul.f32 0.2, %v927_v18  ;;  %v1439_v25 = vmul.f32 0.2, %v1183_v19  ;;  %v948_v26 = vadd.f32 %v3191_v22, %v3569_v8  ;;  %v1204_v27 = vadd.f32 %v3255_v23, %v3569_v8 }
 0x11f   : > { %v1505_v30 = vmax.f32 %v935_v12, %v1377_v20  ;;  %v1569_v31 = vmax.f32 %v1191_v13, %v1441_v21  ;;  %v939_v32 = vpop.f32.mrf.mxu0  ;;  %v1195_v33 = vpop.f32.mrf.mxu1 }
 0x120   : > { %v1503_v36 = vmax.f32 %v927_v18, %v1375_v24  ;;  %v1567_v37 = vmax.f32 %v1183_v19, %v1439_v25  ;;  %v940_v40 = vadd.f32 %v3569_v8, %v939_v32  ;;  %v1196_v41 = vadd.f32 %v3569_v8, %v1195_v33 }
 0x121   : > { %v2752_v38 = vpack.c.bf16 %v1505_v30, %v1504_v28  ;;  %v2912_v39 = vpack.c.bf16 %v1569_v31, %v1568_v29  ;;  %v3192_v42 = vpop.f32.mrf.mxu0  ;;  %v3256_v43 = vpop.f32.mrf.mxu1  ;;  %v1380_v46 = vmul.f32 0.2, %v948_v26  ;;  %v1444_v47 = vmul.f32 0.2, %v1204_v27 }
 0x122   : > { %v2747_v44 = vpack.c.bf16 %v1503_v36, %v1502_v34  ;;  %v2907_v45 = vpack.c.bf16 %v1567_v37, %v1566_v35  ;;  %v951_v48 = vadd.f32 %v3192_v42, %v3569_v8  ;;  %v1207_v49 = vadd.f32 %v3256_v43, %v3569_v8 }
 0x123   : > { %3024 = vst [vmem:[%s3586_s17 + $0x58] sm:$0xff] %v2752_v38   ;;  %3056 = vst [vmem:[%s3586_s17 + $0x158] sm:$0xff] %v2912_v39   ;;  %v942_v50 = vpop.f32.mrf.mxu0  ;;  %v1198_v51 = vpop.f32.mrf.mxu1  ;;  %v1378_v52 = vmul.f32 0.2, %v940_v40  ;;  %v1442_v53 = vmul.f32 0.2, %v1196_v41  ;;  %v1508_v60 = vmax.f32 %v948_v26, %v1380_v46  ;;  %v1572_v61 = vmax.f32 %v1204_v27, %v1444_v47 }
 0x124   : > { %3023 = vst [vmem:[%s3586_s17 + $0x50] sm:$0xff] %v2747_v44   ;;  %3055 = vst [vmem:[%s3586_s17 + $0x150] sm:$0xff] %v2907_v45   ;;  %v943_v54 = vadd.f32 %v3569_v8, %v942_v50  ;;  %v1199_v55 = vadd.f32 %v3569_v8, %v1198_v51  ;;  %v1381_v56 = vmul.f32 0.2, %v951_v48  ;;  %v1445_v57 = vmul.f32 0.2, %v1207_v49 }
 0x125   : > { %v3195_v58 = vpop.f32.mrf.mxu0  ;;  %v3259_v59 = vpop.f32.mrf.mxu1  ;;  %v1506_v6 = vmax.f32 %v940_v40, %v1378_v52  ;;  %v1570_v7 = vmax.f32 %v1196_v41, %v1442_v53 }
 0x126   : > { %v1379_v62 = vmul.f32 0.2, %v943_v54  ;;  %v1443_v63 = vmul.f32 0.2, %v1199_v55  ;;  %v1509_v0 = vmax.f32 %v951_v48, %v1381_v56  ;;  %v1573_v1 = vmax.f32 %v1207_v49, %v1445_v57 }
 0x127   : > { %v964_v2 = vadd.f32 %v3195_v58, %v3569_v8  ;;  %v1220_v3 = vadd.f32 %v3259_v59, %v3569_v8  ;;  %v955_v4 = vpop.f32.mrf.mxu0  ;;  %v1211_v5 = vpop.f32.mrf.mxu1 }
 0x128   : > { %v1507_v9 = vmax.f32 %v943_v54, %v1379_v62  ;;  %v1571_v10 = vmax.f32 %v1199_v55, %v1443_v63  ;;  %v2762_v11 = vpack.c.bf16 %v1509_v0, %v1508_v60  ;;  %v2922_v12 = vpack.c.bf16 %v1573_v1, %v1572_v61 }
 0x129   : > { %v956_v13 = vadd.f32 %v3569_v8, %v955_v4  ;;  %v1212_v14 = vadd.f32 %v3569_v8, %v1211_v5  ;;  %v3196_v15 = vpop.f32.mrf.mxu0  ;;  %v3260_v16 = vpop.f32.mrf.mxu1  ;;  %v1384_v19 = vmul.f32 0.2, %v964_v2  ;;  %v1448_v20 = vmul.f32 0.2, %v1220_v3 }
 0x12a   : > { %v2757_v17 = vpack.c.bf16 %v1507_v9, %v1506_v6  ;;  %v2917_v18 = vpack.c.bf16 %v1571_v10, %v1570_v7  ;;  %3026 = vst [vmem:[%s3586_s17 + $0x68] sm:$0xff] %v2762_v11   ;;  %3058 = vst [vmem:[%s3586_s17 + $0x168] sm:$0xff] %v2922_v12   ;;  %v967_v21 = vadd.f32 %v3196_v15, %v3569_v8 }
 0x12b   : > { %v1223_v22 = vadd.f32 %v3260_v16, %v3569_v8  ;;  %v958_v23 = vpop.f32.mrf.mxu0  ;;  %v1214_v24 = vpop.f32.mrf.mxu1  ;;  %v1382_v25 = vmul.f32 0.2, %v956_v13  ;;  %v1446_v26 = vmul.f32 0.2, %v1212_v14  ;;  %v1512_v37 = vmax.f32 %v964_v2, %v1384_v19 }
 0x12c   : > { %3025 = vst [vmem:[%s3586_s17 + $0x60] sm:$0xff] %v2757_v17   ;;  %3057 = vst [vmem:[%s3586_s17 + $0x160] sm:$0xff] %v2917_v18   ;;  %v959_v27 = vadd.f32 %v3569_v8, %v958_v23  ;;  %v1215_v28 = vadd.f32 %v3569_v8, %v1214_v24  ;;  %v1385_v29 = vmul.f32 0.2, %v967_v21  ;;  %v1576_v38 = vmax.f32 %v1220_v3, %v1448_v20 }
 0x12d   : > { %v1449_v30 = vmul.f32 0.2, %v1223_v22  ;;  %v3199_v31 = vpop.f32.mrf.mxu0  ;;  %v3263_v32 = vpop.f32.mrf.mxu1  ;;  %v1510_v43 = vmax.f32 %v956_v13, %v1382_v25  ;;  %v1574_v44 = vmax.f32 %v1212_v14, %v1446_v26 }
 0x12e   : > { %v1383_v33 = vmul.f32 0.2, %v959_v27  ;;  %v1447_v34 = vmul.f32 0.2, %v1215_v28  ;;  %v980_v35 = vadd.f32 %v3199_v31, %v3569_v8  ;;  %v1236_v36 = vadd.f32 %v3263_v32, %v3569_v8 }
 0x12f   : > { %v1513_v39 = vmax.f32 %v967_v21, %v1385_v29  ;;  %v1577_v40 = vmax.f32 %v1223_v22, %v1449_v30  ;;  %v971_v41 = vpop.f32.mrf.mxu0  ;;  %v1227_v42 = vpop.f32.mrf.mxu1 }
 0x130   : > { %v1511_v45 = vmax.f32 %v959_v27, %v1383_v33  ;;  %v1575_v46 = vmax.f32 %v1215_v28, %v1447_v34  ;;  %v972_v49 = vadd.f32 %v3569_v8, %v971_v41  ;;  %v1228_v50 = vadd.f32 %v3569_v8, %v1227_v42 }
 0x131   : > { %v2772_v47 = vpack.c.bf16 %v1513_v39, %v1512_v37  ;;  %v2932_v48 = vpack.c.bf16 %v1577_v40, %v1576_v38  ;;  %v3200_v51 = vpop.f32.mrf.mxu0  ;;  %v3264_v52 = vpop.f32.mrf.mxu1  ;;  %v1388_v55 = vmul.f32 0.2, %v980_v35  ;;  %v1452_v56 = vmul.f32 0.2, %v1236_v36 }
 0x132   : > { %v2767_v53 = vpack.c.bf16 %v1511_v45, %v1510_v43  ;;  %v2927_v54 = vpack.c.bf16 %v1575_v46, %v1574_v44  ;;  %v983_v57 = vadd.f32 %v3200_v51, %v3569_v8  ;;  %v1239_v58 = vadd.f32 %v3264_v52, %v3569_v8 }
 0x133   : > { %3028 = vst [vmem:[%s3586_s17 + $0x78] sm:$0xff] %v2772_v47   ;;  %3060 = vst [vmem:[%s3586_s17 + $0x178] sm:$0xff] %v2932_v48   ;;  %v974_v59 = vpop.f32.mrf.mxu0  ;;  %v1230_v60 = vpop.f32.mrf.mxu1  ;;  %v1386_v61 = vmul.f32 0.2, %v972_v49  ;;  %v1450_v62 = vmul.f32 0.2, %v1228_v50  ;;  %v1516_v5 = vmax.f32 %v980_v35, %v1388_v55  ;;  %v1580_v6 = vmax.f32 %v1236_v36, %v1452_v56 }
 0x134   : > { %3027 = vst [vmem:[%s3586_s17 + $0x70] sm:$0xff] %v2767_v53   ;;  %3059 = vst [vmem:[%s3586_s17 + $0x170] sm:$0xff] %v2927_v54   ;;  %v975_v63 = vadd.f32 %v3569_v8, %v974_v59  ;;  %v1231_v0 = vadd.f32 %v3569_v8, %v1230_v60  ;;  %v1389_v1 = vmul.f32 0.2, %v983_v57  ;;  %v1453_v2 = vmul.f32 0.2, %v1239_v58 }
 0x135   : > { %v3203_v3 = vpop.f32.mrf.mxu0  ;;  %v3267_v4 = vpop.f32.mrf.mxu1  ;;  %v1514_v16 = vmax.f32 %v972_v49, %v1386_v61  ;;  %v1578_v17 = vmax.f32 %v1228_v50, %v1450_v62 }
 0x136   : > { %v1387_v7 = vmul.f32 0.2, %v975_v63  ;;  %v1451_v9 = vmul.f32 0.2, %v1231_v0  ;;  %v1517_v10 = vmax.f32 %v983_v57, %v1389_v1  ;;  %v1581_v11 = vmax.f32 %v1239_v58, %v1453_v2 }
 0x137   : > { %v996_v12 = vadd.f32 %v3203_v3, %v3569_v8  ;;  %v1252_v13 = vadd.f32 %v3267_v4, %v3569_v8  ;;  %v987_v14 = vpop.f32.mrf.mxu0  ;;  %v1243_v15 = vpop.f32.mrf.mxu1 }
 0x138   : > { %v1515_v18 = vmax.f32 %v975_v63, %v1387_v7  ;;  %v1579_v19 = vmax.f32 %v1231_v0, %v1451_v9  ;;  %v2782_v20 = vpack.c.bf16 %v1517_v10, %v1516_v5  ;;  %v2942_v21 = vpack.c.bf16 %v1581_v11, %v1580_v6 }
 0x139   : > { %v988_v22 = vadd.f32 %v3569_v8, %v987_v14  ;;  %v1244_v23 = vadd.f32 %v3569_v8, %v1243_v15  ;;  %v3204_v24 = vpop.f32.mrf.mxu0  ;;  %v3268_v25 = vpop.f32.mrf.mxu1  ;;  %v1392_v28 = vmul.f32 0.2, %v996_v12  ;;  %v1456_v29 = vmul.f32 0.2, %v1252_v13 }
 0x13a   : > { %v2777_v26 = vpack.c.bf16 %v1515_v18, %v1514_v16  ;;  %v2937_v27 = vpack.c.bf16 %v1579_v19, %v1578_v17  ;;  %3030 = vst [vmem:[%s3586_s17 + $0x88] sm:$0xff] %v2782_v20   ;;  %3062 = vst [vmem:[%s3586_s17 + $0x188] sm:$0xff] %v2942_v21   ;;  %v999_v30 = vadd.f32 %v3204_v24, %v3569_v8 }
 0x13b   : > { %v1255_v31 = vadd.f32 %v3268_v25, %v3569_v8  ;;  %v990_v32 = vpop.f32.mrf.mxu0  ;;  %v1246_v33 = vpop.f32.mrf.mxu1  ;;  %v1390_v34 = vmul.f32 0.2, %v988_v22  ;;  %v1454_v35 = vmul.f32 0.2, %v1244_v23  ;;  %v1520_v46 = vmax.f32 %v996_v12, %v1392_v28 }
 0x13c   : > { %3029 = vst [vmem:[%s3586_s17 + $0x80] sm:$0xff] %v2777_v26   ;;  %3061 = vst [vmem:[%s3586_s17 + $0x180] sm:$0xff] %v2937_v27   ;;  %v991_v36 = vadd.f32 %v3569_v8, %v990_v32  ;;  %v1247_v37 = vadd.f32 %v3569_v8, %v1246_v33  ;;  %v1393_v38 = vmul.f32 0.2, %v999_v30  ;;  %v1584_v47 = vmax.f32 %v1252_v13, %v1456_v29 }
 0x13d   : > { %v1457_v39 = vmul.f32 0.2, %v1255_v31  ;;  %v3207_v40 = vpop.f32.mrf.mxu0  ;;  %v3271_v41 = vpop.f32.mrf.mxu1  ;;  %v1518_v52 = vmax.f32 %v988_v22, %v1390_v34  ;;  %v1582_v53 = vmax.f32 %v1244_v23, %v1454_v35 }
 0x13e   : > { %v1391_v42 = vmul.f32 0.2, %v991_v36  ;;  %v1455_v43 = vmul.f32 0.2, %v1247_v37  ;;  %v1012_v44 = vadd.f32 %v3207_v40, %v3569_v8  ;;  %v1268_v45 = vadd.f32 %v3271_v41, %v3569_v8 }
 0x13f   : > { %v1521_v48 = vmax.f32 %v999_v30, %v1393_v38  ;;  %v1585_v49 = vmax.f32 %v1255_v31, %v1457_v39  ;;  %v1003_v50 = vpop.f32.mrf.mxu0  ;;  %v1259_v51 = vpop.f32.mrf.mxu1 }
 0x140   : > { %v1519_v54 = vmax.f32 %v991_v36, %v1391_v42  ;;  %v1583_v55 = vmax.f32 %v1247_v37, %v1455_v43  ;;  %v1004_v58 = vadd.f32 %v3569_v8, %v1003_v50  ;;  %v1260_v59 = vadd.f32 %v3569_v8, %v1259_v51 }
 0x141   : > { %v2792_v56 = vpack.c.bf16 %v1521_v48, %v1520_v46  ;;  %v2952_v57 = vpack.c.bf16 %v1585_v49, %v1584_v47  ;;  %v3208_v60 = vpop.f32.mrf.mxu0  ;;  %v3272_v61 = vpop.f32.mrf.mxu1  ;;  %v1396_v0 = vmul.f32 0.2, %v1012_v44  ;;  %v1460_v1 = vmul.f32 0.2, %v1268_v45 }
 0x142   : > { %v2787_v62 = vpack.c.bf16 %v1519_v54, %v1518_v52  ;;  %v2947_v63 = vpack.c.bf16 %v1583_v55, %v1582_v53  ;;  %v1015_v2 = vadd.f32 %v3208_v60, %v3569_v8  ;;  %v1271_v3 = vadd.f32 %v3272_v61, %v3569_v8 }
 0x143   : > { %3032 = vst [vmem:[%s3586_s17 + $0x98] sm:$0xff] %v2792_v56   ;;  %3064 = vst [vmem:[%s3586_s17 + $0x198] sm:$0xff] %v2952_v57   ;;  %v1006_v4 = vpop.f32.mrf.mxu0  ;;  %v1262_v5 = vpop.f32.mrf.mxu1  ;;  %v1394_v6 = vmul.f32 0.2, %v1004_v58  ;;  %v1458_v7 = vmul.f32 0.2, %v1260_v59  ;;  %v1524_v15 = vmax.f32 %v1012_v44, %v1396_v0  ;;  %v1588_v16 = vmax.f32 %v1268_v45, %v1460_v1 }
 0x144   : > { %3031 = vst [vmem:[%s3586_s17 + $0x90] sm:$0xff] %v2787_v62   ;;  %3063 = vst [vmem:[%s3586_s17 + $0x190] sm:$0xff] %v2947_v63   ;;  %v1007_v9 = vadd.f32 %v3569_v8, %v1006_v4  ;;  %v1263_v10 = vadd.f32 %v3569_v8, %v1262_v5  ;;  %v1397_v11 = vmul.f32 0.2, %v1015_v2  ;;  %v1461_v12 = vmul.f32 0.2, %v1271_v3 }
 0x145   : > { %v3211_v13 = vpop.f32.mrf.mxu0  ;;  %v3275_v14 = vpop.f32.mrf.mxu1  ;;  %v1522_v25 = vmax.f32 %v1004_v58, %v1394_v6  ;;  %v1586_v26 = vmax.f32 %v1260_v59, %v1458_v7 }
 0x146   : > { %v1395_v17 = vmul.f32 0.2, %v1007_v9  ;;  %v1459_v18 = vmul.f32 0.2, %v1263_v10  ;;  %v1525_v19 = vmax.f32 %v1015_v2, %v1397_v11  ;;  %v1589_v20 = vmax.f32 %v1271_v3, %v1461_v12 }
 0x147   : > { %v1028_v21 = vadd.f32 %v3211_v13, %v3569_v8  ;;  %v1284_v22 = vadd.f32 %v3275_v14, %v3569_v8  ;;  %v1019_v23 = vpop.f32.mrf.mxu0  ;;  %v1275_v24 = vpop.f32.mrf.mxu1 }
 0x148   : > { %v1523_v27 = vmax.f32 %v1007_v9, %v1395_v17  ;;  %v1587_v28 = vmax.f32 %v1263_v10, %v1459_v18  ;;  %v2802_v29 = vpack.c.bf16 %v1525_v19, %v1524_v15  ;;  %v2962_v30 = vpack.c.bf16 %v1589_v20, %v1588_v16 }
 0x149   : > { %v1020_v31 = vadd.f32 %v3569_v8, %v1019_v23  ;;  %v1276_v32 = vadd.f32 %v3569_v8, %v1275_v24  ;;  %v3212_v33 = vpop.f32.mrf.mxu0  ;;  %v3276_v34 = vpop.f32.mrf.mxu1  ;;  %v1400_v37 = vmul.f32 0.2, %v1028_v21  ;;  %v1464_v38 = vmul.f32 0.2, %v1284_v22 }
 0x14a   : > { %v2797_v35 = vpack.c.bf16 %v1523_v27, %v1522_v25  ;;  %v2957_v36 = vpack.c.bf16 %v1587_v28, %v1586_v26  ;;  %3034 = vst [vmem:[%s3586_s17 + $0xa8] sm:$0xff] %v2802_v29   ;;  %3066 = vst [vmem:[%s3586_s17 + $0x1a8] sm:$0xff] %v2962_v30   ;;  %v1031_v39 = vadd.f32 %v3212_v33, %v3569_v8  ;;  %v3733_v30 = vld [vmem:[%s3786_s2] ss:$0 sm:$0xff] }
 0x14b   : > { %v1287_v40 = vadd.f32 %v3276_v34, %v3569_v8  ;;  %v1022_v41 = vpop.f32.mrf.mxu0  ;;  %v1278_v42 = vpop.f32.mrf.mxu1  ;;  %v1398_v43 = vmul.f32 0.2, %v1020_v31  ;;  %v1462_v44 = vmul.f32 0.2, %v1276_v32  ;;  %v1528_v55 = vmax.f32 %v1028_v21, %v1400_v37 }
 0x14c   : > { %3033 = vst [vmem:[%s3586_s17 + $0xa0] sm:$0xff] %v2797_v35   ;;  %3065 = vst [vmem:[%s3586_s17 + $0x1a0] sm:$0xff] %v2957_v36   ;;  %v1023_v45 = vadd.f32 %v3569_v8, %v1022_v41  ;;  %v1279_v46 = vadd.f32 %v3569_v8, %v1278_v42  ;;  %v1401_v47 = vmul.f32 0.2, %v1031_v39  ;;  %v1592_v56 = vmax.f32 %v1284_v22, %v1464_v38 }
 0x14d   : > { %v1465_v48 = vmul.f32 0.2, %v1287_v40  ;;  %v3215_v49 = vpop.f32.mrf.mxu0  ;;  %v3279_v50 = vpop.f32.mrf.mxu1  ;;  %v1526_v61 = vmax.f32 %v1020_v31, %v1398_v43  ;;  %v1590_v62 = vmax.f32 %v1276_v32, %v1462_v44 }
 0x14e   : > { %v1399_v51 = vmul.f32 0.2, %v1023_v45  ;;  %v1463_v52 = vmul.f32 0.2, %v1279_v46  ;;  %v1044_v53 = vadd.f32 %v3215_v49, %v3569_v8  ;;  %v1300_v54 = vadd.f32 %v3279_v50, %v3569_v8 }
 0x14f   : > { %v1529_v57 = vmax.f32 %v1031_v39, %v1401_v47  ;;  %v1593_v58 = vmax.f32 %v1287_v40, %v1465_v48  ;;  %v1035_v59 = vpop.f32.mrf.mxu0  ;;  %v1291_v60 = vpop.f32.mrf.mxu1 }
 0x150   : > { %v1527_v63 = vmax.f32 %v1023_v45, %v1399_v51  ;;  %v1591_v0 = vmax.f32 %v1279_v46, %v1463_v52  ;;  %v1036_v3 = vadd.f32 %v3569_v8, %v1035_v59  ;;  %v1292_v4 = vadd.f32 %v3569_v8, %v1291_v60 }
 0x151   : > { %v2812_v1 = vpack.c.bf16 %v1529_v57, %v1528_v55  ;;  %v2972_v2 = vpack.c.bf16 %v1593_v58, %v1592_v56  ;;  %v3216_v5 = vpop.f32.mrf.mxu0  ;;  %v3280_v6 = vpop.f32.mrf.mxu1  ;;  %v1404_v10 = vmul.f32 0.2, %v1044_v53  ;;  %v1468_v11 = vmul.f32 0.2, %v1300_v54 }
 0x152   : > { %v2807_v7 = vpack.c.bf16 %v1527_v63, %v1526_v61  ;;  %v2967_v9 = vpack.c.bf16 %v1591_v0, %v1590_v62  ;;  %v1047_v12 = vadd.f32 %v3216_v5, %v3569_v8  ;;  %v1303_v13 = vadd.f32 %v3280_v6, %v3569_v8 }
 0x153   : > { %3036 = vst [vmem:[%s3586_s17 + $0xb8] sm:$0xff] %v2812_v1   ;;  %3068 = vst [vmem:[%s3586_s17 + $0x1b8] sm:$0xff] %v2972_v2   ;;  %v1038_v14 = vpop.f32.mrf.mxu0  ;;  %v1294_v15 = vpop.f32.mrf.mxu1  ;;  %v1402_v16 = vmul.f32 0.2, %v1036_v3  ;;  %v1466_v17 = vmul.f32 0.2, %v1292_v4  ;;  %v1532_v24 = vmax.f32 %v1044_v53, %v1404_v10  ;;  %v1596_v25 = vmax.f32 %v1300_v54, %v1468_v11 }
 0x154   : > { %3035 = vst [vmem:[%s3586_s17 + $0xb0] sm:$0xff] %v2807_v7   ;;  %3067 = vst [vmem:[%s3586_s17 + $0x1b0] sm:$0xff] %v2967_v9   ;;  %v1039_v18 = vadd.f32 %v3569_v8, %v1038_v14  ;;  %v1295_v19 = vadd.f32 %v3569_v8, %v1294_v15  ;;  %v1405_v20 = vmul.f32 0.2, %v1047_v12  ;;  %v1469_v21 = vmul.f32 0.2, %v1303_v13 }
 0x155   : > { %v3219_v22 = vpop.f32.mrf.mxu0  ;;  %v3283_v23 = vpop.f32.mrf.mxu1  ;;  %v1530_v34 = vmax.f32 %v1036_v3, %v1402_v16  ;;  %v1594_v35 = vmax.f32 %v1292_v4, %v1466_v17 }
 0x156   : > { %v1403_v26 = vmul.f32 0.2, %v1039_v18  ;;  %v1467_v27 = vmul.f32 0.2, %v1295_v19  ;;  %v1533_v28 = vmax.f32 %v1047_v12, %v1405_v20  ;;  %v1597_v29 = vmax.f32 %v1303_v13, %v1469_v21 }
 0x157   : > { %v1060_v31 = vadd.f32 %v3733_v30, %v3219_v22  ;;  %v1316_v8 = vadd.f32 %v3733_v30, %v3283_v23  ;;  %v1051_v32 = vpop.f32.mrf.mxu0  ;;  %v1307_v33 = vpop.f32.mrf.mxu1 }
 0x158   : > { %v1531_v36 = vmax.f32 %v1039_v18, %v1403_v26  ;;  %v1595_v37 = vmax.f32 %v1295_v19, %v1467_v27  ;;  %v2822_v38 = vpack.c.bf16 %v1533_v28, %v1532_v24  ;;  %v2982_v39 = vpack.c.bf16 %v1597_v29, %v1596_v25 }
 0x159   : > { %v1052_v40 = vadd.f32 %v3733_v30, %v1051_v32  ;;  %v1308_v41 = vadd.f32 %v3733_v30, %v1307_v33  ;;  %v3220_v42 = vpop.f32.mrf.mxu0  ;;  %v3284_v43 = vpop.f32.mrf.mxu1  ;;  %v1408_v46 = vmul.f32 0.2, %v1060_v31  ;;  %v1472_v47 = vmul.f32 0.2, %v1316_v8 }
 0x15a   : > { %v2817_v44 = vpack.c.bf16 %v1531_v36, %v1530_v34  ;;  %v2977_v45 = vpack.c.bf16 %v1595_v37, %v1594_v35  ;;  %3038 = vst [vmem:[%s3586_s17 + $0xc8] sm:$0xff] %v2822_v38   ;;  %3070 = vst [vmem:[%s3586_s17 + $0x1c8] sm:$0xff] %v2982_v39   ;;  %v1063_v48 = vadd.f32 %v3733_v30, %v3220_v42 }
 0x15b   : > { %v1319_v49 = vadd.f32 %v3733_v30, %v3284_v43  ;;  %v1054_v50 = vpop.f32.mrf.mxu0  ;;  %v1310_v51 = vpop.f32.mrf.mxu1  ;;  %v1406_v52 = vmul.f32 0.2, %v1052_v40  ;;  %v1470_v53 = vmul.f32 0.2, %v1308_v41  ;;  %v1536_v0 = vmax.f32 %v1060_v31, %v1408_v46 }
 0x15c   : > { %3037 = vst [vmem:[%s3586_s17 + $0xc0] sm:$0xff] %v2817_v44   ;;  %3069 = vst [vmem:[%s3586_s17 + $0x1c0] sm:$0xff] %v2977_v45   ;;  %v1055_v54 = vadd.f32 %v3733_v30, %v1054_v50  ;;  %v1311_v55 = vadd.f32 %v3733_v30, %v1310_v51  ;;  %v1409_v56 = vmul.f32 0.2, %v1063_v48  ;;  %v1600_v1 = vmax.f32 %v1316_v8, %v1472_v47 }
 0x15d   : > { %v1473_v57 = vmul.f32 0.2, %v1319_v49  ;;  %v3223_v58 = vpop.f32.mrf.mxu0  ;;  %v3287_v59 = vpop.f32.mrf.mxu1  ;;  %v1534_v6 = vmax.f32 %v1052_v40, %v1406_v52  ;;  %v1598_v7 = vmax.f32 %v1308_v41, %v1470_v53 }
 0x15e   : > { %v1407_v60 = vmul.f32 0.2, %v1055_v54  ;;  %v1471_v61 = vmul.f32 0.2, %v1311_v55  ;;  %v1076_v62 = vadd.f32 %v3733_v30, %v3223_v58  ;;  %v1332_v63 = vadd.f32 %v3733_v30, %v3287_v59 }
 0x15f   : > { %v1537_v2 = vmax.f32 %v1063_v48, %v1409_v56  ;;  %v1601_v3 = vmax.f32 %v1319_v49, %v1473_v57  ;;  %v1067_v4 = vpop.f32.mrf.mxu0  ;;  %v1323_v5 = vpop.f32.mrf.mxu1 }
 0x160   : > { %v1535_v9 = vmax.f32 %v1055_v54, %v1407_v60  ;;  %v1599_v10 = vmax.f32 %v1311_v55, %v1471_v61  ;;  %v1068_v13 = vadd.f32 %v3733_v30, %v1067_v4  ;;  %v1324_v14 = vadd.f32 %v3733_v30, %v1323_v5 }
 0x161   : > { %v2832_v11 = vpack.c.bf16 %v1537_v2, %v1536_v0  ;;  %v2992_v12 = vpack.c.bf16 %v1601_v3, %v1600_v1  ;;  %v3224_v15 = vpop.f32.mrf.mxu0  ;;  %v3288_v16 = vpop.f32.mrf.mxu1  ;;  %v1412_v19 = vmul.f32 0.2, %v1076_v62  ;;  %v1476_v20 = vmul.f32 0.2, %v1332_v63 }
 0x162   : > { %v2827_v17 = vpack.c.bf16 %v1535_v9, %v1534_v6  ;;  %v2987_v18 = vpack.c.bf16 %v1599_v10, %v1598_v7  ;;  %v1079_v21 = vadd.f32 %v3733_v30, %v3224_v15  ;;  %v1335_v22 = vadd.f32 %v3733_v30, %v3288_v16 }
 0x163   : > { %3040 = vst [vmem:[%s3586_s17 + $0xd8] sm:$0xff] %v2832_v11   ;;  %3072 = vst [vmem:[%s3586_s17 + $0x1d8] sm:$0xff] %v2992_v12   ;;  %v1070_v23 = vpop.f32.mrf.mxu0  ;;  %v1326_v24 = vpop.f32.mrf.mxu1  ;;  %v1410_v25 = vmul.f32 0.2, %v1068_v13  ;;  %v1474_v26 = vmul.f32 0.2, %v1324_v14  ;;  %v1540_v33 = vmax.f32 %v1076_v62, %v1412_v19  ;;  %v1604_v34 = vmax.f32 %v1332_v63, %v1476_v20 }
 0x164   : > { %3039 = vst [vmem:[%s3586_s17 + $0xd0] sm:$0xff] %v2827_v17   ;;  %3071 = vst [vmem:[%s3586_s17 + $0x1d0] sm:$0xff] %v2987_v18   ;;  %v1071_v27 = vadd.f32 %v3733_v30, %v1070_v23  ;;  %v1327_v28 = vadd.f32 %v3733_v30, %v1326_v24  ;;  %v1413_v29 = vmul.f32 0.2, %v1079_v21  ;;  %v1477_v31 = vmul.f32 0.2, %v1335_v22 }
 0x165   : > { %v3227_v8 = vpop.f32.mrf.mxu0  ;;  %v3291_v32 = vpop.f32.mrf.mxu1  ;;  %v1538_v43 = vmax.f32 %v1068_v13, %v1410_v25  ;;  %v1602_v44 = vmax.f32 %v1324_v14, %v1474_v26 }
 0x166   : > { %v1411_v35 = vmul.f32 0.2, %v1071_v27  ;;  %v1475_v36 = vmul.f32 0.2, %v1327_v28  ;;  %v1541_v37 = vmax.f32 %v1079_v21, %v1413_v29  ;;  %v1605_v38 = vmax.f32 %v1335_v22, %v1477_v31 }
 0x167   : > { %v1092_v39 = vadd.f32 %v3733_v30, %v3227_v8  ;;  %v1348_v40 = vadd.f32 %v3733_v30, %v3291_v32  ;;  %v1083_v41 = vpop.f32.mrf.mxu0  ;;  %v1339_v42 = vpop.f32.mrf.mxu1 }
 0x168   : > { %v1539_v45 = vmax.f32 %v1071_v27, %v1411_v35  ;;  %v1603_v46 = vmax.f32 %v1327_v28, %v1475_v36  ;;  %v2842_v47 = vpack.c.bf16 %v1541_v37, %v1540_v33  ;;  %v3002_v48 = vpack.c.bf16 %v1605_v38, %v1604_v34 }
 0x169   : > { %v1084_v49 = vadd.f32 %v3733_v30, %v1083_v41  ;;  %v1340_v50 = vadd.f32 %v3733_v30, %v1339_v42  ;;  %v3228_v51 = vpop.f32.mrf.mxu0  ;;  %v3292_v52 = vpop.f32.mrf.mxu1  ;;  %v1416_v55 = vmul.f32 0.2, %v1092_v39  ;;  %v1480_v56 = vmul.f32 0.2, %v1348_v40 }
 0x16a   : > { %v2837_v53 = vpack.c.bf16 %v1539_v45, %v1538_v43  ;;  %v2997_v54 = vpack.c.bf16 %v1603_v46, %v1602_v44  ;;  %3042 = vst [vmem:[%s3586_s17 + $0xe8] sm:$0xff] %v2842_v47   ;;  %3074 = vst [vmem:[%s3586_s17 + $0x1e8] sm:$0xff] %v3002_v48   ;;  %v1095_v57 = vadd.f32 %v3733_v30, %v3228_v51 }
 0x16b   : > { %v1351_v58 = vadd.f32 %v3733_v30, %v3292_v52  ;;  %v1086_v59 = vpop.f32.mrf.mxu0  ;;  %v1342_v60 = vpop.f32.mrf.mxu1  ;;  %v1414_v61 = vmul.f32 0.2, %v1084_v49  ;;  %v1478_v62 = vmul.f32 0.2, %v1340_v50  ;;  %v1544_v5 = vmax.f32 %v1092_v39, %v1416_v55 }
 0x16c   : > { %3041 = vst [vmem:[%s3586_s17 + $0xe0] sm:$0xff] %v2837_v53   ;;  %3073 = vst [vmem:[%s3586_s17 + $0x1e0] sm:$0xff] %v2997_v54   ;;  %v1087_v63 = vadd.f32 %v3733_v30, %v1086_v59  ;;  %v1343_v0 = vadd.f32 %v3733_v30, %v1342_v60  ;;  %v1417_v1 = vmul.f32 0.2, %v1095_v57  ;;  %v1608_v6 = vmax.f32 %v1348_v40, %v1480_v56 }
 0x16d   : > { %v1481_v2 = vmul.f32 0.2, %v1351_v58  ;;  %v1542_v10 = vmax.f32 %v1084_v49, %v1414_v61  ;;  %v1606_v11 = vmax.f32 %v1340_v50, %v1478_v62 }
 0x16e   : > { %v1415_v3 = vmul.f32 0.2, %v1087_v63  ;;  %v1479_v4 = vmul.f32 0.2, %v1343_v0  ;;  %v1545_v7 = vmax.f32 %v1095_v57, %v1417_v1 }
 0x16f   : > { %v1609_v9 = vmax.f32 %v1351_v58, %v1481_v2 }
 0x170   : > { %v1543_v12 = vmax.f32 %v1087_v63, %v1415_v3  ;;  %v1607_v13 = vmax.f32 %v1343_v0, %v1479_v4  ;;  %v2852_v14 = vpack.c.bf16 %v1545_v7, %v1544_v5 }
 0x171   : > { %v3012_v15 = vpack.c.bf16 %v1609_v9, %v1608_v6 }
 0x172   : > { %v2847_v16 = vpack.c.bf16 %v1543_v12, %v1542_v10  ;;  %v3007_v30 = vpack.c.bf16 %v1607_v13, %v1606_v11  ;;  %3044 = vst [vmem:[%s3586_s17 + $0xf8] sm:$0xff] %v2852_v14  }
 0x173   : > { %3076 = vst [vmem:[%s3586_s17 + $0x1f8] sm:$0xff] %v3012_v15  }
 0x174   : > { %3043 = vst [vmem:[%s3586_s17 + $0xf0] sm:$0xff] %v2847_v16   ;;  %3075 = vst [vmem:[%s3586_s17 + $0x1f0] sm:$0xff] %v3007_v30  }
 0x175 PF: > { %s13_s14 = sadd.s32 1, %s3428_s14   ;;  %s3788_s12 = smov %s3424_s13 }
 0x176   : > { %p10_p5 = scmp.ge.s32.totalorder %s13_s14, 4   ;;  %s3789_s13 = smov %s3791_s15 }
 0x178   :  { %12 = sbr.rel (!%p10_p5) target bundleno = 2 (0x2), region = 68 }

// kernel: discriminator_forward.5
= control target key start
LH: loop header
LB: loop body
LE: loop exit
PB: predicated region body
PF: predicated region fallthrough
CT: control target
= control target key end

     0   :  { %s6061_s12 = smov 0   ;;  %s6063_s13 = smov 0   ;;  %s7150_s0 = inlined_call_operand.vmem [shape: bf16[512,2048], index: 0, kind: input, shape index: {}]   ;;  %s7151_s1 = inlined_call_operand.vmem [shape: bf16[2048,128], index: 1, kind: input, shape index: {}]   ;;  %s7152_s2 = inlined_call_operand.vmem [shape: f32[1,128], index: 2, kind: input, shape index: {}]   ;;  %s7153_s3 = inlined_call_operand.vmem [shape: bf16[512,128], index: 3, kind: output, shape index: {}]  }
   0x1   :  { %s6065_s14 = smov 0  }
   0x2 LB: > { %s25_s15 = sadd.s32 1, %s6035_s13  ;;  %p4416_p0 = scmp.ge.s32.totalorder %s6039_s14, 1  ;;  %s6039_s14 = sphi %s6065_s14, %s13_s14   ;;  %s6035_s13 = sphi %s6063_s13, %s7155_s13   ;;  %s6031_s12 = sphi %s6061_s12, %s7154_s12  }
   0x3   : > { %p27_p1 = scmp.ge.s32.totalorder %s25_s15, 2  ;;  %p170_p2 = scmp.lt.s32.totalorder %s6039_s14, 3 }
   0x5   : > { %s7157_s15 = smov (%p27_p1, %s25_s15), 0  ;;  %p171_p3 = pnand %p4416_p0, %p170_p2 }
   0x6   : > { %s4417_s25 = sshll.u32 (!%p171_p3), %s6031_s12, 5 }
   0x7   : > { %174 = sbr.rel (%p171_p3) target bundleno = 762 (0x2fa), region = 32  ;;  %p206_p4 = scmp.lt.s32.totalorder (!%p171_p3), %s4417_s25, 63 }
   0xc   : > { %v5889_v0 = vld [vmem:[%s7151_s1 + $0x78] sm:$0xff]   ;;  %v5893_v4 = vld [vmem:[%s7151_s1 + $0x70] sm:$0xff]   ;;  %v5897_v8 = vld [vmem:[%s7151_s1 + $0x68] sm:$0xff]   ;;  %s7159_s25 = smov (!%p206_p4, %s4417_s25), 63 }
   0xd   : > { %v5890_v1 = vld [vmem:[%s7151_s1 + $0xf8] sm:$0xff]   ;;  %4969 = vmatprep.subr.bf16.mxu0 %v5889_v0  ;;  %v5894_v5 = vld [vmem:[%s7151_s1 + $0xf0] sm:$0xff]   ;;  %v5898_v9 = vld [vmem:[%s7151_s1 + $0xe8] sm:$0xff]   ;;  %s4841_s24 = sshll.u32 %s7159_s25, 6 }
   0xe   : > { %v5891_v2 = vld [vmem:[%s7151_s1 + $0x38] sm:$0xff]   ;;  %5081 = vmatprep.subr.bf16.mxu1 %v5890_v1  ;;  %v5895_v6 = vld [vmem:[%s7151_s1 + $0x30] sm:$0xff]   ;;  %v5899_v10 = vld [vmem:[%s7151_s1 + $0x28] sm:$0xff]   ;;  %s6178_s12 = scalar_lea.vmem %s7150_s0, %s4841_s24 }
   0xf   : > { %v5892_v3 = vld [vmem:[%s7151_s1 + $0xb8] sm:$0xff]   ;;  %4970 = vmatpush3.bf16.msra.mxu0 %v5891_v2  ;;  %v5896_v7 = vld [vmem:[%s7151_s1 + $0xb0] sm:$0xff]   ;;  %v5900_v11 = vld [vmem:[%s7151_s1 + $0xa8] sm:$0xff]  }
  0x10   : > { %5082 = vmatpush3.bf16.msra.mxu1 %v5892_v3  ;;  %4971 = vmatprep.subr.bf16.mxu0 %v5893_v4  ;;  %v5901_v12 = vld [vmem:[%s7151_s1 + $0x60] sm:$0xff]   ;;  %v5905_v16 = vld [vmem:[%s7151_s1 + $0x58] sm:$0xff]   ;;  %v5909_v20 = vld [vmem:[%s7151_s1 + $0x50] sm:$0xff]  }
  0x11   : > { %5083 = vmatprep.subr.bf16.mxu1 %v5894_v5  ;;  %v5902_v13 = vld [vmem:[%s7151_s1 + $0xe0] sm:$0xff]   ;;  %v5906_v17 = vld [vmem:[%s7151_s1 + $0xd8] sm:$0xff]   ;;  %v5910_v21 = vld [vmem:[%s7151_s1 + $0xd0] sm:$0xff]  }
  0x12   : > { %v5903_v14 = vld [vmem:[%s7151_s1 + $0x20] sm:$0xff]   ;;  %v5907_v18 = vld [vmem:[%s7151_s1 + $0x18] sm:$0xff]   ;;  %v5911_v22 = vld [vmem:[%s7151_s1 + $0x10] sm:$0xff]  }
  0x13   : > { %4972 = vmatpush3.bf16.msra.mxu0 %v5895_v6  ;;  %v5904_v15 = vld [vmem:[%s7151_s1 + $0xa0] sm:$0xff]   ;;  %v5908_v19 = vld [vmem:[%s7151_s1 + $0x98] sm:$0xff]   ;;  %v5912_v23 = vld [vmem:[%s7151_s1 + $0x90] sm:$0xff]  }
  0x14   : > { %5084 = vmatpush3.bf16.msra.mxu1 %v5896_v7  ;;  %4973 = vmatprep.subr.bf16.mxu0 %v5897_v8  ;;  %v5913_v24 = vld [vmem:[%s7151_s1 + $0x48] sm:$0xff]   ;;  %v5917_v28 = vld [vmem:[%s7151_s1 + $0x40] sm:$0xff]   ;;  %v5921_v40 = vld [vmem:[%s7151_s1 + $0x178] sm:$0xff]  }
  0x15   : > { %5085 = vmatprep.subr.bf16.mxu1 %v5898_v9  ;;  %v5914_v25 = vld [vmem:[%s7151_s1 + $0xc8] sm:$0xff]   ;;  %v5918_v29 = vld [vmem:[%s7151_s1 + $0xc0] sm:$0xff]   ;;  %v5922_v41 = vld [vmem:[%s7151_s1 + $0x138] sm:$0xff]  }
  0x16   : > { %v5915_v26 = vld [vmem:[%s7151_s1 + $0x8] sm:$0xff]   ;;  %v5919_v30 = vld [vmem:[%s7151_s1] sm:$0xff]   ;;  %v5923_v42 = vld [vmem:[%s7151_s1 + $0x1f8] sm:$0xff]  }
  0x17   : > { %4974 = vmatpush3.bf16.msra.mxu0 %v5899_v10  ;;  %v5916_v27 = vld [vmem:[%s7151_s1 + $0x88] sm:$0xff]   ;;  %v5920_v31 = vld [vmem:[%s7151_s1 + $0x80] sm:$0xff]   ;;  %v5924_v43 = vld [vmem:[%s7151_s1 + $0x1b8] sm:$0xff]  }
  0x18   : > { %5086 = vmatpush3.bf16.msra.mxu1 %v5900_v11  ;;  %4975 = vmatprep.subr.bf16.mxu0 %v5901_v12  ;;  %v229_v32 = vld [vmem:[%s6178_s12] sm:$0xff]  ;;  %v230_v34 = vld [vmem:[%s6178_s12 + $0x8] sm:$0xff]  ;;  %v5925_v55 = vld [vmem:[%s7151_s1 + $0x170] sm:$0xff]  }
  0x19   : > { %5087 = vmatprep.subr.bf16.mxu1 %v5902_v13  ;;  %v237_v33 = vld [vmem:[%s6178_s12 + $0x40] sm:$0xff]  ;;  %v238_v37 = vld [vmem:[%s6178_s12 + $0x48] sm:$0xff]  ;;  %v5926_v58 = vld [vmem:[%s7151_s1 + $0x130] sm:$0xff]  }
  0x1a   : > { %v4423_v35 = vcombine.low %v229_v32, %v237_v33  ;;  %v4424_v36 = vcombine.high %v229_v32, %v237_v33  ;;  %v4425_v38 = vcombine.low %v230_v34, %v238_v37  ;;  %v4426_v39 = vcombine.high %v230_v34, %v238_v37  ;;  %v245_v44 = vld [vmem:[%s6178_s12 + $0x80] sm:$0xff]  ;;  %v246_v47 = vld [vmem:[%s6178_s12 + $0x88] sm:$0xff]  ;;  %v5927_v60 = vld [vmem:[%s7151_s1 + $0x1f0] sm:$0xff]  }
  0x1b   : > { %4976 = vmatpush3.bf16.msra.mxu0 %v5903_v14  ;;  %v253_v45 = vld [vmem:[%s6178_s12 + $0xc0] sm:$0xff]  ;;  %v254_v48 = vld [vmem:[%s6178_s12 + $0xc8] sm:$0xff]  ;;  %v5928_v61 = vld [vmem:[%s7151_s1 + $0x1b0] sm:$0xff]  }
  0x1c   : > { %5088 = vmatpush3.bf16.msra.mxu1 %v5904_v15  ;;  %4977 = vmatprep.subr.bf16.mxu0 %v5905_v16  ;;  %v4440_v46 = vcombine.high %v245_v44, %v253_v45  ;;  %v261_v49 = vld [vmem:[%s6178_s12 + $0x100] sm:$0xff]  ;;  %v4442_v50 = vcombine.high %v246_v47, %v254_v48  ;;  %v262_v52 = vld [vmem:[%s6178_s12 + $0x108] sm:$0xff]  ;;  %v4439_v54 = vcombine.low %v245_v44, %v253_v45  ;;  %v5941_v34 = vld [vmem:[%s7151_s1 + $0x150] sm:$0xff]  }
  0x1d   : > { %5089 = vmatprep.subr.bf16.mxu1 %v5906_v17  ;;  %2828 = vmatprep.mubr.bf16.mxu0 %v4424_v36  ;;  %v269_v51 = vld [vmem:[%s6178_s12 + $0x140] sm:$0xff]  ;;  %v270_v53 = vld [vmem:[%s6178_s12 + $0x148] sm:$0xff]  ;;  %v4441_v56 = vcombine.low %v246_v47, %v254_v48  ;;  %v5942_v36 = vld [vmem:[%s7151_s1 + $0x110] sm:$0xff]  }
  0x1e   : > { %2989 = vmatprep.mubr.bf16.mxu1 %v4426_v39  ;;  %v4456_v57 = vcombine.high %v261_v49, %v269_v51  ;;  %v4458_v59 = vcombine.high %v262_v52, %v270_v53  ;;  %v277_v62 = vld [vmem:[%s6178_s12 + $0x180] sm:$0xff]  ;;  %v278_v0 = vld [vmem:[%s6178_s12 + $0x188] sm:$0xff]  ;;  %v4455_v3 = vcombine.low %v261_v49, %v269_v51  ;;  %v4457_v5 = vcombine.low %v262_v52, %v270_v53  ;;  %v5943_v37 = vld [vmem:[%s7151_s1 + $0x1d0] sm:$0xff]  }
  0x1f   : > { %4978 = vmatpush3.bf16.msra.mxu0 %v5907_v18  ;;  %v285_v63 = vld [vmem:[%s6178_s12 + $0x1c0] sm:$0xff]  ;;  %v286_v1 = vld [vmem:[%s6178_s12 + $0x1c8] sm:$0xff]  ;;  %v5944_v39 = vld [vmem:[%s7151_s1 + $0x190] sm:$0xff]  }
  0x20   : > { %5090 = vmatpush3.bf16.msra.mxu1 %v5908_v19  ;;  %4979 = vmatprep.subr.bf16.mxu0 %v5909_v20  ;;  %v5929_v2 = vld [vmem:[%s7151_s1 + $0x168] sm:$0xff]   ;;  %v4472_v6 = vcombine.high %v277_v62, %v285_v63  ;;  %v4474_v8 = vcombine.high %v278_v0, %v286_v1  ;;  %v293_v10 = vld [vmem:[%s6178_s12 + $0x200] sm:$0xff]  ;;  %v4471_v16 = vcombine.low %v277_v62, %v285_v63 }
  0x21   : > { %5091 = vmatprep.subr.bf16.mxu1 %v5910_v21  ;;  %v5930_v4 = vld [vmem:[%s7151_s1 + $0x128] sm:$0xff]   ;;  %v301_v11 = vld [vmem:[%s6178_s12 + $0x240] sm:$0xff]  ;;  %v4473_v18 = vcombine.low %v278_v0, %v286_v1 }
  0x22   : > { %v5931_v7 = vld [vmem:[%s7151_s1 + $0x1e8] sm:$0xff]   ;;  %v5933_v14 = vld [vmem:[%s7151_s1 + $0x160] sm:$0xff]   ;;  %v4488_v19 = vcombine.high %v293_v10, %v301_v11 }
  0x23   : > { %4980 = vmatpush3.bf16.msra.mxu0 %v5911_v22  ;;  %v5932_v9 = vld [vmem:[%s7151_s1 + $0x1a8] sm:$0xff]   ;;  %v5934_v15 = vld [vmem:[%s7151_s1 + $0x120] sm:$0xff]  }
  0x24   : > { %5092 = vmatpush3.bf16.msra.mxu1 %v5912_v23  ;;  %4981 = vmatprep.subr.bf16.mxu0 %v5913_v24  ;;  %v294_v12 = vld [vmem:[%s6178_s12 + $0x208] sm:$0xff]  ;;  %v5935_v17 = vld [vmem:[%s7151_s1 + $0x1e0] sm:$0xff]   ;;  %v5937_v24 = vld [vmem:[%s7151_s1 + $0x158] sm:$0xff]  }
  0x25   : > { %5093 = vmatprep.subr.bf16.mxu1 %v5914_v25  ;;  %v302_v13 = vld [vmem:[%s6178_s12 + $0x248] sm:$0xff]  ;;  %v5936_v20 = vld [vmem:[%s7151_s1 + $0x1a0] sm:$0xff]  }
  0x26   : > { %v4490_v21 = vcombine.high %v294_v12, %v302_v13  ;;  %v309_v22 = vld [vmem:[%s6178_s12 + $0x280] sm:$0xff]  ;;  %v310_v25 = vld [vmem:[%s6178_s12 + $0x288] sm:$0xff] }
  0x27   : > { %4982 = vmatpush3.bf16.msra.mxu0 %v5915_v26  ;;  %v317_v23 = vld [vmem:[%s6178_s12 + $0x2c0] sm:$0xff]  ;;  %v318_v26 = vld [vmem:[%s6178_s12 + $0x2c8] sm:$0xff] }
  0x28   : > { %5094 = vmatpush3.bf16.msra.mxu1 %v5916_v27  ;;  %4983 = vmatprep.subr.bf16.mxu0 %v5917_v28  ;;  %v5938_v27 = vld [vmem:[%s7151_s1 + $0x118] sm:$0xff]   ;;  %v4504_v32 = vcombine.high %v309_v22, %v317_v23  ;;  %v4506_v33 = vcombine.high %v310_v25, %v318_v26  ;;  %v5946_v47 = vld [vmem:[%s7151_s1 + $0x108] sm:$0xff]   ;;  %v349_v51 = vld [vmem:[%s6178_s12 + $0x3c0] sm:$0xff] }
  0x29   : > { %5095 = vmatprep.subr.bf16.mxu1 %v5918_v29  ;;  %v5939_v28 = vld [vmem:[%s7151_s1 + $0x1d8] sm:$0xff]   ;;  %v5947_v48 = vld [vmem:[%s7151_s1 + $0x1c8] sm:$0xff]   ;;  %v357_v62 = vld [vmem:[%s6178_s12 + $0x400] sm:$0xff] }
  0x2a   : > { %v5940_v29 = vld [vmem:[%s7151_s1 + $0x198] sm:$0xff]   ;;  %v5948_v49 = vld [vmem:[%s7151_s1 + $0x188] sm:$0xff]   ;;  %v365_v63 = vld [vmem:[%s6178_s12 + $0x440] sm:$0xff] }
  0x2b   : > { %4984 = vmatpush3.bf16.msra.mxu0 %v5919_v30  ;;  %v4487_v30 = vcombine.low %v293_v10, %v301_v11  ;;  %v342_v52 = vld [vmem:[%s6178_s12 + $0x388] sm:$0xff] }
  0x2c   : > { %5096 = vmatpush3.bf16.msra.mxu1 %v5920_v31  ;;  %5193 = vmatprep.subr.bf16.mxu0 %v5921_v40  ;;  %v4489_v31 = vcombine.low %v294_v12, %v302_v13  ;;  %v326_v40 = vld [vmem:[%s6178_s12 + $0x308] sm:$0xff]  ;;  %v4551_v12 = vcombine.low %v357_v62, %v365_v63 }
  0x2d   : > { %5305 = vmatprep.subr.bf16.mxu1 %v5923_v42  ;;  %v4503_v42 = vcombine.low %v309_v22, %v317_v23  ;;  %v350_v53 = vld [vmem:[%s6178_s12 + $0x3c8] sm:$0xff] }
  0x2e   : > { %2829 = vmatmul.mubr.bf16.vlgmr.msra.gmra.mxu0 %v4423_v35  ;;  %v325_v35 = vld [vmem:[%s6178_s12 + $0x300] sm:$0xff]  ;;  %v358_v0 = vld [vmem:[%s6178_s12 + $0x408] sm:$0xff] }
  0x2f   : > { %2990 = vmatmul.mubr.bf16.vlgmr.msra.gmra.mxu1 %v4425_v38  ;;  %5194 = vmatpush3.bf16.msra.mxu0 %v5922_v41  ;;  %v333_v38 = vld [vmem:[%s6178_s12 + $0x340] sm:$0xff]  ;;  %v334_v41 = vld [vmem:[%s6178_s12 + $0x348] sm:$0xff] }
  0x30   : > { %5306 = vmatpush3.bf16.msra.mxu1 %v5924_v43  ;;  %2836 = vmatprep.mubr.bf16.mxu0 %v4440_v46  ;;  %v4505_v43 = vcombine.low %v310_v25, %v318_v26  ;;  %v4520_v44 = vcombine.high %v325_v35, %v333_v38  ;;  %v4522_v45 = vcombine.high %v326_v40, %v334_v41  ;;  %v5945_v46 = vld [vmem:[%s7151_s1 + $0x148] sm:$0xff]   ;;  %v413_v25 = vld [vmem:[%s6178_s12 + $0x5c0] sm:$0xff] }
  0x31   : > { %2997 = vmatprep.mubr.bf16.mxu1 %v4442_v50  ;;  %5195 = vmatprep.subr.bf16.mxu0 %v5925_v55  ;;  %v341_v50 = vld [vmem:[%s6178_s12 + $0x380] sm:$0xff]  ;;  %v366_v1 = vld [vmem:[%s6178_s12 + $0x448] sm:$0xff] }
  0x32   : > { %5307 = vmatprep.subr.bf16.mxu1 %v5927_v60  ;;  %v5949_v55 = vld [vmem:[%s7151_s1 + $0x140] sm:$0xff]   ;;  %v374_v10 = vld [vmem:[%s6178_s12 + $0x488] sm:$0xff]  ;;  %v4553_v13 = vcombine.low %v358_v0, %v366_v1 }
  0x33   : > { %5196 = vmatpush3.bf16.msra.mxu0 %v5926_v58  ;;  %v5950_v58 = vld [vmem:[%s7151_s1 + $0x100] sm:$0xff]   ;;  %v382_v11 = vld [vmem:[%s6178_s12 + $0x4c8] sm:$0xff] }
  0x34   : > { %5308 = vmatpush3.bf16.msra.mxu1 %v5928_v61  ;;  %5197 = vmatprep.subr.bf16.mxu0 %v5929_v2  ;;  %v5951_v60 = vld [vmem:[%s7151_s1 + $0x1c0] sm:$0xff]   ;;  %v5953_v2 = vld [vmem:[%s7151_s1 + $0x278] sm:$0xff]   ;;  %v406_v26 = vld [vmem:[%s6178_s12 + $0x588] sm:$0xff] }
  0x35   : > { %5309 = vmatprep.subr.bf16.mxu1 %v5931_v7  ;;  %v5952_v61 = vld [vmem:[%s7151_s1 + $0x180] sm:$0xff]   ;;  %v4554_v7 = vcombine.high %v358_v0, %v366_v1  ;;  %v231_v0 = vld [vmem:[%s6178_s12 + $0x10] sm:$0xff] }
  0x36   : > { %2837 = vmatmul.mubr.bf16.gmra.mxu0 %v4439_v54  ;;  %v4519_v54 = vcombine.low %v325_v35, %v333_v38  ;;  %v430_v35 = vld [vmem:[%s6178_s12 + $0x648] sm:$0xff]  ;;  %v239_v1 = vld [vmem:[%s6178_s12 + $0x50] sm:$0xff] }
  0x37   : > { %2998 = vmatmul.mubr.bf16.gmra.mxu1 %v4441_v56  ;;  %2844 = vmatprep.mubr.bf16.mxu0 %v4456_v57  ;;  %v4521_v56 = vcombine.low %v326_v40, %v334_v41  ;;  %v4536_v57 = vcombine.high %v341_v50, %v349_v51  ;;  %v437_v40 = vld [vmem:[%s6178_s12 + $0x680] sm:$0xff] }
  0x38   : > { %3005 = vmatprep.mubr.bf16.mxu1 %v4458_v59  ;;  %5198 = vmatpush3.bf16.msra.mxu0 %v5930_v4  ;;  %v4538_v59 = vcombine.high %v342_v52, %v350_v53  ;;  %v4537_v4 = vcombine.low %v342_v52, %v350_v53  ;;  %v445_v41 = vld [vmem:[%s6178_s12 + $0x6c0] sm:$0xff] }
  0x39   : > { %5310 = vmatpush3.bf16.msra.mxu1 %v5932_v9  ;;  %5199 = vmatprep.subr.bf16.mxu0 %v5933_v14  ;;  %v381_v9 = vld [vmem:[%s6178_s12 + $0x4c0] sm:$0xff]  ;;  %v4631_v52 = vcombine.low %v437_v40, %v445_v41 }
  0x3a   : > { %5311 = vmatprep.subr.bf16.mxu1 %v5935_v17  ;;  %v397_v17 = vld [vmem:[%s6178_s12 + $0x540] sm:$0xff] }
  0x3c   : > { %5200 = vmatpush3.bf16.msra.mxu0 %v5934_v15  ;;  %v4570_v15 = vcombine.high %v374_v10, %v382_v11 }
  0x3d   : > { %5312 = vmatpush3.bf16.msra.mxu1 %v5936_v20  ;;  %5201 = vmatprep.subr.bf16.mxu0 %v5937_v24  ;;  %v405_v24 = vld [vmem:[%s6178_s12 + $0x580] sm:$0xff] }
  0x3e   : > { %2845 = vmatmul.mubr.bf16.gmra.mxu0 %v4455_v3  ;;  %5313 = vmatprep.subr.bf16.mxu1 %v5939_v28  ;;  %v4535_v3 = vcombine.low %v341_v50, %v349_v51  ;;  %v454_v50 = vld [vmem:[%s6178_s12 + $0x708] sm:$0xff] }
  0x3f   : > { %3006 = vmatmul.mubr.bf16.gmra.mxu1 %v4457_v5  ;;  %2852 = vmatprep.mubr.bf16.mxu0 %v4472_v6  ;;  %v4552_v5 = vcombine.high %v357_v62, %v365_v63  ;;  %v5955_v6 = vld [vmem:[%s7151_s1 + $0x2f8] sm:$0xff]   ;;  %v462_v51 = vld [vmem:[%s6178_s12 + $0x748] sm:$0xff] }
  0x40   : > { %3013 = vmatprep.mubr.bf16.mxu1 %v4474_v8  ;;  %5202 = vmatpush3.bf16.msra.mxu0 %v5938_v27  ;;  %v373_v8 = vld [vmem:[%s6178_s12 + $0x480] sm:$0xff]  ;;  %v414_v27 = vld [vmem:[%s6178_s12 + $0x5c8] sm:$0xff] }
  0x41   : > { %5314 = vmatpush3.bf16.msra.mxu1 %v5940_v29  ;;  %5203 = vmatprep.subr.bf16.mxu0 %v5941_v34  ;;  %v4568_v14 = vcombine.high %v373_v8, %v381_v9  ;;  %v4567_v20 = vcombine.low %v373_v8, %v381_v9  ;;  %v422_v34 = vld [vmem:[%s6178_s12 + $0x608] sm:$0xff]  ;;  %v247_v8 = vld [vmem:[%s6178_s12 + $0x90] sm:$0xff] }
  0x42   : > { %5315 = vmatprep.subr.bf16.mxu1 %v5943_v37  ;;  %v4601_v37 = vcombine.low %v406_v26, %v414_v27  ;;  %v255_v9 = vld [vmem:[%s6178_s12 + $0xd0] sm:$0xff] }
  0x44   : > { %5204 = vmatpush3.bf16.msra.mxu0 %v5942_v36  ;;  %v4599_v36 = vcombine.low %v405_v24, %v413_v25 }
  0x45   : > { %5316 = vmatpush3.bf16.msra.mxu1 %v5944_v39  ;;  %5205 = vmatprep.subr.bf16.mxu0 %v5945_v46  ;;  %v4618_v39 = vcombine.high %v422_v34, %v430_v35  ;;  %v4632_v46 = vcombine.high %v437_v40, %v445_v41  ;;  %v288_v40 = vld [vmem:[%s6178_s12 + $0x1d8] sm:$0xff]  ;;  %v5968_v41 = vld [vmem:[%s7151_s1 + $0x2a0] sm:$0xff]  }
  0x46   : > { %2853 = vmatmul.mubr.bf16.gmra.mxu0 %v4471_v16  ;;  %5317 = vmatprep.subr.bf16.mxu1 %v5947_v48  ;;  %v389_v16 = vld [vmem:[%s6178_s12 + $0x500] sm:$0xff] }
  0x47   : > { %3014 = vmatmul.mubr.bf16.gmra.mxu1 %v4473_v18  ;;  %2860 = vmatprep.mubr.bf16.mxu0 %v4488_v19  ;;  %v390_v18 = vld [vmem:[%s6178_s12 + $0x508] sm:$0xff]  ;;  %v4584_v22 = vcombine.high %v389_v16, %v397_v17  ;;  %v4583_v28 = vcombine.low %v389_v16, %v397_v17  ;;  %v453_v48 = vld [vmem:[%s6178_s12 + $0x700] sm:$0xff]  ;;  %v4444_v16 = vcombine.high %v247_v8, %v255_v9 }
  0x48   : > { %3021 = vmatprep.mubr.bf16.mxu1 %v4490_v21  ;;  %5206 = vmatpush3.bf16.msra.mxu0 %v5946_v47  ;;  %v398_v19 = vld [vmem:[%s6178_s12 + $0x548] sm:$0xff]  ;;  %v4569_v21 = vcombine.low %v374_v10, %v382_v11  ;;  %v4427_v10 = vcombine.low %v231_v0, %v239_v1  ;;  %v248_v11 = vld [vmem:[%s6178_s12 + $0x98] sm:$0xff] }
  0x49   : > { %5318 = vmatpush3.bf16.msra.mxu1 %v5948_v49  ;;  %5207 = vmatprep.subr.bf16.mxu0 %v5949_v55  ;;  %v4586_v23 = vcombine.high %v390_v18, %v398_v19  ;;  %v4585_v29 = vcombine.low %v390_v18, %v398_v19  ;;  %v461_v49 = vld [vmem:[%s6178_s12 + $0x740] sm:$0xff]  ;;  %v4650_v55 = vcombine.high %v454_v50, %v462_v51  ;;  %v5957_v18 = vld [vmem:[%s7151_s1 + $0x270] sm:$0xff]  }
  0x4a   : > { %5319 = vmatprep.subr.bf16.mxu1 %v5951_v60  ;;  %v4647_v60 = vcombine.low %v453_v48, %v461_v49  ;;  %v5959_v19 = vld [vmem:[%s7151_s1 + $0x2f0] sm:$0xff]  }
  0x4c   : > { %5208 = vmatpush3.bf16.msra.mxu0 %v5950_v58  ;;  %v470_v58 = vld [vmem:[%s6178_s12 + $0x788] sm:$0xff] }
  0x4d   : > { %5320 = vmatpush3.bf16.msra.mxu1 %v5952_v61  ;;  %5417 = vmatprep.subr.bf16.mxu0 %v5953_v2  ;;  %v4649_v61 = vcombine.low %v454_v50, %v462_v51  ;;  %v232_v2 = vld [vmem:[%s6178_s12 + $0x18] sm:$0xff]  ;;  %v5973_v50 = vld [vmem:[%s7151_s1 + $0x250] sm:$0xff]  }
  0x4e   : > { %2861 = vmatmul.mubr.bf16.gmra.mxu0 %v4487_v30  ;;  %5529 = vmatprep.subr.bf16.mxu1 %v5955_v6  ;;  %v4600_v30 = vcombine.high %v405_v24, %v413_v25  ;;  %v4428_v6 = vcombine.high %v231_v0, %v239_v1  ;;  %v5961_v24 = vld [vmem:[%s7151_s1 + $0x268] sm:$0xff]   ;;  %v264_v25 = vld [vmem:[%s6178_s12 + $0x118] sm:$0xff]  ;;  %v5975_v51 = vld [vmem:[%s7151_s1 + $0x2d0] sm:$0xff]  }
  0x4f   : > { %3022 = vmatmul.mubr.bf16.gmra.mxu1 %v4489_v31  ;;  %2868 = vmatprep.mubr.bf16.mxu0 %v4504_v32  ;;  %v4602_v31 = vcombine.high %v406_v26, %v414_v27  ;;  %v421_v32 = vld [vmem:[%s6178_s12 + $0x600] sm:$0xff]  ;;  %v272_v26 = vld [vmem:[%s6178_s12 + $0x158] sm:$0xff]  ;;  %v5963_v27 = vld [vmem:[%s7151_s1 + $0x2e8] sm:$0xff]  }
  0x50   : > { %3029 = vmatprep.mubr.bf16.mxu1 %v4506_v33  ;;  %v429_v33 = vld [vmem:[%s6178_s12 + $0x640] sm:$0xff]  ;;  %v5978_v0 = vld [vmem:[%s7151_s1 + $0x208] sm:$0xff]  }
  0x51   : > { %v4616_v38 = vcombine.high %v421_v32, %v429_v33  ;;  %v5980_v1 = vld [vmem:[%s7151_s1 + $0x288] sm:$0xff]  }
  0x56   : > { %2869 = vmatmul.mubr.bf16.gmra.mxu0 %v4503_v42  ;;  %v438_v42 = vld [vmem:[%s6178_s12 + $0x688] sm:$0xff] }
  0x57   : > { %3030 = vmatmul.mubr.bf16.gmra.mxu1 %v4505_v43  ;;  %2876 = vmatprep.mubr.bf16.mxu0 %v4520_v44  ;;  %v446_v43 = vld [vmem:[%s6178_s12 + $0x6c8] sm:$0xff]  ;;  %v4615_v44 = vcombine.low %v421_v32, %v429_v33 }
  0x58   : > { %3037 = vmatprep.mubr.bf16.mxu1 %v4522_v45  ;;  %v4617_v45 = vcombine.low %v422_v34, %v430_v35  ;;  %v4634_v47 = vcombine.high %v438_v42, %v446_v43  ;;  %v4633_v53 = vcombine.low %v438_v42, %v446_v43  ;;  %v5962_v32 = vld [vmem:[%s7151_s1 + $0x228] sm:$0xff]   ;;  %v5965_v34 = vld [vmem:[%s7151_s1 + $0x260] sm:$0xff]   ;;  %v5969_v42 = vld [vmem:[%s7151_s1 + $0x258] sm:$0xff]  }
  0x59   : > { %v5964_v33 = vld [vmem:[%s7151_s1 + $0x2a8] sm:$0xff]   ;;  %v5967_v35 = vld [vmem:[%s7151_s1 + $0x2e0] sm:$0xff]  }
  0x5e   : > { %2877 = vmatmul.mubr.bf16.gmra.mxu0 %v4519_v54  ;;  %v4648_v54 = vcombine.high %v453_v48, %v461_v49  ;;  %v5970_v48 = vld [vmem:[%s7151_s1 + $0x218] sm:$0xff]  }
  0x5f   : > { %3038 = vmatmul.mubr.bf16.gmra.mxu1 %v4521_v56  ;;  %2884 = vmatprep.mubr.bf16.mxu0 %v4536_v57  ;;  %v469_v56 = vld [vmem:[%s6178_s12 + $0x780] sm:$0xff]  ;;  %v5972_v49 = vld [vmem:[%s7151_s1 + $0x298] sm:$0xff]  }
  0x60   : > { %3045 = vmatprep.mubr.bf16.mxu1 %v4538_v59  ;;  %v477_v57 = vld [vmem:[%s6178_s12 + $0x7c0] sm:$0xff]  ;;  %v478_v59 = vld [vmem:[%s6178_s12 + $0x7c8] sm:$0xff] }
  0x61   : > { %v4664_v62 = vcombine.high %v469_v56, %v477_v57  ;;  %v4666_v63 = vcombine.high %v470_v58, %v478_v59 }
  0x66   : > { %2885 = vmatmul.mubr.bf16.gmra.mxu0 %v4535_v3  ;;  %v240_v3 = vld [vmem:[%s6178_s12 + $0x58] sm:$0xff] }
  0x67   : > { %3046 = vmatmul.mubr.bf16.gmra.mxu1 %v4537_v4  ;;  %2892 = vmatprep.mubr.bf16.mxu0 %v4552_v5  ;;  %v4663_v4 = vcombine.low %v469_v56, %v477_v57  ;;  %v4665_v5 = vcombine.low %v470_v58, %v478_v59  ;;  %v304_v56 = vld [vmem:[%s6178_s12 + $0x258] sm:$0xff]  ;;  %v5976_v57 = vld [vmem:[%s7151_s1 + $0x290] sm:$0xff]   ;;  %v5977_v58 = vld [vmem:[%s7151_s1 + $0x248] sm:$0xff]  }
  0x68   : > { %3053 = vmatprep.mubr.bf16.mxu1 %v4554_v7  ;;  %v4430_v7 = vcombine.high %v232_v2, %v240_v3 }
  0x6e   : > { %2893 = vmatmul.mubr.bf16.gmra.mxu0 %v4551_v12  ;;  %v256_v12 = vld [vmem:[%s6178_s12 + $0xd8] sm:$0xff] }
  0x6f   : > { %3054 = vmatmul.mubr.bf16.gmra.mxu1 %v4553_v13  ;;  %2900 = vmatprep.mubr.bf16.mxu0 %v4568_v14  ;;  %v4429_v13 = vcombine.low %v232_v2, %v240_v3  ;;  %v5954_v14 = vld [vmem:[%s7151_s1 + $0x238] sm:$0xff]   ;;  %v4446_v17 = vcombine.high %v248_v11, %v256_v12  ;;  %v5981_v2 = vld [vmem:[%s7151_s1 + $0x240] sm:$0xff]  }
  0x70   : > { %3061 = vmatprep.mubr.bf16.mxu1 %v4570_v15  ;;  %v5956_v15 = vld [vmem:[%s7151_s1 + $0x2b8] sm:$0xff]   ;;  %v5983_v3 = vld [vmem:[%s7151_s1 + $0x2c0] sm:$0xff]  }
  0x76   : > { %2901 = vmatmul.mubr.bf16.gmra.mxu0 %v4567_v20  ;;  %v263_v20 = vld [vmem:[%s6178_s12 + $0x110] sm:$0xff] }
  0x77   : > { %3062 = vmatmul.mubr.bf16.gmra.mxu1 %v4569_v21  ;;  %2908 = vmatprep.mubr.bf16.mxu0 %v4584_v22  ;;  %v5958_v21 = vld [vmem:[%s7151_s1 + $0x230] sm:$0xff]  }
  0x78   : > { %3069 = vmatprep.mubr.bf16.mxu1 %v4586_v23  ;;  %v271_v22 = vld [vmem:[%s6178_s12 + $0x150] sm:$0xff] }
  0x79   : > { %v5960_v23 = vld [vmem:[%s7151_s1 + $0x2b0] sm:$0xff]   ;;  %v4459_v43 = vcombine.low %v263_v20, %v271_v22 }
  0x7e   : > { %2909 = vmatmul.mubr.bf16.gmra.mxu0 %v4583_v28  ;;  %v4443_v28 = vcombine.low %v247_v8, %v255_v9  ;;  %v320_v8 = vld [vmem:[%s6178_s12 + $0x2d8] sm:$0xff]  ;;  %v5984_v9 = vld [vmem:[%s7151_s1 + $0x280] sm:$0xff]  }
  0x7f   : > { %3070 = vmatmul.mubr.bf16.gmra.mxu1 %v4585_v29  ;;  %2916 = vmatprep.mubr.bf16.mxu0 %v4600_v30  ;;  %v4445_v29 = vcombine.low %v248_v11, %v256_v12  ;;  %v4460_v30 = vcombine.high %v263_v20, %v271_v22  ;;  %v5987_v12 = vld [vmem:[%s7151_s1 + $0x3f8] sm:$0xff]  }
  0x80   : > { %3077 = vmatprep.mubr.bf16.mxu1 %v4602_v31  ;;  %v4462_v31 = vcombine.high %v264_v25, %v272_v26 }
  0x86   : > { %2917 = vmatmul.mubr.bf16.gmra.mxu0 %v4599_v36  ;;  %v279_v36 = vld [vmem:[%s6178_s12 + $0x190] sm:$0xff] }
  0x87   : > { %3078 = vmatmul.mubr.bf16.gmra.mxu1 %v4601_v37  ;;  %2924 = vmatprep.mubr.bf16.mxu0 %v4616_v38  ;;  %v287_v37 = vld [vmem:[%s6178_s12 + $0x1d0] sm:$0xff]  ;;  %v280_v38 = vld [vmem:[%s6178_s12 + $0x198] sm:$0xff] }
  0x88   : > { %3085 = vmatprep.mubr.bf16.mxu1 %v4618_v39  ;;  %v5966_v39 = vld [vmem:[%s7151_s1 + $0x220] sm:$0xff]   ;;  %v4475_v59 = vcombine.low %v279_v36, %v287_v37 }
  0x8e   : > { %2925 = vmatmul.mubr.bf16.gmra.mxu0 %v4615_v44  ;;  %v5971_v44 = vld [vmem:[%s7151_s1 + $0x2d8] sm:$0xff]  }
  0x8f   : > { %3086 = vmatmul.mubr.bf16.gmra.mxu1 %v4617_v45  ;;  %2932 = vmatprep.mubr.bf16.mxu0 %v4632_v46  ;;  %v4461_v45 = vcombine.low %v264_v25, %v272_v26  ;;  %v4476_v46 = vcombine.high %v279_v36, %v287_v37  ;;  %v351_v25 = vld [vmem:[%s6178_s12 + $0x3d0] sm:$0xff]  ;;  %v344_v26 = vld [vmem:[%s6178_s12 + $0x398] sm:$0xff] }
  0x90   : > { %3093 = vmatprep.mubr.bf16.mxu1 %v4634_v47  ;;  %v4478_v47 = vcombine.high %v280_v38, %v288_v40 }
  0x96   : > { %2933 = vmatmul.mubr.bf16.gmra.mxu0 %v4631_v52  ;;  %v295_v52 = vld [vmem:[%s6178_s12 + $0x210] sm:$0xff] }
  0x97   : > { %3094 = vmatmul.mubr.bf16.gmra.mxu1 %v4633_v53  ;;  %2940 = vmatprep.mubr.bf16.mxu0 %v4648_v54  ;;  %v303_v53 = vld [vmem:[%s6178_s12 + $0x250] sm:$0xff]  ;;  %v296_v54 = vld [vmem:[%s6178_s12 + $0x218] sm:$0xff] }
  0x98   : > { %3101 = vmatprep.mubr.bf16.mxu1 %v4650_v55  ;;  %v5974_v55 = vld [vmem:[%s7151_s1 + $0x210] sm:$0xff]   ;;  %v4491_v11 = vcombine.low %v295_v52, %v303_v53 }
  0x9e   : > { %2941 = vmatmul.mubr.bf16.gmra.mxu0 %v4647_v60  ;;  %v5979_v60 = vld [vmem:[%s7151_s1 + $0x2c8] sm:$0xff]  }
  0x9f   : > { %3102 = vmatmul.mubr.bf16.gmra.mxu1 %v4649_v61  ;;  %2948 = vmatprep.mubr.bf16.mxu0 %v4664_v62  ;;  %v4477_v61 = vcombine.low %v280_v38, %v288_v40  ;;  %v4492_v62 = vcombine.high %v295_v52, %v303_v53  ;;  %v375_v40 = vld [vmem:[%s6178_s12 + $0x490] sm:$0xff] }
  0xa0   : > { %3109 = vmatprep.mubr.bf16.mxu1 %v4666_v63  ;;  %v4494_v63 = vcombine.high %v296_v54, %v304_v56  ;;  %v391_v52 = vld [vmem:[%s6178_s12 + $0x510] sm:$0xff] }
  0xa1   : > { %v399_v53 = vld [vmem:[%s6178_s12 + $0x550] sm:$0xff] }
  0xa6   : > { %2949 = vmatmul.mubr.bf16.gmra.mxu0 %v4663_v4  ;;  %v311_v4 = vld [vmem:[%s6178_s12 + $0x290] sm:$0xff] }
  0xa7   : > { %3110 = vmatmul.mubr.bf16.gmra.mxu1 %v4665_v5  ;;  %3150 = vmatprep.mubr.bf16.mxu0 %v4428_v6  ;;  %v319_v5 = vld [vmem:[%s6178_s12 + $0x2d0] sm:$0xff]  ;;  %v312_v6 = vld [vmem:[%s6178_s12 + $0x298] sm:$0xff] }
  0xa8   : > { %3311 = vmatprep.mubr.bf16.mxu1 %v4430_v7  ;;  %v5982_v7 = vld [vmem:[%s7151_s1 + $0x200] sm:$0xff]   ;;  %v4507_v20 = vcombine.low %v311_v4, %v319_v5 }
  0xae   : > { %3151 = vmatmul.mubr.bf16.vlgmr.msra.gmra.mxu0 %v4427_v10  ;;  %v5985_v10 = vld [vmem:[%s7151_s1 + $0x378] sm:$0xff]  }
  0xaf   : > { %3312 = vmatmul.mubr.bf16.vlgmr.msra.gmra.mxu1 %v4429_v13  ;;  %5418 = vmatpush3.bf16.msra.mxu0 %v5954_v14  ;;  %v4493_v13 = vcombine.low %v296_v54, %v304_v56  ;;  %v4508_v14 = vcombine.high %v311_v4, %v319_v5  ;;  %v392_v56 = vld [vmem:[%s6178_s12 + $0x518] sm:$0xff] }
  0xb0   : > { %5530 = vmatpush3.bf16.msra.mxu1 %v5956_v15  ;;  %3158 = vmatprep.mubr.bf16.mxu0 %v4444_v16  ;;  %v4510_v15 = vcombine.high %v312_v6, %v320_v8  ;;  %v327_v16 = vld [vmem:[%s6178_s12 + $0x310] sm:$0xff] }
  0xb1   : > { %3319 = vmatprep.mubr.bf16.mxu1 %v4446_v17  ;;  %5419 = vmatprep.subr.bf16.mxu0 %v5957_v18  ;;  %v335_v17 = vld [vmem:[%s6178_s12 + $0x350] sm:$0xff]  ;;  %v328_v18 = vld [vmem:[%s6178_s12 + $0x318] sm:$0xff] }
  0xb2   : > { %5531 = vmatprep.subr.bf16.mxu1 %v5959_v19  ;;  %v336_v19 = vld [vmem:[%s6178_s12 + $0x358] sm:$0xff]  ;;  %v4524_v22 = vcombine.high %v327_v16, %v335_v17 }
  0xb3   : > { %5420 = vmatpush3.bf16.msra.mxu0 %v5958_v21  ;;  %v4509_v21 = vcombine.low %v312_v6, %v320_v8 }
  0xb4   : > { %5532 = vmatpush3.bf16.msra.mxu1 %v5960_v23  ;;  %5421 = vmatprep.subr.bf16.mxu0 %v5961_v24  ;;  %v4526_v23 = vcombine.high %v328_v18, %v336_v19  ;;  %v343_v24 = vld [vmem:[%s6178_s12 + $0x390] sm:$0xff] }
  0xb5   : > { %5533 = vmatprep.subr.bf16.mxu1 %v5963_v27  ;;  %v352_v27 = vld [vmem:[%s6178_s12 + $0x3d8] sm:$0xff]  ;;  %v4539_v36 = vcombine.low %v343_v24, %v351_v25 }
  0xb6   : > { %3159 = vmatmul.mubr.bf16.gmra.mxu0 %v4443_v28  ;;  %v4523_v28 = vcombine.low %v327_v16, %v335_v17  ;;  %v4541_v37 = vcombine.low %v344_v26, %v352_v27  ;;  %v408_v16 = vld [vmem:[%s6178_s12 + $0x598] sm:$0xff] }
  0xb7   : > { %3320 = vmatmul.mubr.bf16.gmra.mxu1 %v4445_v29  ;;  %3166 = vmatprep.mubr.bf16.mxu0 %v4460_v30  ;;  %v4525_v29 = vcombine.low %v328_v18, %v336_v19  ;;  %v4540_v30 = vcombine.high %v343_v24, %v351_v25  ;;  %v416_v17 = vld [vmem:[%s6178_s12 + $0x5d8] sm:$0xff] }
  0xb8   : > { %3327 = vmatprep.mubr.bf16.mxu1 %v4462_v31  ;;  %5422 = vmatpush3.bf16.msra.mxu0 %v5962_v32  ;;  %v4542_v31 = vcombine.high %v344_v26, %v352_v27  ;;  %v359_v32 = vld [vmem:[%s6178_s12 + $0x410] sm:$0xff]  ;;  %v4606_v26 = vcombine.high %v408_v16, %v416_v17 }
  0xb9   : > { %5534 = vmatpush3.bf16.msra.mxu1 %v5964_v33  ;;  %5423 = vmatprep.subr.bf16.mxu0 %v5965_v34  ;;  %v367_v33 = vld [vmem:[%s6178_s12 + $0x450] sm:$0xff]  ;;  %v360_v34 = vld [vmem:[%s6178_s12 + $0x418] sm:$0xff] }
  0xba   : > { %5535 = vmatprep.subr.bf16.mxu1 %v5967_v35  ;;  %v368_v35 = vld [vmem:[%s6178_s12 + $0x458] sm:$0xff]  ;;  %v4556_v38 = vcombine.high %v359_v32, %v367_v33 }
  0xbc   : > { %5424 = vmatpush3.bf16.msra.mxu0 %v5966_v39  ;;  %v4558_v39 = vcombine.high %v360_v34, %v368_v35 }
  0xbd   : > { %5536 = vmatpush3.bf16.msra.mxu1 %v5968_v41  ;;  %5425 = vmatprep.subr.bf16.mxu0 %v5969_v42  ;;  %v383_v41 = vld [vmem:[%s6178_s12 + $0x4d0] sm:$0xff]  ;;  %v376_v42 = vld [vmem:[%s6178_s12 + $0x498] sm:$0xff] }
  0xbe   : > { %3167 = vmatmul.mubr.bf16.gmra.mxu0 %v4459_v43  ;;  %5537 = vmatprep.subr.bf16.mxu1 %v5971_v44  ;;  %v384_v43 = vld [vmem:[%s6178_s12 + $0x4d8] sm:$0xff]  ;;  %v4555_v44 = vcombine.low %v359_v32, %v367_v33 }
  0xbf   : > { %3328 = vmatmul.mubr.bf16.gmra.mxu1 %v4461_v45  ;;  %3174 = vmatprep.mubr.bf16.mxu0 %v4476_v46  ;;  %v4557_v45 = vcombine.low %v360_v34, %v368_v35  ;;  %v4572_v46 = vcombine.high %v375_v40, %v383_v41  ;;  %v423_v35 = vld [vmem:[%s6178_s12 + $0x610] sm:$0xff] }
  0xc0   : > { %3335 = vmatprep.mubr.bf16.mxu1 %v4478_v47  ;;  %5426 = vmatpush3.bf16.msra.mxu0 %v5970_v48  ;;  %v4574_v47 = vcombine.high %v376_v42, %v384_v43 }
  0xc1   : > { %5538 = vmatpush3.bf16.msra.mxu1 %v5972_v49  ;;  %5427 = vmatprep.subr.bf16.mxu0 %v5973_v50  ;;  %v6491_v50 = vld [vmem:[%s7152_s2] ss:$0 sm:$0xff] }
  0xc2   : > { %5539 = vmatprep.subr.bf16.mxu1 %v5975_v51 }
  0xc4   : > { %5428 = vmatpush3.bf16.msra.mxu0 %v5974_v55 }
  0xc5   : > { %5540 = vmatpush3.bf16.msra.mxu1 %v5976_v57  ;;  %5429 = vmatprep.subr.bf16.mxu0 %v5977_v58  ;;  %v400_v57 = vld [vmem:[%s6178_s12 + $0x558] sm:$0xff] }
  0xc6   : > { %3175 = vmatmul.mubr.bf16.gmra.mxu0 %v4475_v59  ;;  %5541 = vmatprep.subr.bf16.mxu1 %v5979_v60  ;;  %v4571_v60 = vcombine.low %v375_v40, %v383_v41  ;;  %v424_v40 = vld [vmem:[%s6178_s12 + $0x618] sm:$0xff] }
  0xc7   : > { %3336 = vmatmul.mubr.bf16.gmra.mxu1 %v4477_v61  ;;  %3182 = vmatprep.mubr.bf16.mxu0 %v4492_v62  ;;  %v432_v41 = vld [vmem:[%s6178_s12 + $0x658] sm:$0xff] }
  0xc8   : > { %3343 = vmatprep.mubr.bf16.mxu1 %v4494_v63  ;;  %5430 = vmatpush3.bf16.msra.mxu0 %v5978_v0  ;;  %v4573_v63 = vcombine.low %v376_v42, %v384_v43  ;;  %v4588_v0 = vcombine.high %v391_v52, %v399_v53 }
  0xc9   : > { %5542 = vmatpush3.bf16.msra.mxu1 %v5980_v1  ;;  %5431 = vmatprep.subr.bf16.mxu0 %v5981_v2  ;;  %v4590_v2 = vcombine.high %v392_v56, %v400_v57 }
  0xca   : > { %5543 = vmatprep.subr.bf16.mxu1 %v5983_v3 }
  0xcc   : > { %5432 = vmatpush3.bf16.msra.mxu0 %v5982_v7 }
  0xcd   : > { %5544 = vmatpush3.bf16.msra.mxu1 %v5984_v9  ;;  %5641 = vmatprep.subr.bf16.mxu0 %v5985_v10 }
  0xce   : > { %3183 = vmatmul.mubr.bf16.gmra.mxu0 %v4491_v11  ;;  %5753 = vmatprep.subr.bf16.mxu1 %v5987_v12  ;;  %v407_v11 = vld [vmem:[%s6178_s12 + $0x590] sm:$0xff] }
  0xcf   : > { %3344 = vmatmul.mubr.bf16.gmra.mxu1 %v4493_v13  ;;  %3190 = vmatprep.mubr.bf16.mxu0 %v4508_v14  ;;  %v415_v12 = vld [vmem:[%s6178_s12 + $0x5d0] sm:$0xff] }
  0xd0   : > { %3351 = vmatprep.mubr.bf16.mxu1 %v4510_v15  ;;  %v4604_v24 = vcombine.high %v407_v11, %v415_v12 }
  0xd6   : > { %3191 = vmatmul.mubr.bf16.gmra.mxu0 %v4507_v20  ;;  %v4587_v20 = vcombine.low %v391_v52, %v399_v53 }
  0xd7   : > { %3352 = vmatmul.mubr.bf16.gmra.mxu1 %v4509_v21  ;;  %3198 = vmatprep.mubr.bf16.mxu0 %v4524_v22 }
  0xd8   : > { %3359 = vmatprep.mubr.bf16.mxu1 %v4526_v23  ;;  %v4589_v23 = vcombine.low %v392_v56, %v400_v57 }
  0xde   : > { %3199 = vmatmul.mubr.bf16.gmra.mxu0 %v4523_v28 }
  0xdf   : > { %3360 = vmatmul.mubr.bf16.gmra.mxu1 %v4525_v29  ;;  %3206 = vmatprep.mubr.bf16.mxu0 %v4540_v30 }
  0xe0   : > { %3367 = vmatprep.mubr.bf16.mxu1 %v4542_v31 }
  0xe6   : > { %3207 = vmatmul.mubr.bf16.gmra.mxu0 %v4539_v36  ;;  %v431_v36 = vld [vmem:[%s6178_s12 + $0x650] sm:$0xff] }
  0xe7   : > { %3368 = vmatmul.mubr.bf16.gmra.mxu1 %v4541_v37  ;;  %3214 = vmatprep.mubr.bf16.mxu0 %v4556_v38 }
  0xe8   : > { %3375 = vmatprep.mubr.bf16.mxu1 %v4558_v39 }
  0xee   : > { %v4985_v48 = vpop.f32.mrf.mxu0  ;;  %3215 = vmatmul.mubr.bf16.gmra.mxu0 %v4555_v44  ;;  %v4603_v44 = vcombine.low %v407_v11, %v415_v12 }
  0xef   : > { %v5097_v49 = vpop.f32.mrf.mxu1  ;;  %3376 = vmatmul.mubr.bf16.gmra.mxu1 %v4557_v45  ;;  %3222 = vmatprep.mubr.bf16.mxu0 %v4572_v46 }
  0xf0   : > { %v4986_v51 = vpop.f32.mrf.mxu0  ;;  %3383 = vmatprep.mubr.bf16.mxu1 %v4574_v47  ;;  %v4605_v47 = vcombine.low %v408_v16, %v416_v17 }
  0xf1   : > { %v4987_v54 = vadd.f32 %v4986_v51, %v4985_v48  ;;  %v5098_v55 = vpop.f32.mrf.mxu1  ;;  %v4620_v48 = vcombine.high %v423_v35, %v431_v36  ;;  %v4622_v51 = vcombine.high %v424_v40, %v432_v41 }
  0xf2   : > { %v5099_v58 = vadd.f32 %v5098_v55, %v5097_v49  ;;  %v4988_v59 = vpop.f32.mrf.mxu0 }
  0xf3   : > { %v2831_v61 = vadd.f32 %v4987_v54, %v6491_v50  ;;  %v5100_v62 = vpop.f32.mrf.mxu1 }
  0xf4   : > { %v4989_v1 = vpop.f32.mrf.mxu0 }
  0xf5   : > { %v6498_v3 = vadd.f32 %v5099_v58, %v2831_v61  ;;  %v4990_v4 = vadd.f32 %v4989_v1, %v4988_v59  ;;  %v5101_v5 = vpop.f32.mrf.mxu1  ;;  %v447_v61 = vld [vmem:[%s6178_s12 + $0x6d0] sm:$0xff]  ;;  %v440_v1 = vld [vmem:[%s6178_s12 + $0x698] sm:$0xff] }
  0xf6   : > { %v5102_v6 = vadd.f32 %v5101_v5, %v5100_v62  ;;  %v4991_v7 = vpop.f32.mrf.mxu0  ;;  %3223 = vmatmul.mubr.bf16.gmra.mxu0 %v4571_v60  ;;  %v439_v60 = vld [vmem:[%s6178_s12 + $0x690] sm:$0xff] }
  0xf7   : > { %v2834_v8 = vadd.f32 %v4990_v4, %v6491_v50  ;;  %v5103_v9 = vpop.f32.mrf.mxu1  ;;  %3384 = vmatmul.mubr.bf16.gmra.mxu1 %v4573_v63  ;;  %3230 = vmatprep.mubr.bf16.mxu0 %v4588_v0 }
  0xf8   : > { %v4992_v10 = vpop.f32.mrf.mxu0  ;;  %3391 = vmatprep.mubr.bf16.mxu1 %v4590_v2  ;;  %v448_v2 = vld [vmem:[%s6178_s12 + $0x6d8] sm:$0xff] }
  0xf9   : > { %v6503_v13 = vadd.f32 %v5102_v6, %v2834_v8  ;;  %v4993_v14 = vadd.f32 %v4992_v10, %v4991_v7  ;;  %v5104_v15 = vpop.f32.mrf.mxu1  ;;  %v4619_v6 = vcombine.low %v423_v35, %v431_v36  ;;  %v4636_v10 = vcombine.high %v439_v60, %v447_v61 }
  0xfa   : > { %v5105_v18 = vadd.f32 %v5104_v15, %v5103_v9  ;;  %v4994_v19 = vpop.f32.mrf.mxu0  ;;  %v4621_v9 = vcombine.low %v424_v40, %v432_v41  ;;  %v4638_v12 = vcombine.high %v440_v1, %v448_v2  ;;  %v4637_v35 = vcombine.low %v440_v1, %v448_v2 }
  0xfb   : > { %v2839_v21 = vadd.f32 %v4993_v14, %v6491_v50  ;;  %v5106_v22 = vpop.f32.mrf.mxu1 }
  0xfc   : > { %v4995_v25 = vpop.f32.mrf.mxu0 }
  0xfd   : > { %v6508_v27 = vadd.f32 %v5105_v18, %v2839_v21  ;;  %v4996_v28 = vadd.f32 %v4995_v25, %v4994_v19  ;;  %v5107_v29 = vpop.f32.mrf.mxu1 }
  0xfe   : > { %v5108_v30 = vadd.f32 %v5107_v29, %v5106_v22  ;;  %v4997_v31 = vpop.f32.mrf.mxu0  ;;  %3231 = vmatmul.mubr.bf16.gmra.mxu0 %v4587_v20  ;;  %v455_v22 = vld [vmem:[%s6178_s12 + $0x710] sm:$0xff]  ;;  %v464_v29 = vld [vmem:[%s6178_s12 + $0x758] sm:$0xff] }
  0xff   : > { %v2842_v32 = vadd.f32 %v4996_v28, %v6491_v50  ;;  %v5109_v33 = vpop.f32.mrf.mxu1  ;;  %3392 = vmatmul.mubr.bf16.gmra.mxu1 %v4589_v23  ;;  %3238 = vmatprep.mubr.bf16.mxu0 %v4604_v24  ;;  %v463_v23 = vld [vmem:[%s6178_s12 + $0x750] sm:$0xff]  ;;  %v456_v28 = vld [vmem:[%s6178_s12 + $0x718] sm:$0xff] }
 0x100   : > { %v4998_v34 = vpop.f32.mrf.mxu0  ;;  %3399 = vmatprep.mubr.bf16.mxu1 %v4606_v26  ;;  %v4652_v36 = vcombine.high %v455_v22, %v463_v23 }
 0x101   : > { %v6513_v37 = vadd.f32 %v5108_v30, %v2842_v32  ;;  %v4999_v38 = vadd.f32 %v4998_v34, %v4997_v31  ;;  %v5110_v39 = vpop.f32.mrf.mxu1  ;;  %v4635_v32 = vcombine.low %v439_v60, %v447_v61 }
 0x102   : > { %v5111_v42 = vadd.f32 %v5110_v39, %v5109_v33  ;;  %v5000_v43 = vpop.f32.mrf.mxu0  ;;  %v4654_v39 = vcombine.high %v456_v28, %v464_v29 }
 0x103   : > { %v2847_v45 = vadd.f32 %v4999_v38, %v6491_v50  ;;  %v5112_v46 = vpop.f32.mrf.mxu1 }
 0x104   : > { %v5001_v49 = vpop.f32.mrf.mxu0 }
 0x105   : > { %v6518_v52 = vadd.f32 %v5111_v42, %v2847_v45  ;;  %v5002_v53 = vadd.f32 %v5001_v49, %v5000_v43  ;;  %v5113_v54 = vpop.f32.mrf.mxu1  ;;  %v479_v49 = vld [vmem:[%s6178_s12 + $0x7d0] sm:$0xff] }
 0x106   : > { %v5114_v55 = vadd.f32 %v5113_v54, %v5112_v46  ;;  %v5003_v56 = vpop.f32.mrf.mxu0  ;;  %3239 = vmatmul.mubr.bf16.gmra.mxu0 %v4603_v44 }
 0x107   : > { %v2850_v57 = vadd.f32 %v5002_v53, %v6491_v50  ;;  %v5115_v58 = vpop.f32.mrf.mxu1  ;;  %3400 = vmatmul.mubr.bf16.gmra.mxu1 %v4605_v47  ;;  %3246 = vmatprep.mubr.bf16.mxu0 %v4620_v48  ;;  %v471_v48 = vld [vmem:[%s6178_s12 + $0x790] sm:$0xff] }
 0x108   : > { %v5004_v59 = vpop.f32.mrf.mxu0  ;;  %3407 = vmatprep.mubr.bf16.mxu1 %v4622_v51 }
 0x109   : > { %v6523_v62 = vadd.f32 %v5114_v55, %v2850_v57  ;;  %v5005_v63 = vadd.f32 %v5004_v59, %v5003_v56  ;;  %v5116_v0 = vpop.f32.mrf.mxu1  ;;  %v472_v55 = vld [vmem:[%s6178_s12 + $0x798] sm:$0xff]  ;;  %v4651_v59 = vcombine.low %v455_v22, %v463_v23  ;;  %v4667_v23 = vcombine.low %v471_v48, %v479_v49 }
 0x10a   : > { %v5117_v4 = vadd.f32 %v5116_v0, %v5115_v58  ;;  %v5006_v5 = vpop.f32.mrf.mxu0  ;;  %v480_v56 = vld [vmem:[%s6178_s12 + $0x7d8] sm:$0xff]  ;;  %v4668_v0 = vcombine.high %v471_v48, %v479_v49 }
 0x10b   : > { %v2855_v7 = vadd.f32 %v5005_v63, %v6491_v50  ;;  %v5118_v8 = vpop.f32.mrf.mxu1  ;;  %v4653_v63 = vcombine.low %v456_v28, %v464_v29  ;;  %v4670_v2 = vcombine.high %v472_v55, %v480_v56  ;;  %v4669_v28 = vcombine.low %v472_v55, %v480_v56 }
 0x10c   : > { %v5007_v11 = vpop.f32.mrf.mxu0 }
 0x10d   : > { %v6528_v14 = vadd.f32 %v5117_v4, %v2855_v7  ;;  %v5008_v15 = vadd.f32 %v5007_v11, %v5006_v5  ;;  %v5119_v16 = vpop.f32.mrf.mxu1 }
 0x10e   : > { %v5120_v17 = vadd.f32 %v5119_v16, %v5118_v8  ;;  %v5009_v18 = vpop.f32.mrf.mxu0  ;;  %3247 = vmatmul.mubr.bf16.gmra.mxu0 %v4619_v6 }
 0x10f   : > { %v2858_v19 = vadd.f32 %v5008_v15, %v6491_v50  ;;  %v5121_v20 = vpop.f32.mrf.mxu1  ;;  %3408 = vmatmul.mubr.bf16.gmra.mxu1 %v4621_v9  ;;  %3254 = vmatprep.mubr.bf16.mxu0 %v4636_v10  ;;  %v241_v15 = vld [vmem:[%s6178_s12 + $0x60] sm:$0xff] }
 0x110   : > { %v5010_v21 = vpop.f32.mrf.mxu0  ;;  %3415 = vmatprep.mubr.bf16.mxu1 %v4638_v12  ;;  %v233_v12 = vld [vmem:[%s6178_s12 + $0x20] sm:$0xff] }
 0x111   : > { %v6533_v24 = vadd.f32 %v5120_v17, %v2858_v19  ;;  %v5011_v25 = vadd.f32 %v5010_v21, %v5009_v18  ;;  %v5122_v26 = vpop.f32.mrf.mxu1  ;;  %v234_v19 = vld [vmem:[%s6178_s12 + $0x28] sm:$0xff]  ;;  %v4432_v29 = vcombine.high %v233_v12, %v241_v15  ;;  %v4431_v49 = vcombine.low %v233_v12, %v241_v15  ;;  %v5990_v12 = vld [vmem:[%s7151_s1 + $0x330] sm:$0xff]  }
 0x112   : > { %v5123_v30 = vadd.f32 %v5122_v26, %v5121_v20  ;;  %v5012_v31 = vpop.f32.mrf.mxu0  ;;  %v242_v20 = vld [vmem:[%s6178_s12 + $0x68] sm:$0xff] }
 0x113   : > { %v2863_v33 = vadd.f32 %v5011_v25, %v6491_v50  ;;  %v5124_v34 = vpop.f32.mrf.mxu1 }
 0x114   : > { %v5013_v38 = vpop.f32.mrf.mxu0 }
 0x115   : > { %v6538_v40 = vadd.f32 %v5123_v30, %v2863_v33  ;;  %v5014_v41 = vadd.f32 %v5013_v38, %v5012_v31  ;;  %v5125_v42 = vpop.f32.mrf.mxu1  ;;  %v4434_v31 = vcombine.high %v234_v19, %v242_v20 }
 0x116   : > { %v5126_v43 = vadd.f32 %v5125_v42, %v5124_v34  ;;  %v5015_v44 = vpop.f32.mrf.mxu0  ;;  %3255 = vmatmul.mubr.bf16.gmra.mxu0 %v4635_v32 }
 0x117   : > { %v2866_v45 = vadd.f32 %v5014_v41, %v6491_v50  ;;  %v5127_v46 = vpop.f32.mrf.mxu1  ;;  %3416 = vmatmul.mubr.bf16.gmra.mxu1 %v4637_v35  ;;  %3262 = vmatprep.mubr.bf16.mxu0 %v4652_v36 }
 0x118   : > { %v5016_v47 = vpop.f32.mrf.mxu0  ;;  %3423 = vmatprep.mubr.bf16.mxu1 %v4654_v39 }
 0x119   : > { %v6543_v51 = vadd.f32 %v5126_v43, %v2866_v45  ;;  %v5017_v53 = vadd.f32 %v5016_v47, %v5015_v44  ;;  %v5128_v54 = vpop.f32.mrf.mxu1  ;;  %v6564_v45 = vld [vmem:[%s6178_s12 + $0xa0] sm:$0xff] }
 0x11a   : > { %v5129_v57 = vadd.f32 %v5128_v54, %v5127_v46  ;;  %v5018_v58 = vpop.f32.mrf.mxu0  ;;  %v6567_v46 = vld [vmem:[%s6178_s12 + $0xe0] sm:$0xff]  ;;  %v6573_v54 = vld [vmem:[%s6178_s12 + $0xe8] sm:$0xff] }
 0x11b   : > { %v2871_v60 = vadd.f32 %v5017_v53, %v6491_v50  ;;  %v5130_v61 = vpop.f32.mrf.mxu1  ;;  %v6570_v53 = vld [vmem:[%s6178_s12 + $0xa8] sm:$0xff] }
 0x11c   : > { %v5019_v1 = vpop.f32.mrf.mxu0 }
 0x11d   : > { %v6548_v4 = vadd.f32 %v5129_v57, %v2871_v60  ;;  %v5020_v5 = vadd.f32 %v5019_v1, %v5018_v58  ;;  %v5131_v6 = vpop.f32.mrf.mxu1  ;;  %v4433_v57 = vcombine.low %v234_v19, %v242_v20  ;;  %v5986_v58 = vld [vmem:[%s7151_s1 + $0x338] sm:$0xff]   ;;  %v5993_v19 = vld [vmem:[%s7151_s1 + $0x368] sm:$0xff]  }
 0x11e   : > { %v5132_v7 = vadd.f32 %v5131_v6, %v5130_v61  ;;  %v5021_v8 = vpop.f32.mrf.mxu0  ;;  %3263 = vmatmul.mubr.bf16.gmra.mxu0 %v4651_v59  ;;  %v5988_v60 = vld [vmem:[%s7151_s1 + $0x3b8] sm:$0xff]   ;;  %v4448_v61 = vcombine.high %v6564_v45, %v6567_v46 }
 0x11f   : > { %v2874_v9 = vadd.f32 %v5020_v5, %v6491_v50  ;;  %v5133_v10 = vpop.f32.mrf.mxu1  ;;  %3424 = vmatmul.mubr.bf16.gmra.mxu1 %v4653_v63  ;;  %3270 = vmatprep.mubr.bf16.mxu0 %v4668_v0  ;;  %v5989_v5 = vld [vmem:[%s7151_s1 + $0x370] sm:$0xff]  }
 0x120   : > { %v5022_v11 = vpop.f32.mrf.mxu0  ;;  %3431 = vmatprep.mubr.bf16.mxu1 %v4670_v2  ;;  %v4450_v2 = vcombine.high %v6570_v53, %v6573_v54 }
 0x121   : > { %v6553_v16 = vadd.f32 %v5132_v7, %v2874_v9  ;;  %v5023_v17 = vadd.f32 %v5022_v11, %v5021_v8  ;;  %v5134_v18 = vpop.f32.mrf.mxu1  ;;  %v5991_v8 = vld [vmem:[%s7151_s1 + $0x3f0] sm:$0xff]   ;;  %v6596_v11 = vld [vmem:[%s6178_s12 + $0x120] sm:$0xff] }
 0x122   : > { %v5135_v21 = vadd.f32 %v5134_v18, %v5133_v10  ;;  %v5024_v22 = vpop.f32.mrf.mxu0  ;;  %v5992_v18 = vld [vmem:[%s7151_s1 + $0x3b0] sm:$0xff]  }
 0x123   : > { %v2879_v25 = vadd.f32 %v5023_v17, %v6491_v50  ;;  %v5136_v26 = vpop.f32.mrf.mxu1  ;;  %v6602_v17 = vld [vmem:[%s6178_s12 + $0x160] sm:$0xff] }
 0x124   : > { %v5025_v30 = vpop.f32.mrf.mxu0 }
 0x125   : > { %v6558_v32 = vadd.f32 %v5135_v21, %v2879_v25  ;;  %v5026_v33 = vadd.f32 %v5025_v30, %v5024_v22  ;;  %v5137_v34 = vpop.f32.mrf.mxu1  ;;  %v6616_v25 = vld [vmem:[%s6178_s12 + $0x168] sm:$0xff]  ;;  %v4447_v30 = vcombine.low %v6564_v45, %v6567_v46  ;;  %v5997_v46 = vld [vmem:[%s7151_s1 + $0x360] sm:$0xff]  }
 0x126   : > { %v5138_v35 = vadd.f32 %v5137_v34, %v5136_v26  ;;  %v5027_v36 = vpop.f32.mrf.mxu0  ;;  %3271 = vmatmul.mubr.bf16.gmra.mxu0 %v4667_v23  ;;  %v6613_v23 = vld [vmem:[%s6178_s12 + $0x128] sm:$0xff]  ;;  %v4449_v34 = vcombine.low %v6570_v53, %v6573_v54 }
 0x127   : > { %v2882_v38 = vadd.f32 %v5026_v33, %v6491_v50  ;;  %v5139_v39 = vpop.f32.mrf.mxu1  ;;  %3432 = vmatmul.mubr.bf16.gmra.mxu1 %v4669_v28  ;;  %3472 = vmatprep.mubr.bf16.mxu0 %v4432_v29  ;;  %v5995_v26 = vld [vmem:[%s7151_s1 + $0x3e8] sm:$0xff]  }
 0x128   : > { %v5028_v41 = vpop.f32.mrf.mxu0  ;;  %3633 = vmatprep.mubr.bf16.mxu1 %v4434_v31  ;;  %v5996_v45 = vld [vmem:[%s7151_s1 + $0x3a8] sm:$0xff]  }
 0x129   : > { %v6561_v42 = vadd.f32 %v5138_v35, %v2882_v38  ;;  %v5029_v43 = vadd.f32 %v5028_v41, %v5027_v36  ;;  %v5140_v44 = vpop.f32.mrf.mxu1  ;;  %v4464_v35 = vcombine.high %v6596_v11, %v6602_v17  ;;  %v4466_v38 = vcombine.high %v6613_v23, %v6616_v25 }
 0x12a   : > { %v5141_v47 = vadd.f32 %v5140_v44, %v5139_v39  ;;  %v5030_v48 = vpop.f32.mrf.mxu0  ;;  %v5994_v39 = vld [vmem:[%s7151_s1 + $0x328] sm:$0xff]  }
 0x12b   : > { %v2887_v55 = vadd.f32 %v5029_v43, %v6491_v50  ;;  %v5142_v56 = vpop.f32.mrf.mxu1 }
 0x12c   : > { %v5031_v59 = vpop.f32.mrf.mxu0 }
 0x12d   : > { %v6584_v63 = vadd.f32 %v5141_v47, %v2887_v55  ;;  %v5032_v0 = vadd.f32 %v5031_v59, %v5030_v48  ;;  %v5143_v1 = vpop.f32.mrf.mxu1  ;;  %v6646_v55 = vld [vmem:[%s6178_s12 + $0x1a0] sm:$0xff] }
 0x12e   : > { %v5144_v6 = vadd.f32 %v5143_v1, %v5142_v56  ;;  %v5033_v7 = vpop.f32.mrf.mxu0  ;;  %3473 = vmatmul.mubr.bf16.vlgmr.msra.gmra.mxu0 %v4431_v49  ;;  %v5999_v49 = vld [vmem:[%s7151_s1 + $0x3e0] sm:$0xff]   ;;  %v6660_v1 = vld [vmem:[%s6178_s12 + $0x1e8] sm:$0xff] }
 0x12f   : > { %v2890_v9 = vadd.f32 %v5032_v0, %v6491_v50  ;;  %v5145_v10 = vpop.f32.mrf.mxu1  ;;  %3634 = vmatmul.mubr.bf16.vlgmr.msra.gmra.mxu1 %v4433_v57  ;;  %5642 = vmatpush3.bf16.msra.mxu0 %v5986_v58  ;;  %v6649_v57 = vld [vmem:[%s6178_s12 + $0x1e0] sm:$0xff]  ;;  %v6652_v58 = vld [vmem:[%s6178_s12 + $0x1a8] sm:$0xff] }
 0x130   : > { %v5034_v15 = vpop.f32.mrf.mxu0  ;;  %5754 = vmatpush3.bf16.msra.mxu1 %v5988_v60  ;;  %3480 = vmatprep.mubr.bf16.mxu0 %v4448_v61  ;;  %v5998_v59 = vld [vmem:[%s7151_s1 + $0x320] sm:$0xff]  }
 0x131   : > { %v6610_v20 = vadd.f32 %v5144_v6, %v2890_v9  ;;  %v5035_v21 = vadd.f32 %v5034_v15, %v5033_v7  ;;  %v5146_v22 = vpop.f32.mrf.mxu1  ;;  %3641 = vmatprep.mubr.bf16.mxu1 %v4450_v2  ;;  %5643 = vmatprep.subr.bf16.mxu0 %v5989_v5  ;;  %v6000_v2 = vld [vmem:[%s7151_s1 + $0x3a0] sm:$0xff]   ;;  %v6001_v5 = vld [vmem:[%s7151_s1 + $0x358] sm:$0xff]   ;;  %v4465_v15 = vcombine.low %v6613_v23, %v6616_v25  ;;  %v6005_v25 = vld [vmem:[%s7151_s1 + $0x350] sm:$0xff]  }
 0x132   : > { %v5147_v28 = vadd.f32 %v5146_v22, %v5145_v10  ;;  %v5036_v29 = vpop.f32.mrf.mxu0  ;;  %5755 = vmatprep.subr.bf16.mxu1 %v5991_v8  ;;  %v4463_v8 = vcombine.low %v6596_v11, %v6602_v17  ;;  %v6003_v9 = vld [vmem:[%s7151_s1 + $0x3d8] sm:$0xff]  }
 0x133   : > { %v2895_v31 = vadd.f32 %v5035_v21, %v6491_v50  ;;  %v5148_v33 = vpop.f32.mrf.mxu1  ;;  %5644 = vmatpush3.bf16.msra.mxu0 %v5990_v12  ;;  %v4482_v21 = vcombine.high %v6652_v58, %v6660_v1  ;;  %v6002_v11 = vld [vmem:[%s7151_s1 + $0x318] sm:$0xff]  }
 0x134   : > { %v5037_v36 = vpop.f32.mrf.mxu0  ;;  %5756 = vmatpush3.bf16.msra.mxu1 %v5992_v18  ;;  %5645 = vmatprep.subr.bf16.mxu0 %v5993_v19  ;;  %v4480_v18 = vcombine.high %v6646_v55, %v6649_v57  ;;  %v6004_v23 = vld [vmem:[%s7151_s1 + $0x398] sm:$0xff]  }
 0x135   : > { %v6633_v41 = vadd.f32 %v5147_v28, %v2895_v31  ;;  %v5038_v43 = vadd.f32 %v5037_v36, %v5036_v29  ;;  %v5149_v44 = vpop.f32.mrf.mxu1  ;;  %5757 = vmatprep.subr.bf16.mxu1 %v5995_v26  ;;  %v6699_v36 = vld [vmem:[%s6178_s12 + $0x260] sm:$0xff] }
 0x136   : > { %v5150_v47 = vadd.f32 %v5149_v44, %v5148_v33  ;;  %v5039_v48 = vpop.f32.mrf.mxu0  ;;  %3481 = vmatmul.mubr.bf16.gmra.mxu0 %v4447_v30  ;;  %v6007_v30 = vld [vmem:[%s7151_s1 + $0x3d0] sm:$0xff]  }
 0x137   : > { %v2898_v53 = vadd.f32 %v5038_v43, %v6491_v50  ;;  %v5151_v54 = vpop.f32.mrf.mxu1  ;;  %3642 = vmatmul.mubr.bf16.gmra.mxu1 %v4449_v34  ;;  %3488 = vmatprep.mubr.bf16.mxu0 %v4464_v35  ;;  %v6696_v34 = vld [vmem:[%s6178_s12 + $0x220] sm:$0xff] }
 0x138   : > { %v5040_v56 = vpop.f32.mrf.mxu0  ;;  %3649 = vmatprep.mubr.bf16.mxu1 %v4466_v38  ;;  %5646 = vmatpush3.bf16.msra.mxu0 %v5994_v39  ;;  %v6702_v38 = vld [vmem:[%s6178_s12 + $0x228] sm:$0xff]  ;;  %v6006_v39 = vld [vmem:[%s7151_s1 + $0x310] sm:$0xff]  }
 0x139   : > { %v6657_v60 = vadd.f32 %v5150_v47, %v2898_v53  ;;  %v5041_v61 = vadd.f32 %v5040_v56, %v5039_v48  ;;  %v5152_v0 = vpop.f32.mrf.mxu1  ;;  %5758 = vmatpush3.bf16.msra.mxu1 %v5996_v45  ;;  %5647 = vmatprep.subr.bf16.mxu0 %v5997_v46  ;;  %v6710_v46 = vld [vmem:[%s6178_s12 + $0x268] sm:$0xff]  ;;  %v6008_v47 = vld [vmem:[%s7151_s1 + $0x390] sm:$0xff]  }
 0x13a   : > { %v5153_v6 = vadd.f32 %v5152_v0, %v5151_v54  ;;  %v5042_v7 = vpop.f32.mrf.mxu0  ;;  %5759 = vmatprep.subr.bf16.mxu1 %v5999_v49  ;;  %v6009_v48 = vld [vmem:[%s7151_s1 + $0x348] sm:$0xff]   ;;  %v4479_v54 = vcombine.low %v6646_v55, %v6649_v57  ;;  %v4481_v0 = vcombine.low %v6652_v58, %v6660_v1  ;;  %v6013_v1 = vld [vmem:[%s7151_s1 + $0x340] sm:$0xff]  }
 0x13b   : > { %v2903_v10 = vadd.f32 %v5041_v61, %v6491_v50  ;;  %v5154_v12 = vpop.f32.mrf.mxu1  ;;  %v6011_v56 = vld [vmem:[%s7151_s1 + $0x3c8] sm:$0xff]  }
 0x13c   : > { %v5043_v19 = vpop.f32.mrf.mxu0  ;;  %5648 = vmatpush3.bf16.msra.mxu0 %v5998_v59  ;;  %v6010_v55 = vld [vmem:[%s7151_s1 + $0x308] sm:$0xff]  }
 0x13d   : > { %v6683_v17 = vadd.f32 %v5153_v6, %v2903_v10  ;;  %v5044_v22 = vadd.f32 %v5043_v19, %v5042_v7  ;;  %v5155_v26 = vpop.f32.mrf.mxu1  ;;  %5760 = vmatpush3.bf16.msra.mxu1 %v6000_v2  ;;  %5649 = vmatprep.subr.bf16.mxu0 %v6001_v5  ;;  %v4496_v2 = vcombine.high %v6696_v34, %v6699_v36  ;;  %v6012_v58 = vld [vmem:[%s7151_s1 + $0x388] sm:$0xff]  }
 0x13e   : > { %v5156_v28 = vadd.f32 %v5155_v26, %v5154_v12  ;;  %v5045_v29 = vpop.f32.mrf.mxu0  ;;  %3489 = vmatmul.mubr.bf16.gmra.mxu0 %v4463_v8  ;;  %5761 = vmatprep.subr.bf16.mxu1 %v6003_v9  ;;  %v4498_v6 = vcombine.high %v6702_v38, %v6710_v46  ;;  %v6015_v12 = vld [vmem:[%s7151_s1 + $0x3c0] sm:$0xff]  }
 0x13f   : > { %v2906_v31 = vadd.f32 %v5044_v22, %v6491_v50  ;;  %v5157_v33 = vpop.f32.mrf.mxu1  ;;  %3650 = vmatmul.mubr.bf16.gmra.mxu1 %v4465_v15  ;;  %3496 = vmatprep.mubr.bf16.mxu0 %v4480_v18  ;;  %v6014_v22 = vld [vmem:[%s7151_s1 + $0x300] sm:$0xff]  }
 0x140   : > { %v5046_v35 = vpop.f32.mrf.mxu0  ;;  %3657 = vmatprep.mubr.bf16.mxu1 %v4482_v21  ;;  %5650 = vmatpush3.bf16.msra.mxu0 %v6002_v11  ;;  %v313_v21 = vld [vmem:[%s6178_s12 + $0x2a0] sm:$0xff] }
 0x141   : > { %v6707_v43 = vadd.f32 %v5156_v28, %v2906_v31  ;;  %v5047_v44 = vadd.f32 %v5046_v35, %v5045_v29  ;;  %v5158_v45 = vpop.f32.mrf.mxu1  ;;  %5762 = vmatpush3.bf16.msra.mxu1 %v6004_v23  ;;  %5651 = vmatprep.subr.bf16.mxu0 %v6005_v25  ;;  %v321_v11 = vld [vmem:[%s6178_s12 + $0x2e0] sm:$0xff]  ;;  %v314_v28 = vld [vmem:[%s6178_s12 + $0x2a8] sm:$0xff]  ;;  %v4495_v35 = vcombine.low %v6696_v34, %v6699_v36 }
 0x142   : > { %v5159_v49 = vadd.f32 %v5158_v45, %v5157_v33  ;;  %v5048_v53 = vpop.f32.mrf.mxu0  ;;  %5763 = vmatprep.subr.bf16.mxu1 %v6007_v30  ;;  %v322_v29 = vld [vmem:[%s6178_s12 + $0x2e8] sm:$0xff]  ;;  %v6016_v30 = vld [vmem:[%s7151_s1 + $0x380] sm:$0xff]   ;;  %v4497_v45 = vcombine.low %v6702_v38, %v6710_v46 }
 0x143   : > { %v2911_v59 = vadd.f32 %v5047_v44, %v6491_v50  ;;  %v5160_v61 = vpop.f32.mrf.mxu1  ;;  %v329_v46 = vld [vmem:[%s6178_s12 + $0x320] sm:$0xff] }
 0x144   : > { %v5049_v5 = vpop.f32.mrf.mxu0  ;;  %5652 = vmatpush3.bf16.msra.mxu0 %v6006_v39 }
 0x145   : > { %v6733_v57 = vadd.f32 %v5159_v49, %v2911_v59  ;;  %v5050_v7 = vadd.f32 %v5049_v5, %v5048_v53  ;;  %v5161_v8 = vpop.f32.mrf.mxu1  ;;  %5764 = vmatpush3.bf16.msra.mxu1 %v6008_v47  ;;  %5653 = vmatprep.subr.bf16.mxu0 %v6009_v48  ;;  %v4512_v47 = vcombine.high %v313_v21, %v321_v11 }
 0x146   : > { %v5162_v9 = vadd.f32 %v5161_v8, %v5160_v61  ;;  %v5051_v10 = vpop.f32.mrf.mxu0  ;;  %3497 = vmatmul.mubr.bf16.gmra.mxu0 %v4479_v54  ;;  %5765 = vmatprep.subr.bf16.mxu1 %v6011_v56  ;;  %v4514_v49 = vcombine.high %v314_v28, %v322_v29 }
 0x147   : > { %v2914_v15 = vadd.f32 %v5050_v7, %v6491_v50  ;;  %v5163_v18 = vpop.f32.mrf.mxu1  ;;  %3658 = vmatmul.mubr.bf16.gmra.mxu1 %v4481_v0  ;;  %3504 = vmatprep.mubr.bf16.mxu0 %v4496_v2  ;;  %v337_v0 = vld [vmem:[%s6178_s12 + $0x360] sm:$0xff]  ;;  %v338_v7 = vld [vmem:[%s6178_s12 + $0x368] sm:$0xff] }
 0x148   : > { %v5052_v19 = vpop.f32.mrf.mxu0  ;;  %3665 = vmatprep.mubr.bf16.mxu1 %v4498_v6  ;;  %5654 = vmatpush3.bf16.msra.mxu0 %v6010_v55  ;;  %v330_v55 = vld [vmem:[%s6178_s12 + $0x328] sm:$0xff] }
 0x149   : > { %v6750_v26 = vadd.f32 %v5162_v9, %v2914_v15  ;;  %v5053_v23 = vadd.f32 %v5052_v19, %v5051_v10  ;;  %v5164_v25 = vpop.f32.mrf.mxu1  ;;  %5766 = vmatpush3.bf16.msra.mxu1 %v6012_v58  ;;  %5655 = vmatprep.subr.bf16.mxu0 %v6013_v1  ;;  %v4511_v1 = vcombine.low %v313_v21, %v321_v11 }
 0x14a   : > { %v5165_v31 = vadd.f32 %v5164_v25, %v5163_v18  ;;  %v5054_v33 = vpop.f32.mrf.mxu0  ;;  %5767 = vmatprep.subr.bf16.mxu1 %v6015_v12  ;;  %v4513_v12 = vcombine.low %v314_v28, %v322_v29  ;;  %v4528_v15 = vcombine.high %v329_v46, %v337_v0  ;;  %v4530_v19 = vcombine.high %v330_v55, %v338_v7  ;;  %v345_v29 = vld [vmem:[%s6178_s12 + $0x3a0] sm:$0xff] }
 0x14b   : > { %v2919_v39 = vadd.f32 %v5053_v23, %v6491_v50  ;;  %v5166_v44 = vpop.f32.mrf.mxu1 }
 0x14c   : > { %v5055_v48 = vpop.f32.mrf.mxu0  ;;  %5656 = vmatpush3.bf16.msra.mxu0 %v6014_v22 }
 0x14d   : > { %v6762_v53 = vadd.f32 %v5165_v31, %v2919_v39  ;;  %v5056_v54 = vadd.f32 %v5055_v48, %v5054_v33  ;;  %v5167_v56 = vpop.f32.mrf.mxu1  ;;  %5768 = vmatpush3.bf16.msra.mxu1 %v6016_v30  ;;  %v353_v33 = vld [vmem:[%s6178_s12 + $0x3e0] sm:$0xff] }
 0x14e   : > { %v5168_v34 = vadd.f32 %v5167_v56, %v5166_v44  ;;  %v5057_v36 = vpop.f32.mrf.mxu0  ;;  %3505 = vmatmul.mubr.bf16.gmra.mxu0 %v4495_v35 }
 0x14f   : > { %v2922_v59 = vadd.f32 %v5056_v54, %v6491_v50  ;;  %v5169_v61 = vpop.f32.mrf.mxu1  ;;  %3666 = vmatmul.mubr.bf16.gmra.mxu1 %v4497_v45  ;;  %3512 = vmatprep.mubr.bf16.mxu0 %v4512_v47  ;;  %v346_v45 = vld [vmem:[%s6178_s12 + $0x3a8] sm:$0xff]  ;;  %v4527_v54 = vcombine.low %v329_v46, %v337_v0 }
 0x150   : > { %v5058_v38 = vpop.f32.mrf.mxu0  ;;  %3673 = vmatprep.mubr.bf16.mxu1 %v4514_v49  ;;  %v354_v47 = vld [vmem:[%s6178_s12 + $0x3e8] sm:$0xff] }
 0x151   : > { %v6767_v2 = vadd.f32 %v5168_v34, %v2922_v59  ;;  %v5059_v5 = vadd.f32 %v5058_v38, %v5057_v36  ;;  %v5170_v6 = vpop.f32.mrf.mxu1  ;;  %v4529_v36 = vcombine.low %v330_v55, %v338_v7  ;;  %v4544_v59 = vcombine.high %v345_v29, %v353_v33  ;;  %v361_v7 = vld [vmem:[%s6178_s12 + $0x420] sm:$0xff] }
 0x152   : > { %v5171_v8 = vadd.f32 %v5170_v6, %v5169_v61  ;;  %v5060_v58 = vpop.f32.mrf.mxu0  ;;  %v4546_v38 = vcombine.high %v346_v45, %v354_v47 }
 0x153   : > { %v2927_v9 = vadd.f32 %v5059_v5, %v6491_v50  ;;  %v5172_v10 = vpop.f32.mrf.mxu1 }
 0x154   : > { %v5061_v18 = vpop.f32.mrf.mxu0 }
 0x155   : > { %v6772_v22 = vadd.f32 %v5171_v8, %v2927_v9  ;;  %v5062_v23 = vadd.f32 %v5061_v18, %v5060_v58  ;;  %v5173_v25 = vpop.f32.mrf.mxu1  ;;  %v369_v9 = vld [vmem:[%s6178_s12 + $0x460] sm:$0xff]  ;;  %v362_v18 = vld [vmem:[%s6178_s12 + $0x428] sm:$0xff] }
 0x156   : > { %v5174_v30 = vadd.f32 %v5173_v25, %v5172_v10  ;;  %v5063_v31 = vpop.f32.mrf.mxu0  ;;  %3513 = vmatmul.mubr.bf16.gmra.mxu0 %v4511_v1 }
 0x157   : > { %v2930_v21 = vadd.f32 %v5062_v23, %v6491_v50  ;;  %v5175_v11 = vpop.f32.mrf.mxu1  ;;  %3674 = vmatmul.mubr.bf16.gmra.mxu1 %v4513_v12  ;;  %3520 = vmatprep.mubr.bf16.mxu0 %v4528_v15 }
 0x158   : > { %v5064_v28 = vpop.f32.mrf.mxu0  ;;  %3681 = vmatprep.mubr.bf16.mxu1 %v4530_v19  ;;  %v370_v19 = vld [vmem:[%s6178_s12 + $0x468] sm:$0xff] }
 0x159   : > { %v6777_v35 = vadd.f32 %v5174_v30, %v2930_v21  ;;  %v5065_v39 = vadd.f32 %v5064_v28, %v5063_v31  ;;  %v5176_v44 = vpop.f32.mrf.mxu1  ;;  %v4543_v30 = vcombine.low %v345_v29, %v353_v33  ;;  %v4560_v28 = vcombine.high %v361_v7, %v369_v9 }
 0x15a   : > { %v5177_v48 = vadd.f32 %v5176_v44, %v5175_v11  ;;  %v5066_v49 = vpop.f32.mrf.mxu0  ;;  %v4545_v11 = vcombine.low %v346_v45, %v354_v47  ;;  %v4562_v44 = vcombine.high %v362_v18, %v370_v19  ;;  %v377_v47 = vld [vmem:[%s6178_s12 + $0x4a0] sm:$0xff] }
 0x15b   : > { %v2935_v56 = vadd.f32 %v5065_v39, %v6491_v50  ;;  %v5178_v34 = vpop.f32.mrf.mxu1 }
 0x15c   : > { %v5067_v61 = vpop.f32.mrf.mxu0 }
 0x15d   : > { %v6782_v5 = vadd.f32 %v5177_v48, %v2935_v56  ;;  %v5068_v6 = vadd.f32 %v5067_v61, %v5066_v49  ;;  %v5179_v8 = vpop.f32.mrf.mxu1 }
 0x15e   : > { %v5180_v58 = vadd.f32 %v5179_v8, %v5178_v34  ;;  %v5069_v1 = vpop.f32.mrf.mxu0  ;;  %3521 = vmatmul.mubr.bf16.gmra.mxu0 %v4527_v54  ;;  %v386_v8 = vld [vmem:[%s6178_s12 + $0x4e8] sm:$0xff] }
 0x15f   : > { %v2938_v46 = vadd.f32 %v5068_v6, %v6491_v50  ;;  %v5181_v0 = vpop.f32.mrf.mxu1  ;;  %3682 = vmatmul.mubr.bf16.gmra.mxu1 %v4529_v36  ;;  %3528 = vmatprep.mubr.bf16.mxu0 %v4544_v59  ;;  %v385_v36 = vld [vmem:[%s6178_s12 + $0x4e0] sm:$0xff]  ;;  %v378_v6 = vld [vmem:[%s6178_s12 + $0x4a8] sm:$0xff] }
 0x160   : > { %v5070_v55 = vpop.f32.mrf.mxu0  ;;  %3689 = vmatprep.mubr.bf16.mxu1 %v4546_v38 }
 0x161   : > { %v6787_v10 = vadd.f32 %v5180_v58, %v2938_v46  ;;  %v5071_v12 = vadd.f32 %v5070_v55, %v5069_v1  ;;  %v5182_v15 = vpop.f32.mrf.mxu1  ;;  %v4559_v46 = vcombine.low %v361_v7, %v369_v9 }
 0x162   : > { %v5183_v23 = vadd.f32 %v5182_v15, %v5181_v0  ;;  %v5072_v25 = vpop.f32.mrf.mxu0  ;;  %v4576_v15 = vcombine.high %v377_v47, %v385_v36 }
 0x163   : > { %v2943_v31 = vadd.f32 %v5071_v12, %v6491_v50  ;;  %v5184_v21 = vpop.f32.mrf.mxu1  ;;  %v4561_v12 = vcombine.low %v362_v18, %v370_v19  ;;  %v393_v19 = vld [vmem:[%s6178_s12 + $0x520] sm:$0xff] }
 0x164   : > { %v5073_v39 = vpop.f32.mrf.mxu0 }
 0x165   : > { %v6792_v48 = vadd.f32 %v5183_v23, %v2943_v31  ;;  %v5074_v49 = vadd.f32 %v5073_v39, %v5072_v25  ;;  %v5185_v54 = vpop.f32.mrf.mxu1  ;;  %v4578_v25 = vcombine.high %v378_v6, %v386_v8  ;;  %v401_v39 = vld [vmem:[%s6178_s12 + $0x560] sm:$0xff] }
 0x166   : > { %v5186_v56 = vadd.f32 %v5185_v54, %v5184_v21  ;;  %v5075_v34 = vpop.f32.mrf.mxu0  ;;  %3529 = vmatmul.mubr.bf16.gmra.mxu0 %v4543_v30 }
 0x167   : > { %v2946_v29 = vadd.f32 %v5074_v49, %v6491_v50  ;;  %v5187_v33 = vpop.f32.mrf.mxu1  ;;  %3690 = vmatmul.mubr.bf16.gmra.mxu1 %v4545_v11  ;;  %3536 = vmatprep.mubr.bf16.mxu0 %v4560_v28 }
 0x168   : > { %v5076_v45 = vpop.f32.mrf.mxu0  ;;  %3697 = vmatprep.mubr.bf16.mxu1 %v4562_v44 }
 0x169   : > { %v6797_v59 = vadd.f32 %v5186_v56, %v2946_v29  ;;  %v5077_v61 = vadd.f32 %v5076_v45, %v5075_v34  ;;  %v5188_v38 = vpop.f32.mrf.mxu1  ;;  %v394_v56 = vld [vmem:[%s6178_s12 + $0x528] sm:$0xff]  ;;  %v4575_v45 = vcombine.low %v377_v47, %v385_v36 }
 0x16a   : > { %v5189_v58 = vadd.f32 %v5188_v38, %v5187_v33  ;;  %v5078_v1 = vpop.f32.mrf.mxu0  ;;  %v402_v34 = vld [vmem:[%s6178_s12 + $0x568] sm:$0xff] }
 0x16b   : > { %v2951_v0 = vadd.f32 %v5077_v61, %v6491_v50  ;;  %v5190_v55 = vpop.f32.mrf.mxu1 }
 0x16c   : > { %v5079_v23 = vpop.f32.mrf.mxu0 }
 0x16d   : > { %v6802_v30 = vadd.f32 %v5189_v58, %v2951_v0  ;;  %v5080_v31 = vadd.f32 %v5079_v23, %v5078_v1  ;;  %v5191_v21 = vpop.f32.mrf.mxu1  ;;  %v4592_v58 = vcombine.high %v393_v19, %v401_v39 }
 0x16e   : > { %v5192_v11 = vadd.f32 %v5191_v21, %v5190_v55  ;;  %v5209_v28 = vpop.f32.mrf.mxu0  ;;  %3537 = vmatmul.mubr.bf16.gmra.mxu0 %v4559_v46  ;;  %v4594_v46 = vcombine.high %v394_v56, %v402_v34 }
 0x16f   : > { %v2954_v7 = vadd.f32 %v5080_v31, %v6491_v50  ;;  %v5321_v9 = vpop.f32.mrf.mxu1  ;;  %3698 = vmatmul.mubr.bf16.gmra.mxu1 %v4561_v12  ;;  %3544 = vmatprep.mubr.bf16.mxu0 %v4576_v15  ;;  %v4577_v50 = vcombine.low %v378_v6, %v386_v8  ;;  %v409_v6 = vld [vmem:[%s6178_s12 + $0x5a0] sm:$0xff] }
 0x170   : > { %v5210_v18 = vpop.f32.mrf.mxu0  ;;  %3705 = vmatprep.mubr.bf16.mxu1 %v4578_v25  ;;  %v417_v8 = vld [vmem:[%s6178_s12 + $0x5e0] sm:$0xff] }
 0x171   : > { %v6807_v44 = vadd.f32 %v5192_v11, %v2954_v7  ;;  %v5211_v49 = vadd.f32 %v5210_v18, %v5209_v28  ;;  %v5322_v54 = vpop.f32.mrf.mxu1  ;;  %v410_v11 = vld [vmem:[%s6178_s12 + $0x5a8] sm:$0xff]  ;;  %v4591_v18 = vcombine.low %v393_v19, %v401_v39 }
 0x172   : > { %v5323_v29 = vadd.f32 %v5322_v54, %v5321_v9  ;;  %v5212_v33 = vpop.f32.mrf.mxu0  ;;  %v418_v28 = vld [vmem:[%s6178_s12 + $0x5e8] sm:$0xff] }
 0x173   : > { %v3153_v61 = vadd.f32 %v5211_v49, %v6498_v3  ;;  %v5324_v38 = vpop.f32.mrf.mxu1 }
 0x174   : > { %v5213_v1 = vpop.f32.mrf.mxu0 }
 0x175   : > { %v6812_v0 = vadd.f32 %v5323_v29, %v3153_v61  ;;  %v5214_v55 = vadd.f32 %v5213_v1, %v5212_v33  ;;  %v5325_v12 = vpop.f32.mrf.mxu1  ;;  %v4608_v29 = vcombine.high %v409_v6, %v417_v8 }
 0x176   : > { %v5326_v15 = vadd.f32 %v5325_v12, %v5324_v38  ;;  %v5215_v23 = vpop.f32.mrf.mxu0  ;;  %3545 = vmatmul.mubr.bf16.gmra.mxu0 %v4575_v45  ;;  %v4610_v45 = vcombine.high %v410_v11, %v418_v28 }
 0x177   : > { %v3156_v47 = vadd.f32 %v5214_v55, %v6503_v13  ;;  %v5327_v36 = vpop.f32.mrf.mxu1  ;;  %3706 = vmatmul.mubr.bf16.gmra.mxu1 %v4577_v50  ;;  %3552 = vmatprep.mubr.bf16.mxu0 %v4592_v58  ;;  %v4593_v13 = vcombine.low %v394_v56, %v402_v34  ;;  %v425_v56 = vld [vmem:[%s6178_s12 + $0x620] sm:$0xff] }
 0x178   : > { %v5216_v3 = vpop.f32.mrf.mxu0  ;;  %3713 = vmatprep.mubr.bf16.mxu1 %v4594_v46  ;;  %v433_v34 = vld [vmem:[%s6178_s12 + $0x660] sm:$0xff] }
 0x179   : > { %v6817_v25 = vadd.f32 %v5326_v15, %v3156_v47  ;;  %v5217_v31 = vadd.f32 %v5216_v3, %v5215_v23  ;;  %v5328_v21 = vpop.f32.mrf.mxu1  ;;  %v426_v15 = vld [vmem:[%s6178_s12 + $0x628] sm:$0xff]  ;;  %v4607_v3 = vcombine.low %v409_v6, %v417_v8 }
 0x17a   : > { %v5329_v7 = vadd.f32 %v5328_v21, %v5327_v36  ;;  %v5218_v9 = vpop.f32.mrf.mxu0  ;;  %v434_v23 = vld [vmem:[%s6178_s12 + $0x668] sm:$0xff] }
 0x17b   : > { %v3161_v49 = vadd.f32 %v5217_v31, %v6508_v27  ;;  %v5330_v54 = vpop.f32.mrf.mxu1 }
 0x17c   : > { %v5219_v33 = vpop.f32.mrf.mxu0 }
 0x17d   : > { %v6822_v61 = vadd.f32 %v5329_v7, %v3161_v49  ;;  %v5220_v38 = vadd.f32 %v5219_v33, %v5218_v9  ;;  %v5331_v50 = vpop.f32.mrf.mxu1  ;;  %v4624_v7 = vcombine.high %v425_v56, %v433_v34 }
 0x17e   : > { %v5332_v58 = vadd.f32 %v5331_v50, %v5330_v54  ;;  %v5221_v1 = vpop.f32.mrf.mxu0  ;;  %3553 = vmatmul.mubr.bf16.gmra.mxu0 %v4591_v18  ;;  %v4626_v18 = vcombine.high %v426_v15, %v434_v23 }
 0x17f   : > { %v3164_v19 = vadd.f32 %v5220_v38, %v6513_v37  ;;  %v5333_v39 = vpop.f32.mrf.mxu1  ;;  %3714 = vmatmul.mubr.bf16.gmra.mxu1 %v4593_v13  ;;  %3560 = vmatprep.mubr.bf16.mxu0 %v4608_v29  ;;  %v4609_v37 = vcombine.low %v410_v11, %v418_v28  ;;  %v441_v11 = vld [vmem:[%s6178_s12 + $0x6a0] sm:$0xff] }
 0x180   : > { %v5222_v27 = vpop.f32.mrf.mxu0  ;;  %3721 = vmatprep.mubr.bf16.mxu1 %v4610_v45  ;;  %v449_v28 = vld [vmem:[%s6178_s12 + $0x6e0] sm:$0xff] }
 0x181   : > { %v6827_v46 = vadd.f32 %v5332_v58, %v3164_v19  ;;  %v5223_v55 = vadd.f32 %v5222_v27, %v5221_v1  ;;  %v5334_v12 = vpop.f32.mrf.mxu1  ;;  %v442_v58 = vld [vmem:[%s6178_s12 + $0x6a8] sm:$0xff]  ;;  %v4623_v27 = vcombine.low %v425_v56, %v433_v34 }
 0x182   : > { %v5335_v47 = vadd.f32 %v5334_v12, %v5333_v39  ;;  %v5224_v36 = vpop.f32.mrf.mxu0  ;;  %v450_v1 = vld [vmem:[%s6178_s12 + $0x6e8] sm:$0xff] }
 0x183   : > { %v3169_v31 = vadd.f32 %v5223_v55, %v6518_v52  ;;  %v5336_v21 = vpop.f32.mrf.mxu1 }
 0x184   : > { %v5225_v9 = vpop.f32.mrf.mxu0 }
 0x185   : > { %v6832_v49 = vadd.f32 %v5335_v47, %v3169_v31  ;;  %v5226_v54 = vadd.f32 %v5225_v9, %v5224_v36  ;;  %v5337_v13 = vpop.f32.mrf.mxu1  ;;  %v4640_v47 = vcombine.high %v441_v11, %v449_v28 }
 0x186   : > { %v5338_v29 = vadd.f32 %v5337_v13, %v5336_v21  ;;  %v5227_v33 = vpop.f32.mrf.mxu0  ;;  %3561 = vmatmul.mubr.bf16.gmra.mxu0 %v4607_v3  ;;  %v4642_v3 = vcombine.high %v442_v58, %v450_v1 }
 0x187   : > { %v3172_v6 = vadd.f32 %v5226_v54, %v6523_v62  ;;  %v5339_v8 = vpop.f32.mrf.mxu1  ;;  %3722 = vmatmul.mubr.bf16.gmra.mxu1 %v4609_v37  ;;  %3568 = vmatprep.mubr.bf16.mxu0 %v4624_v7  ;;  %v4625_v62 = vcombine.low %v426_v15, %v434_v23  ;;  %v457_v15 = vld [vmem:[%s6178_s12 + $0x720] sm:$0xff] }
 0x188   : > { %v5228_v52 = vpop.f32.mrf.mxu0  ;;  %3729 = vmatprep.mubr.bf16.mxu1 %v4626_v18  ;;  %v465_v23 = vld [vmem:[%s6178_s12 + $0x760] sm:$0xff] }
 0x189   : > { %v6837_v45 = vadd.f32 %v5338_v29, %v3172_v6  ;;  %v5229_v38 = vadd.f32 %v5228_v52, %v5227_v33  ;;  %v5340_v50 = vpop.f32.mrf.mxu1  ;;  %v458_v29 = vld [vmem:[%s6178_s12 + $0x728] sm:$0xff]  ;;  %v4639_v52 = vcombine.low %v441_v11, %v449_v28 }
 0x18a   : > { %v5341_v19 = vadd.f32 %v5340_v50, %v5339_v8  ;;  %v5230_v39 = vpop.f32.mrf.mxu0  ;;  %v466_v33 = vld [vmem:[%s6178_s12 + $0x768] sm:$0xff] }
 0x18b   : > { %v3177_v55 = vadd.f32 %v5229_v38, %v6528_v14  ;;  %v5342_v12 = vpop.f32.mrf.mxu1 }
 0x18c   : > { %v5231_v36 = vpop.f32.mrf.mxu0 }
 0x18d   : > { %v6842_v31 = vadd.f32 %v5341_v19, %v3177_v55  ;;  %v5232_v21 = vadd.f32 %v5231_v36, %v5230_v39  ;;  %v5343_v37 = vpop.f32.mrf.mxu1  ;;  %v4656_v19 = vcombine.high %v457_v15, %v465_v23 }
 0x18e   : > { %v5344_v7 = vadd.f32 %v5343_v37, %v5342_v12  ;;  %v5233_v9 = vpop.f32.mrf.mxu0  ;;  %3569 = vmatmul.mubr.bf16.gmra.mxu0 %v4623_v27  ;;  %v4658_v27 = vcombine.high %v458_v29, %v466_v33 }
 0x18f   : > { %v3180_v56 = vadd.f32 %v5232_v21, %v6533_v24  ;;  %v5345_v34 = vpop.f32.mrf.mxu1  ;;  %3730 = vmatmul.mubr.bf16.gmra.mxu1 %v4625_v62  ;;  %3576 = vmatprep.mubr.bf16.mxu0 %v4640_v47  ;;  %v4641_v24 = vcombine.low %v442_v58, %v450_v1  ;;  %v473_v58 = vld [vmem:[%s6178_s12 + $0x7a0] sm:$0xff] }
 0x190   : > { %v5234_v14 = vpop.f32.mrf.mxu0  ;;  %3737 = vmatprep.mubr.bf16.mxu1 %v4642_v3  ;;  %v481_v1 = vld [vmem:[%s6178_s12 + $0x7e0] sm:$0xff] }
 0x191   : > { %v6847_v18 = vadd.f32 %v5344_v7, %v3180_v56  ;;  %v5235_v54 = vadd.f32 %v5234_v14, %v5233_v9  ;;  %v5346_v13 = vpop.f32.mrf.mxu1  ;;  %v474_v7 = vld [vmem:[%s6178_s12 + $0x7a8] sm:$0xff]  ;;  %v4655_v14 = vcombine.low %v457_v15, %v465_v23 }
 0x192   : > { %v5347_v6 = vadd.f32 %v5346_v13, %v5345_v34  ;;  %v5236_v8 = vpop.f32.mrf.mxu0  ;;  %v482_v9 = vld [vmem:[%s6178_s12 + $0x7e8] sm:$0xff] }
 0x193   : > { %v3185_v38 = vadd.f32 %v5235_v54, %v6538_v40  ;;  %v5348_v50 = vpop.f32.mrf.mxu1 }
 0x194   : > { %v5237_v39 = vpop.f32.mrf.mxu0 }
 0x195   : > { %v6852_v55 = vadd.f32 %v5347_v6, %v3185_v38  ;;  %v5238_v12 = vadd.f32 %v5237_v39, %v5236_v8  ;;  %v5349_v62 = vpop.f32.mrf.mxu1  ;;  %v4672_v6 = vcombine.high %v473_v58, %v481_v1 }
 0x196   : > { %v5350_v47 = vadd.f32 %v5349_v62, %v5348_v50  ;;  %v5239_v36 = vpop.f32.mrf.mxu0  ;;  %3577 = vmatmul.mubr.bf16.gmra.mxu0 %v4639_v52  ;;  %v4674_v52 = vcombine.high %v474_v7, %v482_v9 }
 0x197   : > { %v3188_v11 = vadd.f32 %v5238_v12, %v6543_v51  ;;  %v5351_v28 = vpop.f32.mrf.mxu1  ;;  %3738 = vmatmul.mubr.bf16.gmra.mxu1 %v4641_v24  ;;  %3584 = vmatprep.mubr.bf16.mxu0 %v4656_v19  ;;  %v4657_v51 = vcombine.low %v458_v29, %v466_v33  ;;  %v235_v29 = vld [vmem:[%s6178_s12 + $0x30] sm:$0xff] }
 0x198   : > { %v5240_v40 = vpop.f32.mrf.mxu0  ;;  %3745 = vmatprep.mubr.bf16.mxu1 %v4658_v27  ;;  %v243_v33 = vld [vmem:[%s6178_s12 + $0x70] sm:$0xff] }
 0x199   : > { %v6857_v3 = vadd.f32 %v5350_v47, %v3188_v11  ;;  %v5241_v21 = vadd.f32 %v5240_v40, %v5239_v36  ;;  %v5352_v37 = vpop.f32.mrf.mxu1  ;;  %v236_v47 = vld [vmem:[%s6178_s12 + $0x38] sm:$0xff]  ;;  %v4671_v40 = vcombine.low %v473_v58, %v481_v1 }
 0x19a   : > { %v5353_v56 = vadd.f32 %v5352_v37, %v5351_v28  ;;  %v5242_v34 = vpop.f32.mrf.mxu0  ;;  %v244_v36 = vld [vmem:[%s6178_s12 + $0x78] sm:$0xff] }
 0x19b   : > { %v3193_v54 = vadd.f32 %v5241_v21, %v6548_v4  ;;  %v5354_v13 = vpop.f32.mrf.mxu1 }
 0x19c   : > { %v5243_v8 = vpop.f32.mrf.mxu0 }
 0x19d   : > { %v6862_v38 = vadd.f32 %v5353_v56, %v3193_v54  ;;  %v5244_v50 = vadd.f32 %v5243_v8, %v5242_v34  ;;  %v5355_v24 = vpop.f32.mrf.mxu1  ;;  %v4436_v56 = vcombine.high %v235_v29, %v243_v33 }
 0x19e   : > { %v5356_v19 = vadd.f32 %v5355_v24, %v5354_v13  ;;  %v5245_v39 = vpop.f32.mrf.mxu0  ;;  %3585 = vmatmul.mubr.bf16.gmra.mxu0 %v4655_v14  ;;  %v4438_v14 = vcombine.high %v236_v47, %v244_v36 }
 0x19f   : > { %v3196_v15 = vadd.f32 %v5244_v50, %v6553_v16  ;;  %v5357_v23 = vpop.f32.mrf.mxu1  ;;  %3746 = vmatmul.mubr.bf16.gmra.mxu1 %v4657_v51  ;;  %3592 = vmatprep.mubr.bf16.mxu0 %v4672_v6  ;;  %v4673_v16 = vcombine.low %v474_v7, %v482_v9  ;;  %v251_v7 = vld [vmem:[%s6178_s12 + $0xb0] sm:$0xff] }
 0x1a0   : > { %v5246_v4 = vpop.f32.mrf.mxu0  ;;  %3753 = vmatprep.mubr.bf16.mxu1 %v4674_v52  ;;  %v259_v9 = vld [vmem:[%s6178_s12 + $0xf0] sm:$0xff] }
 0x1a1   : > { %v6867_v27 = vadd.f32 %v5356_v19, %v3196_v15  ;;  %v5247_v12 = vadd.f32 %v5246_v4, %v5245_v39  ;;  %v5358_v62 = vpop.f32.mrf.mxu1  ;;  %v252_v19 = vld [vmem:[%s6178_s12 + $0xb8] sm:$0xff]  ;;  %v4435_v4 = vcombine.low %v235_v29, %v243_v33 }
 0x1a2   : > { %v5359_v11 = vadd.f32 %v5358_v62, %v5357_v23  ;;  %v5248_v28 = vpop.f32.mrf.mxu0  ;;  %v260_v39 = vld [vmem:[%s6178_s12 + $0xf8] sm:$0xff] }
 0x1a3   : > { %v3201_v21 = vadd.f32 %v5247_v12, %v6558_v32  ;;  %v5360_v37 = vpop.f32.mrf.mxu1 }
 0x1a4   : > { %v5249_v34 = vpop.f32.mrf.mxu0 }
 0x1a5   : > { %v6872_v54 = vadd.f32 %v5359_v11, %v3201_v21  ;;  %v5250_v13 = vadd.f32 %v5249_v34, %v5248_v28  ;;  %v5361_v51 = vpop.f32.mrf.mxu1  ;;  %v4452_v11 = vcombine.high %v251_v7, %v259_v9 }
 0x1a6   : > { %v5362_v6 = vadd.f32 %v5361_v51, %v5360_v37  ;;  %v5251_v8 = vpop.f32.mrf.mxu0  ;;  %3593 = vmatmul.mubr.bf16.gmra.mxu0 %v4671_v40  ;;  %v4454_v40 = vcombine.high %v252_v19, %v260_v39 }
 0x1a7   : > { %v3204_v58 = vadd.f32 %v5250_v13, %v6561_v42  ;;  %v5363_v1 = vpop.f32.mrf.mxu1  ;;  %3754 = vmatmul.mubr.bf16.gmra.mxu1 %v4673_v16  ;;  %3794 = vmatprep.mubr.bf16.mxu0 %v4436_v56  ;;  %v4437_v42 = vcombine.low %v236_v47, %v244_v36  ;;  %v267_v47 = vld [vmem:[%s6178_s12 + $0x130] sm:$0xff] }
 0x1a8   : > { %v5252_v32 = vpop.f32.mrf.mxu0  ;;  %3955 = vmatprep.mubr.bf16.mxu1 %v4438_v14  ;;  %v275_v36 = vld [vmem:[%s6178_s12 + $0x170] sm:$0xff] }
 0x1a9   : > { %v6877_v52 = vadd.f32 %v5362_v6, %v3204_v58  ;;  %v5253_v50 = vadd.f32 %v5252_v32, %v5251_v8  ;;  %v5364_v24 = vpop.f32.mrf.mxu1  ;;  %v268_v6 = vld [vmem:[%s6178_s12 + $0x138] sm:$0xff]  ;;  %v4451_v32 = vcombine.low %v251_v7, %v259_v9 }
 0x1aa   : > { %v5365_v15 = vadd.f32 %v5364_v24, %v5363_v1  ;;  %v5254_v23 = vpop.f32.mrf.mxu0  ;;  %v276_v8 = vld [vmem:[%s6178_s12 + $0x178] sm:$0xff] }
 0x1ab   : > { %v3209_v12 = vadd.f32 %v5253_v50, %v6584_v63  ;;  %v5366_v62 = vpop.f32.mrf.mxu1 }
 0x1ac   : > { %v5255_v28 = vpop.f32.mrf.mxu0 }
 0x1ad   : > { %v6882_v21 = vadd.f32 %v5365_v15, %v3209_v12  ;;  %v5256_v37 = vadd.f32 %v5255_v28, %v5254_v23  ;;  %v5367_v16 = vpop.f32.mrf.mxu1  ;;  %v4468_v15 = vcombine.high %v267_v47, %v275_v36 }
 0x1ae   : > { %v5368_v56 = vadd.f32 %v5367_v16, %v5366_v62  ;;  %v5257_v34 = vpop.f32.mrf.mxu0  ;;  %3795 = vmatmul.mubr.bf16.vlgmr.msra.gmra.mxu0 %v4435_v4  ;;  %v4470_v4 = vcombine.high %v268_v6, %v276_v8 }
 0x1af   : > { %v3212_v29 = vadd.f32 %v5256_v37, %v6610_v20  ;;  %v5369_v33 = vpop.f32.mrf.mxu1  ;;  %3956 = vmatmul.mubr.bf16.vlgmr.msra.gmra.mxu1 %v4437_v42  ;;  %3802 = vmatprep.mubr.bf16.mxu0 %v4452_v11  ;;  %v4453_v20 = vcombine.low %v252_v19, %v260_v39  ;;  %v283_v19 = vld [vmem:[%s6178_s12 + $0x1b0] sm:$0xff] }
 0x1b0   : > { %v5258_v63 = vpop.f32.mrf.mxu0  ;;  %3963 = vmatprep.mubr.bf16.mxu1 %v4454_v40  ;;  %v291_v39 = vld [vmem:[%s6178_s12 + $0x1f0] sm:$0xff] }
 0x1b1   : > { %v6887_v14 = vadd.f32 %v5368_v56, %v3212_v29  ;;  %v5259_v13 = vadd.f32 %v5258_v63, %v5257_v34  ;;  %v5370_v51 = vpop.f32.mrf.mxu1  ;;  %v284_v56 = vld [vmem:[%s6178_s12 + $0x1b8] sm:$0xff]  ;;  %v4467_v63 = vcombine.low %v267_v47, %v275_v36 }
 0x1b2   : > { %v5371_v58 = vadd.f32 %v5370_v51, %v5369_v33  ;;  %v5260_v1 = vpop.f32.mrf.mxu0  ;;  %v292_v34 = vld [vmem:[%s6178_s12 + $0x1f8] sm:$0xff] }
 0x1b3   : > { %v3217_v50 = vadd.f32 %v5259_v13, %v6633_v41  ;;  %v5372_v24 = vpop.f32.mrf.mxu1 }
 0x1b4   : > { %v5261_v23 = vpop.f32.mrf.mxu0 }
 0x1b5   : > { %v6892_v12 = vadd.f32 %v5371_v58, %v3217_v50  ;;  %v5262_v62 = vadd.f32 %v5261_v23, %v5260_v1  ;;  %v5373_v42 = vpop.f32.mrf.mxu1  ;;  %v4484_v58 = vcombine.high %v283_v19, %v291_v39 }
 0x1b6   : > { %v5374_v11 = vadd.f32 %v5373_v42, %v5372_v24  ;;  %v5263_v28 = vpop.f32.mrf.mxu0  ;;  %3803 = vmatmul.mubr.bf16.gmra.mxu0 %v4451_v32  ;;  %v4486_v32 = vcombine.high %v284_v56, %v292_v34 }
 0x1b7   : > { %v3220_v7 = vadd.f32 %v5262_v62, %v6657_v60  ;;  %v5375_v9 = vpop.f32.mrf.mxu1  ;;  %3964 = vmatmul.mubr.bf16.gmra.mxu1 %v4453_v20  ;;  %3810 = vmatprep.mubr.bf16.mxu0 %v4468_v15  ;;  %v4469_v60 = vcombine.low %v268_v6, %v276_v8  ;;  %v299_v6 = vld [vmem:[%s6178_s12 + $0x230] sm:$0xff] }
 0x1b8   : > { %v5264_v41 = vpop.f32.mrf.mxu0  ;;  %3971 = vmatprep.mubr.bf16.mxu1 %v4470_v4  ;;  %v307_v8 = vld [vmem:[%s6178_s12 + $0x270] sm:$0xff] }
 0x1b9   : > { %v6897_v40 = vadd.f32 %v5374_v11, %v3220_v7  ;;  %v5265_v37 = vadd.f32 %v5264_v41, %v5263_v28  ;;  %v5376_v16 = vpop.f32.mrf.mxu1  ;;  %v300_v11 = vld [vmem:[%s6178_s12 + $0x238] sm:$0xff]  ;;  %v4483_v41 = vcombine.low %v283_v19, %v291_v39 }
 0x1ba   : > { %v5377_v29 = vadd.f32 %v5376_v16, %v5375_v9  ;;  %v5266_v33 = vpop.f32.mrf.mxu0  ;;  %v308_v28 = vld [vmem:[%s6178_s12 + $0x278] sm:$0xff] }
 0x1bb   : > { %v3225_v13 = vadd.f32 %v5265_v37, %v6683_v17  ;;  %v5378_v51 = vpop.f32.mrf.mxu1 }
 0x1bc   : > { %v5267_v1 = vpop.f32.mrf.mxu0 }
 0x1bd   : > { %v6902_v50 = vadd.f32 %v5377_v29, %v3225_v13  ;;  %v5268_v24 = vadd.f32 %v5267_v1, %v5266_v33  ;;  %v5379_v20 = vpop.f32.mrf.mxu1  ;;  %v4500_v29 = vcombine.high %v299_v6, %v307_v8 }
 0x1be   : > { %v5380_v15 = vadd.f32 %v5379_v20, %v5378_v51  ;;  %v5269_v23 = vpop.f32.mrf.mxu0  ;;  %3811 = vmatmul.mubr.bf16.gmra.mxu0 %v4467_v63  ;;  %v4502_v63 = vcombine.high %v300_v11, %v308_v28 }
 0x1bf   : > { %v3228_v47 = vadd.f32 %v5268_v24, %v6707_v43  ;;  %v5381_v36 = vpop.f32.mrf.mxu1  ;;  %3972 = vmatmul.mubr.bf16.gmra.mxu1 %v4469_v60  ;;  %3818 = vmatprep.mubr.bf16.mxu0 %v4484_v58  ;;  %v4485_v43 = vcombine.low %v284_v56, %v292_v34  ;;  %v315_v56 = vld [vmem:[%s6178_s12 + $0x2b0] sm:$0xff] }
 0x1c0   : > { %v5270_v17 = vpop.f32.mrf.mxu0  ;;  %3979 = vmatprep.mubr.bf16.mxu1 %v4486_v32  ;;  %v323_v34 = vld [vmem:[%s6178_s12 + $0x2f0] sm:$0xff] }
 0x1c1   : > { %v6907_v4 = vadd.f32 %v5380_v15, %v3228_v47  ;;  %v5271_v62 = vadd.f32 %v5270_v17, %v5269_v23  ;;  %v5382_v42 = vpop.f32.mrf.mxu1  ;;  %v316_v15 = vld [vmem:[%s6178_s12 + $0x2b8] sm:$0xff]  ;;  %v4499_v17 = vcombine.low %v299_v6, %v307_v8 }
 0x1c2   : > { %v5383_v7 = vadd.f32 %v5382_v42, %v5381_v36  ;;  %v5272_v9 = vpop.f32.mrf.mxu0  ;;  %v324_v23 = vld [vmem:[%s6178_s12 + $0x2f8] sm:$0xff] }
 0x1c3   : > { %v3233_v37 = vadd.f32 %v5271_v62, %v6733_v57  ;;  %v5384_v16 = vpop.f32.mrf.mxu1 }
 0x1c4   : > { %v5273_v33 = vpop.f32.mrf.mxu0 }
 0x1c5   : > { %v6912_v13 = vadd.f32 %v5383_v7, %v3233_v37  ;;  %v5274_v51 = vadd.f32 %v5273_v33, %v5272_v9  ;;  %v5385_v60 = vpop.f32.mrf.mxu1  ;;  %v4516_v7 = vcombine.high %v315_v56, %v323_v34 }
 0x1c6   : > { %v5386_v58 = vadd.f32 %v5385_v60, %v5384_v16  ;;  %v5275_v1 = vpop.f32.mrf.mxu0  ;;  %3819 = vmatmul.mubr.bf16.gmra.mxu0 %v4483_v41  ;;  %v4518_v41 = vcombine.high %v316_v15, %v324_v23 }
 0x1c7   : > { %v3236_v19 = vadd.f32 %v5274_v51, %v6750_v26  ;;  %v5387_v39 = vpop.f32.mrf.mxu1  ;;  %3980 = vmatmul.mubr.bf16.gmra.mxu1 %v4485_v43  ;;  %3826 = vmatprep.mubr.bf16.mxu0 %v4500_v29  ;;  %v4501_v26 = vcombine.low %v300_v11, %v308_v28  ;;  %v331_v11 = vld [vmem:[%s6178_s12 + $0x330] sm:$0xff] }
 0x1c8   : > { %v5276_v57 = vpop.f32.mrf.mxu0  ;;  %3987 = vmatprep.mubr.bf16.mxu1 %v4502_v63  ;;  %v339_v28 = vld [vmem:[%s6178_s12 + $0x370] sm:$0xff] }
 0x1c9   : > { %v6917_v32 = vadd.f32 %v5386_v58, %v3236_v19  ;;  %v5277_v24 = vadd.f32 %v5276_v57, %v5275_v1  ;;  %v5388_v20 = vpop.f32.mrf.mxu1  ;;  %v332_v58 = vld [vmem:[%s6178_s12 + $0x338] sm:$0xff]  ;;  %v4515_v57 = vcombine.low %v315_v56, %v323_v34 }
 0x1ca   : > { %v5389_v47 = vadd.f32 %v5388_v20, %v5387_v39  ;;  %v5278_v36 = vpop.f32.mrf.mxu0  ;;  %v340_v1 = vld [vmem:[%s6178_s12 + $0x378] sm:$0xff] }
 0x1cb   : > { %v3241_v62 = vadd.f32 %v5277_v24, %v6762_v53  ;;  %v5390_v42 = vpop.f32.mrf.mxu1 }
 0x1cc   : > { %v5279_v9 = vpop.f32.mrf.mxu0 }
 0x1cd   : > { %v6922_v37 = vadd.f32 %v5389_v47, %v3241_v62  ;;  %v5280_v16 = vadd.f32 %v5279_v9, %v5278_v36  ;;  %v5391_v43 = vpop.f32.mrf.mxu1  ;;  %v4532_v47 = vcombine.high %v331_v11, %v339_v28 }
 0x1ce   : > { %v5392_v29 = vadd.f32 %v5391_v43, %v5390_v42  ;;  %v5281_v33 = vpop.f32.mrf.mxu0  ;;  %3827 = vmatmul.mubr.bf16.gmra.mxu0 %v4499_v17  ;;  %v4534_v17 = vcombine.high %v332_v58, %v340_v1 }
 0x1cf   : > { %v3244_v6 = vadd.f32 %v5280_v16, %v6767_v2  ;;  %v5393_v8 = vpop.f32.mrf.mxu1  ;;  %3988 = vmatmul.mubr.bf16.gmra.mxu1 %v4501_v26  ;;  %3834 = vmatprep.mubr.bf16.mxu0 %v4516_v7  ;;  %v4517_v2 = vcombine.low %v316_v15, %v324_v23  ;;  %v347_v15 = vld [vmem:[%s6178_s12 + $0x3b0] sm:$0xff] }
 0x1d0   : > { %v5282_v53 = vpop.f32.mrf.mxu0  ;;  %3995 = vmatprep.mubr.bf16.mxu1 %v4518_v41  ;;  %v355_v23 = vld [vmem:[%s6178_s12 + $0x3f0] sm:$0xff] }
 0x1d1   : > { %v6927_v63 = vadd.f32 %v5392_v29, %v3244_v6  ;;  %v5283_v51 = vadd.f32 %v5282_v53, %v5281_v33  ;;  %v5394_v60 = vpop.f32.mrf.mxu1  ;;  %v348_v29 = vld [vmem:[%s6178_s12 + $0x3b8] sm:$0xff]  ;;  %v4531_v53 = vcombine.low %v331_v11, %v339_v28 }
 0x1d2   : > { %v5395_v19 = vadd.f32 %v5394_v60, %v5393_v8  ;;  %v5284_v39 = vpop.f32.mrf.mxu0  ;;  %v356_v33 = vld [vmem:[%s6178_s12 + $0x3f8] sm:$0xff] }
 0x1d3   : > { %v3249_v24 = vadd.f32 %v5283_v51, %v6772_v22  ;;  %v5396_v20 = vpop.f32.mrf.mxu1 }
 0x1d4   : > { %v5285_v36 = vpop.f32.mrf.mxu0 }
 0x1d5   : > { %v6932_v62 = vadd.f32 %v5395_v19, %v3249_v24  ;;  %v5286_v42 = vadd.f32 %v5285_v36, %v5284_v39  ;;  %v5397_v26 = vpop.f32.mrf.mxu1  ;;  %v4548_v19 = vcombine.high %v347_v15, %v355_v23 }
 0x1d6   : > { %v5398_v7 = vadd.f32 %v5397_v26, %v5396_v20  ;;  %v5287_v9 = vpop.f32.mrf.mxu0  ;;  %3835 = vmatmul.mubr.bf16.gmra.mxu0 %v4515_v57  ;;  %v4550_v57 = vcombine.high %v348_v29, %v356_v33 }
 0x1d7   : > { %v3252_v56 = vadd.f32 %v5286_v42, %v6777_v35  ;;  %v5399_v34 = vpop.f32.mrf.mxu1  ;;  %3996 = vmatmul.mubr.bf16.gmra.mxu1 %v4517_v2  ;;  %3842 = vmatprep.mubr.bf16.mxu0 %v4532_v47  ;;  %v4533_v35 = vcombine.low %v332_v58, %v340_v1  ;;  %v363_v58 = vld [vmem:[%s6178_s12 + $0x430] sm:$0xff] }
 0x1d8   : > { %v5288_v22 = vpop.f32.mrf.mxu0  ;;  %4003 = vmatprep.mubr.bf16.mxu1 %v4534_v17  ;;  %v371_v1 = vld [vmem:[%s6178_s12 + $0x470] sm:$0xff] }
 0x1d9   : > { %v6937_v41 = vadd.f32 %v5398_v7, %v3252_v56  ;;  %v5289_v16 = vadd.f32 %v5288_v22, %v5287_v9  ;;  %v5400_v43 = vpop.f32.mrf.mxu1  ;;  %v364_v7 = vld [vmem:[%s6178_s12 + $0x438] sm:$0xff]  ;;  %v4547_v22 = vcombine.low %v347_v15, %v355_v23 }
 0x1da   : > { %v5401_v6 = vadd.f32 %v5400_v43, %v5399_v34  ;;  %v5290_v8 = vpop.f32.mrf.mxu0  ;;  %v372_v9 = vld [vmem:[%s6178_s12 + $0x478] sm:$0xff] }
 0x1db   : > { %v3257_v51 = vadd.f32 %v5289_v16, %v6782_v5  ;;  %v5402_v60 = vpop.f32.mrf.mxu1 }
 0x1dc   : > { %v5291_v39 = vpop.f32.mrf.mxu0 }
 0x1dd   : > { %v6942_v24 = vadd.f32 %v5401_v6, %v3257_v51  ;;  %v5292_v20 = vadd.f32 %v5291_v39, %v5290_v8  ;;  %v5403_v2 = vpop.f32.mrf.mxu1  ;;  %v4564_v6 = vcombine.high %v363_v58, %v371_v1 }
 0x1de   : > { %v5404_v47 = vadd.f32 %v5403_v2, %v5402_v60  ;;  %v5293_v36 = vpop.f32.mrf.mxu0  ;;  %3843 = vmatmul.mubr.bf16.gmra.mxu0 %v4531_v53  ;;  %v4566_v53 = vcombine.high %v364_v7, %v372_v9 }
 0x1df   : > { %v3260_v11 = vadd.f32 %v5292_v20, %v6787_v10  ;;  %v5405_v28 = vpop.f32.mrf.mxu1  ;;  %4004 = vmatmul.mubr.bf16.gmra.mxu1 %v4533_v35  ;;  %3850 = vmatprep.mubr.bf16.mxu0 %v4548_v19  ;;  %v4549_v10 = vcombine.low %v348_v29, %v356_v33  ;;  %v379_v29 = vld [vmem:[%s6178_s12 + $0x4b0] sm:$0xff] }
 0x1e0   : > { %v5294_v5 = vpop.f32.mrf.mxu0  ;;  %4011 = vmatprep.mubr.bf16.mxu1 %v4550_v57  ;;  %v387_v33 = vld [vmem:[%s6178_s12 + $0x4f0] sm:$0xff] }
 0x1e1   : > { %v6947_v17 = vadd.f32 %v5404_v47, %v3260_v11  ;;  %v5295_v42 = vadd.f32 %v5294_v5, %v5293_v36  ;;  %v5406_v26 = vpop.f32.mrf.mxu1  ;;  %v380_v47 = vld [vmem:[%s6178_s12 + $0x4b8] sm:$0xff]  ;;  %v4563_v5 = vcombine.low %v363_v58, %v371_v1 }
 0x1e2   : > { %v5407_v56 = vadd.f32 %v5406_v26, %v5405_v28  ;;  %v5296_v34 = vpop.f32.mrf.mxu0  ;;  %v388_v36 = vld [vmem:[%s6178_s12 + $0x4f8] sm:$0xff] }
 0x1e3   : > { %v3265_v16 = vadd.f32 %v5295_v42, %v6792_v48  ;;  %v5408_v43 = vpop.f32.mrf.mxu1 }
 0x1e4   : > { %v5297_v8 = vpop.f32.mrf.mxu0 }
 0x1e5   : > { %v6952_v51 = vadd.f32 %v5407_v56, %v3265_v16  ;;  %v5298_v60 = vadd.f32 %v5297_v8, %v5296_v34  ;;  %v5409_v35 = vpop.f32.mrf.mxu1  ;;  %v4580_v56 = vcombine.high %v379_v29, %v387_v33 }
 0x1e6   : > { %v5410_v19 = vadd.f32 %v5409_v35, %v5408_v43  ;;  %v5299_v39 = vpop.f32.mrf.mxu0  ;;  %3851 = vmatmul.mubr.bf16.gmra.mxu0 %v4547_v22  ;;  %v4582_v22 = vcombine.high %v380_v47, %v388_v36 }
 0x1e7   : > { %v3268_v15 = vadd.f32 %v5298_v60, %v6797_v59  ;;  %v5411_v23 = vpop.f32.mrf.mxu1  ;;  %4012 = vmatmul.mubr.bf16.gmra.mxu1 %v4549_v10  ;;  %3858 = vmatprep.mubr.bf16.mxu0 %v4564_v6  ;;  %v4565_v59 = vcombine.low %v364_v7, %v372_v9  ;;  %v395_v7 = vld [vmem:[%s6178_s12 + $0x530] sm:$0xff] }
 0x1e8   : > { %v5300_v48 = vpop.f32.mrf.mxu0  ;;  %4019 = vmatprep.mubr.bf16.mxu1 %v4566_v53  ;;  %v403_v9 = vld [vmem:[%s6178_s12 + $0x570] sm:$0xff] }
 0x1e9   : > { %v6957_v57 = vadd.f32 %v5410_v19, %v3268_v15  ;;  %v5301_v20 = vadd.f32 %v5300_v48, %v5299_v39  ;;  %v5412_v2 = vpop.f32.mrf.mxu1  ;;  %v396_v19 = vld [vmem:[%s6178_s12 + $0x538] sm:$0xff]  ;;  %v4579_v48 = vcombine.low %v379_v29, %v387_v33 }
 0x1ea   : > { %v5413_v11 = vadd.f32 %v5412_v2, %v5411_v23  ;;  %v5302_v28 = vpop.f32.mrf.mxu0  ;;  %v404_v39 = vld [vmem:[%s6178_s12 + $0x578] sm:$0xff] }
 0x1eb   : > { %v3273_v42 = vadd.f32 %v5301_v20, %v6802_v30  ;;  %v5414_v26 = vpop.f32.mrf.mxu1 }
 0x1ec   : > { %v5303_v34 = vpop.f32.mrf.mxu0 }
 0x1ed   : > { %v6962_v16 = vadd.f32 %v5413_v11, %v3273_v42  ;;  %v5304_v43 = vadd.f32 %v5303_v34, %v5302_v28  ;;  %v5415_v10 = vpop.f32.mrf.mxu1  ;;  %v4596_v11 = vcombine.high %v395_v7, %v403_v9 }
 0x1ee   : > { %v5416_v6 = vadd.f32 %v5415_v10, %v5414_v26  ;;  %v5433_v8 = vpop.f32.mrf.mxu0  ;;  %3859 = vmatmul.mubr.bf16.gmra.mxu0 %v4563_v5  ;;  %v4598_v5 = vcombine.high %v396_v19, %v404_v39 }
 0x1ef   : > { %v3276_v58 = vadd.f32 %v5304_v43, %v6807_v44  ;;  %v5545_v1 = vpop.f32.mrf.mxu1  ;;  %4020 = vmatmul.mubr.bf16.gmra.mxu1 %v4565_v59  ;;  %3866 = vmatprep.mubr.bf16.mxu0 %v4580_v56  ;;  %v4581_v44 = vcombine.low %v380_v47, %v388_v36  ;;  %v411_v47 = vld [vmem:[%s6178_s12 + $0x5b0] sm:$0xff] }
 0x1f0   : > { %v5434_v30 = vpop.f32.mrf.mxu0  ;;  %4027 = vmatprep.mubr.bf16.mxu1 %v4582_v22  ;;  %v419_v36 = vld [vmem:[%s6178_s12 + $0x5f0] sm:$0xff] }
 0x1f1   : > { %v6967_v53 = vadd.f32 %v5416_v6, %v3276_v58  ;;  %v5435_v60 = vadd.f32 %v5434_v30, %v5433_v8  ;;  %v5546_v35 = vpop.f32.mrf.mxu1  ;;  %v412_v6 = vld [vmem:[%s6178_s12 + $0x5b8] sm:$0xff]  ;;  %v4595_v30 = vcombine.low %v395_v7, %v403_v9 }
 0x1f2   : > { %v5547_v15 = vadd.f32 %v5546_v35, %v5545_v1  ;;  %v5436_v23 = vpop.f32.mrf.mxu0  ;;  %v420_v8 = vld [vmem:[%s6178_s12 + $0x5f8] sm:$0xff] }
 0x1f3   : > { %v3475_v20 = vadd.f32 %v5435_v60, %v6812_v0  ;;  %v5548_v2 = vpop.f32.mrf.mxu1 }
 0x1f4   : > { %v5437_v28 = vpop.f32.mrf.mxu0 }
 0x1f5   : > { %v6972_v42 = vadd.f32 %v5547_v15, %v3475_v20  ;;  %v5438_v26 = vadd.f32 %v5437_v28, %v5436_v23  ;;  %v5549_v59 = vpop.f32.mrf.mxu1  ;;  %v4612_v15 = vcombine.high %v411_v47, %v419_v36 }
 0x1f6   : > { %v5550_v56 = vadd.f32 %v5549_v59, %v5548_v2  ;;  %v5439_v34 = vpop.f32.mrf.mxu0  ;;  %3867 = vmatmul.mubr.bf16.gmra.mxu0 %v4579_v48  ;;  %v4614_v48 = vcombine.high %v412_v6, %v420_v8 }
 0x1f7   : > { %v3478_v29 = vadd.f32 %v5438_v26, %v6817_v25  ;;  %v5551_v33 = vpop.f32.mrf.mxu1  ;;  %4028 = vmatmul.mubr.bf16.gmra.mxu1 %v4581_v44  ;;  %3874 = vmatprep.mubr.bf16.mxu0 %v4596_v11  ;;  %v4597_v25 = vcombine.low %v396_v19, %v404_v39  ;;  %v427_v19 = vld [vmem:[%s6178_s12 + $0x630] sm:$0xff] }
 0x1f8   : > { %v5440_v0 = vpop.f32.mrf.mxu0  ;;  %4035 = vmatprep.mubr.bf16.mxu1 %v4598_v5  ;;  %v435_v39 = vld [vmem:[%s6178_s12 + $0x670] sm:$0xff] }
 0x1f9   : > { %v6977_v22 = vadd.f32 %v5550_v56, %v3478_v29  ;;  %v5441_v43 = vadd.f32 %v5440_v0, %v5439_v34  ;;  %v5552_v10 = vpop.f32.mrf.mxu1  ;;  %v428_v56 = vld [vmem:[%s6178_s12 + $0x638] sm:$0xff]  ;;  %v4611_v0 = vcombine.low %v411_v47, %v419_v36 }
 0x1fa   : > { %v5553_v58 = vadd.f32 %v5552_v10, %v5551_v33  ;;  %v5442_v1 = vpop.f32.mrf.mxu0  ;;  %v436_v34 = vld [vmem:[%s6178_s12 + $0x678] sm:$0xff] }
 0x1fb   : > { %v3483_v60 = vadd.f32 %v5441_v43, %v6822_v61  ;;  %v5554_v35 = vpop.f32.mrf.mxu1 }
 0x1fc   : > { %v5443_v23 = vpop.f32.mrf.mxu0 }
 0x1fd   : > { %v6982_v20 = vadd.f32 %v5553_v58, %v3483_v60  ;;  %v5444_v2 = vadd.f32 %v5443_v23, %v5442_v1  ;;  %v5555_v44 = vpop.f32.mrf.mxu1  ;;  %v4628_v58 = vcombine.high %v427_v19, %v435_v39 }
 0x1fe   : > { %v5556_v11 = vadd.f32 %v5555_v44, %v5554_v35  ;;  %v5445_v28 = vpop.f32.mrf.mxu0  ;;  %3875 = vmatmul.mubr.bf16.gmra.mxu0 %v4595_v30  ;;  %v4630_v30 = vcombine.high %v428_v56, %v436_v34 }
 0x1ff   : > { %v3486_v7 = vadd.f32 %v5444_v2, %v6827_v46  ;;  %v5557_v9 = vpop.f32.mrf.mxu1  ;;  %4036 = vmatmul.mubr.bf16.gmra.mxu1 %v4597_v25  ;;  %3882 = vmatprep.mubr.bf16.mxu0 %v4612_v15  ;;  %v4613_v46 = vcombine.low %v412_v6, %v420_v8  ;;  %v443_v6 = vld [vmem:[%s6178_s12 + $0x6b0] sm:$0xff] }
 0x200   : > { %v5446_v61 = vpop.f32.mrf.mxu0  ;;  %4043 = vmatprep.mubr.bf16.mxu1 %v4614_v48  ;;  %v451_v8 = vld [vmem:[%s6178_s12 + $0x6f0] sm:$0xff] }
 0x201   : > { %v6987_v5 = vadd.f32 %v5556_v11, %v3486_v7  ;;  %v5447_v26 = vadd.f32 %v5446_v61, %v5445_v28  ;;  %v5558_v59 = vpop.f32.mrf.mxu1  ;;  %v444_v11 = vld [vmem:[%s6178_s12 + $0x6b8] sm:$0xff]  ;;  %v4627_v61 = vcombine.low %v427_v19, %v435_v39 }
 0x202   : > { %v5559_v29 = vadd.f32 %v5558_v59, %v5557_v9  ;;  %v5448_v33 = vpop.f32.mrf.mxu0  ;;  %v452_v28 = vld [vmem:[%s6178_s12 + $0x6f8] sm:$0xff] }
 0x203   : > { %v3491_v43 = vadd.f32 %v5447_v26, %v6832_v49  ;;  %v5560_v10 = vpop.f32.mrf.mxu1 }
 0x204   : > { %v5449_v1 = vpop.f32.mrf.mxu0 }
 0x205   : > { %v6992_v60 = vadd.f32 %v5559_v29, %v3491_v43  ;;  %v5450_v35 = vadd.f32 %v5449_v1, %v5448_v33  ;;  %v5561_v25 = vpop.f32.mrf.mxu1  ;;  %v4644_v29 = vcombine.high %v443_v6, %v451_v8 }
 0x206   : > { %v5562_v15 = vadd.f32 %v5561_v25, %v5560_v10  ;;  %v5451_v23 = vpop.f32.mrf.mxu0  ;;  %3883 = vmatmul.mubr.bf16.gmra.mxu0 %v4611_v0  ;;  %v4646_v0 = vcombine.high %v444_v11, %v452_v28 }
 0x207   : > { %v3494_v47 = vadd.f32 %v5450_v35, %v6837_v45  ;;  %v5563_v36 = vpop.f32.mrf.mxu1  ;;  %4044 = vmatmul.mubr.bf16.gmra.mxu1 %v4613_v46  ;;  %3890 = vmatprep.mubr.bf16.mxu0 %v4628_v58  ;;  %v4629_v45 = vcombine.low %v428_v56, %v436_v34  ;;  %v459_v56 = vld [vmem:[%s6178_s12 + $0x730] sm:$0xff] }
 0x208   : > { %v5452_v49 = vpop.f32.mrf.mxu0  ;;  %4051 = vmatprep.mubr.bf16.mxu1 %v4630_v30  ;;  %v467_v34 = vld [vmem:[%s6178_s12 + $0x770] sm:$0xff] }
 0x209   : > { %v6997_v48 = vadd.f32 %v5562_v15, %v3494_v47  ;;  %v5453_v2 = vadd.f32 %v5452_v49, %v5451_v23  ;;  %v5564_v44 = vpop.f32.mrf.mxu1  ;;  %v460_v15 = vld [vmem:[%s6178_s12 + $0x738] sm:$0xff]  ;;  %v4643_v49 = vcombine.low %v443_v6, %v451_v8 }
 0x20a   : > { %v5565_v7 = vadd.f32 %v5564_v44, %v5563_v36  ;;  %v5454_v9 = vpop.f32.mrf.mxu0  ;;  %v468_v23 = vld [vmem:[%s6178_s12 + $0x778] sm:$0xff] }
 0x20b   : > { %v3499_v26 = vadd.f32 %v5453_v2, %v6842_v31  ;;  %v5566_v59 = vpop.f32.mrf.mxu1 }
 0x20c   : > { %v5455_v33 = vpop.f32.mrf.mxu0 }
 0x20d   : > { %v7002_v43 = vadd.f32 %v5565_v7, %v3499_v26  ;;  %v5456_v10 = vadd.f32 %v5455_v33, %v5454_v9  ;;  %v5567_v46 = vpop.f32.mrf.mxu1  ;;  %v4660_v7 = vcombine.high %v459_v56, %v467_v34 }
 0x20e   : > { %v5568_v58 = vadd.f32 %v5567_v46, %v5566_v59  ;;  %v5457_v1 = vpop.f32.mrf.mxu0  ;;  %3891 = vmatmul.mubr.bf16.gmra.mxu0 %v4627_v61  ;;  %v4662_v61 = vcombine.high %v460_v15, %v468_v23 }
 0x20f   : > { %v3502_v19 = vadd.f32 %v5456_v10, %v6847_v18  ;;  %v5569_v39 = vpop.f32.mrf.mxu1  ;;  %4052 = vmatmul.mubr.bf16.gmra.mxu1 %v4629_v45  ;;  %3898 = vmatprep.mubr.bf16.mxu0 %v4644_v29  ;;  %v4645_v18 = vcombine.low %v444_v11, %v452_v28  ;;  %v475_v11 = vld [vmem:[%s6178_s12 + $0x7b0] sm:$0xff] }
 0x210   : > { %v5458_v31 = vpop.f32.mrf.mxu0  ;;  %4059 = vmatprep.mubr.bf16.mxu1 %v4646_v0  ;;  %v483_v28 = vld [vmem:[%s6178_s12 + $0x7f0] sm:$0xff] }
 0x211   : > { %v7007_v30 = vadd.f32 %v5568_v58, %v3502_v19  ;;  %v5459_v35 = vadd.f32 %v5458_v31, %v5457_v1  ;;  %v5570_v25 = vpop.f32.mrf.mxu1  ;;  %v476_v58 = vld [vmem:[%s6178_s12 + $0x7b8] sm:$0xff]  ;;  %v4659_v31 = vcombine.low %v459_v56, %v467_v34 }
 0x212   : > { %v5571_v47 = vadd.f32 %v5570_v25, %v5569_v39  ;;  %v5460_v36 = vpop.f32.mrf.mxu0  ;;  %v484_v1 = vld [vmem:[%s6178_s12 + $0x7f8] sm:$0xff]  ;;  %s4421_s12 = sshll.u32 %s7159_s25, 2 }
 0x213   : > { %v3507_v2 = vadd.f32 %v5459_v35, %v6852_v55  ;;  %v5572_v44 = vpop.f32.mrf.mxu1  ;;  %s7094_s9 = scalar_lea.vmem %s7153_s3, %s4421_s12 }
 0x214   : > { %v5461_v9 = vpop.f32.mrf.mxu0 }
 0x215   : > { %v7012_v26 = vadd.f32 %v5571_v47, %v3507_v2  ;;  %v5462_v59 = vadd.f32 %v5461_v9, %v5460_v36  ;;  %v5573_v45 = vpop.f32.mrf.mxu1  ;;  %v4676_v47 = vcombine.high %v475_v11, %v483_v28 }
 0x216   : > { %v5574_v29 = vadd.f32 %v5573_v45, %v5572_v44  ;;  %v5463_v33 = vpop.f32.mrf.mxu0  ;;  %3899 = vmatmul.mubr.bf16.gmra.mxu0 %v4643_v49  ;;  %v4678_v49 = vcombine.high %v476_v58, %v484_v1 }
 0x217   : > { %v3510_v6 = vadd.f32 %v5462_v59, %v6857_v3  ;;  %v5575_v8 = vpop.f32.mrf.mxu1  ;;  %4060 = vmatmul.mubr.bf16.gmra.mxu1 %v4645_v18  ;;  %3906 = vmatprep.mubr.bf16.mxu0 %v4660_v7  ;;  %v4661_v3 = vcombine.low %v460_v15, %v468_v23 }
 0x218   : > { %v5464_v55 = vpop.f32.mrf.mxu0  ;;  %4067 = vmatprep.mubr.bf16.mxu1 %v4662_v61 }
 0x219   : > { %v7017_v0 = vadd.f32 %v5574_v29, %v3510_v6  ;;  %v5465_v10 = vadd.f32 %v5464_v55, %v5463_v33  ;;  %v5576_v46 = vpop.f32.mrf.mxu1  ;;  %v4675_v29 = vcombine.low %v475_v11, %v483_v28 }
 0x21a   : > { %v5577_v19 = vadd.f32 %v5576_v46, %v5575_v8  ;;  %v5466_v39 = vpop.f32.mrf.mxu0  ;;  %v4677_v8 = vcombine.low %v476_v58, %v484_v1 }
 0x21b   : > { %v3515_v35 = vadd.f32 %v5465_v10, %v6862_v38  ;;  %v5578_v25 = vpop.f32.mrf.mxu1 }
 0x21c   : > { %v5467_v36 = vpop.f32.mrf.mxu0 }
 0x21d   : > { %v7022_v2 = vadd.f32 %v5577_v19, %v3515_v35  ;;  %v5468_v44 = vadd.f32 %v5467_v36, %v5466_v39  ;;  %v5579_v18 = vpop.f32.mrf.mxu1 }
 0x21e   : > { %v5580_v7 = vadd.f32 %v5579_v18, %v5578_v25  ;;  %v5469_v9 = vpop.f32.mrf.mxu0  ;;  %3907 = vmatmul.mubr.bf16.gmra.mxu0 %v4659_v31 }
 0x21f   : > { %v3518_v61 = vadd.f32 %v5468_v44, %v6867_v27  ;;  %v5581_v59 = vpop.f32.mrf.mxu1  ;;  %4068 = vmatmul.mubr.bf16.gmra.mxu1 %v4661_v3  ;;  %3914 = vmatprep.mubr.bf16.mxu0 %v4676_v47 }
 0x220   : > { %v5470_v56 = vpop.f32.mrf.mxu0  ;;  %4075 = vmatprep.mubr.bf16.mxu1 %v4678_v49 }
 0x221   : > { %v7025_v38 = vadd.f32 %v5580_v7, %v3518_v61  ;;  %v5471_v34 = vadd.f32 %v5470_v56, %v5469_v9  ;;  %v5582_v15 = vpop.f32.mrf.mxu1 }
 0x222   : > { %v5583_v23 = vadd.f32 %v5582_v15, %v5581_v59  ;;  %v5472_v45 = vpop.f32.mrf.mxu0 }
 0x223   : > { %v3523_v33 = vadd.f32 %v5471_v34, %v6872_v54  ;;  %v5584_v6 = vpop.f32.mrf.mxu1 }
 0x224   : > { %v5473_v55 = vpop.f32.mrf.mxu0 }
 0x225   : > { %v7028_v10 = vadd.f32 %v5583_v23, %v3523_v33  ;;  %v5474_v27 = vadd.f32 %v5473_v55, %v5472_v45  ;;  %v5585_v46 = vpop.f32.mrf.mxu1 }
 0x226   : > { %v5586_v19 = vadd.f32 %v5585_v46, %v5584_v6  ;;  %v5475_v39 = vpop.f32.mrf.mxu0  ;;  %3915 = vmatmul.mubr.bf16.gmra.mxu0 %v4675_v29 }
 0x227   : > { %v3526_v31 = vadd.f32 %v5474_v27, %v6877_v52  ;;  %v5587_v35 = vpop.f32.mrf.mxu1  ;;  %4076 = vmatmul.mubr.bf16.gmra.mxu1 %v4677_v8 }
 0x228   : > { %v5476_v25 = vpop.f32.mrf.mxu0 }
 0x229   : > { %v7031_v3 = vadd.f32 %v5586_v19, %v3526_v31  ;;  %v5477_v11 = vadd.f32 %v5476_v25, %v5475_v39  ;;  %v5588_v28 = vpop.f32.mrf.mxu1 }
 0x22a   : > { %v5589_v54 = vadd.f32 %v5588_v28, %v5587_v35  ;;  %v5478_v47 = vpop.f32.mrf.mxu0 }
 0x22b   : > { %v3531_v58 = vadd.f32 %v5477_v11, %v6882_v21  ;;  %v5590_v1 = vpop.f32.mrf.mxu1 }
 0x22c   : > { %v5479_v36 = vpop.f32.mrf.mxu0 }
 0x22d   : > { %v7034_v49 = vadd.f32 %v5589_v54, %v3531_v58  ;;  %v5480_v44 = vadd.f32 %v5479_v36, %v5478_v47  ;;  %v5591_v18 = vpop.f32.mrf.mxu1 }
 0x22e   : > { %v5592_v7 = vadd.f32 %v5591_v18, %v5590_v1  ;;  %v5481_v9 = vpop.f32.mrf.mxu0 }
 0x22f   : > { %v3534_v52 = vadd.f32 %v5480_v44, %v6887_v14  ;;  %v5593_v61 = vpop.f32.mrf.mxu1 }
 0x230   : > { %v5482_v59 = vpop.f32.mrf.mxu0 }
 0x231   : > { %v7037_v56 = vadd.f32 %v5592_v7, %v3534_v52  ;;  %v5483_v34 = vadd.f32 %v5482_v59, %v5481_v9  ;;  %v5594_v15 = vpop.f32.mrf.mxu1 }
 0x232   : > { %v5595_v23 = vadd.f32 %v5594_v15, %v5593_v61  ;;  %v5484_v45 = vpop.f32.mrf.mxu0 }
 0x233   : > { %v3539_v21 = vadd.f32 %v5483_v34, %v6892_v12  ;;  %v5596_v29 = vpop.f32.mrf.mxu1 }
 0x234   : > { %v5485_v33 = vpop.f32.mrf.mxu0 }
 0x235   : > { %v7040_v6 = vadd.f32 %v5595_v23, %v3539_v21  ;;  %v5486_v8 = vadd.f32 %v5485_v33, %v5484_v45  ;;  %v5597_v55 = vpop.f32.mrf.mxu1 }
 0x236   : > { %v5598_v27 = vadd.f32 %v5597_v55, %v5596_v29  ;;  %v5487_v46 = vpop.f32.mrf.mxu0 }
 0x237   : > { %v3542_v14 = vadd.f32 %v5486_v8, %v6897_v40  ;;  %v5599_v19 = vpop.f32.mrf.mxu1 }
 0x238   : > { %v5488_v39 = vpop.f32.mrf.mxu0 }
 0x239   : > { %v7043_v31 = vadd.f32 %v5598_v27, %v3542_v14  ;;  %v5489_v35 = vadd.f32 %v5488_v39, %v5487_v46  ;;  %v5600_v25 = vpop.f32.mrf.mxu1 }
 0x23a   : > { %v5601_v11 = vadd.f32 %v5600_v25, %v5599_v19  ;;  %v5490_v28 = vpop.f32.mrf.mxu0 }
 0x23b   : > { %v3547_v12 = vadd.f32 %v5489_v35, %v6902_v50  ;;  %v5602_v54 = vpop.f32.mrf.mxu1 }
 0x23c   : > { %v5491_v47 = vpop.f32.mrf.mxu0 }
 0x23d   : > { %v7046_v58 = vadd.f32 %v5601_v11, %v3547_v12  ;;  %v5492_v1 = vadd.f32 %v5491_v47, %v5490_v28  ;;  %v5603_v36 = vpop.f32.mrf.mxu1 }
 0x23e   : > { %v5604_v44 = vadd.f32 %v5603_v36, %v5602_v54  ;;  %v5493_v18 = vpop.f32.mrf.mxu0 }
 0x23f   : > { %v3550_v40 = vadd.f32 %v5492_v1, %v6907_v4  ;;  %v5605_v7 = vpop.f32.mrf.mxu1 }
 0x240   : > { %v5494_v9 = vpop.f32.mrf.mxu0 }
 0x241   : > { %v7049_v52 = vadd.f32 %v5604_v44, %v3550_v40  ;;  %v5495_v61 = vadd.f32 %v5494_v9, %v5493_v18  ;;  %v5606_v59 = vpop.f32.mrf.mxu1 }
 0x242   : > { %v5607_v34 = vadd.f32 %v5606_v59, %v5605_v7  ;;  %v5496_v15 = vpop.f32.mrf.mxu0 }
 0x243   : > { %v3555_v50 = vadd.f32 %v5495_v61, %v6912_v13  ;;  %v5608_v23 = vpop.f32.mrf.mxu1 }
 0x244   : > { %v5497_v45 = vpop.f32.mrf.mxu0 }
 0x245   : > { %v7052_v21 = vadd.f32 %v5607_v34, %v3555_v50  ;;  %v5498_v29 = vadd.f32 %v5497_v45, %v5496_v15  ;;  %v5609_v33 = vpop.f32.mrf.mxu1 }
 0x246   : > { %v5610_v8 = vadd.f32 %v5609_v33, %v5608_v23  ;;  %v5499_v55 = vpop.f32.mrf.mxu0 }
 0x247   : > { %v3558_v4 = vadd.f32 %v5498_v29, %v6917_v32  ;;  %v5611_v27 = vpop.f32.mrf.mxu1 }
 0x248   : > { %v5500_v46 = vpop.f32.mrf.mxu0 }
 0x249   : > { %v7055_v14 = vadd.f32 %v5610_v8, %v3558_v4  ;;  %v5501_v19 = vadd.f32 %v5500_v46, %v5499_v55  ;;  %v5612_v39 = vpop.f32.mrf.mxu1 }
 0x24a   : > { %v5613_v35 = vadd.f32 %v5612_v39, %v5611_v27  ;;  %v5502_v25 = vpop.f32.mrf.mxu0 }
 0x24b   : > { %v3563_v13 = vadd.f32 %v5501_v19, %v6922_v37  ;;  %v5614_v11 = vpop.f32.mrf.mxu1 }
 0x24c   : > { %v5503_v28 = vpop.f32.mrf.mxu0 }
 0x24d   : > { %v7058_v12 = vadd.f32 %v5613_v35, %v3563_v13  ;;  %v5504_v54 = vadd.f32 %v5503_v28, %v5502_v25  ;;  %v5615_v47 = vpop.f32.mrf.mxu1 }
 0x24e   : > { %v5616_v1 = vadd.f32 %v5615_v47, %v5614_v11  ;;  %v5505_v36 = vpop.f32.mrf.mxu0 }
 0x24f   : > { %v3566_v32 = vadd.f32 %v5504_v54, %v6927_v63  ;;  %v5617_v44 = vpop.f32.mrf.mxu1 }
 0x250   : > { %v5506_v18 = vpop.f32.mrf.mxu0 }
 0x251   : > { %v7061_v40 = vadd.f32 %v5616_v1, %v3566_v32  ;;  %v5507_v7 = vadd.f32 %v5506_v18, %v5505_v36  ;;  %v5618_v9 = vpop.f32.mrf.mxu1 }
 0x252   : > { %v5619_v61 = vadd.f32 %v5618_v9, %v5617_v44  ;;  %v5508_v59 = vpop.f32.mrf.mxu0 }
 0x253   : > { %v3571_v37 = vadd.f32 %v5507_v7, %v6932_v62  ;;  %v5620_v34 = vpop.f32.mrf.mxu1 }
 0x254   : > { %v5509_v15 = vpop.f32.mrf.mxu0 }
 0x255   : > { %v7064_v50 = vadd.f32 %v5619_v61, %v3571_v37  ;;  %v5510_v23 = vadd.f32 %v5509_v15, %v5508_v59  ;;  %v5621_v45 = vpop.f32.mrf.mxu1 }
 0x256   : > { %v5622_v29 = vadd.f32 %v5621_v45, %v5620_v34  ;;  %v5511_v33 = vpop.f32.mrf.mxu0 }
 0x257   : > { %v3574_v63 = vadd.f32 %v5510_v23, %v6937_v41  ;;  %v5623_v8 = vpop.f32.mrf.mxu1 }
 0x258   : > { %v5512_v55 = vpop.f32.mrf.mxu0 }
 0x259   : > { %v7067_v4 = vadd.f32 %v5622_v29, %v3574_v63  ;;  %v5513_v27 = vadd.f32 %v5512_v55, %v5511_v33  ;;  %v5624_v46 = vpop.f32.mrf.mxu1 }
 0x25a   : > { %v5625_v19 = vadd.f32 %v5624_v46, %v5623_v8  ;;  %v5514_v39 = vpop.f32.mrf.mxu0 }
 0x25b   : > { %v3579_v62 = vadd.f32 %v5513_v27, %v6942_v24  ;;  %v5626_v35 = vpop.f32.mrf.mxu1 }
 0x25c   : > { %v5515_v25 = vpop.f32.mrf.mxu0 }
 0x25d   : > { %v7070_v13 = vadd.f32 %v5625_v19, %v3579_v62  ;;  %v5516_v11 = vadd.f32 %v5515_v25, %v5514_v39  ;;  %v5627_v28 = vpop.f32.mrf.mxu1 }
 0x25e   : > { %v5628_v54 = vadd.f32 %v5627_v28, %v5626_v35  ;;  %v5517_v47 = vpop.f32.mrf.mxu0 }
 0x25f   : > { %v3582_v41 = vadd.f32 %v5516_v11, %v6947_v17  ;;  %v5629_v1 = vpop.f32.mrf.mxu1 }
 0x260   : > { %v5518_v36 = vpop.f32.mrf.mxu0 }
 0x261   : > { %v7073_v32 = vadd.f32 %v5628_v54, %v3582_v41  ;;  %v5519_v44 = vadd.f32 %v5518_v36, %v5517_v47  ;;  %v5630_v18 = vpop.f32.mrf.mxu1 }
 0x262   : > { %v5631_v7 = vadd.f32 %v5630_v18, %v5629_v1  ;;  %v5520_v9 = vpop.f32.mrf.mxu0 }
 0x263   : > { %v3587_v24 = vadd.f32 %v5519_v44, %v6952_v51  ;;  %v5632_v61 = vpop.f32.mrf.mxu1 }
 0x264   : > { %v5521_v59 = vpop.f32.mrf.mxu0 }
 0x265   : > { %v7076_v37 = vadd.f32 %v5631_v7, %v3587_v24  ;;  %v5522_v34 = vadd.f32 %v5521_v59, %v5520_v9  ;;  %v5633_v15 = vpop.f32.mrf.mxu1 }
 0x266   : > { %v5634_v23 = vadd.f32 %v5633_v15, %v5632_v61  ;;  %v5523_v45 = vpop.f32.mrf.mxu0 }
 0x267   : > { %v3590_v17 = vadd.f32 %v5522_v34, %v6957_v57  ;;  %v5635_v29 = vpop.f32.mrf.mxu1 }
 0x268   : > { %v5524_v33 = vpop.f32.mrf.mxu0 }
 0x269   : > { %v7079_v63 = vadd.f32 %v5634_v23, %v3590_v17  ;;  %v5525_v8 = vadd.f32 %v5524_v33, %v5523_v45  ;;  %v5636_v55 = vpop.f32.mrf.mxu1 }
 0x26a   : > { %v5637_v27 = vadd.f32 %v5636_v55, %v5635_v29  ;;  %v5526_v46 = vpop.f32.mrf.mxu0 }
 0x26b   : > { %v3595_v51 = vadd.f32 %v5525_v8, %v6962_v16  ;;  %v5638_v19 = vpop.f32.mrf.mxu1 }
 0x26c   : > { %v5527_v39 = vpop.f32.mrf.mxu0 }
 0x26d   : > { %v7082_v62 = vadd.f32 %v5637_v27, %v3595_v51  ;;  %v5528_v35 = vadd.f32 %v5527_v39, %v5526_v46  ;;  %v5639_v25 = vpop.f32.mrf.mxu1 }
 0x26e   : > { %v5640_v11 = vadd.f32 %v5639_v25, %v5638_v19  ;;  %v5657_v28 = vpop.f32.mrf.mxu0 }
 0x26f   : > { %v3598_v57 = vadd.f32 %v5528_v35, %v6967_v53  ;;  %v5769_v54 = vpop.f32.mrf.mxu1 }
 0x270   : > { %v5658_v47 = vpop.f32.mrf.mxu0 }
 0x271   : > { %v7085_v41 = vadd.f32 %v5640_v11, %v3598_v57  ;;  %v5659_v1 = vadd.f32 %v5658_v47, %v5657_v28  ;;  %v5770_v36 = vpop.f32.mrf.mxu1 }
 0x272   : > { %v5660_v44 = vpop.f32.mrf.mxu0  ;;  %v5771_v16 = vadd.f32 %v5770_v36, %v5769_v54 }
 0x273   : > { %v3797_v18 = vadd.f32 %v5659_v1, %v6972_v42  ;;  %v5772_v7 = vpop.f32.mrf.mxu1 }
 0x274   : > { %v5661_v9 = vpop.f32.mrf.mxu0 }
 0x275   : > { %v3958_v24 = vadd.f32 %v5771_v16, %v3797_v18  ;;  %v5662_v61 = vadd.f32 %v5661_v9, %v5660_v44  ;;  %v5773_v59 = vpop.f32.mrf.mxu1 }
 0x276   : > { %v5663_v34 = vpop.f32.mrf.mxu0  ;;  %v5774_v53 = vadd.f32 %v5773_v59, %v5772_v7 }
 0x277   : > { %v3800_v15 = vadd.f32 %v5662_v61, %v6977_v22  ;;  %v5775_v23 = vpop.f32.mrf.mxu1  ;;  %v4084_v17 = vmul.f32 0.2, %v3958_v24 }
 0x278   : > { %v5664_v45 = vpop.f32.mrf.mxu0 }
 0x279   : > { %v3961_v29 = vadd.f32 %v5774_v53, %v3800_v15  ;;  %v5665_v33 = vadd.f32 %v5664_v45, %v5663_v34  ;;  %v5776_v8 = vpop.f32.mrf.mxu1  ;;  %v4116_v39 = vmax.f32 %v3958_v24, %v4084_v17 }
 0x27a   : > { %v5666_v55 = vpop.f32.mrf.mxu0  ;;  %v5777_v46 = vadd.f32 %v5776_v8, %v5775_v23 }
 0x27b   : > { %v4085_v42 = vmul.f32 0.2, %v3961_v29  ;;  %v3805_v27 = vadd.f32 %v5665_v33, %v6982_v20  ;;  %v5778_v51 = vpop.f32.mrf.mxu1 }
 0x27c   : > { %v5667_v19 = vpop.f32.mrf.mxu0 }
 0x27d   : > { %v4117_v35 = vmax.f32 %v3961_v29, %v4085_v42  ;;  %v3966_v25 = vadd.f32 %v5777_v46, %v3805_v27  ;;  %v5668_v11 = vadd.f32 %v5667_v19, %v5666_v55  ;;  %v5779_v22 = vpop.f32.mrf.mxu1 }
 0x27e   : > { %v5669_v28 = vpop.f32.mrf.mxu0  ;;  %v5780_v47 = vadd.f32 %v5779_v22, %v5778_v51 }
 0x27f   : > { %v4877_v57 = vpack.c.bf16 %v4117_v35, %v4116_v39  ;;  %v3808_v54 = vadd.f32 %v5668_v11, %v6987_v5  ;;  %v5781_v20 = vpop.f32.mrf.mxu1  ;;  %v4086_v36 = vmul.f32 0.2, %v3966_v25 }
 0x280   : > { %v5670_v1 = vpop.f32.mrf.mxu0 }
 0x281   : > { %4878 = vst [vmem:[%s7094_s9] sm:$0xff] %v4877_v57   ;;  %v3969_v44 = vadd.f32 %v5780_v47, %v3808_v54  ;;  %v5671_v18 = vadd.f32 %v5670_v1, %v5669_v28  ;;  %v5782_v16 = vpop.f32.mrf.mxu1  ;;  %v4118_v15 = vmax.f32 %v3966_v25, %v4086_v36 }
 0x282   : > { %v5672_v7 = vpop.f32.mrf.mxu0  ;;  %v5783_v61 = vadd.f32 %v5782_v16, %v5781_v20 }
 0x283   : > { %v4087_v9 = vmul.f32 0.2, %v3969_v44  ;;  %v3813_v24 = vadd.f32 %v5671_v18, %v6992_v60  ;;  %v5784_v59 = vpop.f32.mrf.mxu1 }
 0x284   : > { %v5673_v34 = vpop.f32.mrf.mxu0 }
 0x285   : > { %v4119_v53 = vmax.f32 %v3969_v44, %v4087_v9  ;;  %v3974_v23 = vadd.f32 %v5783_v61, %v3813_v24  ;;  %v5674_v5 = vadd.f32 %v5673_v34, %v5672_v7  ;;  %v5785_v45 = vpop.f32.mrf.mxu1 }
 0x286   : > { %v5675_v17 = vpop.f32.mrf.mxu0  ;;  %v5786_v8 = vadd.f32 %v5785_v45, %v5784_v59 }
 0x287   : > { %v4882_v29 = vpack.c.bf16 %v4119_v53, %v4118_v15  ;;  %v3816_v33 = vadd.f32 %v5674_v5, %v6997_v48  ;;  %v5787_v55 = vpop.f32.mrf.mxu1  ;;  %v4088_v27 = vmul.f32 0.2, %v3974_v23 }
 0x288   : > { %v5676_v42 = vpop.f32.mrf.mxu0 }
 0x289   : > { %4954 = vst [vmem:[%s7094_s9 + $0x8] sm:$0xff] %v4882_v29   ;;  %v3977_v46 = vadd.f32 %v5786_v8, %v3816_v33  ;;  %v5677_v51 = vadd.f32 %v5676_v42, %v5675_v17  ;;  %v5788_v60 = vpop.f32.mrf.mxu1  ;;  %v4120_v28 = vmax.f32 %v3974_v23, %v4088_v27 }
 0x28a   : > { %v5678_v19 = vpop.f32.mrf.mxu0  ;;  %v5789_v25 = vadd.f32 %v5788_v60, %v5787_v55 }
 0x28b   : > { %v4089_v39 = vmul.f32 0.2, %v3977_v46  ;;  %v3821_v35 = vadd.f32 %v5677_v51, %v7002_v43  ;;  %v5790_v11 = vpop.f32.mrf.mxu1 }
 0x28c   : > { %v5679_v22 = vpop.f32.mrf.mxu0 }
 0x28d   : > { %v4121_v57 = vmax.f32 %v3977_v46, %v4089_v39  ;;  %v3982_v54 = vadd.f32 %v5789_v25, %v3821_v35  ;;  %v5680_v48 = vadd.f32 %v5679_v22, %v5678_v19  ;;  %v5791_v47 = vpop.f32.mrf.mxu1 }
 0x28e   : > { %v5681_v20 = vpop.f32.mrf.mxu0  ;;  %v5792_v44 = vadd.f32 %v5791_v47, %v5790_v11 }
 0x28f   : > { %v4887_v1 = vpack.c.bf16 %v4121_v57, %v4120_v28  ;;  %v3824_v36 = vadd.f32 %v5680_v48, %v7007_v30  ;;  %v5793_v18 = vpop.f32.mrf.mxu1  ;;  %v4090_v7 = vmul.f32 0.2, %v3982_v54 }
 0x290   : > { %v5682_v16 = vpop.f32.mrf.mxu0 }
 0x291   : > { %4955 = vst [vmem:[%s7094_s9 + $0x10] sm:$0xff] %v4887_v1   ;;  %v3985_v9 = vadd.f32 %v5792_v44, %v3824_v36  ;;  %v5683_v24 = vadd.f32 %v5682_v16, %v5681_v20  ;;  %v5794_v43 = vpop.f32.mrf.mxu1  ;;  %v4122_v5 = vmax.f32 %v3982_v54, %v4090_v7 }
 0x292   : > { %v5684_v61 = vpop.f32.mrf.mxu0  ;;  %v5795_v15 = vadd.f32 %v5794_v43, %v5793_v18 }
 0x293   : > { %v4091_v59 = vmul.f32 0.2, %v3985_v9  ;;  %v3829_v34 = vadd.f32 %v5683_v24, %v7012_v26  ;;  %v5796_v53 = vpop.f32.mrf.mxu1 }
 0x294   : > { %v5685_v23 = vpop.f32.mrf.mxu0 }
 0x295   : > { %v4123_v45 = vmax.f32 %v3985_v9, %v4091_v59  ;;  %v3990_v17 = vadd.f32 %v5795_v15, %v3829_v34  ;;  %v5686_v30 = vadd.f32 %v5685_v23, %v5684_v61  ;;  %v5797_v29 = vpop.f32.mrf.mxu1 }
 0x296   : > { %v5687_v33 = vpop.f32.mrf.mxu0  ;;  %v5798_v42 = vadd.f32 %v5797_v29, %v5796_v53 }
 0x297   : > { %v4892_v8 = vpack.c.bf16 %v4123_v45, %v4122_v5  ;;  %v3832_v55 = vadd.f32 %v5686_v30, %v7017_v0  ;;  %v5799_v27 = vpop.f32.mrf.mxu1  ;;  %v4092_v51 = vmul.f32 0.2, %v3990_v17 }
 0x298   : > { %v5688_v46 = vpop.f32.mrf.mxu0 }
 0x299   : > { %4956 = vst [vmem:[%s7094_s9 + $0x18] sm:$0xff] %v4892_v8   ;;  %v3993_v60 = vadd.f32 %v5798_v42, %v3832_v55  ;;  %v5689_v19 = vadd.f32 %v5688_v46, %v5687_v33  ;;  %v5800_v26 = vpop.f32.mrf.mxu1  ;;  %v4124_v57 = vmax.f32 %v3990_v17, %v4092_v51 }
 0x29a   : > { %v5690_v39 = vpop.f32.mrf.mxu0  ;;  %v5801_v11 = vadd.f32 %v5800_v26, %v5799_v27 }
 0x29b   : > { %v4093_v35 = vmul.f32 0.2, %v3993_v60  ;;  %v3837_v25 = vadd.f32 %v5689_v19, %v7022_v2  ;;  %v5802_v22 = vpop.f32.mrf.mxu1 }
 0x29c   : > { %v5691_v28 = vpop.f32.mrf.mxu0 }
 0x29d   : > { %v4125_v54 = vmax.f32 %v3993_v60, %v4093_v35  ;;  %v3998_v48 = vadd.f32 %v5801_v11, %v3837_v25  ;;  %v5692_v0 = vadd.f32 %v5691_v28, %v5690_v39  ;;  %v5803_v47 = vpop.f32.mrf.mxu1 }
 0x29e   : > { %v5693_v20 = vpop.f32.mrf.mxu0  ;;  %v5804_v44 = vadd.f32 %v5803_v47, %v5802_v22 }
 0x29f   : > { %v4897_v1 = vpack.c.bf16 %v4125_v54, %v4124_v57  ;;  %v3840_v36 = vadd.f32 %v5692_v0, %v7025_v38  ;;  %v5805_v18 = vpop.f32.mrf.mxu1  ;;  %v4094_v7 = vmul.f32 0.2, %v3998_v48 }
 0x2a0   : > { %v5694_v16 = vpop.f32.mrf.mxu0 }
 0x2a1   : > { %4957 = vst [vmem:[%s7094_s9 + $0x20] sm:$0xff] %v4897_v1   ;;  %v4001_v9 = vadd.f32 %v5804_v44, %v3840_v36  ;;  %v5695_v24 = vadd.f32 %v5694_v16, %v5693_v20  ;;  %v5806_v2 = vpop.f32.mrf.mxu1  ;;  %v4126_v23 = vmax.f32 %v3998_v48, %v4094_v7 }
 0x2a2   : > { %v5696_v43 = vpop.f32.mrf.mxu0  ;;  %v5807_v34 = vadd.f32 %v5806_v2, %v5805_v18 }
 0x2a3   : > { %v4095_v61 = vmul.f32 0.2, %v4001_v9  ;;  %v3845_v59 = vadd.f32 %v5695_v24, %v7028_v10  ;;  %v5808_v15 = vpop.f32.mrf.mxu1 }
 0x2a4   : > { %v5697_v53 = vpop.f32.mrf.mxu0 }
 0x2a5   : > { %v4127_v5 = vmax.f32 %v4001_v9, %v4095_v61  ;;  %v4006_v45 = vadd.f32 %v5807_v34, %v3845_v59  ;;  %v5698_v38 = vadd.f32 %v5697_v53, %v5696_v43  ;;  %v5809_v17 = vpop.f32.mrf.mxu1 }
 0x2a6   : > { %v5699_v30 = vpop.f32.mrf.mxu0  ;;  %v5810_v8 = vadd.f32 %v5809_v17, %v5808_v15 }
 0x2a7   : > { %v4902_v29 = vpack.c.bf16 %v4127_v5, %v4126_v23  ;;  %v3848_v33 = vadd.f32 %v5698_v38, %v7031_v3  ;;  %v5811_v55 = vpop.f32.mrf.mxu1  ;;  %v4096_v27 = vmul.f32 0.2, %v4006_v45 }
 0x2a8   : > { %v5700_v42 = vpop.f32.mrf.mxu0 }
 0x2a9   : > { %4958 = vst [vmem:[%s7094_s9 + $0x28] sm:$0xff] %v4902_v29   ;;  %v4009_v46 = vadd.f32 %v5810_v8, %v3848_v33  ;;  %v5701_v51 = vadd.f32 %v5700_v42, %v5699_v30  ;;  %v5812_v10 = vpop.f32.mrf.mxu1  ;;  %v4128_v11 = vmax.f32 %v4006_v45, %v4096_v27 }
 0x2aa   : > { %v5702_v60 = vpop.f32.mrf.mxu0  ;;  %v5813_v39 = vadd.f32 %v5812_v10, %v5811_v55 }
 0x2ab   : > { %v4097_v19 = vmul.f32 0.2, %v4009_v46  ;;  %v3853_v26 = vadd.f32 %v5701_v51, %v7034_v49  ;;  %v5814_v35 = vpop.f32.mrf.mxu1 }
 0x2ac   : > { %v5703_v25 = vpop.f32.mrf.mxu0 }
 0x2ad   : > { %v4129_v22 = vmax.f32 %v4009_v46, %v4097_v19  ;;  %v4014_v28 = vadd.f32 %v5813_v39, %v3853_v26  ;;  %v5704_v3 = vadd.f32 %v5703_v25, %v5702_v60  ;;  %v5815_v57 = vpop.f32.mrf.mxu1 }
 0x2ae   : > { %v5705_v54 = vpop.f32.mrf.mxu0  ;;  %v5816_v47 = vadd.f32 %v5815_v57, %v5814_v35 }
 0x2af   : > { %v4907_v48 = vpack.c.bf16 %v4129_v22, %v4128_v11  ;;  %v3856_v0 = vadd.f32 %v5704_v3, %v7037_v56  ;;  %v5817_v20 = vpop.f32.mrf.mxu1  ;;  %v4098_v36 = vmul.f32 0.2, %v4014_v28 }
 0x2b0   : > { %v5706_v1 = vpop.f32.mrf.mxu0 }
 0x2b1   : > { %4959 = vst [vmem:[%s7094_s9 + $0x30] sm:$0xff] %v4907_v48   ;;  %v4017_v44 = vadd.f32 %v5816_v47, %v3856_v0  ;;  %v5707_v18 = vadd.f32 %v5706_v1, %v5705_v54  ;;  %v5818_v49 = vpop.f32.mrf.mxu1  ;;  %v4130_v61 = vmax.f32 %v4014_v28, %v4098_v36 }
 0x2b2   : > { %v5708_v16 = vpop.f32.mrf.mxu0  ;;  %v5819_v24 = vadd.f32 %v5818_v49, %v5817_v20 }
 0x2b3   : > { %v4099_v7 = vmul.f32 0.2, %v4017_v44  ;;  %v3861_v9 = vadd.f32 %v5707_v18, %v7040_v6  ;;  %v5820_v2 = vpop.f32.mrf.mxu1 }
 0x2b4   : > { %v5709_v43 = vpop.f32.mrf.mxu0 }
 0x2b5   : > { %v4131_v59 = vmax.f32 %v4017_v44, %v4099_v7  ;;  %v4022_v34 = vadd.f32 %v5819_v24, %v3861_v9  ;;  %v5710_v56 = vadd.f32 %v5709_v43, %v5708_v16  ;;  %v5821_v15 = vpop.f32.mrf.mxu1 }
 0x2b6   : > { %v5711_v53 = vpop.f32.mrf.mxu0  ;;  %v5822_v45 = vadd.f32 %v5821_v15, %v5820_v2 }
 0x2b7   : > { %v4912_v23 = vpack.c.bf16 %v4131_v59, %v4130_v61  ;;  %v3864_v5 = vadd.f32 %v5710_v56, %v7043_v31  ;;  %v5823_v38 = vpop.f32.mrf.mxu1  ;;  %v4100_v30 = vmul.f32 0.2, %v4022_v34 }
 0x2b8   : > { %v5712_v17 = vpop.f32.mrf.mxu0 }
 0x2b9   : > { %4960 = vst [vmem:[%s7094_s9 + $0x38] sm:$0xff] %v4912_v23   ;;  %v4025_v29 = vadd.f32 %v5822_v45, %v3864_v5  ;;  %v5713_v33 = vadd.f32 %v5712_v17, %v5711_v53  ;;  %v5824_v6 = vpop.f32.mrf.mxu1  ;;  %v4132_v10 = vmax.f32 %v4022_v34, %v4100_v30 }
 0x2ba   : > { %v5714_v8 = vpop.f32.mrf.mxu0  ;;  %v5825_v27 = vadd.f32 %v5824_v6, %v5823_v38 }
 0x2bb   : > { %v4101_v55 = vmul.f32 0.2, %v4025_v29  ;;  %v3869_v42 = vadd.f32 %v5713_v33, %v7046_v58  ;;  %v5826_v46 = vpop.f32.mrf.mxu1 }
 0x2bc   : > { %v5715_v51 = vpop.f32.mrf.mxu0 }
 0x2bd   : > { %v4133_v60 = vmax.f32 %v4025_v29, %v4101_v55  ;;  %v4030_v19 = vadd.f32 %v5825_v27, %v3869_v42  ;;  %v5716_v31 = vadd.f32 %v5715_v51, %v5714_v8  ;;  %v5827_v26 = vpop.f32.mrf.mxu1 }
 0x2be   : > { %v5717_v39 = vpop.f32.mrf.mxu0  ;;  %v5828_v11 = vadd.f32 %v5827_v26, %v5826_v46 }
 0x2bf   : > { %v4917_v35 = vpack.c.bf16 %v4133_v60, %v4132_v10  ;;  %v3872_v25 = vadd.f32 %v5716_v31, %v7049_v52  ;;  %v5829_v22 = vpop.f32.mrf.mxu1  ;;  %v4102_v3 = vmul.f32 0.2, %v4030_v19 }
 0x2c0   : > { %v5718_v28 = vpop.f32.mrf.mxu0 }
 0x2c1   : > { %4961 = vst [vmem:[%s7094_s9 + $0x40] sm:$0xff] %v4917_v35   ;;  %v4033_v57 = vadd.f32 %v5828_v11, %v3872_v25  ;;  %v5719_v54 = vadd.f32 %v5718_v28, %v5717_v39  ;;  %v5830_v58 = vpop.f32.mrf.mxu1  ;;  %v4134_v44 = vmax.f32 %v4030_v19, %v4102_v3 }
 0x2c2   : > { %v5720_v48 = vpop.f32.mrf.mxu0  ;;  %v5831_v20 = vadd.f32 %v5830_v58, %v5829_v22 }
 0x2c3   : > { %v4103_v0 = vmul.f32 0.2, %v4033_v57  ;;  %v3877_v47 = vadd.f32 %v5719_v54, %v7052_v21  ;;  %v5832_v1 = vpop.f32.mrf.mxu1 }
 0x2c4   : > { %v5721_v36 = vpop.f32.mrf.mxu0 }
 0x2c5   : > { %v4135_v18 = vmax.f32 %v4033_v57, %v4103_v0  ;;  %v4038_v49 = vadd.f32 %v5831_v20, %v3877_v47  ;;  %v5722_v52 = vadd.f32 %v5721_v36, %v5720_v48  ;;  %v5833_v16 = vpop.f32.mrf.mxu1 }
 0x2c6   : > { %v5723_v7 = vpop.f32.mrf.mxu0  ;;  %v5834_v2 = vadd.f32 %v5833_v16, %v5832_v1 }
 0x2c7   : > { %v4922_v9 = vpack.c.bf16 %v4135_v18, %v4134_v44  ;;  %v3880_v24 = vadd.f32 %v5722_v52, %v7055_v14  ;;  %v5835_v43 = vpop.f32.mrf.mxu1  ;;  %v4104_v59 = vmul.f32 0.2, %v4038_v49 }
 0x2c8   : > { %v5724_v61 = vpop.f32.mrf.mxu0 }
 0x2c9   : > { %4962 = vst [vmem:[%s7094_s9 + $0x48] sm:$0xff] %v4922_v9   ;;  %v4041_v34 = vadd.f32 %v5834_v2, %v3880_v24  ;;  %v5725_v56 = vadd.f32 %v5724_v61, %v5723_v7  ;;  %v5836_v21 = vpop.f32.mrf.mxu1  ;;  %v4136_v17 = vmax.f32 %v4038_v49, %v4104_v59 }
 0x2ca   : > { %v5726_v15 = vpop.f32.mrf.mxu0  ;;  %v5837_v5 = vadd.f32 %v5836_v21, %v5835_v43 }
 0x2cb   : > { %v4105_v53 = vmul.f32 0.2, %v4041_v34  ;;  %v3885_v23 = vadd.f32 %v5725_v56, %v7058_v12  ;;  %v5838_v45 = vpop.f32.mrf.mxu1 }
 0x2cc   : > { %v5727_v38 = vpop.f32.mrf.mxu0 }
 0x2cd   : > { %v4137_v30 = vmax.f32 %v4041_v34, %v4105_v53  ;;  %v4046_v29 = vadd.f32 %v5837_v5, %v3885_v23  ;;  %v5728_v14 = vadd.f32 %v5727_v38, %v5726_v15  ;;  %v5839_v33 = vpop.f32.mrf.mxu1 }
 0x2ce   : > { %v5729_v6 = vpop.f32.mrf.mxu0  ;;  %v5840_v42 = vadd.f32 %v5839_v33, %v5838_v45 }
 0x2cf   : > { %v4927_v8 = vpack.c.bf16 %v4137_v30, %v4136_v17  ;;  %v3888_v55 = vadd.f32 %v5728_v14, %v7061_v40  ;;  %v5841_v27 = vpop.f32.mrf.mxu1  ;;  %v4106_v51 = vmul.f32 0.2, %v4046_v29 }
 0x2d0   : > { %v5730_v46 = vpop.f32.mrf.mxu0 }
 0x2d1   : > { %4963 = vst [vmem:[%s7094_s9 + $0x50] sm:$0xff] %v4927_v8   ;;  %v4049_v10 = vadd.f32 %v5840_v42, %v3888_v55  ;;  %v5731_v60 = vadd.f32 %v5730_v46, %v5729_v6  ;;  %v5842_v12 = vpop.f32.mrf.mxu1  ;;  %v4138_v11 = vmax.f32 %v4046_v29, %v4106_v51 }
 0x2d2   : > { %v5732_v19 = vpop.f32.mrf.mxu0  ;;  %v5843_v39 = vadd.f32 %v5842_v12, %v5841_v27 }
 0x2d3   : > { %v4107_v31 = vmul.f32 0.2, %v4049_v10  ;;  %v3893_v26 = vadd.f32 %v5731_v60, %v7064_v50  ;;  %v5844_v35 = vpop.f32.mrf.mxu1 }
 0x2d4   : > { %v5733_v25 = vpop.f32.mrf.mxu0 }
 0x2d5   : > { %v4139_v22 = vmax.f32 %v4049_v10, %v4107_v31  ;;  %v4054_v28 = vadd.f32 %v5843_v39, %v3893_v26  ;;  %v5734_v40 = vadd.f32 %v5733_v25, %v5732_v19  ;;  %v5845_v3 = vpop.f32.mrf.mxu1 }
 0x2d6   : > { %v5735_v57 = vpop.f32.mrf.mxu0  ;;  %v5846_v48 = vadd.f32 %v5845_v3, %v5844_v35 }
 0x2d7   : > { %v4932_v54 = vpack.c.bf16 %v4139_v22, %v4138_v11  ;;  %v3896_v58 = vadd.f32 %v5734_v40, %v7067_v4  ;;  %v5847_v0 = vpop.f32.mrf.mxu1  ;;  %v4108_v20 = vmul.f32 0.2, %v4054_v28 }
 0x2d8   : > { %v5736_v47 = vpop.f32.mrf.mxu0 }
 0x2d9   : > { %4964 = vst [vmem:[%s7094_s9 + $0x58] sm:$0xff] %v4932_v54   ;;  %v4057_v1 = vadd.f32 %v5846_v48, %v3896_v58  ;;  %v5737_v36 = vadd.f32 %v5736_v47, %v5735_v57  ;;  %v5848_v50 = vpop.f32.mrf.mxu1  ;;  %v4140_v9 = vmax.f32 %v4054_v28, %v4108_v20 }
 0x2da   : > { %v5738_v44 = vpop.f32.mrf.mxu0  ;;  %v5849_v52 = vadd.f32 %v5848_v50, %v5847_v0 }
 0x2db   : > { %v4109_v18 = vmul.f32 0.2, %v4057_v1  ;;  %v3901_v49 = vadd.f32 %v5737_v36, %v7070_v13  ;;  %v5850_v16 = vpop.f32.mrf.mxu1 }
 0x2dc   : > { %v5739_v7 = vpop.f32.mrf.mxu0 }
 0x2dd   : > { %v4141_v24 = vmax.f32 %v4057_v1, %v4109_v18  ;;  %v4062_v2 = vadd.f32 %v5849_v52, %v3901_v49  ;;  %v5740_v4 = vadd.f32 %v5739_v7, %v5738_v44  ;;  %v5851_v43 = vpop.f32.mrf.mxu1 }
 0x2de   : > { %v5741_v61 = vpop.f32.mrf.mxu0  ;;  %v5852_v56 = vadd.f32 %v5851_v43, %v5850_v16 }
 0x2df   : > { %v4937_v59 = vpack.c.bf16 %v4141_v24, %v4140_v9  ;;  %v3904_v34 = vadd.f32 %v5740_v4, %v7073_v32  ;;  %v5853_v21 = vpop.f32.mrf.mxu1  ;;  %v4110_v53 = vmul.f32 0.2, %v4062_v2 }
 0x2e0   : > { %v5742_v15 = vpop.f32.mrf.mxu0 }
 0x2e1   : > { %4965 = vst [vmem:[%s7094_s9 + $0x60] sm:$0xff] %v4937_v59   ;;  %v4065_v23 = vadd.f32 %v5852_v56, %v3904_v34  ;;  %v5743_v5 = vadd.f32 %v5742_v15, %v5741_v61  ;;  %v5854_v13 = vpop.f32.mrf.mxu1  ;;  %v4142_v33 = vmax.f32 %v4062_v2, %v4110_v53 }
 0x2e2   : > { %v5744_v45 = vpop.f32.mrf.mxu0  ;;  %v5855_v30 = vadd.f32 %v5854_v13, %v5853_v21 }
 0x2e3   : > { %v4111_v38 = vmul.f32 0.2, %v4065_v23  ;;  %v3909_v17 = vadd.f32 %v5743_v5, %v7076_v37  ;;  %v5856_v29 = vpop.f32.mrf.mxu1 }
 0x2e4   : > { %v5745_v14 = vpop.f32.mrf.mxu0 }
 0x2e5   : > { %v4143_v6 = vmax.f32 %v4065_v23, %v4111_v38  ;;  %v4070_v8 = vadd.f32 %v5855_v30, %v3909_v17  ;;  %v5746_v32 = vadd.f32 %v5745_v14, %v5744_v45  ;;  %v5857_v55 = vpop.f32.mrf.mxu1 }
 0x2e6   : > { %v5747_v42 = vpop.f32.mrf.mxu0  ;;  %v5858_v51 = vadd.f32 %v5857_v55, %v5856_v29 }
 0x2e7   : > { %v4942_v27 = vpack.c.bf16 %v4143_v6, %v4142_v33  ;;  %v3912_v46 = vadd.f32 %v5746_v32, %v7079_v63  ;;  %v5859_v10 = vpop.f32.mrf.mxu1  ;;  %v4112_v12 = vmul.f32 0.2, %v4070_v8 }
 0x2e8   : > { %v5748_v60 = vpop.f32.mrf.mxu0 }
 0x2e9   : > { %4966 = vst [vmem:[%s7094_s9 + $0x68] sm:$0xff] %v4942_v27   ;;  %v4073_v19 = vadd.f32 %v5858_v51, %v3912_v46  ;;  %v5749_v31 = vadd.f32 %v5748_v60, %v5747_v42  ;;  %v5860_v37 = vpop.f32.mrf.mxu1  ;;  %v4144_v28 = vmax.f32 %v4070_v8, %v4112_v12 }
 0x2ea   : > { %v5750_v26 = vpop.f32.mrf.mxu0  ;;  %v5861_v25 = vadd.f32 %v5860_v37, %v5859_v10 }
 0x2eb   : > { %v4113_v39 = vmul.f32 0.2, %v4073_v19  ;;  %v3917_v35 = vadd.f32 %v5749_v31, %v7082_v62  ;;  %v5862_v11 = vpop.f32.mrf.mxu1 }
 0x2ec   : > { %v5751_v22 = vpop.f32.mrf.mxu0 }
 0x2ed   : > { %v4145_v40 = vmax.f32 %v4073_v19, %v4113_v39  ;;  %v4078_v63 = vadd.f32 %v5861_v25, %v3917_v35  ;;  %v5752_v3 = vadd.f32 %v5751_v22, %v5750_v26  ;;  %v5863_v57 = vpop.f32.mrf.mxu1 }
 0x2ee   : > { %v5864_v48 = vadd.f32 %v5863_v57, %v5862_v11 }
 0x2ef   : > { %v4947_v54 = vpack.c.bf16 %v4145_v40, %v4144_v28  ;;  %v3920_v58 = vadd.f32 %v5752_v3, %v7085_v41  ;;  %v4114_v0 = vmul.f32 0.2, %v4078_v63 }
 0x2f1   : > { %4967 = vst [vmem:[%s7094_s9 + $0x70] sm:$0xff] %v4947_v54   ;;  %v4081_v47 = vadd.f32 %v5864_v48, %v3920_v58  ;;  %v4146_v1 = vmax.f32 %v4078_v63, %v4114_v0 }
 0x2f3   : > { %v4115_v20 = vmul.f32 0.2, %v4081_v47 }
 0x2f5   : > { %v4147_v36 = vmax.f32 %v4081_v47, %v4115_v20 }
 0x2f7   : > { %v4952_v62 = vpack.c.bf16 %v4147_v36, %v4146_v1 }
 0x2f9   : > { %4968 = vst [vmem:[%s7094_s9 + $0x78] sm:$0xff] %v4952_v62  }
 0x2fa PF: > { %s13_s14 = sadd.s32 1, %s6039_s14   ;;  %s7154_s12 = smov %s6035_s13 }
 0x2fb   : > { %p10_p5 = scmp.ge.s32.totalorder %s13_s14, 4   ;;  %s7155_s13 = smov %s7157_s15 }
 0x2fd   :  { %12 = sbr.rel (!%p10_p5) target bundleno = 2 (0x2), region = 68 }

// kernel: discriminator_forward.6
= control target key start
LH: loop header
LB: loop body
LE: loop exit
PB: predicated region body
PF: predicated region fallthrough
CT: control target
= control target key end

     0   :  { %s3085_s12 = smov 0   ;;  %s3087_s13 = smov 0   ;;  %s3740_s0 = inlined_call_operand.vmem [shape: bf16[128,2048], index: 0, kind: input, shape index: {}]   ;;  %s3741_s1 = inlined_call_operand.vmem [shape: bf16[2048,128], index: 1, kind: input, shape index: {}]   ;;  %s3742_s2 = inlined_call_operand.vmem [shape: f32[1,128], index: 2, kind: input, shape index: {}]   ;;  %s3743_s3 = inlined_call_operand.vmem [shape: bf16[128,128], index: 3, kind: output, shape index: {}]  }
   0x1   :  { %s3089_s14 = smov 0  }
   0x2 LB: > { %s25_s15 = sadd.s32 1, %s3059_s13  ;;  %p2328_p0 = scmp.ge.s32.totalorder %s3063_s14, 1  ;;  %s3063_s14 = sphi %s3089_s14, %s13_s14   ;;  %s3059_s13 = sphi %s3087_s13, %s3777_s13   ;;  %s3055_s12 = sphi %s3085_s12, %s3776_s12  }
   0x3   : > { %p27_p1 = scmp.ge.s32.totalorder %s25_s15, 2  ;;  %p170_p2 = scmp.lt.s32.totalorder %s3063_s14, 3 }
   0x5   : > { %s3779_s15 = smov (%p27_p1, %s25_s15), 0  ;;  %p171_p3 = pnand %p2328_p0, %p170_p2 }
   0x7   : > { %174 = sbr.rel (%p171_p3) target bundleno = 378 (0x17a), region = 32 }
   0xc   : > { %v2913_v0 = vld [vmem:[%s3741_s1 + $0x78] sm:$0xff]   ;;  %v2917_v4 = vld [vmem:[%s3741_s1 + $0x70] sm:$0xff]   ;;  %v2921_v8 = vld [vmem:[%s3741_s1 + $0x68] sm:$0xff]   ;;  %s2329_s25 = sshll.u32 %s3055_s12, 3 }
   0xd   : > { %v2914_v1 = vld [vmem:[%s3741_s1 + $0xf8] sm:$0xff]   ;;  %2569 = vmatprep.subr.bf16.mxu0 %v2913_v0  ;;  %v2918_v5 = vld [vmem:[%s3741_s1 + $0xf0] sm:$0xff]   ;;  %v2922_v9 = vld [vmem:[%s3741_s1 + $0xe8] sm:$0xff]   ;;  %p206_p4 = scmp.lt.s32.totalorder %s2329_s25, 15 }
   0xe   : > { %v2915_v2 = vld [vmem:[%s3741_s1 + $0x38] sm:$0xff]   ;;  %2609 = vmatprep.subr.bf16.mxu1 %v2914_v1  ;;  %v2919_v6 = vld [vmem:[%s3741_s1 + $0x30] sm:$0xff]   ;;  %v2923_v10 = vld [vmem:[%s3741_s1 + $0x28] sm:$0xff]  }
   0xf   : > { %v2916_v3 = vld [vmem:[%s3741_s1 + $0xb8] sm:$0xff]   ;;  %2570 = vmatpush3.bf16.msra.mxu0 %v2915_v2  ;;  %v2920_v7 = vld [vmem:[%s3741_s1 + $0xb0] sm:$0xff]   ;;  %v2924_v11 = vld [vmem:[%s3741_s1 + $0xa8] sm:$0xff]   ;;  %s3781_s25 = smov (!%p206_p4, %s2329_s25), 15 }
  0x10   : > { %2610 = vmatpush3.bf16.msra.mxu1 %v2916_v3  ;;  %2571 = vmatprep.subr.bf16.mxu0 %v2917_v4  ;;  %v2925_v12 = vld [vmem:[%s3741_s1 + $0x60] sm:$0xff]   ;;  %v2929_v16 = vld [vmem:[%s3741_s1 + $0x58] sm:$0xff]   ;;  %v2933_v20 = vld [vmem:[%s3741_s1 + $0x50] sm:$0xff]   ;;  %s2537_s24 = sshll.u32 %s3781_s25, 6 }
  0x11   : > { %2611 = vmatprep.subr.bf16.mxu1 %v2918_v5  ;;  %v2926_v13 = vld [vmem:[%s3741_s1 + $0xe0] sm:$0xff]   ;;  %v2930_v17 = vld [vmem:[%s3741_s1 + $0xd8] sm:$0xff]   ;;  %v2934_v21 = vld [vmem:[%s3741_s1 + $0xd0] sm:$0xff]   ;;  %s3202_s12 = scalar_lea.vmem %s3740_s0, %s2537_s24 }
  0x12   : > { %v2927_v14 = vld [vmem:[%s3741_s1 + $0x20] sm:$0xff]   ;;  %v2931_v18 = vld [vmem:[%s3741_s1 + $0x18] sm:$0xff]   ;;  %v2935_v22 = vld [vmem:[%s3741_s1 + $0x10] sm:$0xff]  }
  0x13   : > { %2572 = vmatpush3.bf16.msra.mxu0 %v2919_v6  ;;  %v2928_v15 = vld [vmem:[%s3741_s1 + $0xa0] sm:$0xff]   ;;  %v2932_v19 = vld [vmem:[%s3741_s1 + $0x98] sm:$0xff]   ;;  %v2936_v23 = vld [vmem:[%s3741_s1 + $0x90] sm:$0xff]  }
  0x14   : > { %2612 = vmatpush3.bf16.msra.mxu1 %v2920_v7  ;;  %2573 = vmatprep.subr.bf16.mxu0 %v2921_v8  ;;  %v2937_v24 = vld [vmem:[%s3741_s1 + $0x48] sm:$0xff]   ;;  %v2941_v28 = vld [vmem:[%s3741_s1 + $0x40] sm:$0xff]   ;;  %v2945_v40 = vld [vmem:[%s3741_s1 + $0x178] sm:$0xff]  }
  0x15   : > { %2613 = vmatprep.subr.bf16.mxu1 %v2922_v9  ;;  %v2938_v25 = vld [vmem:[%s3741_s1 + $0xc8] sm:$0xff]   ;;  %v2942_v29 = vld [vmem:[%s3741_s1 + $0xc0] sm:$0xff]   ;;  %v2946_v41 = vld [vmem:[%s3741_s1 + $0x1f8] sm:$0xff]  }
  0x16   : > { %v2939_v26 = vld [vmem:[%s3741_s1 + $0x8] sm:$0xff]   ;;  %v2943_v30 = vld [vmem:[%s3741_s1] sm:$0xff]   ;;  %v2947_v42 = vld [vmem:[%s3741_s1 + $0x138] sm:$0xff]  }
  0x17   : > { %2574 = vmatpush3.bf16.msra.mxu0 %v2923_v10  ;;  %v2940_v27 = vld [vmem:[%s3741_s1 + $0x88] sm:$0xff]   ;;  %v2944_v31 = vld [vmem:[%s3741_s1 + $0x80] sm:$0xff]   ;;  %v2948_v43 = vld [vmem:[%s3741_s1 + $0x1b8] sm:$0xff]  }
  0x18   : > { %2614 = vmatpush3.bf16.msra.mxu1 %v2924_v11  ;;  %2575 = vmatprep.subr.bf16.mxu0 %v2925_v12  ;;  %v229_v32 = vld [vmem:[%s3202_s12] sm:$0xff]  ;;  %v230_v34 = vld [vmem:[%s3202_s12 + $0x8] sm:$0xff]  ;;  %v2949_v44 = vld [vmem:[%s3741_s1 + $0x170] sm:$0xff]  }
  0x19   : > { %2615 = vmatprep.subr.bf16.mxu1 %v2926_v13  ;;  %v237_v33 = vld [vmem:[%s3202_s12 + $0x40] sm:$0xff]  ;;  %v238_v37 = vld [vmem:[%s3202_s12 + $0x48] sm:$0xff]  ;;  %v2950_v45 = vld [vmem:[%s3741_s1 + $0x1f0] sm:$0xff]  }
  0x1a   : > { %v2335_v35 = vcombine.low %v229_v32, %v237_v33  ;;  %v2336_v36 = vcombine.high %v229_v32, %v237_v33  ;;  %v2337_v38 = vcombine.low %v230_v34, %v238_v37  ;;  %v2338_v39 = vcombine.high %v230_v34, %v238_v37  ;;  %v2951_v46 = vld [vmem:[%s3741_s1 + $0x130] sm:$0xff]   ;;  %v245_v48 = vld [vmem:[%s3202_s12 + $0x80] sm:$0xff]  ;;  %v246_v51 = vld [vmem:[%s3202_s12 + $0x88] sm:$0xff] }
  0x1b   : > { %2576 = vmatpush3.bf16.msra.mxu0 %v2927_v14  ;;  %v2952_v47 = vld [vmem:[%s3741_s1 + $0x1b0] sm:$0xff]   ;;  %v253_v49 = vld [vmem:[%s3202_s12 + $0xc0] sm:$0xff]  ;;  %v254_v52 = vld [vmem:[%s3202_s12 + $0xc8] sm:$0xff] }
  0x1c   : > { %2616 = vmatpush3.bf16.msra.mxu1 %v2928_v15  ;;  %2577 = vmatprep.subr.bf16.mxu0 %v2929_v16  ;;  %v2352_v50 = vcombine.high %v245_v48, %v253_v49  ;;  %v2351_v53 = vcombine.low %v245_v48, %v253_v49  ;;  %v2354_v54 = vcombine.high %v246_v51, %v254_v52  ;;  %v2953_v56 = vld [vmem:[%s3741_s1 + $0x168] sm:$0xff]   ;;  %v2957_v60 = vld [vmem:[%s3741_s1 + $0x160] sm:$0xff]   ;;  %v2961_v8 = vld [vmem:[%s3741_s1 + $0x158] sm:$0xff]  }
  0x1d   : > { %2617 = vmatprep.subr.bf16.mxu1 %v2930_v17  ;;  %1676 = vmatprep.mubr.bf16.mxu0 %v2336_v36  ;;  %v2353_v55 = vcombine.low %v246_v51, %v254_v52  ;;  %v2954_v57 = vld [vmem:[%s3741_s1 + $0x1e8] sm:$0xff]   ;;  %v2958_v61 = vld [vmem:[%s3741_s1 + $0x1e0] sm:$0xff]   ;;  %v2962_v9 = vld [vmem:[%s3741_s1 + $0x1d8] sm:$0xff]  }
  0x1e   : > { %1741 = vmatprep.mubr.bf16.mxu1 %v2338_v39  ;;  %v2955_v58 = vld [vmem:[%s3741_s1 + $0x128] sm:$0xff]   ;;  %v2959_v62 = vld [vmem:[%s3741_s1 + $0x120] sm:$0xff]   ;;  %v2963_v10 = vld [vmem:[%s3741_s1 + $0x118] sm:$0xff]  }
  0x1f   : > { %2578 = vmatpush3.bf16.msra.mxu0 %v2931_v18  ;;  %v2956_v59 = vld [vmem:[%s3741_s1 + $0x1a8] sm:$0xff]   ;;  %v2960_v63 = vld [vmem:[%s3741_s1 + $0x1a0] sm:$0xff]   ;;  %v2964_v11 = vld [vmem:[%s3741_s1 + $0x198] sm:$0xff]  }
  0x20   : > { %2618 = vmatpush3.bf16.msra.mxu1 %v2932_v19  ;;  %2579 = vmatprep.subr.bf16.mxu0 %v2933_v20  ;;  %v261_v0 = vld [vmem:[%s3202_s12 + $0x100] sm:$0xff]  ;;  %v262_v2 = vld [vmem:[%s3202_s12 + $0x108] sm:$0xff]  ;;  %v2965_v12 = vld [vmem:[%s3741_s1 + $0x150] sm:$0xff]  }
  0x21   : > { %2619 = vmatprep.subr.bf16.mxu1 %v2934_v21  ;;  %v269_v1 = vld [vmem:[%s3202_s12 + $0x140] sm:$0xff]  ;;  %v270_v3 = vld [vmem:[%s3202_s12 + $0x148] sm:$0xff]  ;;  %v2966_v13 = vld [vmem:[%s3741_s1 + $0x1d0] sm:$0xff]  }
  0x22   : > { %v2368_v4 = vcombine.high %v261_v0, %v269_v1  ;;  %v2370_v5 = vcombine.high %v262_v2, %v270_v3  ;;  %v2367_v6 = vcombine.low %v261_v0, %v269_v1  ;;  %v2369_v7 = vcombine.low %v262_v2, %v270_v3  ;;  %v2967_v14 = vld [vmem:[%s3741_s1 + $0x110] sm:$0xff]   ;;  %v277_v16 = vld [vmem:[%s3202_s12 + $0x180] sm:$0xff]  ;;  %v278_v18 = vld [vmem:[%s3202_s12 + $0x188] sm:$0xff] }
  0x23   : > { %2580 = vmatpush3.bf16.msra.mxu0 %v2935_v22  ;;  %v2968_v15 = vld [vmem:[%s3741_s1 + $0x190] sm:$0xff]   ;;  %v285_v17 = vld [vmem:[%s3202_s12 + $0x1c0] sm:$0xff]  ;;  %v286_v20 = vld [vmem:[%s3202_s12 + $0x1c8] sm:$0xff] }
  0x24   : > { %2620 = vmatpush3.bf16.msra.mxu1 %v2936_v23  ;;  %2581 = vmatprep.subr.bf16.mxu0 %v2937_v24  ;;  %v2384_v19 = vcombine.high %v277_v16, %v285_v17  ;;  %v2383_v21 = vcombine.low %v277_v16, %v285_v17  ;;  %v2386_v22 = vcombine.high %v278_v18, %v286_v20  ;;  %v2969_v24 = vld [vmem:[%s3741_s1 + $0x148] sm:$0xff]   ;;  %v231_v32 = vld [vmem:[%s3202_s12 + $0x10] sm:$0xff]  ;;  %v232_v36 = vld [vmem:[%s3202_s12 + $0x18] sm:$0xff] }
  0x25   : > { %2621 = vmatprep.subr.bf16.mxu1 %v2938_v25  ;;  %v2385_v23 = vcombine.low %v278_v18, %v286_v20  ;;  %v2970_v25 = vld [vmem:[%s3741_s1 + $0x1c8] sm:$0xff]   ;;  %v239_v33 = vld [vmem:[%s3202_s12 + $0x50] sm:$0xff]  ;;  %v240_v37 = vld [vmem:[%s3202_s12 + $0x58] sm:$0xff] }
  0x26   : > { %v2339_v34 = vcombine.low %v231_v32, %v239_v33  ;;  %v2342_v39 = vcombine.high %v232_v36, %v240_v37  ;;  %v247_v48 = vld [vmem:[%s3202_s12 + $0x90] sm:$0xff]  ;;  %v256_v51 = vld [vmem:[%s3202_s12 + $0xd8] sm:$0xff] }
  0x27   : > { %2582 = vmatpush3.bf16.msra.mxu0 %v2939_v26  ;;  %v2971_v26 = vld [vmem:[%s3741_s1 + $0x108] sm:$0xff]   ;;  %v255_v49 = vld [vmem:[%s3202_s12 + $0xd0] sm:$0xff]  ;;  %v264_v2 = vld [vmem:[%s3202_s12 + $0x118] sm:$0xff] }
  0x28   : > { %2622 = vmatpush3.bf16.msra.mxu1 %v2940_v27  ;;  %2583 = vmatprep.subr.bf16.mxu0 %v2941_v28  ;;  %v2972_v27 = vld [vmem:[%s3741_s1 + $0x188] sm:$0xff]   ;;  %v2973_v28 = vld [vmem:[%s3741_s1 + $0x140] sm:$0xff]   ;;  %v2356_v52 = vcombine.high %v247_v48, %v255_v49  ;;  %v263_v0 = vld [vmem:[%s3202_s12 + $0x110] sm:$0xff] }
  0x29   : > { %2623 = vmatprep.subr.bf16.mxu1 %v2942_v29  ;;  %v2974_v29 = vld [vmem:[%s3741_s1 + $0x1c0] sm:$0xff]   ;;  %v271_v1 = vld [vmem:[%s3202_s12 + $0x150] sm:$0xff]  ;;  %v288_v20 = vld [vmem:[%s3202_s12 + $0x1d8] sm:$0xff] }
  0x2a   : > { %v2372_v3 = vcombine.high %v263_v0, %v271_v1  ;;  %v279_v16 = vld [vmem:[%s3202_s12 + $0x190] sm:$0xff] }
  0x2b   : > { %2584 = vmatpush3.bf16.msra.mxu0 %v2943_v30  ;;  %v2975_v30 = vld [vmem:[%s3741_s1 + $0x100] sm:$0xff]   ;;  %v287_v17 = vld [vmem:[%s3202_s12 + $0x1d0] sm:$0xff] }
  0x2c   : > { %2624 = vmatpush3.bf16.msra.mxu1 %v2944_v31  ;;  %2649 = vmatprep.subr.bf16.mxu0 %v2945_v40  ;;  %v2976_v31 = vld [vmem:[%s3741_s1 + $0x180] sm:$0xff]   ;;  %v2977_v40 = vld [vmem:[%s3741_s1 + $0x278] sm:$0xff]   ;;  %v2388_v18 = vcombine.high %v279_v16, %v287_v17 }
  0x2d   : > { %2689 = vmatprep.subr.bf16.mxu1 %v2946_v41  ;;  %v2978_v41 = vld [vmem:[%s3741_s1 + $0x2f8] sm:$0xff]  }
  0x2e   : > { %1677 = vmatmul.mubr.bf16.vlgmr.msra.gmra.mxu0 %v2335_v35  ;;  %v2340_v35 = vcombine.high %v231_v32, %v239_v33  ;;  %v233_v32 = vld [vmem:[%s3202_s12 + $0x20] sm:$0xff] }
  0x2f   : > { %1742 = vmatmul.mubr.bf16.vlgmr.msra.gmra.mxu1 %v2337_v38  ;;  %2650 = vmatpush3.bf16.msra.mxu0 %v2947_v42  ;;  %v2341_v38 = vcombine.low %v232_v36, %v240_v37  ;;  %v2979_v42 = vld [vmem:[%s3741_s1 + $0x238] sm:$0xff]   ;;  %v241_v33 = vld [vmem:[%s3202_s12 + $0x60] sm:$0xff] }
  0x30   : > { %2690 = vmatpush3.bf16.msra.mxu1 %v2948_v43  ;;  %2651 = vmatprep.subr.bf16.mxu0 %v2949_v44  ;;  %v2980_v43 = vld [vmem:[%s3741_s1 + $0x2b8] sm:$0xff]   ;;  %v2981_v44 = vld [vmem:[%s3741_s1 + $0x270] sm:$0xff]   ;;  %v2343_v36 = vcombine.low %v233_v32, %v241_v33  ;;  %v2344_v37 = vcombine.high %v233_v32, %v241_v33 }
  0x31   : > { %2691 = vmatprep.subr.bf16.mxu1 %v2950_v45  ;;  %1684 = vmatprep.mubr.bf16.mxu0 %v2352_v50  ;;  %v2982_v45 = vld [vmem:[%s3741_s1 + $0x2f0] sm:$0xff]   ;;  %v248_v50 = vld [vmem:[%s3202_s12 + $0x98] sm:$0xff] }
  0x32   : > { %1749 = vmatprep.mubr.bf16.mxu1 %v2354_v54  ;;  %v2355_v54 = vcombine.low %v247_v48, %v255_v49  ;;  %v249_v48 = vld [vmem:[%s3202_s12 + $0xa0] sm:$0xff]  ;;  %v235_v32 = vld [vmem:[%s3202_s12 + $0x30] sm:$0xff] }
  0x33   : > { %2652 = vmatpush3.bf16.msra.mxu0 %v2951_v46  ;;  %v2983_v46 = vld [vmem:[%s3741_s1 + $0x230] sm:$0xff]   ;;  %v257_v49 = vld [vmem:[%s3202_s12 + $0xe0] sm:$0xff] }
  0x34   : > { %2692 = vmatpush3.bf16.msra.mxu1 %v2952_v47  ;;  %2653 = vmatprep.subr.bf16.mxu0 %v2953_v56  ;;  %v2984_v47 = vld [vmem:[%s3741_s1 + $0x2b0] sm:$0xff]   ;;  %v2985_v56 = vld [vmem:[%s3741_s1 + $0x268] sm:$0xff]  }
  0x35   : > { %2693 = vmatprep.subr.bf16.mxu1 %v2954_v57  ;;  %v2986_v57 = vld [vmem:[%s3741_s1 + $0x2e8] sm:$0xff]   ;;  %v243_v33 = vld [vmem:[%s3202_s12 + $0x70] sm:$0xff] }
  0x36   : > { %1685 = vmatmul.mubr.bf16.gmra.mxu0 %v2351_v53  ;;  %v2358_v53 = vcombine.high %v248_v50, %v256_v51 }
  0x37   : > { %1750 = vmatmul.mubr.bf16.gmra.mxu1 %v2353_v55  ;;  %2654 = vmatpush3.bf16.msra.mxu0 %v2955_v58  ;;  %v2357_v55 = vcombine.low %v248_v50, %v256_v51  ;;  %v2987_v58 = vld [vmem:[%s3741_s1 + $0x228] sm:$0xff]   ;;  %v2360_v51 = vcombine.high %v249_v48, %v257_v49 }
  0x38   : > { %2694 = vmatpush3.bf16.msra.mxu1 %v2956_v59  ;;  %2655 = vmatprep.subr.bf16.mxu0 %v2957_v60  ;;  %v2988_v59 = vld [vmem:[%s3741_s1 + $0x2a8] sm:$0xff]   ;;  %v2989_v60 = vld [vmem:[%s3741_s1 + $0x260] sm:$0xff]  }
  0x39   : > { %2695 = vmatprep.subr.bf16.mxu1 %v2958_v61  ;;  %1692 = vmatprep.mubr.bf16.mxu0 %v2368_v4  ;;  %v2990_v61 = vld [vmem:[%s3741_s1 + $0x2e0] sm:$0xff]   ;;  %v272_v4 = vld [vmem:[%s3202_s12 + $0x158] sm:$0xff]  ;;  %v250_v50 = vld [vmem:[%s3202_s12 + $0xa8] sm:$0xff] }
  0x3a   : > { %1757 = vmatprep.mubr.bf16.mxu1 %v2370_v5  ;;  %v2371_v5 = vcombine.low %v263_v0, %v271_v1  ;;  %v265_v0 = vld [vmem:[%s3202_s12 + $0x120] sm:$0xff] }
  0x3b   : > { %2656 = vmatpush3.bf16.msra.mxu0 %v2959_v62  ;;  %v2991_v62 = vld [vmem:[%s3741_s1 + $0x220] sm:$0xff]  }
  0x3c   : > { %2696 = vmatpush3.bf16.msra.mxu1 %v2960_v63  ;;  %2657 = vmatprep.subr.bf16.mxu0 %v2961_v8  ;;  %v2992_v63 = vld [vmem:[%s3741_s1 + $0x2a0] sm:$0xff]   ;;  %v2993_v8 = vld [vmem:[%s3741_s1 + $0x258] sm:$0xff]  }
  0x3d   : > { %2697 = vmatprep.subr.bf16.mxu1 %v2962_v9  ;;  %v2994_v9 = vld [vmem:[%s3741_s1 + $0x2d8] sm:$0xff]   ;;  %v273_v1 = vld [vmem:[%s3202_s12 + $0x160] sm:$0xff] }
  0x3e   : > { %1693 = vmatmul.mubr.bf16.gmra.mxu0 %v2367_v6  ;;  %v2374_v6 = vcombine.high %v264_v2, %v272_v4 }
  0x3f   : > { %1758 = vmatmul.mubr.bf16.gmra.mxu1 %v2369_v7  ;;  %2658 = vmatpush3.bf16.msra.mxu0 %v2963_v10  ;;  %v2373_v7 = vcombine.low %v264_v2, %v272_v4  ;;  %v2995_v10 = vld [vmem:[%s3741_s1 + $0x218] sm:$0xff]   ;;  %v2376_v2 = vcombine.high %v265_v0, %v273_v1  ;;  %v274_v4 = vld [vmem:[%s3202_s12 + $0x168] sm:$0xff] }
  0x40   : > { %2698 = vmatpush3.bf16.msra.mxu1 %v2964_v11  ;;  %2659 = vmatprep.subr.bf16.mxu0 %v2965_v12  ;;  %v2996_v11 = vld [vmem:[%s3741_s1 + $0x298] sm:$0xff]   ;;  %v2997_v12 = vld [vmem:[%s3741_s1 + $0x250] sm:$0xff]  }
  0x41   : > { %2699 = vmatprep.subr.bf16.mxu1 %v2966_v13  ;;  %1700 = vmatprep.mubr.bf16.mxu0 %v2384_v19  ;;  %v2998_v13 = vld [vmem:[%s3741_s1 + $0x2d0] sm:$0xff]   ;;  %v280_v19 = vld [vmem:[%s3202_s12 + $0x198] sm:$0xff] }
  0x42   : > { %1765 = vmatprep.mubr.bf16.mxu1 %v2386_v22  ;;  %v2390_v22 = vcombine.high %v280_v19, %v288_v20 }
  0x43   : > { %2660 = vmatpush3.bf16.msra.mxu0 %v2967_v14  ;;  %v2999_v14 = vld [vmem:[%s3741_s1 + $0x210] sm:$0xff]  }
  0x44   : > { %2700 = vmatpush3.bf16.msra.mxu1 %v2968_v15  ;;  %2661 = vmatprep.subr.bf16.mxu0 %v2969_v24  ;;  %v3000_v15 = vld [vmem:[%s3741_s1 + $0x290] sm:$0xff]   ;;  %v3001_v24 = vld [vmem:[%s3741_s1 + $0x248] sm:$0xff]  }
  0x45   : > { %2701 = vmatprep.subr.bf16.mxu1 %v2970_v25  ;;  %v3002_v25 = vld [vmem:[%s3741_s1 + $0x2c8] sm:$0xff]  }
  0x46   : > { %1701 = vmatmul.mubr.bf16.gmra.mxu0 %v2383_v21  ;;  %v2387_v21 = vcombine.low %v279_v16, %v287_v17  ;;  %v281_v16 = vld [vmem:[%s3202_s12 + $0x1a0] sm:$0xff] }
  0x47   : > { %1766 = vmatmul.mubr.bf16.gmra.mxu1 %v2385_v23  ;;  %2662 = vmatpush3.bf16.msra.mxu0 %v2971_v26  ;;  %v2389_v23 = vcombine.low %v280_v19, %v288_v20  ;;  %v3003_v26 = vld [vmem:[%s3741_s1 + $0x208] sm:$0xff]   ;;  %v289_v17 = vld [vmem:[%s3202_s12 + $0x1e0] sm:$0xff] }
  0x48   : > { %2702 = vmatpush3.bf16.msra.mxu1 %v2972_v27  ;;  %2663 = vmatprep.subr.bf16.mxu0 %v2973_v28  ;;  %v3004_v27 = vld [vmem:[%s3741_s1 + $0x288] sm:$0xff]   ;;  %v3005_v28 = vld [vmem:[%s3741_s1 + $0x240] sm:$0xff]   ;;  %v2392_v20 = vcombine.high %v281_v16, %v289_v17 }
  0x49   : > { %2703 = vmatprep.subr.bf16.mxu1 %v2974_v29  ;;  %1806 = vmatprep.mubr.bf16.mxu0 %v2340_v35  ;;  %v3006_v29 = vld [vmem:[%s3741_s1 + $0x2c0] sm:$0xff]   ;;  %v242_v35 = vld [vmem:[%s3202_s12 + $0x68] sm:$0xff] }
  0x4a   : > { %1871 = vmatprep.mubr.bf16.mxu1 %v2342_v39  ;;  %v290_v19 = vld [vmem:[%s3202_s12 + $0x1e8] sm:$0xff] }
  0x4b   : > { %2664 = vmatpush3.bf16.msra.mxu0 %v2975_v30  ;;  %v3007_v30 = vld [vmem:[%s3741_s1 + $0x200] sm:$0xff]  }
  0x4c   : > { %2704 = vmatpush3.bf16.msra.mxu1 %v2976_v31  ;;  %2729 = vmatprep.subr.bf16.mxu0 %v2977_v40  ;;  %v3008_v31 = vld [vmem:[%s3741_s1 + $0x280] sm:$0xff]   ;;  %v3009_v40 = vld [vmem:[%s3741_s1 + $0x378] sm:$0xff]  }
  0x4d   : > { %2769 = vmatprep.subr.bf16.mxu1 %v2978_v41  ;;  %v3010_v41 = vld [vmem:[%s3741_s1 + $0x3f8] sm:$0xff]  }
  0x4e   : > { %1807 = vmatmul.mubr.bf16.vlgmr.msra.gmra.mxu0 %v2339_v34  ;;  %v234_v34 = vld [vmem:[%s3202_s12 + $0x28] sm:$0xff] }
  0x4f   : > { %1872 = vmatmul.mubr.bf16.vlgmr.msra.gmra.mxu1 %v2341_v38  ;;  %2730 = vmatpush3.bf16.msra.mxu0 %v2979_v42  ;;  %v2345_v38 = vcombine.low %v234_v34, %v242_v35  ;;  %v2346_v39 = vcombine.high %v234_v34, %v242_v35  ;;  %v3011_v42 = vld [vmem:[%s3741_s1 + $0x338] sm:$0xff]   ;;  %v2347_v35 = vcombine.low %v235_v32, %v243_v33 }
  0x50   : > { %2770 = vmatpush3.bf16.msra.mxu1 %v2980_v43  ;;  %2731 = vmatprep.subr.bf16.mxu0 %v2981_v44  ;;  %v3012_v43 = vld [vmem:[%s3741_s1 + $0x3b8] sm:$0xff]   ;;  %v3013_v44 = vld [vmem:[%s3741_s1 + $0x370] sm:$0xff]  }
  0x51   : > { %2771 = vmatprep.subr.bf16.mxu1 %v2982_v45  ;;  %1814 = vmatprep.mubr.bf16.mxu0 %v2356_v52  ;;  %v3014_v45 = vld [vmem:[%s3741_s1 + $0x3f0] sm:$0xff]   ;;  %v258_v52 = vld [vmem:[%s3202_s12 + $0xe8] sm:$0xff]  ;;  %v236_v34 = vld [vmem:[%s3202_s12 + $0x38] sm:$0xff] }
  0x52   : > { %1879 = vmatprep.mubr.bf16.mxu1 %v2358_v53  ;;  %v2359_v53 = vcombine.low %v249_v48, %v257_v49  ;;  %v268_v48 = vld [vmem:[%s3202_s12 + $0x138] sm:$0xff] }
  0x53   : > { %2732 = vmatpush3.bf16.msra.mxu0 %v2983_v46  ;;  %v3015_v46 = vld [vmem:[%s3741_s1 + $0x330] sm:$0xff]   ;;  %v276_v49 = vld [vmem:[%s3202_s12 + $0x178] sm:$0xff] }
  0x54   : > { %2772 = vmatpush3.bf16.msra.mxu1 %v2984_v47  ;;  %2733 = vmatprep.subr.bf16.mxu0 %v2985_v56  ;;  %v3016_v47 = vld [vmem:[%s3741_s1 + $0x3b0] sm:$0xff]   ;;  %v3017_v56 = vld [vmem:[%s3741_s1 + $0x368] sm:$0xff]  }
  0x55   : > { %2773 = vmatprep.subr.bf16.mxu1 %v2986_v57  ;;  %v3018_v57 = vld [vmem:[%s3741_s1 + $0x3e8] sm:$0xff]  }
  0x56   : > { %1815 = vmatmul.mubr.bf16.gmra.mxu0 %v2355_v54  ;;  %v2362_v54 = vcombine.high %v250_v50, %v258_v52 }
  0x57   : > { %1880 = vmatmul.mubr.bf16.gmra.mxu1 %v2357_v55  ;;  %2734 = vmatpush3.bf16.msra.mxu0 %v2987_v58  ;;  %v2361_v55 = vcombine.low %v250_v50, %v258_v52  ;;  %v3019_v58 = vld [vmem:[%s3741_s1 + $0x328] sm:$0xff]  }
  0x58   : > { %2774 = vmatpush3.bf16.msra.mxu1 %v2988_v59  ;;  %2735 = vmatprep.subr.bf16.mxu0 %v2989_v60  ;;  %v3020_v59 = vld [vmem:[%s3741_s1 + $0x3a8] sm:$0xff]   ;;  %v3021_v60 = vld [vmem:[%s3741_s1 + $0x360] sm:$0xff]  }
  0x59   : > { %2775 = vmatprep.subr.bf16.mxu1 %v2990_v61  ;;  %1822 = vmatprep.mubr.bf16.mxu0 %v2372_v3  ;;  %v3022_v61 = vld [vmem:[%s3741_s1 + $0x3e0] sm:$0xff]   ;;  %v266_v3 = vld [vmem:[%s3202_s12 + $0x128] sm:$0xff] }
  0x5a   : > { %1887 = vmatprep.mubr.bf16.mxu1 %v2374_v6  ;;  %v2378_v6 = vcombine.high %v266_v3, %v274_v4 }
  0x5b   : > { %2736 = vmatpush3.bf16.msra.mxu0 %v2991_v62  ;;  %v3023_v62 = vld [vmem:[%s3741_s1 + $0x320] sm:$0xff]  }
  0x5c   : > { %2776 = vmatpush3.bf16.msra.mxu1 %v2992_v63  ;;  %2737 = vmatprep.subr.bf16.mxu0 %v2993_v8  ;;  %v3024_v63 = vld [vmem:[%s3741_s1 + $0x3a0] sm:$0xff]   ;;  %v3025_v8 = vld [vmem:[%s3741_s1 + $0x358] sm:$0xff]  }
  0x5d   : > { %2777 = vmatprep.subr.bf16.mxu1 %v2994_v9  ;;  %v3026_v9 = vld [vmem:[%s3741_s1 + $0x3d8] sm:$0xff]  }
  0x5e   : > { %1823 = vmatmul.mubr.bf16.gmra.mxu0 %v2371_v5  ;;  %v2375_v5 = vcombine.low %v265_v0, %v273_v1 }
  0x5f   : > { %1888 = vmatmul.mubr.bf16.gmra.mxu1 %v2373_v7  ;;  %2738 = vmatpush3.bf16.msra.mxu0 %v2995_v10  ;;  %v2377_v7 = vcombine.low %v266_v3, %v274_v4  ;;  %v3027_v10 = vld [vmem:[%s3741_s1 + $0x318] sm:$0xff]  }
  0x60   : > { %2778 = vmatpush3.bf16.msra.mxu1 %v2996_v11  ;;  %2739 = vmatprep.subr.bf16.mxu0 %v2997_v12  ;;  %v3028_v11 = vld [vmem:[%s3741_s1 + $0x398] sm:$0xff]   ;;  %v3029_v12 = vld [vmem:[%s3741_s1 + $0x350] sm:$0xff]  }
  0x61   : > { %2779 = vmatprep.subr.bf16.mxu1 %v2998_v13  ;;  %1830 = vmatprep.mubr.bf16.mxu0 %v2388_v18  ;;  %v3030_v13 = vld [vmem:[%s3741_s1 + $0x3d0] sm:$0xff]   ;;  %v282_v18 = vld [vmem:[%s3202_s12 + $0x1a8] sm:$0xff] }
  0x62   : > { %1895 = vmatprep.mubr.bf16.mxu1 %v2390_v22  ;;  %v2391_v22 = vcombine.low %v281_v16, %v289_v17 }
  0x63   : > { %2740 = vmatpush3.bf16.msra.mxu0 %v2999_v14  ;;  %v3031_v14 = vld [vmem:[%s3741_s1 + $0x310] sm:$0xff]  }
  0x64   : > { %2780 = vmatpush3.bf16.msra.mxu1 %v3000_v15  ;;  %2741 = vmatprep.subr.bf16.mxu0 %v3001_v24  ;;  %v3032_v15 = vld [vmem:[%s3741_s1 + $0x390] sm:$0xff]   ;;  %v3033_v24 = vld [vmem:[%s3741_s1 + $0x348] sm:$0xff]  }
  0x65   : > { %2781 = vmatprep.subr.bf16.mxu1 %v3002_v25  ;;  %v3034_v25 = vld [vmem:[%s3741_s1 + $0x3c8] sm:$0xff]  }
  0x66   : > { %1831 = vmatmul.mubr.bf16.gmra.mxu0 %v2387_v21  ;;  %v2394_v21 = vcombine.high %v282_v18, %v290_v19 }
  0x67   : > { %1896 = vmatmul.mubr.bf16.gmra.mxu1 %v2389_v23  ;;  %2742 = vmatpush3.bf16.msra.mxu0 %v3003_v26  ;;  %v2393_v23 = vcombine.low %v282_v18, %v290_v19  ;;  %v3035_v26 = vld [vmem:[%s3741_s1 + $0x308] sm:$0xff]  }
  0x68   : > { %2782 = vmatpush3.bf16.msra.mxu1 %v3004_v27  ;;  %2743 = vmatprep.subr.bf16.mxu0 %v3005_v28  ;;  %v3036_v27 = vld [vmem:[%s3741_s1 + $0x388] sm:$0xff]   ;;  %v3037_v28 = vld [vmem:[%s3741_s1 + $0x340] sm:$0xff]  }
  0x69   : > { %2783 = vmatprep.subr.bf16.mxu1 %v3006_v29  ;;  %1936 = vmatprep.mubr.bf16.mxu0 %v2344_v37  ;;  %v3038_v29 = vld [vmem:[%s3741_s1 + $0x3c0] sm:$0xff]   ;;  %v244_v37 = vld [vmem:[%s3202_s12 + $0x78] sm:$0xff] }
  0x6a   : > { %2001 = vmatprep.mubr.bf16.mxu1 %v2346_v39  ;;  %v259_v39 = vld [vmem:[%s3202_s12 + $0xf0] sm:$0xff] }
  0x6b   : > { %2744 = vmatpush3.bf16.msra.mxu0 %v3007_v30  ;;  %v3039_v30 = vld [vmem:[%s3741_s1 + $0x300] sm:$0xff]  }
  0x6c   : > { %2784 = vmatpush3.bf16.msra.mxu1 %v3008_v31  ;;  %2809 = vmatprep.subr.bf16.mxu0 %v3009_v40  ;;  %v3040_v31 = vld [vmem:[%s3741_s1 + $0x380] sm:$0xff]   ;;  %v2349_v40 = vcombine.low %v236_v34, %v244_v37 }
  0x6d   : > { %2849 = vmatprep.subr.bf16.mxu1 %v3010_v41  ;;  %v2350_v41 = vcombine.high %v236_v34, %v244_v37 }
  0x6e   : > { %1937 = vmatmul.mubr.bf16.vlgmr.msra.gmra.mxu0 %v2343_v36  ;;  %v2348_v36 = vcombine.high %v235_v32, %v243_v33 }
  0x6f   : > { %2002 = vmatmul.mubr.bf16.vlgmr.msra.gmra.mxu1 %v2345_v38  ;;  %2810 = vmatpush3.bf16.msra.mxu0 %v3011_v42  ;;  %v251_v38 = vld [vmem:[%s3202_s12 + $0xb0] sm:$0xff] }
  0x70   : > { %2850 = vmatpush3.bf16.msra.mxu1 %v3012_v43  ;;  %2811 = vmatprep.subr.bf16.mxu0 %v3013_v44  ;;  %v2364_v42 = vcombine.high %v251_v38, %v259_v39  ;;  %v252_v43 = vld [vmem:[%s3202_s12 + $0xb8] sm:$0xff]  ;;  %v2363_v50 = vcombine.low %v251_v38, %v259_v39 }
  0x71   : > { %2851 = vmatprep.subr.bf16.mxu1 %v3014_v45  ;;  %1944 = vmatprep.mubr.bf16.mxu0 %v2360_v51  ;;  %v260_v44 = vld [vmem:[%s3202_s12 + $0xf8] sm:$0xff] }
  0x72   : > { %2009 = vmatprep.mubr.bf16.mxu1 %v2362_v54  ;;  %v2366_v45 = vcombine.high %v252_v43, %v260_v44  ;;  %v2365_v51 = vcombine.low %v252_v43, %v260_v44  ;;  %v283_v54 = vld [vmem:[%s3202_s12 + $0x1b0] sm:$0xff] }
  0x73   : > { %2812 = vmatpush3.bf16.msra.mxu0 %v3015_v46  ;;  %v267_v46 = vld [vmem:[%s3202_s12 + $0x130] sm:$0xff] }
  0x74   : > { %2852 = vmatpush3.bf16.msra.mxu1 %v3016_v47  ;;  %2813 = vmatprep.subr.bf16.mxu0 %v3017_v56  ;;  %v275_v47 = vld [vmem:[%s3202_s12 + $0x170] sm:$0xff]  ;;  %v284_v56 = vld [vmem:[%s3202_s12 + $0x1b8] sm:$0xff] }
  0x75   : > { %2853 = vmatprep.subr.bf16.mxu1 %v3018_v57  ;;  %v2380_v52 = vcombine.high %v267_v46, %v275_v47  ;;  %v292_v57 = vld [vmem:[%s3202_s12 + $0x1f8] sm:$0xff] }
  0x76   : > { %1945 = vmatmul.mubr.bf16.gmra.mxu0 %v2359_v53  ;;  %v2382_v53 = vcombine.high %v268_v48, %v276_v49 }
  0x77   : > { %2010 = vmatmul.mubr.bf16.gmra.mxu1 %v2361_v55  ;;  %2814 = vmatpush3.bf16.msra.mxu0 %v3019_v58  ;;  %v291_v55 = vld [vmem:[%s3202_s12 + $0x1f0] sm:$0xff]  ;;  %v2379_v58 = vcombine.low %v267_v46, %v275_v47  ;;  %s2333_s12 = sshll.u32 %s3781_s25, 2 }
  0x78   : > { %2854 = vmatpush3.bf16.msra.mxu1 %v3020_v59  ;;  %2815 = vmatprep.subr.bf16.mxu0 %v3021_v60  ;;  %v2381_v59 = vcombine.low %v268_v48, %v276_v49  ;;  %v2396_v60 = vcombine.high %v283_v54, %v291_v55  ;;  %s3708_s8 = scalar_lea.vmem %s3743_s3, %s2333_s12 }
  0x79   : > { %2855 = vmatprep.subr.bf16.mxu1 %v3022_v61  ;;  %1952 = vmatprep.mubr.bf16.mxu0 %v2376_v2  ;;  %v2398_v61 = vcombine.high %v284_v56, %v292_v57  ;;  %v2334_v2 = vld [vmem:[%s3742_s2] ss:$0 sm:$0xff] }
  0x7a   : > { %2017 = vmatprep.mubr.bf16.mxu1 %v2378_v6 }
  0x7b   : > { %2816 = vmatpush3.bf16.msra.mxu0 %v3023_v62  ;;  %v2395_v62 = vcombine.low %v283_v54, %v291_v55 }
  0x7c   : > { %2856 = vmatpush3.bf16.msra.mxu1 %v3024_v63  ;;  %2817 = vmatprep.subr.bf16.mxu0 %v3025_v8  ;;  %v2397_v63 = vcombine.low %v284_v56, %v292_v57 }
  0x7d   : > { %2857 = vmatprep.subr.bf16.mxu1 %v3026_v9 }
  0x7e   : > { %1953 = vmatmul.mubr.bf16.gmra.mxu0 %v2375_v5 }
  0x7f   : > { %2018 = vmatmul.mubr.bf16.gmra.mxu1 %v2377_v7  ;;  %2818 = vmatpush3.bf16.msra.mxu0 %v3027_v10 }
  0x80   : > { %2858 = vmatpush3.bf16.msra.mxu1 %v3028_v11  ;;  %2819 = vmatprep.subr.bf16.mxu0 %v3029_v12 }
  0x81   : > { %2859 = vmatprep.subr.bf16.mxu1 %v3030_v13  ;;  %1960 = vmatprep.mubr.bf16.mxu0 %v2392_v20 }
  0x82   : > { %2025 = vmatprep.mubr.bf16.mxu1 %v2394_v21 }
  0x83   : > { %2820 = vmatpush3.bf16.msra.mxu0 %v3031_v14 }
  0x84   : > { %2860 = vmatpush3.bf16.msra.mxu1 %v3032_v15  ;;  %2821 = vmatprep.subr.bf16.mxu0 %v3033_v24 }
  0x85   : > { %2861 = vmatprep.subr.bf16.mxu1 %v3034_v25 }
  0x86   : > { %1961 = vmatmul.mubr.bf16.gmra.mxu0 %v2391_v22 }
  0x87   : > { %2026 = vmatmul.mubr.bf16.gmra.mxu1 %v2393_v23  ;;  %2822 = vmatpush3.bf16.msra.mxu0 %v3035_v26 }
  0x88   : > { %2862 = vmatpush3.bf16.msra.mxu1 %v3036_v27  ;;  %2823 = vmatprep.subr.bf16.mxu0 %v3037_v28 }
  0x89   : > { %2863 = vmatprep.subr.bf16.mxu1 %v3038_v29  ;;  %2066 = vmatprep.mubr.bf16.mxu0 %v2348_v36 }
  0x8a   : > { %2131 = vmatprep.mubr.bf16.mxu1 %v2350_v41 }
  0x8b   : > { %2824 = vmatpush3.bf16.msra.mxu0 %v3039_v30 }
  0x8c   : > { %2864 = vmatpush3.bf16.msra.mxu1 %v3040_v31 }
  0x8e   : > { %2067 = vmatmul.mubr.bf16.vlgmr.msra.gmra.mxu0 %v2347_v35 }
  0x8f   : > { %2132 = vmatmul.mubr.bf16.vlgmr.msra.gmra.mxu1 %v2349_v40  ;;  %2074 = vmatprep.mubr.bf16.mxu0 %v2364_v42 }
  0x90   : > { %2139 = vmatprep.mubr.bf16.mxu1 %v2366_v45 }
  0x96   : > { %2075 = vmatmul.mubr.bf16.gmra.mxu0 %v2363_v50 }
  0x97   : > { %2140 = vmatmul.mubr.bf16.gmra.mxu1 %v2365_v51  ;;  %2082 = vmatprep.mubr.bf16.mxu0 %v2380_v52 }
  0x98   : > { %2147 = vmatprep.mubr.bf16.mxu1 %v2382_v53 }
  0x9e   : > { %2083 = vmatmul.mubr.bf16.gmra.mxu0 %v2379_v58 }
  0x9f   : > { %2148 = vmatmul.mubr.bf16.gmra.mxu1 %v2381_v59  ;;  %2090 = vmatprep.mubr.bf16.mxu0 %v2396_v60 }
  0xa0   : > { %2155 = vmatprep.mubr.bf16.mxu1 %v2398_v61 }
  0xa6   : > { %2091 = vmatmul.mubr.bf16.gmra.mxu0 %v2395_v62 }
  0xa7   : > { %2156 = vmatmul.mubr.bf16.gmra.mxu1 %v2397_v63 }
  0xee   : > { %v2585_v0 = vpop.f32.mrf.mxu0 }
  0xef   : > { %v2625_v1 = vpop.f32.mrf.mxu1 }
  0xf0   : > { %v2586_v3 = vpop.f32.mrf.mxu0 }
  0xf1   : > { %v2587_v4 = vadd.f32 %v2586_v3, %v2585_v0  ;;  %v2626_v5 = vpop.f32.mrf.mxu1 }
  0xf2   : > { %v2627_v6 = vadd.f32 %v2626_v5, %v2625_v1  ;;  %v2588_v7 = vpop.f32.mrf.mxu0 }
  0xf3   : > { %v1679_v8 = vadd.f32 %v2587_v4, %v2334_v2  ;;  %v2628_v9 = vpop.f32.mrf.mxu1 }
  0xf4   : > { %v2589_v10 = vpop.f32.mrf.mxu0 }
  0xf5   : > { %v3565_v11 = vadd.f32 %v2627_v6, %v1679_v8  ;;  %v2590_v12 = vadd.f32 %v2589_v10, %v2588_v7  ;;  %v2629_v13 = vpop.f32.mrf.mxu1 }
  0xf6   : > { %v2630_v14 = vadd.f32 %v2629_v13, %v2628_v9  ;;  %v2591_v16 = vpop.f32.mrf.mxu0 }
  0xf7   : > { %v1682_v15 = vadd.f32 %v2590_v12, %v2334_v2  ;;  %v2631_v17 = vpop.f32.mrf.mxu1 }
  0xf8   : > { %v2592_v19 = vpop.f32.mrf.mxu0 }
  0xf9   : > { %v3567_v18 = vadd.f32 %v2630_v14, %v1682_v15  ;;  %v2593_v20 = vadd.f32 %v2592_v19, %v2591_v16  ;;  %v2632_v21 = vpop.f32.mrf.mxu1 }
  0xfa   : > { %v2633_v22 = vadd.f32 %v2632_v21, %v2631_v17  ;;  %v2594_v23 = vpop.f32.mrf.mxu0 }
  0xfb   : > { %v1687_v24 = vadd.f32 %v2593_v20, %v2334_v2  ;;  %v2634_v25 = vpop.f32.mrf.mxu1 }
  0xfc   : > { %v2595_v26 = vpop.f32.mrf.mxu0 }
  0xfd   : > { %v3569_v27 = vadd.f32 %v2633_v22, %v1687_v24  ;;  %v2596_v28 = vadd.f32 %v2595_v26, %v2594_v23  ;;  %v2635_v29 = vpop.f32.mrf.mxu1 }
  0xfe   : > { %v2636_v30 = vadd.f32 %v2635_v29, %v2634_v25  ;;  %v2597_v32 = vpop.f32.mrf.mxu0 }
  0xff   : > { %v1690_v31 = vadd.f32 %v2596_v28, %v2334_v2  ;;  %v2637_v33 = vpop.f32.mrf.mxu1 }
 0x100   : > { %v2598_v35 = vpop.f32.mrf.mxu0 }
 0x101   : > { %v3571_v34 = vadd.f32 %v2636_v30, %v1690_v31  ;;  %v2638_v36 = vpop.f32.mrf.mxu1  ;;  %v2599_v37 = vadd.f32 %v2598_v35, %v2597_v32 }
 0x102   : > { %v2639_v38 = vadd.f32 %v2638_v36, %v2637_v33  ;;  %v2600_v39 = vpop.f32.mrf.mxu0 }
 0x103   : > { %v2640_v40 = vpop.f32.mrf.mxu1  ;;  %v1695_v41 = vadd.f32 %v2599_v37, %v2334_v2 }
 0x104   : > { %v2601_v42 = vpop.f32.mrf.mxu0 }
 0x105   : > { %v2641_v43 = vpop.f32.mrf.mxu1  ;;  %v3573_v44 = vadd.f32 %v2639_v38, %v1695_v41  ;;  %v2602_v45 = vadd.f32 %v2601_v42, %v2600_v39 }
 0x106   : > { %v2642_v46 = vadd.f32 %v2641_v43, %v2640_v40  ;;  %v2603_v48 = vpop.f32.mrf.mxu0 }
 0x107   : > { %v1698_v47 = vadd.f32 %v2602_v45, %v2334_v2  ;;  %v2643_v49 = vpop.f32.mrf.mxu1 }
 0x108   : > { %v2604_v51 = vpop.f32.mrf.mxu0 }
 0x109   : > { %v3575_v50 = vadd.f32 %v2642_v46, %v1698_v47  ;;  %v2605_v52 = vadd.f32 %v2604_v51, %v2603_v48  ;;  %v2644_v53 = vpop.f32.mrf.mxu1 }
 0x10a   : > { %v2645_v54 = vadd.f32 %v2644_v53, %v2643_v49  ;;  %v2606_v55 = vpop.f32.mrf.mxu0 }
 0x10b   : > { %v1703_v56 = vadd.f32 %v2605_v52, %v2334_v2  ;;  %v2646_v57 = vpop.f32.mrf.mxu1 }
 0x10c   : > { %v2607_v58 = vpop.f32.mrf.mxu0 }
 0x10d   : > { %v3577_v59 = vadd.f32 %v2645_v54, %v1703_v56  ;;  %v2608_v60 = vadd.f32 %v2607_v58, %v2606_v55  ;;  %v2647_v61 = vpop.f32.mrf.mxu1 }
 0x10e   : > { %v2648_v62 = vadd.f32 %v2647_v61, %v2646_v57  ;;  %v2665_v0 = vpop.f32.mrf.mxu0 }
 0x10f   : > { %3744 = vst [vmem:[#allocation2_spill] sm:$0xff] %v3577_v59  ;;  %v1706_v63 = vadd.f32 %v2608_v60, %v2334_v2  ;;  %v3579_v1 = vpop.f32.mrf.mxu1 }
 0x110   : > { %v2666_v4 = vpop.f32.mrf.mxu0 }
 0x111   : > { %v3581_v3 = vadd.f32 %v2648_v62, %v1706_v63  ;;  %v2706_v5 = vpop.f32.mrf.mxu1 }
 0x112   : > { %v2668_v6 = vpop.f32.mrf.mxu0 }
 0x113   : > { %3745 = vst [vmem:[#allocation3_spill] sm:$0xff] %v3581_v3  ;;  %v3583_v7 = vpop.f32.mrf.mxu1 }
 0x114   : > { %v2669_v8 = vpop.f32.mrf.mxu0 }
 0x115   : > { %v3585_v9 = vpop.f32.mrf.mxu1 }
 0x116   : > { %v2671_v10 = vpop.f32.mrf.mxu0 }
 0x117   : > { %v3587_v12 = vpop.f32.mrf.mxu1 }
 0x118   : > { %v2672_v13 = vpop.f32.mrf.mxu0 }
 0x119   : > { %v3589_v14 = vpop.f32.mrf.mxu1 }
 0x11a   : > { %v3591_v2 = vpop.f32.mrf.mxu0 }
 0x11b   : > { %v3593_v15 = vpop.f32.mrf.mxu1 }
 0x11c   : > { %v2675_v16 = vpop.f32.mrf.mxu0 }
 0x11d   : > { %v3595_v17 = vpop.f32.mrf.mxu1 }
 0x11e   : > { %v3597_v19 = vpop.f32.mrf.mxu0 }
 0x11f   : > { %v3599_v20 = vpop.f32.mrf.mxu1 }
 0x120   : > { %v3601_v21 = vpop.f32.mrf.mxu0 }
 0x121   : > { %v3603_v22 = vpop.f32.mrf.mxu1 }
 0x122   : > { %v3605_v23 = vpop.f32.mrf.mxu0 }
 0x123   : > { %v3607_v24 = vpop.f32.mrf.mxu1 }
 0x124   : > { %v3609_v25 = vpop.f32.mrf.mxu0 }
 0x125   : > { %v3611_v26 = vpop.f32.mrf.mxu1 }
 0x126   : > { %v3613_v28 = vpop.f32.mrf.mxu0 }
 0x127   : > { %v3615_v29 = vpop.f32.mrf.mxu1 }
 0x128   : > { %3746 = vst [vmem:[#allocation4_spill] sm:$0xff] %v3615_v29  ;;  %v3617_v30 = vpop.f32.mrf.mxu0  ;;  %v2670_v29 = vadd.f32 %v2669_v8, %v2668_v6 }
 0x129   : > { %v3619_v31 = vpop.f32.mrf.mxu1 }
 0x12a   : > { %3747 = vst [vmem:[#allocation5_spill] sm:$0xff] %v3619_v31  ;;  %v3621_v32 = vpop.f32.mrf.mxu0 }
 0x12b   : > { %3748 = vst [vmem:[#allocation6_spill] sm:$0xff] %v3621_v32  ;;  %v3623_v33 = vpop.f32.mrf.mxu1 }
 0x12c   : > { %3749 = vst [vmem:[#allocation7_spill] sm:$0xff] %v3623_v33  ;;  %v3625_v35 = vpop.f32.mrf.mxu0 }
 0x12d   : > { %3750 = vst [vmem:[#allocation8_spill] sm:$0xff] %v3625_v35  ;;  %v3627_v36 = vpop.f32.mrf.mxu1 }
 0x12e   : > { %3751 = vst [vmem:[#allocation9_spill] sm:$0xff] %v3627_v36  ;;  %v2745_v37 = vpop.f32.mrf.mxu0  ;;  %v2667_v36 = vadd.f32 %v2666_v4, %v2665_v0  ;;  %v1812_v0 = vadd.f32 %v2670_v29, %v3567_v18  ;;  %v2673_v4 = vadd.f32 %v2672_v13, %v2671_v10  ;;  %v2713_v18 = vadd.f32 %v3589_v14, %v3587_v12 }
 0x12f   : > { %v2785_v38 = vpop.f32.mrf.mxu1  ;;  %v2716_v12 = vadd.f32 %v3595_v17, %v3593_v15  ;;  %v2719_v17 = vadd.f32 %v3603_v22, %v3599_v20 }
 0x130   : > { %v2746_v39 = vpop.f32.mrf.mxu0  ;;  %v1809_v31 = vadd.f32 %v2667_v36, %v3565_v11  ;;  %v2710_v11 = vadd.f32 %v3585_v9, %v3583_v7  ;;  %v2679_v9 = vadd.f32 %v3601_v21, %v3597_v19  ;;  %v2682_v19 = vadd.f32 %v3609_v25, %v3605_v23 }
 0x131   : > { %v2786_v40 = vpop.f32.mrf.mxu1  ;;  %v2747_v32 = vadd.f32 %v2746_v39, %v2745_v37  ;;  %v1817_v37 = vadd.f32 %v2673_v4, %v3569_v27 }
 0x132   : > { %v2748_v41 = vpop.f32.mrf.mxu0  ;;  %v1877_v36 = vadd.f32 %v2710_v11, %v1812_v0  ;;  %v2787_v39 = vadd.f32 %v2786_v40, %v2785_v38  ;;  %v1825_v4 = vadd.f32 %v2679_v9, %v3573_v44 }
 0x133   : > { %v2788_v42 = vpop.f32.mrf.mxu1 }
 0x134   : > { %v2749_v43 = vpop.f32.mrf.mxu0 }
 0x135   : > { %v2789_v45 = vpop.f32.mrf.mxu1  ;;  %v2750_v8 = vadd.f32 %v2749_v43, %v2748_v41 }
 0x136   : > { %v2751_v46 = vpop.f32.mrf.mxu0 }
 0x137   : > { %v3629_v47 = vpop.f32.mrf.mxu1  ;;  %v1942_v29 = vadd.f32 %v2750_v8, %v1877_v36  ;;  %v1890_v8 = vadd.f32 %v2719_v17, %v1825_v4  ;;  %v2722_v36 = vadd.f32 %v3611_v26, %v3607_v24 }
 0x138   : > { %v2752_v48 = vpop.f32.mrf.mxu0 }
 0x139   : > { %v3631_v49 = vpop.f32.mrf.mxu1 }
 0x13a   : > { %v2754_v51 = vpop.f32.mrf.mxu0 }
 0x13b   : > { %v3633_v52 = vpop.f32.mrf.mxu1 }
 0x13c   : > { %v2755_v53 = vpop.f32.mrf.mxu0 }
 0x13d   : > { %v3635_v54 = vpop.f32.mrf.mxu1  ;;  %v2756_v14 = vadd.f32 %v2755_v53, %v2754_v51 }
 0x13e   : > { %v3637_v55 = vpop.f32.mrf.mxu0 }
 0x13f   : > { %v3639_v56 = vpop.f32.mrf.mxu1 }
 0x140   : > { %3752 = vst [vmem:[#allocation10_spill] sm:$0xff] %v3639_v56  ;;  %v3641_v57 = vpop.f32.mrf.mxu0 }
 0x141   : > { %v3643_v58 = vpop.f32.mrf.mxu1  ;;  %v2759_v51 = vadd.f32 %v3641_v57, %v3637_v55 }
 0x142   : > { %3753 = vst [vmem:[#allocation11_spill] sm:$0xff] %v3643_v58  ;;  %v3645_v60 = vpop.f32.mrf.mxu0  ;;  %v2707_v58 = vadd.f32 %v2706_v5, %v3579_v1  ;;  %v2676_v1 = vadd.f32 %v2675_v16, %v3591_v2  ;;  %v1882_v16 = vadd.f32 %v2713_v18, %v1817_v37 }
 0x143   : > { %v3647_v61 = vpop.f32.mrf.mxu1 }
 0x144   : > { %3754 = vst [vmem:[#allocation12_spill] sm:$0xff] %v3647_v61  ;;  %v3649_v62 = vpop.f32.mrf.mxu0  ;;  %v1820_v7 = vadd.f32 %v2676_v1, %v3571_v34  ;;  %v2796_v1 = vadd.f32 %v3635_v54, %v3633_v52 }
 0x145   : > { %v3651_v63 = vpop.f32.mrf.mxu1 }
 0x146   : > { %3755 = vst [vmem:[#allocation13_spill] sm:$0xff] %v3651_v63  ;;  %v3653_v33 = vpop.f32.mrf.mxu0  ;;  %v1874_v63 = vadd.f32 %v2707_v58, %v1809_v31  ;;  %v2753_v58 = vadd.f32 %v2752_v48, %v2751_v46  ;;  %v1885_v34 = vadd.f32 %v2716_v12, %v1820_v7  ;;  %v3762_v7 = vld [vmem:[#allocation8_spill] sm:$0xff] }
 0x147   : > { %3756 = vst [vmem:[#allocation14_spill] sm:$0xff] %v3653_v33  ;;  %v3655_v3 = vpop.f32.mrf.mxu1  ;;  %v3763_v26 = vld [vmem:[#allocation10_spill] sm:$0xff] }
 0x148   : > { %3757 = vst [vmem:[#allocation15_spill] sm:$0xff] %v3655_v3  ;;  %v3658_v56 = vpop.f32.mrf.mxu0  ;;  %v1939_v6 = vadd.f32 %v2747_v32, %v1874_v63  ;;  %v2790_v32 = vadd.f32 %v2789_v45, %v2788_v42  ;;  %v1947_v46 = vadd.f32 %v2753_v58, %v1882_v16  ;;  %v1950_v45 = vadd.f32 %v2756_v14, %v1885_v34  ;;  %v3761_v58 = vld [vmem:[#allocation6_spill] sm:$0xff] }
 0x149   : > { %v3660_v35 = vpop.f32.mrf.mxu1  ;;  %v2688_v9 = vadd.f32 %v3762_v7, %v3761_v58 }
 0x14a   : > { %v3663_v61 = vpop.f32.mrf.mxu0  ;;  %v2004_v13 = vadd.f32 %v2787_v39, %v1939_v6  ;;  %v2007_v43 = vadd.f32 %v2790_v32, %v1942_v29  ;;  %v2015_v37 = vadd.f32 %v2796_v1, %v1950_v45  ;;  %v1955_v39 = vadd.f32 %v2759_v51, %v1890_v8 }
 0x14b   : > { %v3665_v59 = vpop.f32.mrf.mxu1 }
 0x14c   : > { %3758 = vst [vmem:[#allocation16_spill] sm:$0xff] %v3665_v59  ;;  %v3668_v33 = vpop.f32.mrf.mxu0 }
 0x14d   : > { %v3670_v3 = vpop.f32.mrf.mxu1  ;;  %v2768_v8 = vadd.f32 %v3668_v33, %v3663_v61 }
 0x14e   : > { %3759 = vst [vmem:[#allocation17_spill] sm:$0xff] %v3670_v3  ;;  %v2825_v5 = vpop.f32.mrf.mxu0 }
 0x14f   : > { %v2865_v31 = vpop.f32.mrf.mxu1 }
 0x150   : > { %v2826_v10 = vpop.f32.mrf.mxu0 }
 0x151   : > { %v2827_v3 = vadd.f32 %v2826_v10, %v2825_v5  ;;  %v2866_v59 = vpop.f32.mrf.mxu1 }
 0x152   : > { %v2828_v2 = vpop.f32.mrf.mxu0  ;;  %v2867_v38 = vadd.f32 %v2866_v59, %v2865_v31  ;;  %v2793_v59 = vadd.f32 %v3631_v49, %v3629_v47  ;;  %v1828_v47 = vadd.f32 %v2682_v19, %v3575_v50  ;;  %v2685_v49 = vadd.f32 %v3617_v30, %v3613_v28 }
 0x153   : > { %v2069_v27 = vadd.f32 %v2827_v3, %v2004_v13  ;;  %v2868_v40 = vpop.f32.mrf.mxu1  ;;  %v2762_v50 = vadd.f32 %v3649_v62, %v3645_v60  ;;  %v3760_v13 = vld [vmem:[#allocation2_spill] sm:$0xff]  ;;  %v3764_v60 = vld [vmem:[#allocation11_spill] sm:$0xff] }
 0x154   : > { %v2829_v41 = vpop.f32.mrf.mxu0  ;;  %v2012_v44 = vadd.f32 %v2793_v59, %v1947_v46  ;;  %v1893_v54 = vadd.f32 %v2722_v36, %v1828_v47  ;;  %v1833_v29 = vadd.f32 %v2685_v49, %v3760_v13  ;;  %v2799_v62 = vadd.f32 %v3764_v60, %v3763_v26  ;;  %v3773_v36 = vld [vmem:[#allocation15_spill] sm:$0xff]  ;;  %v3774_v13 = vld [vmem:[#allocation16_spill] sm:$0xff] }
 0x155   : > { %v2134_v48 = vadd.f32 %v2867_v38, %v2069_v27  ;;  %v2830_v63 = vadd.f32 %v2829_v41, %v2828_v2  ;;  %v2869_v0 = vpop.f32.mrf.mxu1  ;;  %v3765_v38 = vld [vmem:[#allocation4_spill] sm:$0xff]  ;;  %v3767_v41 = vld [vmem:[#allocation14_spill] sm:$0xff] }
 0x156   : > { %v2831_v21 = vpop.f32.mrf.mxu0  ;;  %v2870_v42 = vadd.f32 %v2869_v0, %v2868_v40  ;;  %v3766_v40 = vld [vmem:[#allocation5_spill] sm:$0xff]  ;;  %v1958_v14 = vadd.f32 %v2762_v50, %v1893_v54 }
 0x157   : > { %v2072_v3 = vadd.f32 %v2830_v63, %v2007_v43  ;;  %v2871_v15 = vpop.f32.mrf.mxu1  ;;  %v2164_v11 = vmul.f32 0.2, %v2134_v48  ;;  %v2725_v12 = vadd.f32 %v3766_v40, %v3765_v38  ;;  %v2765_v43 = vadd.f32 %v3658_v56, %v3767_v41  ;;  %v3772_v56 = vld [vmem:[#allocation9_spill] sm:$0xff] }
 0x158   : > { %v2832_v53 = vpop.f32.mrf.mxu0 }
 0x159   : > { %v2137_v6 = vadd.f32 %v2870_v42, %v2072_v3  ;;  %v2833_v23 = vadd.f32 %v2832_v53, %v2831_v21  ;;  %v2872_v25 = vpop.f32.mrf.mxu1  ;;  %v2172_v18 = vmax.f32 %v2134_v48, %v2164_v11  ;;  %v2020_v48 = vadd.f32 %v2799_v62, %v1955_v39  ;;  %v3768_v21 = vld [vmem:[#allocation3_spill] sm:$0xff]  ;;  %v3769_v3 = vld [vmem:[#allocation12_spill] sm:$0xff]  ;;  %v3770_v42 = vld [vmem:[#allocation13_spill] sm:$0xff] }
 0x15a   : > { %v2834_v20 = vpop.f32.mrf.mxu0  ;;  %v2873_v55 = vadd.f32 %v2872_v25, %v2871_v15  ;;  %v1898_v19 = vadd.f32 %v2725_v12, %v1833_v29  ;;  %v1836_v59 = vadd.f32 %v2688_v9, %v3768_v21  ;;  %v2802_v15 = vadd.f32 %v3770_v42, %v3769_v3  ;;  %v3771_v11 = vld [vmem:[#allocation7_spill] sm:$0xff]  ;;  %v3775_v29 = vld [vmem:[#allocation17_spill] sm:$0xff] }
 0x15b   : > { %v2165_v22 = vmul.f32 0.2, %v2137_v6  ;;  %v2077_v5 = vadd.f32 %v2833_v23, %v2012_v44  ;;  %v2874_v57 = vpop.f32.mrf.mxu1  ;;  %v2808_v58 = vadd.f32 %v3775_v29, %v3774_v13 }
 0x15c   : > { %v2835_v31 = vpop.f32.mrf.mxu0  ;;  %v2023_v23 = vadd.f32 %v2802_v15, %v1958_v14  ;;  %v1963_v25 = vadd.f32 %v2765_v43, %v1898_v19 }
 0x15d   : > { %v2173_v28 = vmax.f32 %v2137_v6, %v2165_v22  ;;  %v2142_v30 = vadd.f32 %v2873_v55, %v2077_v5  ;;  %v2836_v10 = vadd.f32 %v2835_v31, %v2834_v20  ;;  %v2875_v52 = vpop.f32.mrf.mxu1  ;;  %v2728_v6 = vadd.f32 %v3772_v56, %v3771_v11 }
 0x15e   : > { %v2837_v24 = vpop.f32.mrf.mxu0  ;;  %v2876_v32 = vadd.f32 %v2875_v52, %v2874_v57 }
 0x15f   : > { %v2549_v2 = vpack.c.bf16 %v2173_v28, %v2172_v18  ;;  %v2080_v16 = vadd.f32 %v2836_v10, %v2015_v37  ;;  %v2877_v27 = vpop.f32.mrf.mxu1  ;;  %v2166_v63 = vmul.f32 0.2, %v2142_v30  ;;  %v1901_v55 = vadd.f32 %v2728_v6, %v1836_v59 }
 0x160   : > { %v2838_v46 = vpop.f32.mrf.mxu0  ;;  %v2805_v37 = vadd.f32 %v3660_v35, %v3773_v36 }
 0x161   : > { %2550 = vst [vmem:[%s3708_s8] sm:$0xff] %v2549_v2   ;;  %v2145_v0 = vadd.f32 %v2876_v32, %v2080_v16  ;;  %v2839_v34 = vadd.f32 %v2838_v46, %v2837_v24  ;;  %v2878_v4 = vpop.f32.mrf.mxu1  ;;  %v2174_v49 = vmax.f32 %v2142_v30, %v2166_v63  ;;  %v1966_v28 = vadd.f32 %v2768_v8, %v1901_v55 }
 0x162   : > { %v2840_v17 = vpop.f32.mrf.mxu0  ;;  %v2879_v53 = vadd.f32 %v2878_v4, %v2877_v27  ;;  %v2028_v52 = vadd.f32 %v2805_v37, %v1963_v25 }
 0x163   : > { %v2167_v45 = vmul.f32 0.2, %v2145_v0  ;;  %v2085_v51 = vadd.f32 %v2839_v34, %v2020_v48  ;;  %v2880_v44 = vpop.f32.mrf.mxu1  ;;  %v2031_v60 = vadd.f32 %v2808_v58, %v1966_v28 }
 0x164   : > { %v2841_v47 = vpop.f32.mrf.mxu0 }
 0x165   : > { %v2175_v1 = vmax.f32 %v2145_v0, %v2167_v45  ;;  %v2150_v20 = vadd.f32 %v2879_v53, %v2085_v51  ;;  %v2842_v22 = vadd.f32 %v2841_v47, %v2840_v17  ;;  %v2881_v5 = vpop.f32.mrf.mxu1 }
 0x166   : > { %v2843_v57 = vpop.f32.mrf.mxu0  ;;  %v2882_v31 = vadd.f32 %v2881_v5, %v2880_v44 }
 0x167   : > { %v2554_v39 = vpack.c.bf16 %v2175_v1, %v2174_v49  ;;  %v2088_v50 = vadd.f32 %v2842_v22, %v2023_v23  ;;  %v2883_v18 = vpop.f32.mrf.mxu1  ;;  %v2168_v33 = vmul.f32 0.2, %v2150_v20 }
 0x168   : > { %v2844_v10 = vpop.f32.mrf.mxu0 }
 0x169   : > { %2566 = vst [vmem:[%s3708_s8 + $0x8] sm:$0xff] %v2554_v39   ;;  %v2153_v61 = vadd.f32 %v2882_v31, %v2088_v50  ;;  %v2845_v30 = vadd.f32 %v2844_v10, %v2843_v57  ;;  %v2884_v54 = vpop.f32.mrf.mxu1  ;;  %v2176_v2 = vmax.f32 %v2150_v20, %v2168_v33 }
 0x16a   : > { %v2846_v7 = vpop.f32.mrf.mxu0  ;;  %v2885_v35 = vadd.f32 %v2884_v54, %v2883_v18 }
 0x16b   : > { %v2169_v9 = vmul.f32 0.2, %v2153_v61  ;;  %v2093_v24 = vadd.f32 %v2845_v30, %v2028_v52  ;;  %v2886_v26 = vpop.f32.mrf.mxu1 }
 0x16c   : > { %v2847_v62 = vpop.f32.mrf.mxu0 }
 0x16d   : > { %v2177_v16 = vmax.f32 %v2153_v61, %v2169_v9  ;;  %v2158_v32 = vadd.f32 %v2885_v35, %v2093_v24  ;;  %v2848_v27 = vadd.f32 %v2847_v62, %v2846_v7  ;;  %v2887_v38 = vpop.f32.mrf.mxu1 }
 0x16e   : > { %v2888_v14 = vadd.f32 %v2887_v38, %v2886_v26 }
 0x16f   : > { %v2559_v40 = vpack.c.bf16 %v2177_v16, %v2176_v2  ;;  %v2096_v12 = vadd.f32 %v2848_v27, %v2031_v60  ;;  %v2170_v41 = vmul.f32 0.2, %v2158_v32 }
 0x171   : > { %2567 = vst [vmem:[%s3708_s8 + $0x10] sm:$0xff] %v2559_v40   ;;  %v2161_v43 = vadd.f32 %v2888_v14, %v2096_v12  ;;  %v2178_v48 = vmax.f32 %v2158_v32, %v2170_v41 }
 0x173   : > { %v2171_v46 = vmul.f32 0.2, %v2161_v43 }
 0x175   : > { %v2179_v63 = vmax.f32 %v2161_v43, %v2171_v46 }
 0x177   : > { %v2564_v0 = vpack.c.bf16 %v2179_v63, %v2178_v48 }
 0x179   : > { %2568 = vst [vmem:[%s3708_s8 + $0x18] sm:$0xff] %v2564_v0  }
 0x17a PF: > { %s13_s14 = sadd.s32 1, %s3063_s14   ;;  %s3776_s12 = smov %s3059_s13 }
 0x17b   : > { %p10_p5 = scmp.ge.s32.totalorder %s13_s14, 4   ;;  %s3777_s13 = smov %s3779_s15 }
 0x17d   :  { %12 = sbr.rel (!%p10_p5) target bundleno = 2 (0x2), region = 68 }

// kernel: discriminator_forward.7
= control target key start
LH: loop header
LB: loop body
LE: loop exit
PB: predicated region body
PF: predicated region fallthrough
CT: control target
= control target key end

     0   :  { %s2244_s15 = smov 0   ;;  %s2677_s0 = inlined_call_operand.vmem [shape: bf16[32,2048], index: 0, kind: input, shape index: {}]   ;;  %s2678_s1 = inlined_call_operand.vmem [shape: bf16[2048,128], index: 1, kind: input, shape index: {}]   ;;  %s2679_s2 = inlined_call_operand.vmem [shape: f32[1,128], index: 2, kind: input, shape index: {}]   ;;  %s2680_s3 = inlined_call_operand.vmem [shape: f32[16,128], index: 3, kind: input, shape index: {}]   ;;  %s2681_s4 = inlined_call_operand.vmem [shape: f32[2,8,128], index: 4, kind: output, shape index: {}]  }
   0x1 LB: > { %s2250_s16 = sadd.s32 4294967295, %s2217_s15   ;;  %p1740_p0 = scmp.ge.s32.totalorder %s2217_s15, 1  ;;  %s2217_s15 = sphi %s2244_s15, %s14_s15  }
   0x2   : > { %p164_p1 = scmp.lt.s32.totalorder %s2217_s15, 3 }
   0x4   : > { %p165_p2 = pnand %p1740_p0, %p164_p1 }
   0x5   : > { %s1741_s25 = sshll.u32 (!%p165_p2), %s2250_s16, 1  ;;  %p197_p4 = scmp.lt.s32.totalorder (!%p165_p2), %s2250_s16, 1 }
   0x6   : > { %168 = sbr.rel (%p165_p2) target bundleno = 590 (0x24e), region = 36  ;;  %p191_p3 = scmp.lt.s32.totalorder (!%p165_p2), %s1741_s25, 3 }
   0xb   : > { %v2079_v0 = vld [vmem:[%s2678_s1 + $0x78] sm:$0xff]   ;;  %v2083_v4 = vld [vmem:[%s2678_s1 + $0x70] sm:$0xff]   ;;  %v2087_v8 = vld [vmem:[%s2678_s1 + $0x68] sm:$0xff]   ;;  %s2683_s25 = smov (!%p191_p3, %s1741_s25), 3  ;;  %s2685_s16 = smov (!%p197_p4, %s2250_s16), 1 }
   0xc   : > { %v2080_v1 = vld [vmem:[%s2678_s1 + $0xf8] sm:$0xff]   ;;  %1893 = vmatprep.subr.bf16.mxu0 %v2079_v0  ;;  %v2084_v5 = vld [vmem:[%s2678_s1 + $0xf0] sm:$0xff]   ;;  %v2088_v9 = vld [vmem:[%s2678_s1 + $0xe8] sm:$0xff]   ;;  %s1892_s24 = sshll.u32 %s2683_s25, 6  ;;  %s1744_s29 = sshll.u32 %s2685_s16, 3 }
   0xd   : > { %v2081_v2 = vld [vmem:[%s2678_s1 + $0x38] sm:$0xff]   ;;  %1915 = vmatprep.subr.bf16.mxu1 %v2080_v1  ;;  %v2085_v6 = vld [vmem:[%s2678_s1 + $0x30] sm:$0xff]   ;;  %v2089_v10 = vld [vmem:[%s2678_s1 + $0x28] sm:$0xff]   ;;  %s2348_s8 = scalar_lea.vmem %s2677_s0, %s1892_s24  ;;  %s200_s6 = scalar_lea.vmem %s2681_s4, %s1744_s29 }
   0xe   : > { %v2082_v3 = vld [vmem:[%s2678_s1 + $0xb8] sm:$0xff]   ;;  %1894 = vmatpush3.bf16.msra.mxu0 %v2081_v2  ;;  %v2086_v7 = vld [vmem:[%s2678_s1 + $0xb0] sm:$0xff]   ;;  %v2090_v11 = vld [vmem:[%s2678_s1 + $0xa8] sm:$0xff]  }
   0xf   : > { %1916 = vmatpush3.bf16.msra.mxu1 %v2082_v3  ;;  %1895 = vmatprep.subr.bf16.mxu0 %v2083_v4  ;;  %v2091_v12 = vld [vmem:[%s2678_s1 + $0x60] sm:$0xff]   ;;  %v2095_v16 = vld [vmem:[%s2678_s1 + $0x58] sm:$0xff]   ;;  %v2099_v20 = vld [vmem:[%s2678_s1 + $0x50] sm:$0xff]  }
  0x10   : > { %1917 = vmatprep.subr.bf16.mxu1 %v2084_v5  ;;  %v2092_v13 = vld [vmem:[%s2678_s1 + $0xe0] sm:$0xff]   ;;  %v2096_v17 = vld [vmem:[%s2678_s1 + $0xd8] sm:$0xff]   ;;  %v2100_v21 = vld [vmem:[%s2678_s1 + $0xd0] sm:$0xff]  }
  0x11   : > { %v2093_v14 = vld [vmem:[%s2678_s1 + $0x20] sm:$0xff]   ;;  %v2097_v18 = vld [vmem:[%s2678_s1 + $0x18] sm:$0xff]   ;;  %v2101_v22 = vld [vmem:[%s2678_s1 + $0x10] sm:$0xff]  }
  0x12   : > { %1896 = vmatpush3.bf16.msra.mxu0 %v2085_v6  ;;  %v2094_v15 = vld [vmem:[%s2678_s1 + $0xa0] sm:$0xff]   ;;  %v2098_v19 = vld [vmem:[%s2678_s1 + $0x98] sm:$0xff]   ;;  %v2102_v23 = vld [vmem:[%s2678_s1 + $0x90] sm:$0xff]  }
  0x13   : > { %1918 = vmatpush3.bf16.msra.mxu1 %v2086_v7  ;;  %1897 = vmatprep.subr.bf16.mxu0 %v2087_v8  ;;  %v2103_v24 = vld [vmem:[%s2678_s1 + $0x48] sm:$0xff]   ;;  %v2107_v28 = vld [vmem:[%s2678_s1 + $0x40] sm:$0xff]   ;;  %v2111_v40 = vld [vmem:[%s2678_s1 + $0x178] sm:$0xff]  }
  0x14   : > { %1919 = vmatprep.subr.bf16.mxu1 %v2088_v9  ;;  %v2104_v25 = vld [vmem:[%s2678_s1 + $0xc8] sm:$0xff]   ;;  %v2108_v29 = vld [vmem:[%s2678_s1 + $0xc0] sm:$0xff]   ;;  %v2112_v41 = vld [vmem:[%s2678_s1 + $0x1f8] sm:$0xff]  }
  0x15   : > { %v2105_v26 = vld [vmem:[%s2678_s1 + $0x8] sm:$0xff]   ;;  %v2109_v30 = vld [vmem:[%s2678_s1] sm:$0xff]   ;;  %v2113_v42 = vld [vmem:[%s2678_s1 + $0x138] sm:$0xff]  }
  0x16   : > { %1898 = vmatpush3.bf16.msra.mxu0 %v2089_v10  ;;  %v2106_v27 = vld [vmem:[%s2678_s1 + $0x88] sm:$0xff]   ;;  %v2110_v31 = vld [vmem:[%s2678_s1 + $0x80] sm:$0xff]   ;;  %v2114_v43 = vld [vmem:[%s2678_s1 + $0x1b8] sm:$0xff]  }
  0x17   : > { %1920 = vmatpush3.bf16.msra.mxu1 %v2090_v11  ;;  %1899 = vmatprep.subr.bf16.mxu0 %v2091_v12  ;;  %v202_v32 = vld [vmem:[%s2348_s8] sm:$0xff]  ;;  %v203_v34 = vld [vmem:[%s2348_s8 + $0x8] sm:$0xff]  ;;  %v2115_v44 = vld [vmem:[%s2678_s1 + $0x170] sm:$0xff]  }
  0x18   : > { %1921 = vmatprep.subr.bf16.mxu1 %v2092_v13  ;;  %v210_v33 = vld [vmem:[%s2348_s8 + $0x40] sm:$0xff]  ;;  %v211_v37 = vld [vmem:[%s2348_s8 + $0x48] sm:$0xff]  ;;  %v2116_v45 = vld [vmem:[%s2678_s1 + $0x1f0] sm:$0xff]  }
  0x19   : > { %v1746_v35 = vcombine.low %v202_v32, %v210_v33  ;;  %v1747_v36 = vcombine.high %v202_v32, %v210_v33  ;;  %v1748_v38 = vcombine.low %v203_v34, %v211_v37  ;;  %v1749_v39 = vcombine.high %v203_v34, %v211_v37  ;;  %v2117_v46 = vld [vmem:[%s2678_s1 + $0x130] sm:$0xff]   ;;  %v2119_v48 = vld [vmem:[%s2678_s1 + $0x168] sm:$0xff]   ;;  %v2123_v52 = vld [vmem:[%s2678_s1 + $0x160] sm:$0xff]  }
  0x1a   : > { %1900 = vmatpush3.bf16.msra.mxu0 %v2093_v14  ;;  %v2118_v47 = vld [vmem:[%s2678_s1 + $0x1b0] sm:$0xff]   ;;  %v2120_v49 = vld [vmem:[%s2678_s1 + $0x1e8] sm:$0xff]   ;;  %v2124_v53 = vld [vmem:[%s2678_s1 + $0x1e0] sm:$0xff]  }
  0x1b   : > { %1922 = vmatpush3.bf16.msra.mxu1 %v2094_v15  ;;  %1901 = vmatprep.subr.bf16.mxu0 %v2095_v16  ;;  %v2121_v50 = vld [vmem:[%s2678_s1 + $0x128] sm:$0xff]   ;;  %v2125_v54 = vld [vmem:[%s2678_s1 + $0x120] sm:$0xff]   ;;  %v2127_v56 = vld [vmem:[%s2678_s1 + $0x158] sm:$0xff]  }
  0x1c   : > { %1923 = vmatprep.subr.bf16.mxu1 %v2096_v17  ;;  %1361 = vmatprep.mubr.bf16.mxu0 %v1747_v36  ;;  %v2122_v51 = vld [vmem:[%s2678_s1 + $0x1a8] sm:$0xff]   ;;  %v2126_v55 = vld [vmem:[%s2678_s1 + $0x1a0] sm:$0xff]   ;;  %v2128_v57 = vld [vmem:[%s2678_s1 + $0x1d8] sm:$0xff]  }
  0x1d   : > { %1402 = vmatprep.mubr.bf16.mxu1 %v1749_v39  ;;  %v2129_v58 = vld [vmem:[%s2678_s1 + $0x118] sm:$0xff]   ;;  %v2131_v60 = vld [vmem:[%s2678_s1 + $0x150] sm:$0xff]   ;;  %v2135_v0 = vld [vmem:[%s2678_s1 + $0x148] sm:$0xff]  }
  0x1e   : > { %1902 = vmatpush3.bf16.msra.mxu0 %v2097_v18  ;;  %v2130_v59 = vld [vmem:[%s2678_s1 + $0x198] sm:$0xff]   ;;  %v2132_v61 = vld [vmem:[%s2678_s1 + $0x1d0] sm:$0xff]   ;;  %v2136_v1 = vld [vmem:[%s2678_s1 + $0x1c8] sm:$0xff]  }
  0x1f   : > { %1924 = vmatpush3.bf16.msra.mxu1 %v2098_v19  ;;  %1903 = vmatprep.subr.bf16.mxu0 %v2099_v20  ;;  %v2133_v62 = vld [vmem:[%s2678_s1 + $0x110] sm:$0xff]   ;;  %v2137_v2 = vld [vmem:[%s2678_s1 + $0x108] sm:$0xff]   ;;  %v2139_v4 = vld [vmem:[%s2678_s1 + $0x140] sm:$0xff]  }
  0x20   : > { %1925 = vmatprep.subr.bf16.mxu1 %v2100_v21  ;;  %v2134_v63 = vld [vmem:[%s2678_s1 + $0x190] sm:$0xff]   ;;  %v2138_v3 = vld [vmem:[%s2678_s1 + $0x188] sm:$0xff]   ;;  %v2140_v5 = vld [vmem:[%s2678_s1 + $0x1c0] sm:$0xff]  }
  0x21   : > { %v2141_v6 = vld [vmem:[%s2678_s1 + $0x100] sm:$0xff]   ;;  %v204_v8 = vld [vmem:[%s2348_s8 + $0x10] sm:$0xff]  ;;  %v205_v12 = vld [vmem:[%s2348_s8 + $0x18] sm:$0xff] }
  0x22   : > { %1904 = vmatpush3.bf16.msra.mxu0 %v2101_v22  ;;  %v2142_v7 = vld [vmem:[%s2678_s1 + $0x180] sm:$0xff]   ;;  %v212_v9 = vld [vmem:[%s2348_s8 + $0x50] sm:$0xff]  ;;  %v213_v13 = vld [vmem:[%s2348_s8 + $0x58] sm:$0xff] }
  0x23   : > { %1926 = vmatpush3.bf16.msra.mxu1 %v2102_v23  ;;  %1905 = vmatprep.subr.bf16.mxu0 %v2103_v24  ;;  %v1750_v10 = vcombine.low %v204_v8, %v212_v9  ;;  %v1751_v11 = vcombine.high %v204_v8, %v212_v9  ;;  %v1752_v14 = vcombine.low %v205_v12, %v213_v13  ;;  %v2143_v16 = vld [vmem:[%s2678_s1 + $0x278] sm:$0xff]   ;;  %v2147_v20 = vld [vmem:[%s2678_s1 + $0x270] sm:$0xff]   ;;  %v2151_v24 = vld [vmem:[%s2678_s1 + $0x268] sm:$0xff]  }
  0x24   : > { %1927 = vmatprep.subr.bf16.mxu1 %v2104_v25  ;;  %v1753_v15 = vcombine.high %v205_v12, %v213_v13  ;;  %v2144_v17 = vld [vmem:[%s2678_s1 + $0x2f8] sm:$0xff]   ;;  %v2148_v21 = vld [vmem:[%s2678_s1 + $0x2f0] sm:$0xff]   ;;  %v2152_v25 = vld [vmem:[%s2678_s1 + $0x2e8] sm:$0xff]  }
  0x25   : > { %v2145_v18 = vld [vmem:[%s2678_s1 + $0x238] sm:$0xff]   ;;  %v2149_v22 = vld [vmem:[%s2678_s1 + $0x230] sm:$0xff]  }
  0x26   : > { %1906 = vmatpush3.bf16.msra.mxu0 %v2105_v26  ;;  %v2146_v19 = vld [vmem:[%s2678_s1 + $0x2b8] sm:$0xff]   ;;  %v2150_v23 = vld [vmem:[%s2678_s1 + $0x2b0] sm:$0xff]   ;;  %v2153_v26 = vld [vmem:[%s2678_s1 + $0x228] sm:$0xff]  }
  0x27   : > { %1928 = vmatpush3.bf16.msra.mxu1 %v2106_v27  ;;  %1907 = vmatprep.subr.bf16.mxu0 %v2107_v28  ;;  %v2154_v27 = vld [vmem:[%s2678_s1 + $0x2a8] sm:$0xff]   ;;  %v2155_v28 = vld [vmem:[%s2678_s1 + $0x260] sm:$0xff]   ;;  %v2159_v32 = vld [vmem:[%s2678_s1 + $0x258] sm:$0xff]  }
  0x28   : > { %1929 = vmatprep.subr.bf16.mxu1 %v2108_v29  ;;  %v2156_v29 = vld [vmem:[%s2678_s1 + $0x2e0] sm:$0xff]   ;;  %v2160_v33 = vld [vmem:[%s2678_s1 + $0x2d8] sm:$0xff]   ;;  %v2163_v36 = vld [vmem:[%s2678_s1 + $0x250] sm:$0xff]  }
  0x29   : > { %v2161_v34 = vld [vmem:[%s2678_s1 + $0x218] sm:$0xff]   ;;  %v2164_v37 = vld [vmem:[%s2678_s1 + $0x2d0] sm:$0xff]  }
  0x2a   : > { %1908 = vmatpush3.bf16.msra.mxu0 %v2109_v30  ;;  %v2157_v30 = vld [vmem:[%s2678_s1 + $0x220] sm:$0xff]   ;;  %v2166_v39 = vld [vmem:[%s2678_s1 + $0x290] sm:$0xff]   ;;  %v2191_v8 = vld [vmem:[%s2678_s1 + $0x358] sm:$0xff]  }
  0x2b   : > { %1930 = vmatpush3.bf16.msra.mxu1 %v2110_v31  ;;  %1937 = vmatprep.subr.bf16.mxu0 %v2111_v40  ;;  %v2158_v31 = vld [vmem:[%s2678_s1 + $0x2a0] sm:$0xff]   ;;  %v2167_v40 = vld [vmem:[%s2678_s1 + $0x248] sm:$0xff]   ;;  %v2192_v9 = vld [vmem:[%s2678_s1 + $0x3d8] sm:$0xff]  }
  0x2c   : > { %1959 = vmatprep.subr.bf16.mxu1 %v2112_v41  ;;  %v2168_v41 = vld [vmem:[%s2678_s1 + $0x2c8] sm:$0xff]   ;;  %v2195_v12 = vld [vmem:[%s2678_s1 + $0x350] sm:$0xff]  }
  0x2d   : > { %1362 = vmatmul.mubr.bf16.vlgmr.msra.gmra.mxu0 %v1746_v35  ;;  %v2162_v35 = vld [vmem:[%s2678_s1 + $0x298] sm:$0xff]   ;;  %v2196_v13 = vld [vmem:[%s2678_s1 + $0x3d0] sm:$0xff]  }
  0x2e   : > { %1403 = vmatmul.mubr.bf16.vlgmr.msra.gmra.mxu1 %v1748_v38  ;;  %1938 = vmatpush3.bf16.msra.mxu0 %v2113_v42  ;;  %v2165_v38 = vld [vmem:[%s2678_s1 + $0x210] sm:$0xff]   ;;  %v2169_v42 = vld [vmem:[%s2678_s1 + $0x208] sm:$0xff]  }
  0x2f   : > { %1960 = vmatpush3.bf16.msra.mxu1 %v2114_v43  ;;  %1939 = vmatprep.subr.bf16.mxu0 %v2115_v44  ;;  %v2170_v43 = vld [vmem:[%s2678_s1 + $0x288] sm:$0xff]   ;;  %v2171_v44 = vld [vmem:[%s2678_s1 + $0x240] sm:$0xff]  }
  0x30   : > { %1961 = vmatprep.subr.bf16.mxu1 %v2116_v45  ;;  %1443 = vmatprep.mubr.bf16.mxu0 %v1751_v11  ;;  %v2172_v45 = vld [vmem:[%s2678_s1 + $0x2c0] sm:$0xff]   ;;  %v2194_v11 = vld [vmem:[%s2678_s1 + $0x398] sm:$0xff]  }
  0x31   : > { %1484 = vmatprep.mubr.bf16.mxu1 %v1753_v15  ;;  %v2198_v15 = vld [vmem:[%s2678_s1 + $0x390] sm:$0xff]  }
  0x32   : > { %1940 = vmatpush3.bf16.msra.mxu0 %v2117_v46  ;;  %v2173_v46 = vld [vmem:[%s2678_s1 + $0x200] sm:$0xff]  }
  0x33   : > { %1962 = vmatpush3.bf16.msra.mxu1 %v2118_v47  ;;  %1941 = vmatprep.subr.bf16.mxu0 %v2119_v48  ;;  %v2174_v47 = vld [vmem:[%s2678_s1 + $0x280] sm:$0xff]  }
  0x34   : > { %1963 = vmatprep.subr.bf16.mxu1 %v2120_v49  ;;  %v206_v48 = vld [vmem:[%s2348_s8 + $0x20] sm:$0xff] }
  0x35   : > { %v214_v49 = vld [vmem:[%s2348_s8 + $0x60] sm:$0xff] }
  0x36   : > { %1942 = vmatpush3.bf16.msra.mxu0 %v2121_v50  ;;  %v207_v50 = vld [vmem:[%s2348_s8 + $0x28] sm:$0xff] }
  0x37   : > { %1964 = vmatpush3.bf16.msra.mxu1 %v2122_v51  ;;  %1943 = vmatprep.subr.bf16.mxu0 %v2123_v52  ;;  %v215_v51 = vld [vmem:[%s2348_s8 + $0x68] sm:$0xff]  ;;  %v1754_v52 = vcombine.low %v206_v48, %v214_v49 }
  0x38   : > { %1965 = vmatprep.subr.bf16.mxu1 %v2124_v53  ;;  %v1755_v53 = vcombine.high %v206_v48, %v214_v49  ;;  %v1745_v48 = vld [vmem:[%s2679_s2] ss:$0 sm:$0xff] }
  0x3a   : > { %1944 = vmatpush3.bf16.msra.mxu0 %v2125_v54  ;;  %v1756_v54 = vcombine.low %v207_v50, %v215_v51 }
  0x3b   : > { %1966 = vmatpush3.bf16.msra.mxu1 %v2126_v55  ;;  %1945 = vmatprep.subr.bf16.mxu0 %v2127_v56  ;;  %v1757_v55 = vcombine.high %v207_v50, %v215_v51  ;;  %v2175_v56 = vld [vmem:[%s2678_s1 + $0x378] sm:$0xff]  }
  0x3c   : > { %1967 = vmatprep.subr.bf16.mxu1 %v2128_v57  ;;  %v2176_v57 = vld [vmem:[%s2678_s1 + $0x3f8] sm:$0xff]  }
  0x3e   : > { %1946 = vmatpush3.bf16.msra.mxu0 %v2129_v58  ;;  %v2177_v58 = vld [vmem:[%s2678_s1 + $0x338] sm:$0xff]  }
  0x3f   : > { %1968 = vmatpush3.bf16.msra.mxu1 %v2130_v59  ;;  %1947 = vmatprep.subr.bf16.mxu0 %v2131_v60  ;;  %v2178_v59 = vld [vmem:[%s2678_s1 + $0x3b8] sm:$0xff]   ;;  %v2179_v60 = vld [vmem:[%s2678_s1 + $0x370] sm:$0xff]  }
  0x40   : > { %1969 = vmatprep.subr.bf16.mxu1 %v2132_v61  ;;  %v2180_v61 = vld [vmem:[%s2678_s1 + $0x3f0] sm:$0xff]  }
  0x42   : > { %1948 = vmatpush3.bf16.msra.mxu0 %v2133_v62  ;;  %v2181_v62 = vld [vmem:[%s2678_s1 + $0x330] sm:$0xff]  }
  0x43   : > { %1970 = vmatpush3.bf16.msra.mxu1 %v2134_v63  ;;  %1949 = vmatprep.subr.bf16.mxu0 %v2135_v0  ;;  %v2182_v63 = vld [vmem:[%s2678_s1 + $0x3b0] sm:$0xff]   ;;  %v2183_v0 = vld [vmem:[%s2678_s1 + $0x368] sm:$0xff]  }
  0x44   : > { %1971 = vmatprep.subr.bf16.mxu1 %v2136_v1  ;;  %v2184_v1 = vld [vmem:[%s2678_s1 + $0x3e8] sm:$0xff]  }
  0x46   : > { %1950 = vmatpush3.bf16.msra.mxu0 %v2137_v2  ;;  %v2185_v2 = vld [vmem:[%s2678_s1 + $0x328] sm:$0xff]  }
  0x47   : > { %1972 = vmatpush3.bf16.msra.mxu1 %v2138_v3  ;;  %1951 = vmatprep.subr.bf16.mxu0 %v2139_v4  ;;  %v2186_v3 = vld [vmem:[%s2678_s1 + $0x3a8] sm:$0xff]   ;;  %v2187_v4 = vld [vmem:[%s2678_s1 + $0x360] sm:$0xff]  }
  0x48   : > { %1973 = vmatprep.subr.bf16.mxu1 %v2140_v5  ;;  %v2188_v5 = vld [vmem:[%s2678_s1 + $0x3e0] sm:$0xff]  }
  0x4a   : > { %1952 = vmatpush3.bf16.msra.mxu0 %v2141_v6  ;;  %v2189_v6 = vld [vmem:[%s2678_s1 + $0x320] sm:$0xff]  }
  0x4b   : > { %1974 = vmatpush3.bf16.msra.mxu1 %v2142_v7  ;;  %1981 = vmatprep.subr.bf16.mxu0 %v2143_v16  ;;  %v2190_v7 = vld [vmem:[%s2678_s1 + $0x3a0] sm:$0xff]   ;;  %v2199_v16 = vld [vmem:[%s2678_s1 + $0x348] sm:$0xff]  }
  0x4c   : > { %2003 = vmatprep.subr.bf16.mxu1 %v2144_v17  ;;  %v2200_v17 = vld [vmem:[%s2678_s1 + $0x3c8] sm:$0xff]  }
  0x4d   : > { %1444 = vmatmul.mubr.bf16.vlgmr.msra.gmra.mxu0 %v1750_v10  ;;  %v2193_v10 = vld [vmem:[%s2678_s1 + $0x318] sm:$0xff]  }
  0x4e   : > { %1485 = vmatmul.mubr.bf16.vlgmr.msra.gmra.mxu1 %v1752_v14  ;;  %1982 = vmatpush3.bf16.msra.mxu0 %v2145_v18  ;;  %v2197_v14 = vld [vmem:[%s2678_s1 + $0x310] sm:$0xff]   ;;  %v2201_v18 = vld [vmem:[%s2678_s1 + $0x308] sm:$0xff]  }
  0x4f   : > { %2004 = vmatpush3.bf16.msra.mxu1 %v2146_v19  ;;  %1983 = vmatprep.subr.bf16.mxu0 %v2147_v20  ;;  %v2202_v19 = vld [vmem:[%s2678_s1 + $0x388] sm:$0xff]   ;;  %v2203_v20 = vld [vmem:[%s2678_s1 + $0x340] sm:$0xff]  }
  0x50   : > { %2005 = vmatprep.subr.bf16.mxu1 %v2148_v21  ;;  %1525 = vmatprep.mubr.bf16.mxu0 %v1755_v53  ;;  %v2204_v21 = vld [vmem:[%s2678_s1 + $0x3c0] sm:$0xff]  }
  0x51   : > { %1566 = vmatprep.mubr.bf16.mxu1 %v1757_v55 }
  0x52   : > { %1984 = vmatpush3.bf16.msra.mxu0 %v2149_v22  ;;  %v2205_v22 = vld [vmem:[%s2678_s1 + $0x300] sm:$0xff]  }
  0x53   : > { %2006 = vmatpush3.bf16.msra.mxu1 %v2150_v23  ;;  %1985 = vmatprep.subr.bf16.mxu0 %v2151_v24  ;;  %v2206_v23 = vld [vmem:[%s2678_s1 + $0x380] sm:$0xff]   ;;  %v208_v24 = vld [vmem:[%s2348_s8 + $0x30] sm:$0xff] }
  0x54   : > { %2007 = vmatprep.subr.bf16.mxu1 %v2152_v25  ;;  %v216_v25 = vld [vmem:[%s2348_s8 + $0x70] sm:$0xff] }
  0x56   : > { %1986 = vmatpush3.bf16.msra.mxu0 %v2153_v26  ;;  %v209_v26 = vld [vmem:[%s2348_s8 + $0x38] sm:$0xff] }
  0x57   : > { %2008 = vmatpush3.bf16.msra.mxu1 %v2154_v27  ;;  %1987 = vmatprep.subr.bf16.mxu0 %v2155_v28  ;;  %v1758_v27 = vcombine.low %v208_v24, %v216_v25  ;;  %v1759_v28 = vcombine.high %v208_v24, %v216_v25 }
  0x58   : > { %2009 = vmatprep.subr.bf16.mxu1 %v2156_v29  ;;  %v217_v29 = vld [vmem:[%s2348_s8 + $0x78] sm:$0xff] }
  0x5a   : > { %1988 = vmatpush3.bf16.msra.mxu0 %v2157_v30  ;;  %v1760_v30 = vcombine.low %v209_v26, %v217_v29 }
  0x5b   : > { %2010 = vmatpush3.bf16.msra.mxu1 %v2158_v31  ;;  %1989 = vmatprep.subr.bf16.mxu0 %v2159_v32  ;;  %v1761_v31 = vcombine.high %v209_v26, %v217_v29 }
  0x5c   : > { %2011 = vmatprep.subr.bf16.mxu1 %v2160_v33 }
  0x5e   : > { %1990 = vmatpush3.bf16.msra.mxu0 %v2161_v34 }
  0x5f   : > { %2012 = vmatpush3.bf16.msra.mxu1 %v2162_v35  ;;  %1991 = vmatprep.subr.bf16.mxu0 %v2163_v36 }
  0x60   : > { %2013 = vmatprep.subr.bf16.mxu1 %v2164_v37 }
  0x62   : > { %1992 = vmatpush3.bf16.msra.mxu0 %v2165_v38 }
  0x63   : > { %2014 = vmatpush3.bf16.msra.mxu1 %v2166_v39  ;;  %1993 = vmatprep.subr.bf16.mxu0 %v2167_v40 }
  0x64   : > { %2015 = vmatprep.subr.bf16.mxu1 %v2168_v41 }
  0x66   : > { %1994 = vmatpush3.bf16.msra.mxu0 %v2169_v42 }
  0x67   : > { %2016 = vmatpush3.bf16.msra.mxu1 %v2170_v43  ;;  %1995 = vmatprep.subr.bf16.mxu0 %v2171_v44 }
  0x68   : > { %2017 = vmatprep.subr.bf16.mxu1 %v2172_v45 }
  0x6a   : > { %1996 = vmatpush3.bf16.msra.mxu0 %v2173_v46 }
  0x6b   : > { %2018 = vmatpush3.bf16.msra.mxu1 %v2174_v47  ;;  %2025 = vmatprep.subr.bf16.mxu0 %v2175_v56 }
  0x6c   : > { %2047 = vmatprep.subr.bf16.mxu1 %v2176_v57 }
  0x6d   : > { %1526 = vmatmul.mubr.bf16.vlgmr.msra.gmra.mxu0 %v1754_v52 }
  0x6e   : > { %1567 = vmatmul.mubr.bf16.vlgmr.msra.gmra.mxu1 %v1756_v54  ;;  %2026 = vmatpush3.bf16.msra.mxu0 %v2177_v58 }
  0x6f   : > { %2048 = vmatpush3.bf16.msra.mxu1 %v2178_v59  ;;  %2027 = vmatprep.subr.bf16.mxu0 %v2179_v60 }
  0x70   : > { %2049 = vmatprep.subr.bf16.mxu1 %v2180_v61  ;;  %1607 = vmatprep.mubr.bf16.mxu0 %v1759_v28 }
  0x71   : > { %1648 = vmatprep.mubr.bf16.mxu1 %v1761_v31 }
  0x72   : > { %2028 = vmatpush3.bf16.msra.mxu0 %v2181_v62 }
  0x73   : > { %2050 = vmatpush3.bf16.msra.mxu1 %v2182_v63  ;;  %2029 = vmatprep.subr.bf16.mxu0 %v2183_v0 }
  0x74   : > { %2051 = vmatprep.subr.bf16.mxu1 %v2184_v1 }
  0x76   : > { %2030 = vmatpush3.bf16.msra.mxu0 %v2185_v2 }
  0x77   : > { %2052 = vmatpush3.bf16.msra.mxu1 %v2186_v3  ;;  %2031 = vmatprep.subr.bf16.mxu0 %v2187_v4 }
  0x78   : > { %2053 = vmatprep.subr.bf16.mxu1 %v2188_v5 }
  0x7a   : > { %2032 = vmatpush3.bf16.msra.mxu0 %v2189_v6 }
  0x7b   : > { %2054 = vmatpush3.bf16.msra.mxu1 %v2190_v7  ;;  %2033 = vmatprep.subr.bf16.mxu0 %v2191_v8 }
  0x7c   : > { %2055 = vmatprep.subr.bf16.mxu1 %v2192_v9 }
  0x7e   : > { %2034 = vmatpush3.bf16.msra.mxu0 %v2193_v10 }
  0x7f   : > { %2056 = vmatpush3.bf16.msra.mxu1 %v2194_v11  ;;  %2035 = vmatprep.subr.bf16.mxu0 %v2195_v12 }
  0x80   : > { %2057 = vmatprep.subr.bf16.mxu1 %v2196_v13 }
  0x82   : > { %2036 = vmatpush3.bf16.msra.mxu0 %v2197_v14 }
  0x83   : > { %2058 = vmatpush3.bf16.msra.mxu1 %v2198_v15  ;;  %2037 = vmatprep.subr.bf16.mxu0 %v2199_v16 }
  0x84   : > { %2059 = vmatprep.subr.bf16.mxu1 %v2200_v17 }
  0x86   : > { %2038 = vmatpush3.bf16.msra.mxu0 %v2201_v18 }
  0x87   : > { %2060 = vmatpush3.bf16.msra.mxu1 %v2202_v19  ;;  %2039 = vmatprep.subr.bf16.mxu0 %v2203_v20 }
  0x88   : > { %2061 = vmatprep.subr.bf16.mxu1 %v2204_v21 }
  0x8a   : > { %2040 = vmatpush3.bf16.msra.mxu0 %v2205_v22 }
  0x8b   : > { %2062 = vmatpush3.bf16.msra.mxu1 %v2206_v23 }
  0x8d   : > { %1608 = vmatmul.mubr.bf16.vlgmr.msra.gmra.mxu0 %v1758_v27 }
  0x8e   : > { %1649 = vmatmul.mubr.bf16.vlgmr.msra.gmra.mxu1 %v1760_v30 }
  0xed   : > { %v1909_v32 = vpop.f32.mrf.mxu0 }
  0xee   : > { %v1931_v33 = vpop.f32.mrf.mxu1 }
  0xef   : > { %v1910_v34 = vpop.f32.mrf.mxu0 }
  0xf0   : > { %v1932_v35 = vpop.f32.mrf.mxu1  ;;  %v1911_v47 = vadd.f32 %v1910_v34, %v1909_v32 }
  0xf1   : > { %v1912_v36 = vpop.f32.mrf.mxu0  ;;  %v1933_v52 = vadd.f32 %v1932_v35, %v1931_v33 }
  0xf2   : > { %v1934_v37 = vpop.f32.mrf.mxu1  ;;  %v1364_v51 = vadd.f32 %v1911_v47, %v1745_v48 }
  0xf3   : > { %v1913_v38 = vpop.f32.mrf.mxu0 }
  0xf4   : > { %v1935_v40 = vpop.f32.mrf.mxu1  ;;  %v1914_v53 = vadd.f32 %v1913_v38, %v1912_v36  ;;  %v1405_v57 = vadd.f32 %v1933_v52, %v1364_v51  ;;  %v1661_v36 = vld [vmem:[%s2680_s3] sm:$0xff] }
  0xf5   : > { %v1936_v61 = vadd.f32 %v1935_v40, %v1934_v37  ;;  %v1662_v37 = vld [vmem:[%s2680_s3 + $0x8] sm:$0xff] }
  0xf6   : > { %v1367_v58 = vadd.f32 %v1914_v53, %v1745_v48 }
  0xf8   : > { %v1408_v1 = vadd.f32 %v1936_v61, %v1367_v58 }
 0x10d   : > { %v1953_v39 = vpop.f32.mrf.mxu0 }
 0x10e   : > { %v1975_v41 = vpop.f32.mrf.mxu1 }
 0x10f   : > { %v1954_v42 = vpop.f32.mrf.mxu0 }
 0x110   : > { %v1976_v43 = vpop.f32.mrf.mxu1  ;;  %v1955_v56 = vadd.f32 %v1954_v42, %v1953_v39 }
 0x111   : > { %v1956_v44 = vpop.f32.mrf.mxu0  ;;  %v1977_v63 = vadd.f32 %v1976_v43, %v1975_v41 }
 0x112   : > { %v1978_v45 = vpop.f32.mrf.mxu1  ;;  %v1446_v62 = vadd.f32 %v1955_v56, %v1405_v57 }
 0x113   : > { %v1957_v46 = vpop.f32.mrf.mxu0 }
 0x114   : > { %v1979_v50 = vpop.f32.mrf.mxu1  ;;  %v1958_v0 = vadd.f32 %v1957_v46, %v1956_v44  ;;  %v1487_v5 = vadd.f32 %v1977_v63, %v1446_v62 }
 0x115   : > { %v1980_v7 = vadd.f32 %v1979_v50, %v1978_v45 }
 0x116   : > { %v1449_v6 = vadd.f32 %v1958_v0, %v1408_v1 }
 0x118   : > { %v1490_v13 = vadd.f32 %v1980_v7, %v1449_v6 }
 0x12d   : > { %v1997_v49 = vpop.f32.mrf.mxu0 }
 0x12e   : > { %v2019_v54 = vpop.f32.mrf.mxu1 }
 0x12f   : > { %v1998_v55 = vpop.f32.mrf.mxu0 }
 0x130   : > { %v2020_v59 = vpop.f32.mrf.mxu1  ;;  %v1999_v2 = vadd.f32 %v1998_v55, %v1997_v49 }
 0x131   : > { %v2000_v60 = vpop.f32.mrf.mxu0  ;;  %v2021_v9 = vadd.f32 %v2020_v59, %v2019_v54 }
 0x132   : > { %v2022_v3 = vpop.f32.mrf.mxu1  ;;  %v1528_v8 = vadd.f32 %v1999_v2, %v1487_v5 }
 0x133   : > { %v2001_v4 = vpop.f32.mrf.mxu0 }
 0x134   : > { %v2002_v10 = vadd.f32 %v2001_v4, %v2000_v60  ;;  %v2023_v11 = vpop.f32.mrf.mxu1  ;;  %v1569_v16 = vadd.f32 %v2021_v9, %v1528_v8 }
 0x135   : > { %v2024_v21 = vadd.f32 %v2023_v11, %v2022_v3 }
 0x136   : > { %v1531_v17 = vadd.f32 %v2002_v10, %v1490_v13 }
 0x138   : > { %v1572_v26 = vadd.f32 %v2024_v21, %v1531_v17 }
 0x14d   : > { %v2041_v12 = vpop.f32.mrf.mxu0 }
 0x14e   : > { %v2063_v14 = vpop.f32.mrf.mxu1 }
 0x14f   : > { %v2042_v15 = vpop.f32.mrf.mxu0 }
 0x150   : > { %v2043_v18 = vadd.f32 %v2042_v15, %v2041_v12  ;;  %v2064_v19 = vpop.f32.mrf.mxu1 }
 0x151   : > { %v2044_v20 = vpop.f32.mrf.mxu0  ;;  %v2065_v23 = vadd.f32 %v2064_v19, %v2063_v14 }
 0x152   : > { %v1610_v22 = vadd.f32 %v2043_v18, %v1569_v16  ;;  %v2066_v24 = vpop.f32.mrf.mxu1 }
 0x153   : > { %v2045_v25 = vpop.f32.mrf.mxu0 }
 0x154   : > { %v1651_v27 = vadd.f32 %v2065_v23, %v1610_v22  ;;  %v2046_v28 = vadd.f32 %v2045_v25, %v2044_v20  ;;  %v2067_v29 = vpop.f32.mrf.mxu1 }
 0x155   : > { %v2068_v32 = vadd.f32 %v2067_v29, %v2066_v24 }
 0x156   : > { %v1657_v30 = vmul.f32 0.2, %v1651_v27  ;;  %v1613_v31 = vadd.f32 %v2046_v28, %v1572_v26 }
 0x158   : > { %v1654_v33 = vadd.f32 %v2068_v32, %v1613_v31  ;;  %v1659_v35 = vmax.f32 %v1651_v27, %v1657_v30 }
 0x15a   : > { %v1658_v34 = vmul.f32 0.2, %v1654_v33  ;;  %v1663_v39 = vmul.f32 %v1661_v36, %v1659_v35 }
 0x15c   : > { %v1660_v38 = vmax.f32 %v1654_v33, %v1658_v34 }
 0x15e   : > { %v1664_v40 = vmul.f32 %v1662_v37, %v1660_v38 }
 0x160   : > { %v1665_v41 = vadd.f32 %v1664_v40, %v1663_v39 }
 0x162   : > { %1666 = vadd.xlane.f32.xlu0 %v1665_v41 }
 0x1eb   : > { %v1667_v42 = vpop.xlane.xlu0 %1666 }
 0x1ec   : > { %v1668_v43 = vrot.slane %v1667_v42, 4 }
 0x1ee   : > { %v1669_v44 = vadd.f32 %v1668_v43, %v1667_v42 }
 0x1f0   : > { %v1670_v45 = vrot.slane %v1669_v44, 2 }
 0x1f2   : > { %v1671_v46 = vadd.f32 %v1670_v45, %v1669_v44 }
 0x1f4   : > { %v1672_v47 = vrot.slane %v1671_v46, 1 }
 0x1f6   : > { %v1673_v48 = vadd.f32 %v1672_v47, %v1671_v46 }
 0x1f8   : > { %2069 = vpush %v1673_v48 }
 0x229   : > { %s2070_s28 = spop %2069 }
 0x22a   : > { %v1675_v49 = vstv %s2070_s28 }
 0x22b   : > { %v1676_v50 = vsub.f32 0.0, %v1675_v49 }
 0x22d   : > { %v1677_v51 = vmul.f32 1.442695, %v1676_v50 }
 0x22f   : > { %2207 = vpow2.f32 %v1677_v51 }
 0x23c   : > { %v2208_v52 = vpop.eup %2207 }
 0x23d   : > { %v1679_v53 = vadd.f32 1.0, %v2208_v52 }
 0x23f   : > { %2209 = vrcp.f32 %v1679_v53 }
 0x24c   : > { %v2210_v54 = vpop.eup %2209 }
 0x24d   : > { %1682 = vst [vmem:[%s200_s6] sm:$0xff] %v2210_v54 }
 0x24e PF: > { %s14_s15 = sadd.s32 1, %s2217_s15  }
 0x24f   : > { %p11_p5 = scmp.ge.s32.totalorder %s14_s15, 4  }
 0x251   :  { %13 = sbr.rel (!%p11_p5) target bundleno = 1 (0x1), region = 66 }

</bundles_post_ra>
